<compile_context>
chip_gen: v7x
topology: tpu7x:2x2x1
jax: 0.10.0
libtpu: 0.0.40
codegen_flags: <defaults>
</compile_context>

<pallas_src>
import functools

import jax
import jax.numpy as jnp
from jax.experimental import pallas as pl
from jax.experimental.pallas import tpu as pltpu


# ----------------------------- fused Pallas kernel -----------------------------

def gate4_fused_kernel(
    x_cur_ref, aux1_ref, aux2_ref, aux3_ref,          # per-batch activations
    wtaps_ref, scale_ref, bias_ref,                    # 5 convs: taps + folded BN
    ca_w1_ref, ca_w2t_ref, w7_ref,                     # channel attn, stacked 7x7 SA taps
    dw1_ref, db1_ref, dw2_ref, db2_ref, dw3_ref, db3_ref,   # collapsed downconvs
    o_ref,                                             # output (H, W, C)
    cpad_ref, spad_ref,                                # VMEM scratch (conv / SA halos)
    *, H, W, C, P):
    f32 = jnp.float32
    bf16 = jnp.bfloat16
    Q = 3                                # 7x7 spatial-attention padding
    Wp, Wq = W + 2 * P, W + 2 * Q

    # Zero only the halo borders of the pad scratches; the interiors are always
    # fully overwritten before each use. (Done every grid step so it is safe
    # when the batch grid is sharded across TensorCores.)
    cpad_ref[0:P, :, :] = jnp.zeros((P, Wp, C), f32)
    cpad_ref[P + H:P + H + P, :, :] = jnp.zeros((P, Wp, C), f32)
    cpad_ref[P:P + H, 0:P, :] = jnp.zeros((H, P, C), f32)
    cpad_ref[P:P + H, P + W:P + W + P, :] = jnp.zeros((H, P, C), f32)

    spad_ref[0:Q, :, :] = jnp.zeros((Q, Wq, 4), f32)
    spad_ref[Q + H:Q + H + Q, :, :] = jnp.zeros((Q, Wq, 4), f32)
    spad_ref[Q:Q + H, 0:Q, :] = jnp.zeros((H, Q, 4), f32)
    spad_ref[Q:Q + H, Q + W:Q + W + Q, :] = jnp.zeros((H, Q, 4), f32)

    def basic_conv(x_f32, idx, d):
        # 3x3 conv (dilation=d, padding=d, no conv bias) + folded BN + ReLU.
        cpad_ref[P:P + H, P:P + W, :] = x_f32
        base = P - d
        acc = jnp.zeros((H * W, C), f32)
        for kh in range(3):
            for kw in range(3):
                win = cpad_ref[base + kh * d:base + kh * d + H,
                               base + kw * d:base + kw * d + W, :]
                acc = acc + jnp.dot(win.reshape(H * W, C).astype(bf16),
                                    wtaps_ref[idx, kh * 3 + kw],
                                    preferred_element_type=f32)
        y = jnp.maximum(acc * scale_ref[idx] + bias_ref[idx], 0.0)
        return y.reshape(H, W, C)

    def down_branch(aux_ref, dw_ref, db_ref):
        # Collapsed chain of stride-2 1x1 convs: one matmul + folded bias.
        d_in = aux_ref.shape[-1]
        xs = aux_ref[...].reshape(H * W, d_in).astype(bf16)
        y = jnp.dot(xs, dw_ref[...], preferred_element_type=f32) + db_ref[...]
        return y.reshape(H, W, d_in)

    # ---- current-scale conv chain ----
    x_cur = x_cur_ref[...]
    x1 = basic_conv(x_cur, 0, 1)
    x2 = basic_conv(x1, 1, 2)
    x3 = basic_conv(x2, 2, 3)
    x4 = basic_conv(x3, 3, 4)
    x_all = basic_conv(x4, 4, 1)                       # x_cur_all (H, W, C) f32

    # ---- channel attention (global max pool -> fc1 -> relu -> fc2 -> sigmoid) ----
    m = jnp.max(jnp.max(x_all, axis=0), axis=0, keepdims=True)                  # (1, C)
    h1 = jnp.maximum(jnp.sum(m * ca_w1_ref[...], axis=1, keepdims=True), 0.0)   # (C1, 1)
    ca = jax.nn.sigmoid(jnp.sum(h1 * ca_w2t_ref[...], axis=0, keepdims=True))   # (1, C)

    # ---- 4 spatial attentions, fused into one 7x7 pass ----
    # Channel-max maps stacked on the lane axis:
    #   ch 0: channel-attended current feature; ch 1..3: aux down branches.
    m0 = jnp.max(x_all * ca.reshape(1, 1, C), axis=2, keepdims=True)
    m1 = jnp.max(down_branch(aux1_ref, dw1_ref, db1_ref), axis=2, keepdims=True)
    m2 = jnp.max(down_branch(aux2_ref, dw2_ref, db2_ref), axis=2, keepdims=True)
    m3 = jnp.max(down_branch(aux3_ref, dw3_ref, db3_ref), axis=2, keepdims=True)
    spad_ref[Q:Q + H, Q:Q + W, :] = jnp.concatenate([m0, m1, m2, m3], axis=2)

    acc = jnp.zeros((H, W, 4), f32)
    for kh in range(7):
        for kw in range(7):
            acc = acc + spad_ref[kh:kh + H, kw:kw + W, :] * w7_ref[kh * 7 + kw]
    att = jax.nn.sigmoid(acc)                          # (H, W, 4)
    sa = att[:, :, 0:1]                                # cur_all_sa
    w1 = att[:, :, 1:2]
    w2 = att[:, :, 2:3]
    w3 = att[:, :, 3:4]

    # ---- fusion (same op ordering as the PyTorch module) ----
    aux1 = x_all * w1
    aux2 = x_all * w2
    aux3 = x_all * w3
    aux_fusion = aux1 + aux2 + aux3
    weight = 1.0 - sa
    cur_all_sa_or = x_all * sa
    aux_fusion2 = weight * aux_fusion
    aux_fusion = aux_fusion + aux_fusion2 + cur_all_sa_or
    o_ref[...] = aux_fusion + x_cur


# ----------------------------- pallas_call wrapper -----------------------------

def _gate4_pallas(params, x_cur, a1, a2, a3):
    B, H, W, C = x_cur.shape
    d0, d1, d2 = a1.shape[-1], a2.shape[-1], a3.shape[-1]
    C1 = params["ca_w1"].shape[0]
    P = 4                                     # max dilation -> shared conv halo

    kern = functools.partial(gate4_fused_kernel, H=H, W=W, C=C, P=P)

    def bspec(c):
        return pl.BlockSpec((None, H, W, c), lambda b: (b, 0, 0, 0))

    def wspec(shape):
        zeros = (0,) * len(shape)
        return pl.BlockSpec(shape, lambda b: zeros)

    return pl.pallas_call(
        kern,
        out_shape=jax.ShapeDtypeStruct((B, H, W, C), jnp.float32),
        grid=(B,),
        in_specs=[
            bspec(C), bspec(d0), bspec(d1), bspec(d2),
            wspec((5, 9, C, C)),                     # conv taps (bf16)
            wspec((5, 1, C)), wspec((5, 1, C)),      # folded BN scale / bias
            wspec((C1, C)), wspec((C1, C)),          # channel attention weights
            wspec((49, 4)),                          # stacked 7x7 SA taps
            wspec((d0, d0)), wspec((1, d0)),         # collapsed downconv 1
            wspec((d1, d1)), wspec((1, d1)),         # collapsed downconv 2
            wspec((d2, d2)), wspec((1, d2)),         # collapsed downconv 3
        ],
        out_specs=pl.BlockSpec((None, H, W, C), lambda b: (b, 0, 0, 0)),
        scratch_shapes=[
            pltpu.VMEM((H + 2 * P, W + 2 * P, C), jnp.float32),   # conv halo buffer
            pltpu.VMEM((H + 6, W + 6, 4), jnp.float32),           # stacked SA halo buffer
        ],
        compiler_params=pltpu.CompilerParams(
            dimension_semantics=("parallel",)),
    )(x_cur, a1, a2, a3,
      params["wtaps"], params["scale"], params["bias"],
      params["ca_w1"], params["ca_w2t"], params["w7"],
      params["dw1"], params["db1"], params["dw2"], params["db2"],
      params["dw3"], params["db3"])


# ----------------------------- parameters & forward -----------------------------

def init_gate4_params(key, C, dims):
    keys = iter(jax.random.split(key, 64))
    nxt = lambda: next(keys)

    # 5 BasicConv2d blocks: conv 3x3 (no bias) + BN folded to eval-mode scale/bias.
    wtaps, scales, biases = [], [], []
    for _ in range(5):
        w = 0.1 * jax.random.normal(nxt(), (C, C, 3, 3), jnp.float32)
        gamma = 1.0 + 0.1 * jax.random.normal(nxt(), (C,), jnp.float32)
        beta = 0.1 * jax.random.normal(nxt(), (C,), jnp.float32)
        mean = 0.1 * jax.random.normal(nxt(), (C,), jnp.float32)
        var = 1.0 + 0.1 * jax.random.uniform(nxt(), (C,), jnp.float32)
        s = gamma / jnp.sqrt(var + 1e-5)
        b = beta - mean * s
        # (Cout, Cin, 3, 3) -> per-tap (9, Cin, Cout)
        wtaps.append(jnp.transpose(w, (2, 3, 1, 0)).reshape(9, C, C))
        scales.append(s.reshape(1, C))
        biases.append(b.reshape(1, C))
    params = {
        "wtaps": jnp.stack(wtaps).astype(jnp.bfloat16),   # (5, 9, C, C)
        "scale": jnp.stack(scales),                        # (5, 1, C)
        "bias": jnp.stack(biases),                         # (5, 1, C)
    }

    # Channel attention (1x1 convs, bias=False).
    C1 = max(C // 16, 1)
    fc1 = 0.1 * jax.random.normal(nxt(), (C1, C), jnp.float32)   # fc1.weight
    fc2 = 0.1 * jax.random.normal(nxt(), (C, C1), jnp.float32)   # fc2.weight
    params["ca_w1"] = fc1
    params["ca_w2t"] = fc2.T                                     # (C1, C)

    # 4 spatial-attention 7x7 convs (bias=False), stacked on the lane axis:
    # order = [cur_all_sa, sa1, sa2, sa3] -> (49, 4).
    w7 = 0.05 * jax.random.normal(nxt(), (4, 7, 7), jnp.float32)
    params["w7"] = w7.reshape(4, 49).T                           # (49, 4)

    # Stride-2 1x1 downconvs (with bias), algebraically collapsed per branch:
    #   y[i,j] = (Wn..W1) x[s*i, s*j] + folded bias.
    def conv1x1(c):
        w = 0.1 * jax.random.normal(nxt(), (c, c), jnp.float32)   # (Cout, Cin)
        b = 0.05 * jax.random.normal(nxt(), (c,), jnp.float32)
        return w, b

    def collapse(layers):
        Wf, bf = layers[0]
        for Wk, bk in layers[1:]:
            bf = Wk @ bf + bk
            Wf = Wk @ Wf
        return Wf.T.astype(jnp.bfloat16), bf.reshape(1, -1)       # NHWC matmul form

    params["dw1"], params["db1"] = collapse([conv1x1(dims[0]) for _ in range(3)])
    params["dw2"], params["db2"] = collapse([conv1x1(dims[1]) for _ in range(2)])
    params["dw3"], params["db3"] = collapse([conv1x1(dims[2])])
    return params


def gate4_forward(params, x_cur, aux_1, aux_2, aux_3):
    # Inputs are NCHW (PyTorch convention); compute runs in NHWC.
    to_nhwc = lambda t: jnp.transpose(t, (0, 2, 3, 1)).astype(jnp.float32)
    x = to_nhwc(x_cur)
    # The chained stride-2 1x1 convs only ever read input pixels on a stride
    # 8 / 4 / 2 grid; the matmuls themselves are folded into one per branch.
    a1 = to_nhwc(aux_1)[:, ::8, ::8, :]
    a2 = to_nhwc(aux_2)[:, ::4, ::4, :]
    a3 = to_nhwc(aux_3)[:, ::2, ::2, :]
    out = _gate4_pallas(params, x, a1, a2, a3)
    return jnp.transpose(out, (0, 3, 1, 2))                       # back to NCHW


if __name__ == "__main__":
    key = jax.random.PRNGKey(0)
    C = 32                     # cur_channel (>= 16 for ChannelAttention ratio)
    dims = [8, 12, 16, C]      # small synthetic dims for the aux branches
    B, H, W = 2, 8, 8

    kp, k1, k2, k3, k4 = jax.random.split(key, 5)
    params = init_gate4_params(kp, C, dims)
    x_cur = jax.random.normal(k1, (B, C, H, W), jnp.float32)
    aux_1 = jax.random.normal(k2, (B, dims[0], H * 8, W * 8), jnp.float32)
    aux_2 = jax.random.normal(k3, (B, dims[1], H * 4, W * 4), jnp.float32)
    aux_3 = jax.random.normal(k4, (B, dims[2], H * 2, W * 2), jnp.float32)

    out = jax.jit(gate4_forward)(params, x_cur, aux_1, aux_2, aux_3)
    jax.block_until_ready(out)
    assert out.shape == (B, C, H, W) and out.dtype == jnp.float32
    print("KERNEL_OK")
</pallas_src>

<mosaic_0001>
module attributes {stable_mosaic.version = 11 : i64} {
  func.func @gate4_fused_kernel(%arg0: i32, %arg1: memref<1x8x8x32xf32, #tpu.memory_space<vmem>>, %arg2: memref<1x8x8x8xf32, #tpu.memory_space<vmem>>, %arg3: memref<1x8x8x12xf32, #tpu.memory_space<vmem>>, %arg4: memref<1x8x8x16xf32, #tpu.memory_space<vmem>>, %arg5: memref<5x9x32x32xbf16, #tpu.memory_space<vmem>>, %arg6: memref<5x1x32xf32, #tpu.memory_space<vmem>>, %arg7: memref<5x1x32xf32, #tpu.memory_space<vmem>>, %arg8: memref<2x32xf32, #tpu.memory_space<vmem>>, %arg9: memref<2x32xf32, #tpu.memory_space<vmem>>, %arg10: memref<49x4xf32, #tpu.memory_space<vmem>>, %arg11: memref<8x8xbf16, #tpu.memory_space<vmem>>, %arg12: memref<1x8xf32, #tpu.memory_space<vmem>>, %arg13: memref<12x12xbf16, #tpu.memory_space<vmem>>, %arg14: memref<1x12xf32, #tpu.memory_space<vmem>>, %arg15: memref<16x16xbf16, #tpu.memory_space<vmem>>, %arg16: memref<1x16xf32, #tpu.memory_space<vmem>>, %arg17: memref<1x8x8x32xf32, #tpu.memory_space<vmem>>, %arg18: memref<16x16x32xf32, #tpu.memory_space<vmem>>, %arg19: memref<14x14x4xf32, #tpu.memory_space<vmem>>) attributes {dimension_semantics = [#tpu.dimension_semantics<parallel>], iteration_bounds = array<i64: 2>, scalar_prefetch = 0 : i64, scratch_operands = 2 : i64, tpu.core_type = #tpu.core_type<tc>, window_params = [{transform_indices = @transform_0, window_bounds = array<i64: 1, 8, 8, 32>}, {transform_indices = @transform_1, window_bounds = array<i64: 1, 8, 8, 8>}, {transform_indices = @transform_2, window_bounds = array<i64: 1, 8, 8, 12>}, {transform_indices = @transform_3, window_bounds = array<i64: 1, 8, 8, 16>}, {pipeline_mode = #tpu.pipeline_mode<synchronous>, transform_indices = @transform_4, window_bounds = array<i64: 5, 9, 32, 32>}, {pipeline_mode = #tpu.pipeline_mode<synchronous>, transform_indices = @transform_5, window_bounds = array<i64: 5, 1, 32>}, {pipeline_mode = #tpu.pipeline_mode<synchronous>, transform_indices = @transform_6, window_bounds = array<i64: 5, 1, 32>}, {pipeline_mode = #tpu.pipeline_mode<synchronous>, transform_indices = @transform_7, window_bounds = array<i64: 2, 32>}, {pipeline_mode = #tpu.pipeline_mode<synchronous>, transform_indices = @transform_8, window_bounds = array<i64: 2, 32>}, {pipeline_mode = #tpu.pipeline_mode<synchronous>, transform_indices = @transform_9, window_bounds = array<i64: 49, 4>}, {pipeline_mode = #tpu.pipeline_mode<synchronous>, transform_indices = @transform_10, window_bounds = array<i64: 8, 8>}, {pipeline_mode = #tpu.pipeline_mode<synchronous>, transform_indices = @transform_11, window_bounds = array<i64: 1, 8>}, {pipeline_mode = #tpu.pipeline_mode<synchronous>, transform_indices = @transform_12, window_bounds = array<i64: 12, 12>}, {pipeline_mode = #tpu.pipeline_mode<synchronous>, transform_indices = @transform_13, window_bounds = array<i64: 1, 12>}, {pipeline_mode = #tpu.pipeline_mode<synchronous>, transform_indices = @transform_14, window_bounds = array<i64: 16, 16>}, {pipeline_mode = #tpu.pipeline_mode<synchronous>, transform_indices = @transform_15, window_bounds = array<i64: 1, 16>}, {transform_indices = @transform_16, window_bounds = array<i64: 1, 8, 8, 32>}]} {
    %cst = arith.constant 0.000000e+00 : f32
    %0 = vector.broadcast %cst : f32 to vector<4x16x32xf32>
    %c0 = arith.constant 0 : index
    %c0_0 = arith.constant 0 : index
    %c0_1 = arith.constant 0 : index
    %1 = vector.load %arg18[%c0, %c0_0, %c0_1] : memref<16x16x32xf32, #tpu.memory_space<vmem>>, vector<4x16x32xf32>
    tpu.vector_store %arg18[%c0, %c0_0, %c0_1], %0 {strides = array<i32>} : memref<16x16x32xf32, #tpu.memory_space<vmem>>, vector<4x16x32xf32>,
    %cst_2 = arith.constant 0.000000e+00 : f32
    %2 = vector.broadcast %cst_2 : f32 to vector<4x16x32xf32>
    %c12 = arith.constant 12 : index
    %c0_3 = arith.constant 0 : index
    %c0_4 = arith.constant 0 : index
    %3 = vector.load %arg18[%c12, %c0_3, %c0_4] : memref<16x16x32xf32, #tpu.memory_space<vmem>>, vector<4x16x32xf32>
    tpu.vector_store %arg18[%c12, %c0_3, %c0_4], %2 {strides = array<i32>} : memref<16x16x32xf32, #tpu.memory_space<vmem>>, vector<4x16x32xf32>,
    %cst_5 = arith.constant 0.000000e+00 : f32
    %4 = vector.broadcast %cst_5 : f32 to vector<8x4x32xf32>
    %c4 = arith.constant 4 : index
    %c0_6 = arith.constant 0 : index
    %c0_7 = arith.constant 0 : index
    %5 = vector.load %arg18[%c4, %c0_6, %c0_7] : memref<16x16x32xf32, #tpu.memory_space<vmem>>, vector<8x4x32xf32>
    tpu.vector_store %arg18[%c4, %c0_6, %c0_7], %4 {strides = array<i32>} : memref<16x16x32xf32, #tpu.memory_space<vmem>>, vector<8x4x32xf32>,
    %cst_8 = arith.constant 0.000000e+00 : f32
    %6 = vector.broadcast %cst_8 : f32 to vector<8x4x32xf32>
    %c4_9 = arith.constant 4 : index
    %c12_10 = arith.constant 12 : index
    %c0_11 = arith.constant 0 : index
    %7 = vector.load %arg18[%c4_9, %c12_10, %c0_11] : memref<16x16x32xf32, #tpu.memory_space<vmem>>, vector<8x4x32xf32>
    tpu.vector_store %arg18[%c4_9, %c12_10, %c0_11], %6 {strides = array<i32>} : memref<16x16x32xf32, #tpu.memory_space<vmem>>, vector<8x4x32xf32>,
    %cst_12 = arith.constant 0.000000e+00 : f32
    %8 = vector.broadcast %cst_12 : f32 to vector<3x14x4xf32>
    %c0_13 = arith.constant 0 : index
    %c0_14 = arith.constant 0 : index
    %c0_15 = arith.constant 0 : index
    %9 = vector.load %arg19[%c0_13, %c0_14, %c0_15] : memref<14x14x4xf32, #tpu.memory_space<vmem>>, vector<3x14x4xf32>
    tpu.vector_store %arg19[%c0_13, %c0_14, %c0_15], %8 {strides = array<i32>} : memref<14x14x4xf32, #tpu.memory_space<vmem>>, vector<3x14x4xf32>,
    %cst_16 = arith.constant 0.000000e+00 : f32
    %10 = vector.broadcast %cst_16 : f32 to vector<3x14x4xf32>
    %c11 = arith.constant 11 : index
    %c0_17 = arith.constant 0 : index
    %c0_18 = arith.constant 0 : index
    %11 = vector.load %arg19[%c11, %c0_17, %c0_18] : memref<14x14x4xf32, #tpu.memory_space<vmem>>, vector<3x14x4xf32>
    tpu.vector_store %arg19[%c11, %c0_17, %c0_18], %10 {strides = array<i32>} : memref<14x14x4xf32, #tpu.memory_space<vmem>>, vector<3x14x4xf32>,
    %cst_19 = arith.constant 0.000000e+00 : f32
    %12 = vector.broadcast %cst_19 : f32 to vector<8x3x4xf32>
    %c3 = arith.constant 3 : index
    %c0_20 = arith.constant 0 : index
    %c0_21 = arith.constant 0 : index
    %13 = vector.load %arg19[%c3, %c0_20, %c0_21] : memref<14x14x4xf32, #tpu.memory_space<vmem>>, vector<8x3x4xf32>
    tpu.vector_store %arg19[%c3, %c0_20, %c0_21], %12 {strides = array<i32>} : memref<14x14x4xf32, #tpu.memory_space<vmem>>, vector<8x3x4xf32>,
    %cst_22 = arith.constant 0.000000e+00 : f32
    %14 = vector.broadcast %cst_22 : f32 to vector<8x3x4xf32>
    %c3_23 = arith.constant 3 : index
    %c11_24 = arith.constant 11 : index
    %c0_25 = arith.constant 0 : index
    %15 = vector.load %arg19[%c3_23, %c11_24, %c0_25] : memref<14x14x4xf32, #tpu.memory_space<vmem>>, vector<8x3x4xf32>
    tpu.vector_store %arg19[%c3_23, %c11_24, %c0_25], %14 {strides = array<i32>} : memref<14x14x4xf32, #tpu.memory_space<vmem>>, vector<8x3x4xf32>,
    %c0_26 = arith.constant 0 : index
    %c0_27 = arith.constant 0 : index
    %c0_28 = arith.constant 0 : index
    %c0_29 = arith.constant 0 : index
    %16 = vector.load %arg1[%c0_26, %c0_27, %c0_28, %c0_29] : memref<1x8x8x32xf32, #tpu.memory_space<vmem>>, vector<1x8x8x32xf32>
    %17 = vector.shape_cast %16 : vector<1x8x8x32xf32> to vector<8x8x32xf32>
    %c4_30 = arith.constant 4 : index
    %c4_31 = arith.constant 4 : index
    %c0_32 = arith.constant 0 : index
    %18 = vector.load %arg18[%c4_30, %c4_31, %c0_32] : memref<16x16x32xf32, #tpu.memory_space<vmem>>, vector<8x8x32xf32>
    tpu.vector_store %arg18[%c4_30, %c4_31, %c0_32], %17 {strides = array<i32>} : memref<16x16x32xf32, #tpu.memory_space<vmem>>, vector<8x8x32xf32>,
    %cst_33 = arith.constant 0.000000e+00 : f32
    %19 = vector.broadcast %cst_33 : f32 to vector<64x32xf32>
    %c3_34 = arith.constant 3 : index
    %c3_35 = arith.constant 3 : index
    %c0_36 = arith.constant 0 : index
    %20 = vector.load %arg18[%c3_34, %c3_35, %c0_36] : memref<16x16x32xf32, #tpu.memory_space<vmem>>, vector<8x8x32xf32>
    %21 = vector.shape_cast %20 : vector<8x8x32xf32> to vector<64x32xf32>
    %22 = arith.truncf %21 : vector<64x32xf32> to vector<64x32xbf16>
    %c0_37 = arith.constant 0 : index
    %c0_38 = arith.constant 0 : index
    %c0_39 = arith.constant 0 : index
    %c0_40 = arith.constant 0 : index
    %23 = vector.load %arg5[%c0_37, %c0_38, %c0_39, %c0_40] : memref<5x9x32x32xbf16, #tpu.memory_space<vmem>>, vector<1x1x32x32xbf16>
    %24 = vector.shape_cast %23 : vector<1x1x32x32xbf16> to vector<32x32xbf16>
    %cst_41 = arith.constant dense<0.000000e+00> : vector<64x32xf32>
    %25 = tpu.matmul %22, %24, %cst_41 {dimension_numbers = #tpu.dot_dimension_numbers<[1], [0], [0], [1], [0, 0, 1, 1], [], []>} : vector<64x32xbf16>, vector<32x32xbf16>, vector<64x32xf32> -> vector<64x32xf32>
    %26 = arith.addf %19, %25 : vector<64x32xf32>
    %c3_42 = arith.constant 3 : index
    %c4_43 = arith.constant 4 : index
    %c0_44 = arith.constant 0 : index
    %27 = vector.load %arg18[%c3_42, %c4_43, %c0_44] : memref<16x16x32xf32, #tpu.memory_space<vmem>>, vector<8x8x32xf32>
    %28 = vector.shape_cast %27 : vector<8x8x32xf32> to vector<64x32xf32>
    %29 = arith.truncf %28 : vector<64x32xf32> to vector<64x32xbf16>
    %c0_45 = arith.constant 0 : index
    %c1 = arith.constant 1 : index
    %c0_46 = arith.constant 0 : index
    %c0_47 = arith.constant 0 : index
    %30 = vector.load %arg5[%c0_45, %c1, %c0_46, %c0_47] : memref<5x9x32x32xbf16, #tpu.memory_space<vmem>>, vector<1x1x32x32xbf16>
    %31 = vector.shape_cast %30 : vector<1x1x32x32xbf16> to vector<32x32xbf16>
    %cst_48 = arith.constant dense<0.000000e+00> : vector<64x32xf32>
    %32 = tpu.matmul %29, %31, %cst_48 {dimension_numbers = #tpu.dot_dimension_numbers<[1], [0], [0], [1], [0, 0, 1, 1], [], []>} : vector<64x32xbf16>, vector<32x32xbf16>, vector<64x32xf32> -> vector<64x32xf32>
    %33 = arith.addf %26, %32 : vector<64x32xf32>
    %c3_49 = arith.constant 3 : index
    %c5 = arith.constant 5 : index
    %c0_50 = arith.constant 0 : index
    %34 = vector.load %arg18[%c3_49, %c5, %c0_50] : memref<16x16x32xf32, #tpu.memory_space<vmem>>, vector<8x8x32xf32>
    %35 = vector.shape_cast %34 : vector<8x8x32xf32> to vector<64x32xf32>
    %36 = arith.truncf %35 : vector<64x32xf32> to vector<64x32xbf16>
    %c0_51 = arith.constant 0 : index
    %c2 = arith.constant 2 : index
    %c0_52 = arith.constant 0 : index
    %c0_53 = arith.constant 0 : index
    %37 = vector.load %arg5[%c0_51, %c2, %c0_52, %c0_53] : memref<5x9x32x32xbf16, #tpu.memory_space<vmem>>, vector<1x1x32x32xbf16>
    %38 = vector.shape_cast %37 : vector<1x1x32x32xbf16> to vector<32x32xbf16>
    %cst_54 = arith.constant dense<0.000000e+00> : vector<64x32xf32>
    %39 = tpu.matmul %36, %38, %cst_54 {dimension_numbers = #tpu.dot_dimension_numbers<[1], [0], [0], [1], [0, 0, 1, 1], [], []>} : vector<64x32xbf16>, vector<32x32xbf16>, vector<64x32xf32> -> vector<64x32xf32>
    %40 = arith.addf %33, %39 : vector<64x32xf32>
    %c4_55 = arith.constant 4 : index
    %c3_56 = arith.constant 3 : index
    %c0_57 = arith.constant 0 : index
    %41 = vector.load %arg18[%c4_55, %c3_56, %c0_57] : memref<16x16x32xf32, #tpu.memory_space<vmem>>, vector<8x8x32xf32>
    %42 = vector.shape_cast %41 : vector<8x8x32xf32> to vector<64x32xf32>
    %43 = arith.truncf %42 : vector<64x32xf32> to vector<64x32xbf16>
    %c0_58 = arith.constant 0 : index
    %c3_59 = arith.constant 3 : index
    %c0_60 = arith.constant 0 : index
    %c0_61 = arith.constant 0 : index
    %44 = vector.load %arg5[%c0_58, %c3_59, %c0_60, %c0_61] : memref<5x9x32x32xbf16, #tpu.memory_space<vmem>>, vector<1x1x32x32xbf16>
    %45 = vector.shape_cast %44 : vector<1x1x32x32xbf16> to vector<32x32xbf16>
    %cst_62 = arith.constant dense<0.000000e+00> : vector<64x32xf32>
    %46 = tpu.matmul %43, %45, %cst_62 {dimension_numbers = #tpu.dot_dimension_numbers<[1], [0], [0], [1], [0, 0, 1, 1], [], []>} : vector<64x32xbf16>, vector<32x32xbf16>, vector<64x32xf32> -> vector<64x32xf32>
    %47 = arith.addf %40, %46 : vector<64x32xf32>
    %c4_63 = arith.constant 4 : index
    %c4_64 = arith.constant 4 : index
    %c0_65 = arith.constant 0 : index
    %48 = vector.load %arg18[%c4_63, %c4_64, %c0_65] : memref<16x16x32xf32, #tpu.memory_space<vmem>>, vector<8x8x32xf32>
    %49 = vector.shape_cast %48 : vector<8x8x32xf32> to vector<64x32xf32>
    %50 = arith.truncf %49 : vector<64x32xf32> to vector<64x32xbf16>
    %c0_66 = arith.constant 0 : index
    %c4_67 = arith.constant 4 : index
    %c0_68 = arith.constant 0 : index
    %c0_69 = arith.constant 0 : index
    %51 = vector.load %arg5[%c0_66, %c4_67, %c0_68, %c0_69] : memref<5x9x32x32xbf16, #tpu.memory_space<vmem>>, vector<1x1x32x32xbf16>
    %52 = vector.shape_cast %51 : vector<1x1x32x32xbf16> to vector<32x32xbf16>
    %cst_70 = arith.constant dense<0.000000e+00> : vector<64x32xf32>
    %53 = tpu.matmul %50, %52, %cst_70 {dimension_numbers = #tpu.dot_dimension_numbers<[1], [0], [0], [1], [0, 0, 1, 1], [], []>} : vector<64x32xbf16>, vector<32x32xbf16>, vector<64x32xf32> -> vector<64x32xf32>
    %54 = arith.addf %47, %53 : vector<64x32xf32>
    %c4_71 = arith.constant 4 : index
    %c5_72 = arith.constant 5 : index
    %c0_73 = arith.constant 0 : index
    %55 = vector.load %arg18[%c4_71, %c5_72, %c0_73] : memref<16x16x32xf32, #tpu.memory_space<vmem>>, vector<8x8x32xf32>
    %56 = vector.shape_cast %55 : vector<8x8x32xf32> to vector<64x32xf32>
    %57 = arith.truncf %56 : vector<64x32xf32> to vector<64x32xbf16>
    %c0_74 = arith.constant 0 : index
    %c5_75 = arith.constant 5 : index
    %c0_76 = arith.constant 0 : index
    %c0_77 = arith.constant 0 : index
    %58 = vector.load %arg5[%c0_74, %c5_75, %c0_76, %c0_77] : memref<5x9x32x32xbf16, #tpu.memory_space<vmem>>, vector<1x1x32x32xbf16>
    %59 = vector.shape_cast %58 : vector<1x1x32x32xbf16> to vector<32x32xbf16>
    %cst_78 = arith.constant dense<0.000000e+00> : vector<64x32xf32>
    %60 = tpu.matmul %57, %59, %cst_78 {dimension_numbers = #tpu.dot_dimension_numbers<[1], [0], [0], [1], [0, 0, 1, 1], [], []>} : vector<64x32xbf16>, vector<32x32xbf16>, vector<64x32xf32> -> vector<64x32xf32>
    %61 = arith.addf %54, %60 : vector<64x32xf32>
    %c5_79 = arith.constant 5 : index
    %c3_80 = arith.constant 3 : index
    %c0_81 = arith.constant 0 : index
    %62 = vector.load %arg18[%c5_79, %c3_80, %c0_81] : memref<16x16x32xf32, #tpu.memory_space<vmem>>, vector<8x8x32xf32>
    %63 = vector.shape_cast %62 : vector<8x8x32xf32> to vector<64x32xf32>
    %64 = arith.truncf %63 : vector<64x32xf32> to vector<64x32xbf16>
    %c0_82 = arith.constant 0 : index
    %c6 = arith.constant 6 : index
    %c0_83 = arith.constant 0 : index
    %c0_84 = arith.constant 0 : index
    %65 = vector.load %arg5[%c0_82, %c6, %c0_83, %c0_84] : memref<5x9x32x32xbf16, #tpu.memory_space<vmem>>, vector<1x1x32x32xbf16>
    %66 = vector.shape_cast %65 : vector<1x1x32x32xbf16> to vector<32x32xbf16>
    %cst_85 = arith.constant dense<0.000000e+00> : vector<64x32xf32>
    %67 = tpu.matmul %64, %66, %cst_85 {dimension_numbers = #tpu.dot_dimension_numbers<[1], [0], [0], [1], [0, 0, 1, 1], [], []>} : vector<64x32xbf16>, vector<32x32xbf16>, vector<64x32xf32> -> vector<64x32xf32>
    %68 = arith.addf %61, %67 : vector<64x32xf32>
    %c5_86 = arith.constant 5 : index
    %c4_87 = arith.constant 4 : index
    %c0_88 = arith.constant 0 : index
    %69 = vector.load %arg18[%c5_86, %c4_87, %c0_88] : memref<16x16x32xf32, #tpu.memory_space<vmem>>, vector<8x8x32xf32>
    %70 = vector.shape_cast %69 : vector<8x8x32xf32> to vector<64x32xf32>
    %71 = arith.truncf %70 : vector<64x32xf32> to vector<64x32xbf16>
    %c0_89 = arith.constant 0 : index
    %c7 = arith.constant 7 : index
    %c0_90 = arith.constant 0 : index
    %c0_91 = arith.constant 0 : index
    %72 = vector.load %arg5[%c0_89, %c7, %c0_90, %c0_91] : memref<5x9x32x32xbf16, #tpu.memory_space<vmem>>, vector<1x1x32x32xbf16>
    %73 = vector.shape_cast %72 : vector<1x1x32x32xbf16> to vector<32x32xbf16>
    %cst_92 = arith.constant dense<0.000000e+00> : vector<64x32xf32>
    %74 = tpu.matmul %71, %73, %cst_92 {dimension_numbers = #tpu.dot_dimension_numbers<[1], [0], [0], [1], [0, 0, 1, 1], [], []>} : vector<64x32xbf16>, vector<32x32xbf16>, vector<64x32xf32> -> vector<64x32xf32>
    %75 = arith.addf %68, %74 : vector<64x32xf32>
    %c5_93 = arith.constant 5 : index
    %c5_94 = arith.constant 5 : index
    %c0_95 = arith.constant 0 : index
    %76 = vector.load %arg18[%c5_93, %c5_94, %c0_95] : memref<16x16x32xf32, #tpu.memory_space<vmem>>, vector<8x8x32xf32>
    %77 = vector.shape_cast %76 : vector<8x8x32xf32> to vector<64x32xf32>
    %78 = arith.truncf %77 : vector<64x32xf32> to vector<64x32xbf16>
    %c0_96 = arith.constant 0 : index
    %c8 = arith.constant 8 : index
    %c0_97 = arith.constant 0 : index
    %c0_98 = arith.constant 0 : index
    %79 = vector.load %arg5[%c0_96, %c8, %c0_97, %c0_98] : memref<5x9x32x32xbf16, #tpu.memory_space<vmem>>, vector<1x1x32x32xbf16>
    %80 = vector.shape_cast %79 : vector<1x1x32x32xbf16> to vector<32x32xbf16>
    %cst_99 = arith.constant dense<0.000000e+00> : vector<64x32xf32>
    %81 = tpu.matmul %78, %80, %cst_99 {dimension_numbers = #tpu.dot_dimension_numbers<[1], [0], [0], [1], [0, 0, 1, 1], [], []>} : vector<64x32xbf16>, vector<32x32xbf16>, vector<64x32xf32> -> vector<64x32xf32>
    %82 = arith.addf %75, %81 : vector<64x32xf32>
    %c0_100 = arith.constant 0 : index
    %c0_101 = arith.constant 0 : index
    %c0_102 = arith.constant 0 : index
    %83 = vector.load %arg6[%c0_100, %c0_101, %c0_102] : memref<5x1x32xf32, #tpu.memory_space<vmem>>, vector<1x1x32xf32>
    %84 = vector.shape_cast %83 : vector<1x1x32xf32> to vector<1x32xf32>
    %85 = vector.broadcast %84 : vector<1x32xf32> to vector<64x32xf32>
    %86 = arith.mulf %82, %85 : vector<64x32xf32>
    %c0_103 = arith.constant 0 : index
    %c0_104 = arith.constant 0 : index
    %c0_105 = arith.constant 0 : index
    %87 = vector.load %arg7[%c0_103, %c0_104, %c0_105] : memref<5x1x32xf32, #tpu.memory_space<vmem>>, vector<1x1x32xf32>
    %88 = vector.shape_cast %87 : vector<1x1x32xf32> to vector<1x32xf32>
    %89 = vector.broadcast %88 : vector<1x32xf32> to vector<64x32xf32>
    %90 = arith.addf %86, %89 : vector<64x32xf32>
    %cst_106 = arith.constant 0.000000e+00 : f32
    %91 = vector.broadcast %cst_106 : f32 to vector<64x32xf32>
    %92 = arith.maximumf %90, %91 : vector<64x32xf32>
    %93 = vector.shape_cast %92 : vector<64x32xf32> to vector<8x8x32xf32>
    %c4_107 = arith.constant 4 : index
    %c4_108 = arith.constant 4 : index
    %c0_109 = arith.constant 0 : index
    %94 = vector.load %arg18[%c4_107, %c4_108, %c0_109] : memref<16x16x32xf32, #tpu.memory_space<vmem>>, vector<8x8x32xf32>
    tpu.vector_store %arg18[%c4_107, %c4_108, %c0_109], %93 {strides = array<i32>} : memref<16x16x32xf32, #tpu.memory_space<vmem>>, vector<8x8x32xf32>,
    %cst_110 = arith.constant 0.000000e+00 : f32
    %95 = vector.broadcast %cst_110 : f32 to vector<64x32xf32>
    %c2_111 = arith.constant 2 : index
    %c2_112 = arith.constant 2 : index
    %c0_113 = arith.constant 0 : index
    %96 = vector.load %arg18[%c2_111, %c2_112, %c0_113] : memref<16x16x32xf32, #tpu.memory_space<vmem>>, vector<8x8x32xf32>
    %97 = vector.shape_cast %96 : vector<8x8x32xf32> to vector<64x32xf32>
    %98 = arith.truncf %97 : vector<64x32xf32> to vector<64x32xbf16>
    %c1_114 = arith.constant 1 : index
    %c0_115 = arith.constant 0 : index
    %c0_116 = arith.constant 0 : index
    %c0_117 = arith.constant 0 : index
    %99 = vector.load %arg5[%c1_114, %c0_115, %c0_116, %c0_117] : memref<5x9x32x32xbf16, #tpu.memory_space<vmem>>, vector<1x1x32x32xbf16>
    %100 = vector.shape_cast %99 : vector<1x1x32x32xbf16> to vector<32x32xbf16>
    %cst_118 = arith.constant dense<0.000000e+00> : vector<64x32xf32>
    %101 = tpu.matmul %98, %100, %cst_118 {dimension_numbers = #tpu.dot_dimension_numbers<[1], [0], [0], [1], [0, 0, 1, 1], [], []>} : vector<64x32xbf16>, vector<32x32xbf16>, vector<64x32xf32> -> vector<64x32xf32>
    %102 = arith.addf %95, %101 : vector<64x32xf32>
    %c2_119 = arith.constant 2 : index
    %c4_120 = arith.constant 4 : index
    %c0_121 = arith.constant 0 : index
    %103 = vector.load %arg18[%c2_119, %c4_120, %c0_121] : memref<16x16x32xf32, #tpu.memory_space<vmem>>, vector<8x8x32xf32>
    %104 = vector.shape_cast %103 : vector<8x8x32xf32> to vector<64x32xf32>
    %105 = arith.truncf %104 : vector<64x32xf32> to vector<64x32xbf16>
    %c1_122 = arith.constant 1 : index
    %c1_123 = arith.constant 1 : index
    %c0_124 = arith.constant 0 : index
    %c0_125 = arith.constant 0 : index
    %106 = vector.load %arg5[%c1_122, %c1_123, %c0_124, %c0_125] : memref<5x9x32x32xbf16, #tpu.memory_space<vmem>>, vector<1x1x32x32xbf16>
    %107 = vector.shape_cast %106 : vector<1x1x32x32xbf16> to vector<32x32xbf16>
    %cst_126 = arith.constant dense<0.000000e+00> : vector<64x32xf32>
    %108 = tpu.matmul %105, %107, %cst_126 {dimension_numbers = #tpu.dot_dimension_numbers<[1], [0], [0], [1], [0, 0, 1, 1], [], []>} : vector<64x32xbf16>, vector<32x32xbf16>, vector<64x32xf32> -> vector<64x32xf32>
    %109 = arith.addf %102, %108 : vector<64x32xf32>
    %c2_127 = arith.constant 2 : index
    %c6_128 = arith.constant 6 : index
    %c0_129 = arith.constant 0 : index
    %110 = vector.load %arg18[%c2_127, %c6_128, %c0_129] : memref<16x16x32xf32, #tpu.memory_space<vmem>>, vector<8x8x32xf32>
    %111 = vector.shape_cast %110 : vector<8x8x32xf32> to vector<64x32xf32>
    %112 = arith.truncf %111 : vector<64x32xf32> to vector<64x32xbf16>
    %c1_130 = arith.constant 1 : index
    %c2_131 = arith.constant 2 : index
    %c0_132 = arith.constant 0 : index
    %c0_133 = arith.constant 0 : index
    %113 = vector.load %arg5[%c1_130, %c2_131, %c0_132, %c0_133] : memref<5x9x32x32xbf16, #tpu.memory_space<vmem>>, vector<1x1x32x32xbf16>
    %114 = vector.shape_cast %113 : vector<1x1x32x32xbf16> to vector<32x32xbf16>
    %cst_134 = arith.constant dense<0.000000e+00> : vector<64x32xf32>
    %115 = tpu.matmul %112, %114, %cst_134 {dimension_numbers = #tpu.dot_dimension_numbers<[1], [0], [0], [1], [0, 0, 1, 1], [], []>} : vector<64x32xbf16>, vector<32x32xbf16>, vector<64x32xf32> -> vector<64x32xf32>
    %116 = arith.addf %109, %115 : vector<64x32xf32>
    %c4_135 = arith.constant 4 : index
    %c2_136 = arith.constant 2 : index
    %c0_137 = arith.constant 0 : index
    %117 = vector.load %arg18[%c4_135, %c2_136, %c0_137] : memref<16x16x32xf32, #tpu.memory_space<vmem>>, vector<8x8x32xf32>
    %118 = vector.shape_cast %117 : vector<8x8x32xf32> to vector<64x32xf32>
    %119 = arith.truncf %118 : vector<64x32xf32> to vector<64x32xbf16>
    %c1_138 = arith.constant 1 : index
    %c3_139 = arith.constant 3 : index
    %c0_140 = arith.constant 0 : index
    %c0_141 = arith.constant 0 : index
    %120 = vector.load %arg5[%c1_138, %c3_139, %c0_140, %c0_141] : memref<5x9x32x32xbf16, #tpu.memory_space<vmem>>, vector<1x1x32x32xbf16>
    %121 = vector.shape_cast %120 : vector<1x1x32x32xbf16> to vector<32x32xbf16>
    %cst_142 = arith.constant dense<0.000000e+00> : vector<64x32xf32>
    %122 = tpu.matmul %119, %121, %cst_142 {dimension_numbers = #tpu.dot_dimension_numbers<[1], [0], [0], [1], [0, 0, 1, 1], [], []>} : vector<64x32xbf16>, vector<32x32xbf16>, vector<64x32xf32> -> vector<64x32xf32>
    %123 = arith.addf %116, %122 : vector<64x32xf32>
    %c4_143 = arith.constant 4 : index
    %c4_144 = arith.constant 4 : index
    %c0_145 = arith.constant 0 : index
    %124 = vector.load %arg18[%c4_143, %c4_144, %c0_145] : memref<16x16x32xf32, #tpu.memory_space<vmem>>, vector<8x8x32xf32>
    %125 = vector.shape_cast %124 : vector<8x8x32xf32> to vector<64x32xf32>
    %126 = arith.truncf %125 : vector<64x32xf32> to vector<64x32xbf16>
    %c1_146 = arith.constant 1 : index
    %c4_147 = arith.constant 4 : index
    %c0_148 = arith.constant 0 : index
    %c0_149 = arith.constant 0 : index
    %127 = vector.load %arg5[%c1_146, %c4_147, %c0_148, %c0_149] : memref<5x9x32x32xbf16, #tpu.memory_space<vmem>>, vector<1x1x32x32xbf16>
    %128 = vector.shape_cast %127 : vector<1x1x32x32xbf16> to vector<32x32xbf16>
    %cst_150 = arith.constant dense<0.000000e+00> : vector<64x32xf32>
    %129 = tpu.matmul %126, %128, %cst_150 {dimension_numbers = #tpu.dot_dimension_numbers<[1], [0], [0], [1], [0, 0, 1, 1], [], []>} : vector<64x32xbf16>, vector<32x32xbf16>, vector<64x32xf32> -> vector<64x32xf32>
    %130 = arith.addf %123, %129 : vector<64x32xf32>
    %c4_151 = arith.constant 4 : index
    %c6_152 = arith.constant 6 : index
    %c0_153 = arith.constant 0 : index
    %131 = vector.load %arg18[%c4_151, %c6_152, %c0_153] : memref<16x16x32xf32, #tpu.memory_space<vmem>>, vector<8x8x32xf32>
    %132 = vector.shape_cast %131 : vector<8x8x32xf32> to vector<64x32xf32>
    %133 = arith.truncf %132 : vector<64x32xf32> to vector<64x32xbf16>
    %c1_154 = arith.constant 1 : index
    %c5_155 = arith.constant 5 : index
    %c0_156 = arith.constant 0 : index
    %c0_157 = arith.constant 0 : index
    %134 = vector.load %arg5[%c1_154, %c5_155, %c0_156, %c0_157] : memref<5x9x32x32xbf16, #tpu.memory_space<vmem>>, vector<1x1x32x32xbf16>
    %135 = vector.shape_cast %134 : vector<1x1x32x32xbf16> to vector<32x32xbf16>
    %cst_158 = arith.constant dense<0.000000e+00> : vector<64x32xf32>
    %136 = tpu.matmul %133, %135, %cst_158 {dimension_numbers = #tpu.dot_dimension_numbers<[1], [0], [0], [1], [0, 0, 1, 1], [], []>} : vector<64x32xbf16>, vector<32x32xbf16>, vector<64x32xf32> -> vector<64x32xf32>
    %137 = arith.addf %130, %136 : vector<64x32xf32>
    %c6_159 = arith.constant 6 : index
    %c2_160 = arith.constant 2 : index
    %c0_161 = arith.constant 0 : index
    %138 = vector.load %arg18[%c6_159, %c2_160, %c0_161] : memref<16x16x32xf32, #tpu.memory_space<vmem>>, vector<8x8x32xf32>
    %139 = vector.shape_cast %138 : vector<8x8x32xf32> to vector<64x32xf32>
    %140 = arith.truncf %139 : vector<64x32xf32> to vector<64x32xbf16>
    %c1_162 = arith.constant 1 : index
    %c6_163 = arith.constant 6 : index
    %c0_164 = arith.constant 0 : index
    %c0_165 = arith.constant 0 : index
    %141 = vector.load %arg5[%c1_162, %c6_163, %c0_164, %c0_165] : memref<5x9x32x32xbf16, #tpu.memory_space<vmem>>, vector<1x1x32x32xbf16>
    %142 = vector.shape_cast %141 : vector<1x1x32x32xbf16> to vector<32x32xbf16>
    %cst_166 = arith.constant dense<0.000000e+00> : vector<64x32xf32>
    %143 = tpu.matmul %140, %142, %cst_166 {dimension_numbers = #tpu.dot_dimension_numbers<[1], [0], [0], [1], [0, 0, 1, 1], [], []>} : vector<64x32xbf16>, vector<32x32xbf16>, vector<64x32xf32> -> vector<64x32xf32>
    %144 = arith.addf %137, %143 : vector<64x32xf32>
    %c6_167 = arith.constant 6 : index
    %c4_168 = arith.constant 4 : index
    %c0_169 = arith.constant 0 : index
    %145 = vector.load %arg18[%c6_167, %c4_168, %c0_169] : memref<16x16x32xf32, #tpu.memory_space<vmem>>, vector<8x8x32xf32>
    %146 = vector.shape_cast %145 : vector<8x8x32xf32> to vector<64x32xf32>
    %147 = arith.truncf %146 : vector<64x32xf32> to vector<64x32xbf16>
    %c1_170 = arith.constant 1 : index
    %c7_171 = arith.constant 7 : index
    %c0_172 = arith.constant 0 : index
    %c0_173 = arith.constant 0 : index
    %148 = vector.load %arg5[%c1_170, %c7_171, %c0_172, %c0_173] : memref<5x9x32x32xbf16, #tpu.memory_space<vmem>>, vector<1x1x32x32xbf16>
    %149 = vector.shape_cast %148 : vector<1x1x32x32xbf16> to vector<32x32xbf16>
    %cst_174 = arith.constant dense<0.000000e+00> : vector<64x32xf32>
    %150 = tpu.matmul %147, %149, %cst_174 {dimension_numbers = #tpu.dot_dimension_numbers<[1], [0], [0], [1], [0, 0, 1, 1], [], []>} : vector<64x32xbf16>, vector<32x32xbf16>, vector<64x32xf32> -> vector<64x32xf32>
    %151 = arith.addf %144, %150 : vector<64x32xf32>
    %c6_175 = arith.constant 6 : index
    %c6_176 = arith.constant 6 : index
    %c0_177 = arith.constant 0 : index
    %152 = vector.load %arg18[%c6_175, %c6_176, %c0_177] : memref<16x16x32xf32, #tpu.memory_space<vmem>>, vector<8x8x32xf32>
    %153 = vector.shape_cast %152 : vector<8x8x32xf32> to vector<64x32xf32>
    %154 = arith.truncf %153 : vector<64x32xf32> to vector<64x32xbf16>
    %c1_178 = arith.constant 1 : index
    %c8_179 = arith.constant 8 : index
    %c0_180 = arith.constant 0 : index
    %c0_181 = arith.constant 0 : index
    %155 = vector.load %arg5[%c1_178, %c8_179, %c0_180, %c0_181] : memref<5x9x32x32xbf16, #tpu.memory_space<vmem>>, vector<1x1x32x32xbf16>
    %156 = vector.shape_cast %155 : vector<1x1x32x32xbf16> to vector<32x32xbf16>
    %cst_182 = arith.constant dense<0.000000e+00> : vector<64x32xf32>
    %157 = tpu.matmul %154, %156, %cst_182 {dimension_numbers = #tpu.dot_dimension_numbers<[1], [0], [0], [1], [0, 0, 1, 1], [], []>} : vector<64x32xbf16>, vector<32x32xbf16>, vector<64x32xf32> -> vector<64x32xf32>
    %158 = arith.addf %151, %157 : vector<64x32xf32>
    %c1_183 = arith.constant 1 : index
    %c0_184 = arith.constant 0 : index
    %c0_185 = arith.constant 0 : index
    %159 = vector.load %arg6[%c1_183, %c0_184, %c0_185] : memref<5x1x32xf32, #tpu.memory_space<vmem>>, vector<1x1x32xf32>
    %160 = vector.shape_cast %159 : vector<1x1x32xf32> to vector<1x32xf32>
    %161 = vector.broadcast %160 : vector<1x32xf32> to vector<64x32xf32>
    %162 = arith.mulf %158, %161 : vector<64x32xf32>
    %c1_186 = arith.constant 1 : index
    %c0_187 = arith.constant 0 : index
    %c0_188 = arith.constant 0 : index
    %163 = vector.load %arg7[%c1_186, %c0_187, %c0_188] : memref<5x1x32xf32, #tpu.memory_space<vmem>>, vector<1x1x32xf32>
    %164 = vector.shape_cast %163 : vector<1x1x32xf32> to vector<1x32xf32>
    %165 = vector.broadcast %164 : vector<1x32xf32> to vector<64x32xf32>
    %166 = arith.addf %162, %165 : vector<64x32xf32>
    %cst_189 = arith.constant 0.000000e+00 : f32
    %167 = vector.broadcast %cst_189 : f32 to vector<64x32xf32>
    %168 = arith.maximumf %166, %167 : vector<64x32xf32>
    %169 = vector.shape_cast %168 : vector<64x32xf32> to vector<8x8x32xf32>
    %c4_190 = arith.constant 4 : index
    %c4_191 = arith.constant 4 : index
    %c0_192 = arith.constant 0 : index
    %170 = vector.load %arg18[%c4_190, %c4_191, %c0_192] : memref<16x16x32xf32, #tpu.memory_space<vmem>>, vector<8x8x32xf32>
    tpu.vector_store %arg18[%c4_190, %c4_191, %c0_192], %169 {strides = array<i32>} : memref<16x16x32xf32, #tpu.memory_space<vmem>>, vector<8x8x32xf32>,
    %cst_193 = arith.constant 0.000000e+00 : f32
    %171 = vector.broadcast %cst_193 : f32 to vector<64x32xf32>
    %c1_194 = arith.constant 1 : index
    %c1_195 = arith.constant 1 : index
    %c0_196 = arith.constant 0 : index
    %172 = vector.load %arg18[%c1_194, %c1_195, %c0_196] : memref<16x16x32xf32, #tpu.memory_space<vmem>>, vector<8x8x32xf32>
    %173 = vector.shape_cast %172 : vector<8x8x32xf32> to vector<64x32xf32>
    %174 = arith.truncf %173 : vector<64x32xf32> to vector<64x32xbf16>
    %c2_197 = arith.constant 2 : index
    %c0_198 = arith.constant 0 : index
    %c0_199 = arith.constant 0 : index
    %c0_200 = arith.constant 0 : index
    %175 = vector.load %arg5[%c2_197, %c0_198, %c0_199, %c0_200] : memref<5x9x32x32xbf16, #tpu.memory_space<vmem>>, vector<1x1x32x32xbf16>
    %176 = vector.shape_cast %175 : vector<1x1x32x32xbf16> to vector<32x32xbf16>
    %cst_201 = arith.constant dense<0.000000e+00> : vector<64x32xf32>
    %177 = tpu.matmul %174, %176, %cst_201 {dimension_numbers = #tpu.dot_dimension_numbers<[1], [0], [0], [1], [0, 0, 1, 1], [], []>} : vector<64x32xbf16>, vector<32x32xbf16>, vector<64x32xf32> -> vector<64x32xf32>
    %178 = arith.addf %171, %177 : vector<64x32xf32>
    %c1_202 = arith.constant 1 : index
    %c4_203 = arith.constant 4 : index
    %c0_204 = arith.constant 0 : index
    %179 = vector.load %arg18[%c1_202, %c4_203, %c0_204] : memref<16x16x32xf32, #tpu.memory_space<vmem>>, vector<8x8x32xf32>
    %180 = vector.shape_cast %179 : vector<8x8x32xf32> to vector<64x32xf32>
    %181 = arith.truncf %180 : vector<64x32xf32> to vector<64x32xbf16>
    %c2_205 = arith.constant 2 : index
    %c1_206 = arith.constant 1 : index
    %c0_207 = arith.constant 0 : index
    %c0_208 = arith.constant 0 : index
    %182 = vector.load %arg5[%c2_205, %c1_206, %c0_207, %c0_208] : memref<5x9x32x32xbf16, #tpu.memory_space<vmem>>, vector<1x1x32x32xbf16>
    %183 = vector.shape_cast %182 : vector<1x1x32x32xbf16> to vector<32x32xbf16>
    %cst_209 = arith.constant dense<0.000000e+00> : vector<64x32xf32>
    %184 = tpu.matmul %181, %183, %cst_209 {dimension_numbers = #tpu.dot_dimension_numbers<[1], [0], [0], [1], [0, 0, 1, 1], [], []>} : vector<64x32xbf16>, vector<32x32xbf16>, vector<64x32xf32> -> vector<64x32xf32>
    %185 = arith.addf %178, %184 : vector<64x32xf32>
    %c1_210 = arith.constant 1 : index
    %c7_211 = arith.constant 7 : index
    %c0_212 = arith.constant 0 : index
    %186 = vector.load %arg18[%c1_210, %c7_211, %c0_212] : memref<16x16x32xf32, #tpu.memory_space<vmem>>, vector<8x8x32xf32>
    %187 = vector.shape_cast %186 : vector<8x8x32xf32> to vector<64x32xf32>
    %188 = arith.truncf %187 : vector<64x32xf32> to vector<64x32xbf16>
    %c2_213 = arith.constant 2 : index
    %c2_214 = arith.constant 2 : index
    %c0_215 = arith.constant 0 : index
    %c0_216 = arith.constant 0 : index
    %189 = vector.load %arg5[%c2_213, %c2_214, %c0_215, %c0_216] : memref<5x9x32x32xbf16, #tpu.memory_space<vmem>>, vector<1x1x32x32xbf16>
    %190 = vector.shape_cast %189 : vector<1x1x32x32xbf16> to vector<32x32xbf16>
    %cst_217 = arith.constant dense<0.000000e+00> : vector<64x32xf32>
    %191 = tpu.matmul %188, %190, %cst_217 {dimension_numbers = #tpu.dot_dimension_numbers<[1], [0], [0], [1], [0, 0, 1, 1], [], []>} : vector<64x32xbf16>, vector<32x32xbf16>, vector<64x32xf32> -> vector<64x32xf32>
    %192 = arith.addf %185, %191 : vector<64x32xf32>
    %c4_218 = arith.constant 4 : index
    %c1_219 = arith.constant 1 : index
    %c0_220 = arith.constant 0 : index
    %193 = vector.load %arg18[%c4_218, %c1_219, %c0_220] : memref<16x16x32xf32, #tpu.memory_space<vmem>>, vector<8x8x32xf32>
    %194 = vector.shape_cast %193 : vector<8x8x32xf32> to vector<64x32xf32>
    %195 = arith.truncf %194 : vector<64x32xf32> to vector<64x32xbf16>
    %c2_221 = arith.constant 2 : index
    %c3_222 = arith.constant 3 : index
    %c0_223 = arith.constant 0 : index
    %c0_224 = arith.constant 0 : index
    %196 = vector.load %arg5[%c2_221, %c3_222, %c0_223, %c0_224] : memref<5x9x32x32xbf16, #tpu.memory_space<vmem>>, vector<1x1x32x32xbf16>
    %197 = vector.shape_cast %196 : vector<1x1x32x32xbf16> to vector<32x32xbf16>
    %cst_225 = arith.constant dense<0.000000e+00> : vector<64x32xf32>
    %198 = tpu.matmul %195, %197, %cst_225 {dimension_numbers = #tpu.dot_dimension_numbers<[1], [0], [0], [1], [0, 0, 1, 1], [], []>} : vector<64x32xbf16>, vector<32x32xbf16>, vector<64x32xf32> -> vector<64x32xf32>
    %199 = arith.addf %192, %198 : vector<64x32xf32>
    %c4_226 = arith.constant 4 : index
    %c4_227 = arith.constant 4 : index
    %c0_228 = arith.constant 0 : index
    %200 = vector.load %arg18[%c4_226, %c4_227, %c0_228] : memref<16x16x32xf32, #tpu.memory_space<vmem>>, vector<8x8x32xf32>
    %201 = vector.shape_cast %200 : vector<8x8x32xf32> to vector<64x32xf32>
    %202 = arith.truncf %201 : vector<64x32xf32> to vector<64x32xbf16>
    %c2_229 = arith.constant 2 : index
    %c4_230 = arith.constant 4 : index
    %c0_231 = arith.constant 0 : index
    %c0_232 = arith.constant 0 : index
    %203 = vector.load %arg5[%c2_229, %c4_230, %c0_231, %c0_232] : memref<5x9x32x32xbf16, #tpu.memory_space<vmem>>, vector<1x1x32x32xbf16>
    %204 = vector.shape_cast %203 : vector<1x1x32x32xbf16> to vector<32x32xbf16>
    %cst_233 = arith.constant dense<0.000000e+00> : vector<64x32xf32>
    %205 = tpu.matmul %202, %204, %cst_233 {dimension_numbers = #tpu.dot_dimension_numbers<[1], [0], [0], [1], [0, 0, 1, 1], [], []>} : vector<64x32xbf16>, vector<32x32xbf16>, vector<64x32xf32> -> vector<64x32xf32>
    %206 = arith.addf %199, %205 : vector<64x32xf32>
    %c4_234 = arith.constant 4 : index
    %c7_235 = arith.constant 7 : index
    %c0_236 = arith.constant 0 : index
    %207 = vector.load %arg18[%c4_234, %c7_235, %c0_236] : memref<16x16x32xf32, #tpu.memory_space<vmem>>, vector<8x8x32xf32>
    %208 = vector.shape_cast %207 : vector<8x8x32xf32> to vector<64x32xf32>
    %209 = arith.truncf %208 : vector<64x32xf32> to vector<64x32xbf16>
    %c2_237 = arith.constant 2 : index
    %c5_238 = arith.constant 5 : index
    %c0_239 = arith.constant 0 : index
    %c0_240 = arith.constant 0 : index
    %210 = vector.load %arg5[%c2_237, %c5_238, %c0_239, %c0_240] : memref<5x9x32x32xbf16, #tpu.memory_space<vmem>>, vector<1x1x32x32xbf16>
    %211 = vector.shape_cast %210 : vector<1x1x32x32xbf16> to vector<32x32xbf16>
    %cst_241 = arith.constant dense<0.000000e+00> : vector<64x32xf32>
    %212 = tpu.matmul %209, %211, %cst_241 {dimension_numbers = #tpu.dot_dimension_numbers<[1], [0], [0], [1], [0, 0, 1, 1], [], []>} : vector<64x32xbf16>, vector<32x32xbf16>, vector<64x32xf32> -> vector<64x32xf32>
    %213 = arith.addf %206, %212 : vector<64x32xf32>
    %c7_242 = arith.constant 7 : index
    %c1_243 = arith.constant 1 : index
    %c0_244 = arith.constant 0 : index
    %214 = vector.load %arg18[%c7_242, %c1_243, %c0_244] : memref<16x16x32xf32, #tpu.memory_space<vmem>>, vector<8x8x32xf32>
    %215 = vector.shape_cast %214 : vector<8x8x32xf32> to vector<64x32xf32>
    %216 = arith.truncf %215 : vector<64x32xf32> to vector<64x32xbf16>
    %c2_245 = arith.constant 2 : index
    %c6_246 = arith.constant 6 : index
    %c0_247 = arith.constant 0 : index
    %c0_248 = arith.constant 0 : index
    %217 = vector.load %arg5[%c2_245, %c6_246, %c0_247, %c0_248] : memref<5x9x32x32xbf16, #tpu.memory_space<vmem>>, vector<1x1x32x32xbf16>
    %218 = vector.shape_cast %217 : vector<1x1x32x32xbf16> to vector<32x32xbf16>
    %cst_249 = arith.constant dense<0.000000e+00> : vector<64x32xf32>
    %219 = tpu.matmul %216, %218, %cst_249 {dimension_numbers = #tpu.dot_dimension_numbers<[1], [0], [0], [1], [0, 0, 1, 1], [], []>} : vector<64x32xbf16>, vector<32x32xbf16>, vector<64x32xf32> -> vector<64x32xf32>
    %220 = arith.addf %213, %219 : vector<64x32xf32>
    %c7_250 = arith.constant 7 : index
    %c4_251 = arith.constant 4 : index
    %c0_252 = arith.constant 0 : index
    %221 = vector.load %arg18[%c7_250, %c4_251, %c0_252] : memref<16x16x32xf32, #tpu.memory_space<vmem>>, vector<8x8x32xf32>
    %222 = vector.shape_cast %221 : vector<8x8x32xf32> to vector<64x32xf32>
    %223 = arith.truncf %222 : vector<64x32xf32> to vector<64x32xbf16>
    %c2_253 = arith.constant 2 : index
    %c7_254 = arith.constant 7 : index
    %c0_255 = arith.constant 0 : index
    %c0_256 = arith.constant 0 : index
    %224 = vector.load %arg5[%c2_253, %c7_254, %c0_255, %c0_256] : memref<5x9x32x32xbf16, #tpu.memory_space<vmem>>, vector<1x1x32x32xbf16>
    %225 = vector.shape_cast %224 : vector<1x1x32x32xbf16> to vector<32x32xbf16>
    %cst_257 = arith.constant dense<0.000000e+00> : vector<64x32xf32>
    %226 = tpu.matmul %223, %225, %cst_257 {dimension_numbers = #tpu.dot_dimension_numbers<[1], [0], [0], [1], [0, 0, 1, 1], [], []>} : vector<64x32xbf16>, vector<32x32xbf16>, vector<64x32xf32> -> vector<64x32xf32>
    %227 = arith.addf %220, %226 : vector<64x32xf32>
    %c7_258 = arith.constant 7 : index
    %c7_259 = arith.constant 7 : index
    %c0_260 = arith.constant 0 : index
    %228 = vector.load %arg18[%c7_258, %c7_259, %c0_260] : memref<16x16x32xf32, #tpu.memory_space<vmem>>, vector<8x8x32xf32>
    %229 = vector.shape_cast %228 : vector<8x8x32xf32> to vector<64x32xf32>
    %230 = arith.truncf %229 : vector<64x32xf32> to vector<64x32xbf16>
    %c2_261 = arith.constant 2 : index
    %c8_262 = arith.constant 8 : index
    %c0_263 = arith.constant 0 : index
    %c0_264 = arith.constant 0 : index
    %231 = vector.load %arg5[%c2_261, %c8_262, %c0_263, %c0_264] : memref<5x9x32x32xbf16, #tpu.memory_space<vmem>>, vector<1x1x32x32xbf16>
    %232 = vector.shape_cast %231 : vector<1x1x32x32xbf16> to vector<32x32xbf16>
    %cst_265 = arith.constant dense<0.000000e+00> : vector<64x32xf32>
    %233 = tpu.matmul %230, %232, %cst_265 {dimension_numbers = #tpu.dot_dimension_numbers<[1], [0], [0], [1], [0, 0, 1, 1], [], []>} : vector<64x32xbf16>, vector<32x32xbf16>, vector<64x32xf32> -> vector<64x32xf32>
    %234 = arith.addf %227, %233 : vector<64x32xf32>
    %c2_266 = arith.constant 2 : index
    %c0_267 = arith.constant 0 : index
    %c0_268 = arith.constant 0 : index
    %235 = vector.load %arg6[%c2_266, %c0_267, %c0_268] : memref<5x1x32xf32, #tpu.memory_space<vmem>>, vector<1x1x32xf32>
    %236 = vector.shape_cast %235 : vector<1x1x32xf32> to vector<1x32xf32>
    %237 = vector.broadcast %236 : vector<1x32xf32> to vector<64x32xf32>
    %238 = arith.mulf %234, %237 : vector<64x32xf32>
    %c2_269 = arith.constant 2 : index
    %c0_270 = arith.constant 0 : index
    %c0_271 = arith.constant 0 : index
    %239 = vector.load %arg7[%c2_269, %c0_270, %c0_271] : memref<5x1x32xf32, #tpu.memory_space<vmem>>, vector<1x1x32xf32>
    %240 = vector.shape_cast %239 : vector<1x1x32xf32> to vector<1x32xf32>
    %241 = vector.broadcast %240 : vector<1x32xf32> to vector<64x32xf32>
    %242 = arith.addf %238, %241 : vector<64x32xf32>
    %cst_272 = arith.constant 0.000000e+00 : f32
    %243 = vector.broadcast %cst_272 : f32 to vector<64x32xf32>
    %244 = arith.maximumf %242, %243 : vector<64x32xf32>
    %245 = vector.shape_cast %244 : vector<64x32xf32> to vector<8x8x32xf32>
    %c4_273 = arith.constant 4 : index
    %c4_274 = arith.constant 4 : index
    %c0_275 = arith.constant 0 : index
    %246 = vector.load %arg18[%c4_273, %c4_274, %c0_275] : memref<16x16x32xf32, #tpu.memory_space<vmem>>, vector<8x8x32xf32>
    tpu.vector_store %arg18[%c4_273, %c4_274, %c0_275], %245 {strides = array<i32>} : memref<16x16x32xf32, #tpu.memory_space<vmem>>, vector<8x8x32xf32>,
    %cst_276 = arith.constant 0.000000e+00 : f32
    %247 = vector.broadcast %cst_276 : f32 to vector<64x32xf32>
    %c0_277 = arith.constant 0 : index
    %c0_278 = arith.constant 0 : index
    %c0_279 = arith.constant 0 : index
    %248 = vector.load %arg18[%c0_277, %c0_278, %c0_279] : memref<16x16x32xf32, #tpu.memory_space<vmem>>, vector<8x8x32xf32>
    %249 = vector.shape_cast %248 : vector<8x8x32xf32> to vector<64x32xf32>
    %250 = arith.truncf %249 : vector<64x32xf32> to vector<64x32xbf16>
    %c3_280 = arith.constant 3 : index
    %c0_281 = arith.constant 0 : index
    %c0_282 = arith.constant 0 : index
    %c0_283 = arith.constant 0 : index
    %251 = vector.load %arg5[%c3_280, %c0_281, %c0_282, %c0_283] : memref<5x9x32x32xbf16, #tpu.memory_space<vmem>>, vector<1x1x32x32xbf16>
    %252 = vector.shape_cast %251 : vector<1x1x32x32xbf16> to vector<32x32xbf16>
    %cst_284 = arith.constant dense<0.000000e+00> : vector<64x32xf32>
    %253 = tpu.matmul %250, %252, %cst_284 {dimension_numbers = #tpu.dot_dimension_numbers<[1], [0], [0], [1], [0, 0, 1, 1], [], []>} : vector<64x32xbf16>, vector<32x32xbf16>, vector<64x32xf32> -> vector<64x32xf32>
    %254 = arith.addf %247, %253 : vector<64x32xf32>
    %c0_285 = arith.constant 0 : index
    %c4_286 = arith.constant 4 : index
    %c0_287 = arith.constant 0 : index
    %255 = vector.load %arg18[%c0_285, %c4_286, %c0_287] : memref<16x16x32xf32, #tpu.memory_space<vmem>>, vector<8x8x32xf32>
    %256 = vector.shape_cast %255 : vector<8x8x32xf32> to vector<64x32xf32>
    %257 = arith.truncf %256 : vector<64x32xf32> to vector<64x32xbf16>
    %c3_288 = arith.constant 3 : index
    %c1_289 = arith.constant 1 : index
    %c0_290 = arith.constant 0 : index
    %c0_291 = arith.constant 0 : index
    %258 = vector.load %arg5[%c3_288, %c1_289, %c0_290, %c0_291] : memref<5x9x32x32xbf16, #tpu.memory_space<vmem>>, vector<1x1x32x32xbf16>
    %259 = vector.shape_cast %258 : vector<1x1x32x32xbf16> to vector<32x32xbf16>
    %cst_292 = arith.constant dense<0.000000e+00> : vector<64x32xf32>
    %260 = tpu.matmul %257, %259, %cst_292 {dimension_numbers = #tpu.dot_dimension_numbers<[1], [0], [0], [1], [0, 0, 1, 1], [], []>} : vector<64x32xbf16>, vector<32x32xbf16>, vector<64x32xf32> -> vector<64x32xf32>
    %261 = arith.addf %254, %260 : vector<64x32xf32>
    %c0_293 = arith.constant 0 : index
    %c8_294 = arith.constant 8 : index
    %c0_295 = arith.constant 0 : index
    %262 = vector.load %arg18[%c0_293, %c8_294, %c0_295] : memref<16x16x32xf32, #tpu.memory_space<vmem>>, vector<8x8x32xf32>
    %263 = vector.shape_cast %262 : vector<8x8x32xf32> to vector<64x32xf32>
    %264 = arith.truncf %263 : vector<64x32xf32> to vector<64x32xbf16>
    %c3_296 = arith.constant 3 : index
    %c2_297 = arith.constant 2 : index
    %c0_298 = arith.constant 0 : index
    %c0_299 = arith.constant 0 : index
    %265 = vector.load %arg5[%c3_296, %c2_297, %c0_298, %c0_299] : memref<5x9x32x32xbf16, #tpu.memory_space<vmem>>, vector<1x1x32x32xbf16>
    %266 = vector.shape_cast %265 : vector<1x1x32x32xbf16> to vector<32x32xbf16>
    %cst_300 = arith.constant dense<0.000000e+00> : vector<64x32xf32>
    %267 = tpu.matmul %264, %266, %cst_300 {dimension_numbers = #tpu.dot_dimension_numbers<[1], [0], [0], [1], [0, 0, 1, 1], [], []>} : vector<64x32xbf16>, vector<32x32xbf16>, vector<64x32xf32> -> vector<64x32xf32>
    %268 = arith.addf %261, %267 : vector<64x32xf32>
    %c4_301 = arith.constant 4 : index
    %c0_302 = arith.constant 0 : index
    %c0_303 = arith.constant 0 : index
    %269 = vector.load %arg18[%c4_301, %c0_302, %c0_303] : memref<16x16x32xf32, #tpu.memory_space<vmem>>, vector<8x8x32xf32>
    %270 = vector.shape_cast %269 : vector<8x8x32xf32> to vector<64x32xf32>
    %271 = arith.truncf %270 : vector<64x32xf32> to vector<64x32xbf16>
    %c3_304 = arith.constant 3 : index
    %c3_305 = arith.constant 3 : index
    %c0_306 = arith.constant 0 : index
    %c0_307 = arith.constant 0 : index
    %272 = vector.load %arg5[%c3_304, %c3_305, %c0_306, %c0_307] : memref<5x9x32x32xbf16, #tpu.memory_space<vmem>>, vector<1x1x32x32xbf16>
    %273 = vector.shape_cast %272 : vector<1x1x32x32xbf16> to vector<32x32xbf16>
    %cst_308 = arith.constant dense<0.000000e+00> : vector<64x32xf32>
    %274 = tpu.matmul %271, %273, %cst_308 {dimension_numbers = #tpu.dot_dimension_numbers<[1], [0], [0], [1], [0, 0, 1, 1], [], []>} : vector<64x32xbf16>, vector<32x32xbf16>, vector<64x32xf32> -> vector<64x32xf32>
    %275 = arith.addf %268, %274 : vector<64x32xf32>
    %c4_309 = arith.constant 4 : index
    %c4_310 = arith.constant 4 : index
    %c0_311 = arith.constant 0 : index
    %276 = vector.load %arg18[%c4_309, %c4_310, %c0_311] : memref<16x16x32xf32, #tpu.memory_space<vmem>>, vector<8x8x32xf32>
    %277 = vector.shape_cast %276 : vector<8x8x32xf32> to vector<64x32xf32>
    %278 = arith.truncf %277 : vector<64x32xf32> to vector<64x32xbf16>
    %c3_312 = arith.constant 3 : index
    %c4_313 = arith.constant 4 : index
    %c0_314 = arith.constant 0 : index
    %c0_315 = arith.constant 0 : index
    %279 = vector.load %arg5[%c3_312, %c4_313, %c0_314, %c0_315] : memref<5x9x32x32xbf16, #tpu.memory_space<vmem>>, vector<1x1x32x32xbf16>
    %280 = vector.shape_cast %279 : vector<1x1x32x32xbf16> to vector<32x32xbf16>
    %cst_316 = arith.constant dense<0.000000e+00> : vector<64x32xf32>
    %281 = tpu.matmul %278, %280, %cst_316 {dimension_numbers = #tpu.dot_dimension_numbers<[1], [0], [0], [1], [0, 0, 1, 1], [], []>} : vector<64x32xbf16>, vector<32x32xbf16>, vector<64x32xf32> -> vector<64x32xf32>
    %282 = arith.addf %275, %281 : vector<64x32xf32>
    %c4_317 = arith.constant 4 : index
    %c8_318 = arith.constant 8 : index
    %c0_319 = arith.constant 0 : index
    %283 = vector.load %arg18[%c4_317, %c8_318, %c0_319] : memref<16x16x32xf32, #tpu.memory_space<vmem>>, vector<8x8x32xf32>
    %284 = vector.shape_cast %283 : vector<8x8x32xf32> to vector<64x32xf32>
    %285 = arith.truncf %284 : vector<64x32xf32> to vector<64x32xbf16>
    %c3_320 = arith.constant 3 : index
    %c5_321 = arith.constant 5 : index
    %c0_322 = arith.constant 0 : index
    %c0_323 = arith.constant 0 : index
    %286 = vector.load %arg5[%c3_320, %c5_321, %c0_322, %c0_323] : memref<5x9x32x32xbf16, #tpu.memory_space<vmem>>, vector<1x1x32x32xbf16>
    %287 = vector.shape_cast %286 : vector<1x1x32x32xbf16> to vector<32x32xbf16>
    %cst_324 = arith.constant dense<0.000000e+00> : vector<64x32xf32>
    %288 = tpu.matmul %285, %287, %cst_324 {dimension_numbers = #tpu.dot_dimension_numbers<[1], [0], [0], [1], [0, 0, 1, 1], [], []>} : vector<64x32xbf16>, vector<32x32xbf16>, vector<64x32xf32> -> vector<64x32xf32>
    %289 = arith.addf %282, %288 : vector<64x32xf32>
    %c8_325 = arith.constant 8 : index
    %c0_326 = arith.constant 0 : index
    %c0_327 = arith.constant 0 : index
    %290 = vector.load %arg18[%c8_325, %c0_326, %c0_327] : memref<16x16x32xf32, #tpu.memory_space<vmem>>, vector<8x8x32xf32>
    %291 = vector.shape_cast %290 : vector<8x8x32xf32> to vector<64x32xf32>
    %292 = arith.truncf %291 : vector<64x32xf32> to vector<64x32xbf16>
    %c3_328 = arith.constant 3 : index
    %c6_329 = arith.constant 6 : index
    %c0_330 = arith.constant 0 : index
    %c0_331 = arith.constant 0 : index
    %293 = vector.load %arg5[%c3_328, %c6_329, %c0_330, %c0_331] : memref<5x9x32x32xbf16, #tpu.memory_space<vmem>>, vector<1x1x32x32xbf16>
    %294 = vector.shape_cast %293 : vector<1x1x32x32xbf16> to vector<32x32xbf16>
    %cst_332 = arith.constant dense<0.000000e+00> : vector<64x32xf32>
    %295 = tpu.matmul %292, %294, %cst_332 {dimension_numbers = #tpu.dot_dimension_numbers<[1], [0], [0], [1], [0, 0, 1, 1], [], []>} : vector<64x32xbf16>, vector<32x32xbf16>, vector<64x32xf32> -> vector<64x32xf32>
    %296 = arith.addf %289, %295 : vector<64x32xf32>
    %c8_333 = arith.constant 8 : index
    %c4_334 = arith.constant 4 : index
    %c0_335 = arith.constant 0 : index
    %297 = vector.load %arg18[%c8_333, %c4_334, %c0_335] : memref<16x16x32xf32, #tpu.memory_space<vmem>>, vector<8x8x32xf32>
    %298 = vector.shape_cast %297 : vector<8x8x32xf32> to vector<64x32xf32>
    %299 = arith.truncf %298 : vector<64x32xf32> to vector<64x32xbf16>
    %c3_336 = arith.constant 3 : index
    %c7_337 = arith.constant 7 : index
    %c0_338 = arith.constant 0 : index
    %c0_339 = arith.constant 0 : index
    %300 = vector.load %arg5[%c3_336, %c7_337, %c0_338, %c0_339] : memref<5x9x32x32xbf16, #tpu.memory_space<vmem>>, vector<1x1x32x32xbf16>
    %301 = vector.shape_cast %300 : vector<1x1x32x32xbf16> to vector<32x32xbf16>
    %cst_340 = arith.constant dense<0.000000e+00> : vector<64x32xf32>
    %302 = tpu.matmul %299, %301, %cst_340 {dimension_numbers = #tpu.dot_dimension_numbers<[1], [0], [0], [1], [0, 0, 1, 1], [], []>} : vector<64x32xbf16>, vector<32x32xbf16>, vector<64x32xf32> -> vector<64x32xf32>
    %303 = arith.addf %296, %302 : vector<64x32xf32>
    %c8_341 = arith.constant 8 : index
    %c8_342 = arith.constant 8 : index
    %c0_343 = arith.constant 0 : index
    %304 = vector.load %arg18[%c8_341, %c8_342, %c0_343] : memref<16x16x32xf32, #tpu.memory_space<vmem>>, vector<8x8x32xf32>
    %305 = vector.shape_cast %304 : vector<8x8x32xf32> to vector<64x32xf32>
    %306 = arith.truncf %305 : vector<64x32xf32> to vector<64x32xbf16>
    %c3_344 = arith.constant 3 : index
    %c8_345 = arith.constant 8 : index
    %c0_346 = arith.constant 0 : index
    %c0_347 = arith.constant 0 : index
    %307 = vector.load %arg5[%c3_344, %c8_345, %c0_346, %c0_347] : memref<5x9x32x32xbf16, #tpu.memory_space<vmem>>, vector<1x1x32x32xbf16>
    %308 = vector.shape_cast %307 : vector<1x1x32x32xbf16> to vector<32x32xbf16>
    %cst_348 = arith.constant dense<0.000000e+00> : vector<64x32xf32>
    %309 = tpu.matmul %306, %308, %cst_348 {dimension_numbers = #tpu.dot_dimension_numbers<[1], [0], [0], [1], [0, 0, 1, 1], [], []>} : vector<64x32xbf16>, vector<32x32xbf16>, vector<64x32xf32> -> vector<64x32xf32>
    %310 = arith.addf %303, %309 : vector<64x32xf32>
    %c3_349 = arith.constant 3 : index
    %c0_350 = arith.constant 0 : index
    %c0_351 = arith.constant 0 : index
    %311 = vector.load %arg6[%c3_349, %c0_350, %c0_351] : memref<5x1x32xf32, #tpu.memory_space<vmem>>, vector<1x1x32xf32>
    %312 = vector.shape_cast %311 : vector<1x1x32xf32> to vector<1x32xf32>
    %313 = vector.broadcast %312 : vector<1x32xf32> to vector<64x32xf32>
    %314 = arith.mulf %310, %313 : vector<64x32xf32>
    %c3_352 = arith.constant 3 : index
    %c0_353 = arith.constant 0 : index
    %c0_354 = arith.constant 0 : index
    %315 = vector.load %arg7[%c3_352, %c0_353, %c0_354] : memref<5x1x32xf32, #tpu.memory_space<vmem>>, vector<1x1x32xf32>
    %316 = vector.shape_cast %315 : vector<1x1x32xf32> to vector<1x32xf32>
    %317 = vector.broadcast %316 : vector<1x32xf32> to vector<64x32xf32>
    %318 = arith.addf %314, %317 : vector<64x32xf32>
    %cst_355 = arith.constant 0.000000e+00 : f32
    %319 = vector.broadcast %cst_355 : f32 to vector<64x32xf32>
    %320 = arith.maximumf %318, %319 : vector<64x32xf32>
    %321 = vector.shape_cast %320 : vector<64x32xf32> to vector<8x8x32xf32>
    %c4_356 = arith.constant 4 : index
    %c4_357 = arith.constant 4 : index
    %c0_358 = arith.constant 0 : index
    %322 = vector.load %arg18[%c4_356, %c4_357, %c0_358] : memref<16x16x32xf32, #tpu.memory_space<vmem>>, vector<8x8x32xf32>
    tpu.vector_store %arg18[%c4_356, %c4_357, %c0_358], %321 {strides = array<i32>} : memref<16x16x32xf32, #tpu.memory_space<vmem>>, vector<8x8x32xf32>,
    %cst_359 = arith.constant 0.000000e+00 : f32
    %323 = vector.broadcast %cst_359 : f32 to vector<64x32xf32>
    %c3_360 = arith.constant 3 : index
    %c3_361 = arith.constant 3 : index
    %c0_362 = arith.constant 0 : index
    %324 = vector.load %arg18[%c3_360, %c3_361, %c0_362] : memref<16x16x32xf32, #tpu.memory_space<vmem>>, vector<8x8x32xf32>
    %325 = vector.shape_cast %324 : vector<8x8x32xf32> to vector<64x32xf32>
    %326 = arith.truncf %325 : vector<64x32xf32> to vector<64x32xbf16>
    %c4_363 = arith.constant 4 : index
    %c0_364 = arith.constant 0 : index
    %c0_365 = arith.constant 0 : index
    %c0_366 = arith.constant 0 : index
    %327 = vector.load %arg5[%c4_363, %c0_364, %c0_365, %c0_366] : memref<5x9x32x32xbf16, #tpu.memory_space<vmem>>, vector<1x1x32x32xbf16>
    %328 = vector.shape_cast %327 : vector<1x1x32x32xbf16> to vector<32x32xbf16>
    %cst_367 = arith.constant dense<0.000000e+00> : vector<64x32xf32>
    %329 = tpu.matmul %326, %328, %cst_367 {dimension_numbers = #tpu.dot_dimension_numbers<[1], [0], [0], [1], [0, 0, 1, 1], [], []>} : vector<64x32xbf16>, vector<32x32xbf16>, vector<64x32xf32> -> vector<64x32xf32>
    %330 = arith.addf %323, %329 : vector<64x32xf32>
    %c3_368 = arith.constant 3 : index
    %c4_369 = arith.constant 4 : index
    %c0_370 = arith.constant 0 : index
    %331 = vector.load %arg18[%c3_368, %c4_369, %c0_370] : memref<16x16x32xf32, #tpu.memory_space<vmem>>, vector<8x8x32xf32>
    %332 = vector.shape_cast %331 : vector<8x8x32xf32> to vector<64x32xf32>
    %333 = arith.truncf %332 : vector<64x32xf32> to vector<64x32xbf16>
    %c4_371 = arith.constant 4 : index
    %c1_372 = arith.constant 1 : index
    %c0_373 = arith.constant 0 : index
    %c0_374 = arith.constant 0 : index
    %334 = vector.load %arg5[%c4_371, %c1_372, %c0_373, %c0_374] : memref<5x9x32x32xbf16, #tpu.memory_space<vmem>>, vector<1x1x32x32xbf16>
    %335 = vector.shape_cast %334 : vector<1x1x32x32xbf16> to vector<32x32xbf16>
    %cst_375 = arith.constant dense<0.000000e+00> : vector<64x32xf32>
    %336 = tpu.matmul %333, %335, %cst_375 {dimension_numbers = #tpu.dot_dimension_numbers<[1], [0], [0], [1], [0, 0, 1, 1], [], []>} : vector<64x32xbf16>, vector<32x32xbf16>, vector<64x32xf32> -> vector<64x32xf32>
    %337 = arith.addf %330, %336 : vector<64x32xf32>
    %c3_376 = arith.constant 3 : index
    %c5_377 = arith.constant 5 : index
    %c0_378 = arith.constant 0 : index
    %338 = vector.load %arg18[%c3_376, %c5_377, %c0_378] : memref<16x16x32xf32, #tpu.memory_space<vmem>>, vector<8x8x32xf32>
    %339 = vector.shape_cast %338 : vector<8x8x32xf32> to vector<64x32xf32>
    %340 = arith.truncf %339 : vector<64x32xf32> to vector<64x32xbf16>
    %c4_379 = arith.constant 4 : index
    %c2_380 = arith.constant 2 : index
    %c0_381 = arith.constant 0 : index
    %c0_382 = arith.constant 0 : index
    %341 = vector.load %arg5[%c4_379, %c2_380, %c0_381, %c0_382] : memref<5x9x32x32xbf16, #tpu.memory_space<vmem>>, vector<1x1x32x32xbf16>
    %342 = vector.shape_cast %341 : vector<1x1x32x32xbf16> to vector<32x32xbf16>
    %cst_383 = arith.constant dense<0.000000e+00> : vector<64x32xf32>
    %343 = tpu.matmul %340, %342, %cst_383 {dimension_numbers = #tpu.dot_dimension_numbers<[1], [0], [0], [1], [0, 0, 1, 1], [], []>} : vector<64x32xbf16>, vector<32x32xbf16>, vector<64x32xf32> -> vector<64x32xf32>
    %344 = arith.addf %337, %343 : vector<64x32xf32>
    %c4_384 = arith.constant 4 : index
    %c3_385 = arith.constant 3 : index
    %c0_386 = arith.constant 0 : index
    %345 = vector.load %arg18[%c4_384, %c3_385, %c0_386] : memref<16x16x32xf32, #tpu.memory_space<vmem>>, vector<8x8x32xf32>
    %346 = vector.shape_cast %345 : vector<8x8x32xf32> to vector<64x32xf32>
    %347 = arith.truncf %346 : vector<64x32xf32> to vector<64x32xbf16>
    %c4_387 = arith.constant 4 : index
    %c3_388 = arith.constant 3 : index
    %c0_389 = arith.constant 0 : index
    %c0_390 = arith.constant 0 : index
    %348 = vector.load %arg5[%c4_387, %c3_388, %c0_389, %c0_390] : memref<5x9x32x32xbf16, #tpu.memory_space<vmem>>, vector<1x1x32x32xbf16>
    %349 = vector.shape_cast %348 : vector<1x1x32x32xbf16> to vector<32x32xbf16>
    %cst_391 = arith.constant dense<0.000000e+00> : vector<64x32xf32>
    %350 = tpu.matmul %347, %349, %cst_391 {dimension_numbers = #tpu.dot_dimension_numbers<[1], [0], [0], [1], [0, 0, 1, 1], [], []>} : vector<64x32xbf16>, vector<32x32xbf16>, vector<64x32xf32> -> vector<64x32xf32>
    %351 = arith.addf %344, %350 : vector<64x32xf32>
    %c4_392 = arith.constant 4 : index
    %c4_393 = arith.constant 4 : index
    %c0_394 = arith.constant 0 : index
    %352 = vector.load %arg18[%c4_392, %c4_393, %c0_394] : memref<16x16x32xf32, #tpu.memory_space<vmem>>, vector<8x8x32xf32>
    %353 = vector.shape_cast %352 : vector<8x8x32xf32> to vector<64x32xf32>
    %354 = arith.truncf %353 : vector<64x32xf32> to vector<64x32xbf16>
    %c4_395 = arith.constant 4 : index
    %c4_396 = arith.constant 4 : index
    %c0_397 = arith.constant 0 : index
    %c0_398 = arith.constant 0 : index
    %355 = vector.load %arg5[%c4_395, %c4_396, %c0_397, %c0_398] : memref<5x9x32x32xbf16, #tpu.memory_space<vmem>>, vector<1x1x32x32xbf16>
    %356 = vector.shape_cast %355 : vector<1x1x32x32xbf16> to vector<32x32xbf16>
    %cst_399 = arith.constant dense<0.000000e+00> : vector<64x32xf32>
    %357 = tpu.matmul %354, %356, %cst_399 {dimension_numbers = #tpu.dot_dimension_numbers<[1], [0], [0], [1], [0, 0, 1, 1], [], []>} : vector<64x32xbf16>, vector<32x32xbf16>, vector<64x32xf32> -> vector<64x32xf32>
    %358 = arith.addf %351, %357 : vector<64x32xf32>
    %c4_400 = arith.constant 4 : index
    %c5_401 = arith.constant 5 : index
    %c0_402 = arith.constant 0 : index
    %359 = vector.load %arg18[%c4_400, %c5_401, %c0_402] : memref<16x16x32xf32, #tpu.memory_space<vmem>>, vector<8x8x32xf32>
    %360 = vector.shape_cast %359 : vector<8x8x32xf32> to vector<64x32xf32>
    %361 = arith.truncf %360 : vector<64x32xf32> to vector<64x32xbf16>
    %c4_403 = arith.constant 4 : index
    %c5_404 = arith.constant 5 : index
    %c0_405 = arith.constant 0 : index
    %c0_406 = arith.constant 0 : index
    %362 = vector.load %arg5[%c4_403, %c5_404, %c0_405, %c0_406] : memref<5x9x32x32xbf16, #tpu.memory_space<vmem>>, vector<1x1x32x32xbf16>
    %363 = vector.shape_cast %362 : vector<1x1x32x32xbf16> to vector<32x32xbf16>
    %cst_407 = arith.constant dense<0.000000e+00> : vector<64x32xf32>
    %364 = tpu.matmul %361, %363, %cst_407 {dimension_numbers = #tpu.dot_dimension_numbers<[1], [0], [0], [1], [0, 0, 1, 1], [], []>} : vector<64x32xbf16>, vector<32x32xbf16>, vector<64x32xf32> -> vector<64x32xf32>
    %365 = arith.addf %358, %364 : vector<64x32xf32>
    %c5_408 = arith.constant 5 : index
    %c3_409 = arith.constant 3 : index
    %c0_410 = arith.constant 0 : index
    %366 = vector.load %arg18[%c5_408, %c3_409, %c0_410] : memref<16x16x32xf32, #tpu.memory_space<vmem>>, vector<8x8x32xf32>
    %367 = vector.shape_cast %366 : vector<8x8x32xf32> to vector<64x32xf32>
    %368 = arith.truncf %367 : vector<64x32xf32> to vector<64x32xbf16>
    %c4_411 = arith.constant 4 : index
    %c6_412 = arith.constant 6 : index
    %c0_413 = arith.constant 0 : index
    %c0_414 = arith.constant 0 : index
    %369 = vector.load %arg5[%c4_411, %c6_412, %c0_413, %c0_414] : memref<5x9x32x32xbf16, #tpu.memory_space<vmem>>, vector<1x1x32x32xbf16>
    %370 = vector.shape_cast %369 : vector<1x1x32x32xbf16> to vector<32x32xbf16>
    %cst_415 = arith.constant dense<0.000000e+00> : vector<64x32xf32>
    %371 = tpu.matmul %368, %370, %cst_415 {dimension_numbers = #tpu.dot_dimension_numbers<[1], [0], [0], [1], [0, 0, 1, 1], [], []>} : vector<64x32xbf16>, vector<32x32xbf16>, vector<64x32xf32> -> vector<64x32xf32>
    %372 = arith.addf %365, %371 : vector<64x32xf32>
    %c5_416 = arith.constant 5 : index
    %c4_417 = arith.constant 4 : index
    %c0_418 = arith.constant 0 : index
    %373 = vector.load %arg18[%c5_416, %c4_417, %c0_418] : memref<16x16x32xf32, #tpu.memory_space<vmem>>, vector<8x8x32xf32>
    %374 = vector.shape_cast %373 : vector<8x8x32xf32> to vector<64x32xf32>
    %375 = arith.truncf %374 : vector<64x32xf32> to vector<64x32xbf16>
    %c4_419 = arith.constant 4 : index
    %c7_420 = arith.constant 7 : index
    %c0_421 = arith.constant 0 : index
    %c0_422 = arith.constant 0 : index
    %376 = vector.load %arg5[%c4_419, %c7_420, %c0_421, %c0_422] : memref<5x9x32x32xbf16, #tpu.memory_space<vmem>>, vector<1x1x32x32xbf16>
    %377 = vector.shape_cast %376 : vector<1x1x32x32xbf16> to vector<32x32xbf16>
    %cst_423 = arith.constant dense<0.000000e+00> : vector<64x32xf32>
    %378 = tpu.matmul %375, %377, %cst_423 {dimension_numbers = #tpu.dot_dimension_numbers<[1], [0], [0], [1], [0, 0, 1, 1], [], []>} : vector<64x32xbf16>, vector<32x32xbf16>, vector<64x32xf32> -> vector<64x32xf32>
    %379 = arith.addf %372, %378 : vector<64x32xf32>
    %c5_424 = arith.constant 5 : index
    %c5_425 = arith.constant 5 : index
    %c0_426 = arith.constant 0 : index
    %380 = vector.load %arg18[%c5_424, %c5_425, %c0_426] : memref<16x16x32xf32, #tpu.memory_space<vmem>>, vector<8x8x32xf32>
    %381 = vector.shape_cast %380 : vector<8x8x32xf32> to vector<64x32xf32>
    %382 = arith.truncf %381 : vector<64x32xf32> to vector<64x32xbf16>
    %c4_427 = arith.constant 4 : index
    %c8_428 = arith.constant 8 : index
    %c0_429 = arith.constant 0 : index
    %c0_430 = arith.constant 0 : index
    %383 = vector.load %arg5[%c4_427, %c8_428, %c0_429, %c0_430] : memref<5x9x32x32xbf16, #tpu.memory_space<vmem>>, vector<1x1x32x32xbf16>
    %384 = vector.shape_cast %383 : vector<1x1x32x32xbf16> to vector<32x32xbf16>
    %cst_431 = arith.constant dense<0.000000e+00> : vector<64x32xf32>
    %385 = tpu.matmul %382, %384, %cst_431 {dimension_numbers = #tpu.dot_dimension_numbers<[1], [0], [0], [1], [0, 0, 1, 1], [], []>} : vector<64x32xbf16>, vector<32x32xbf16>, vector<64x32xf32> -> vector<64x32xf32>
    %386 = arith.addf %379, %385 : vector<64x32xf32>
    %c4_432 = arith.constant 4 : index
    %c0_433 = arith.constant 0 : index
    %c0_434 = arith.constant 0 : index
    %387 = vector.load %arg6[%c4_432, %c0_433, %c0_434] : memref<5x1x32xf32, #tpu.memory_space<vmem>>, vector<1x1x32xf32>
    %388 = vector.shape_cast %387 : vector<1x1x32xf32> to vector<1x32xf32>
    %389 = vector.broadcast %388 : vector<1x32xf32> to vector<64x32xf32>
    %390 = arith.mulf %386, %389 : vector<64x32xf32>
    %c4_435 = arith.constant 4 : index
    %c0_436 = arith.constant 0 : index
    %c0_437 = arith.constant 0 : index
    %391 = vector.load %arg7[%c4_435, %c0_436, %c0_437] : memref<5x1x32xf32, #tpu.memory_space<vmem>>, vector<1x1x32xf32>
    %392 = vector.shape_cast %391 : vector<1x1x32xf32> to vector<1x32xf32>
    %393 = vector.broadcast %392 : vector<1x32xf32> to vector<64x32xf32>
    %394 = arith.addf %390, %393 : vector<64x32xf32>
    %cst_438 = arith.constant 0.000000e+00 : f32
    %395 = vector.broadcast %cst_438 : f32 to vector<64x32xf32>
    %396 = arith.maximumf %394, %395 : vector<64x32xf32>
    %397 = vector.shape_cast %396 : vector<64x32xf32> to vector<8x8x32xf32>
    %cst_439 = arith.constant dense<0xFF800000> : vector<8x32xf32>
    %398 = vector.multi_reduction <maximumf>, %397, %cst_439 [0] : vector<8x8x32xf32> to vector<8x32xf32>
    %cst_440 = arith.constant dense<0xFF800000> : vector<32xf32>
    %399 = vector.multi_reduction <maximumf>, %398, %cst_440 [0] : vector<8x32xf32> to vector<32xf32>
    %400 = vector.shape_cast %399 : vector<32xf32> to vector<1x32xf32>
    %c0_441 = arith.constant 0 : index
    %c0_442 = arith.constant 0 : index
    %401 = vector.load %arg8[%c0_441, %c0_442] : memref<2x32xf32, #tpu.memory_space<vmem>>, vector<2x32xf32>
    %402 = vector.broadcast %400 : vector<1x32xf32> to vector<2x32xf32>
    %403 = arith.mulf %402, %401 : vector<2x32xf32>
    %cst_443 = arith.constant dense<0.000000e+00> : vector<2xf32>
    %404 = vector.multi_reduction <add>, %403, %cst_443 [1] : vector<2x32xf32> to vector<2xf32>
    %405 = vector.shape_cast %404 : vector<2xf32> to vector<2x1xf32>
    %cst_444 = arith.constant 0.000000e+00 : f32
    %406 = vector.broadcast %cst_444 : f32 to vector<2x1xf32>
    %407 = arith.maximumf %405, %406 : vector<2x1xf32>
    %c0_445 = arith.constant 0 : index
    %c0_446 = arith.constant 0 : index
    %408 = vector.load %arg9[%c0_445, %c0_446] : memref<2x32xf32, #tpu.memory_space<vmem>>, vector<2x32xf32>
    %409 = vector.broadcast %407 : vector<2x1xf32> to vector<2x32xf32>
    %410 = arith.mulf %409, %408 : vector<2x32xf32>
    %cst_447 = arith.constant dense<0.000000e+00> : vector<32xf32>
    %411 = vector.multi_reduction <add>, %410, %cst_447 [0] : vector<2x32xf32> to vector<32xf32>
    %412 = vector.shape_cast %411 : vector<32xf32> to vector<1x32xf32>
    %413 = arith.negf %412 : vector<1x32xf32>
    %414 = math.exp %413 : vector<1x32xf32>
    %cst_448 = arith.constant 1.000000e+00 : f32
    %415 = vector.broadcast %cst_448 : f32 to vector<1x32xf32>
    %416 = arith.addf %415, %414 : vector<1x32xf32>
    %417 = arith.divf %415, %416 : vector<1x32xf32>
    %418 = vector.shape_cast %417 : vector<1x32xf32> to vector<1x1x32xf32>
    %419 = vector.broadcast %418 : vector<1x1x32xf32> to vector<8x8x32xf32>
    %420 = arith.mulf %397, %419 : vector<8x8x32xf32>
    %cst_449 = arith.constant dense<0xFF800000> : vector<8x8xf32>
    %421 = vector.multi_reduction <maximumf>, %420, %cst_449 [2] : vector<8x8x32xf32> to vector<8x8xf32>
    %422 = vector.shape_cast %421 : vector<8x8xf32> to vector<8x8x1xf32>
    %c0_450 = arith.constant 0 : index
    %c0_451 = arith.constant 0 : index
    %c0_452 = arith.constant 0 : index
    %c0_453 = arith.constant 0 : index
    %423 = vector.load %arg2[%c0_450, %c0_451, %c0_452, %c0_453] : memref<1x8x8x8xf32, #tpu.memory_space<vmem>>, vector<1x8x8x8xf32>
    %424 = vector.shape_cast %423 : vector<1x8x8x8xf32> to vector<8x8x8xf32>
    %425 = vector.shape_cast %424 : vector<8x8x8xf32> to vector<64x8xf32>
    %426 = arith.truncf %425 : vector<64x8xf32> to vector<64x8xbf16>
    %c0_454 = arith.constant 0 : index
    %c0_455 = arith.constant 0 : index
    %427 = vector.load %arg11[%c0_454, %c0_455] : memref<8x8xbf16, #tpu.memory_space<vmem>>, vector<8x8xbf16>
    %cst_456 = arith.constant dense<0.000000e+00> : vector<64x8xf32>
    %428 = tpu.matmul %426, %427, %cst_456 {dimension_numbers = #tpu.dot_dimension_numbers<[1], [0], [0], [1], [0, 0, 1, 1], [], []>} : vector<64x8xbf16>, vector<8x8xbf16>, vector<64x8xf32> -> vector<64x8xf32>
    %c0_457 = arith.constant 0 : index
    %c0_458 = arith.constant 0 : index
    %429 = vector.load %arg12[%c0_457, %c0_458] : memref<1x8xf32, #tpu.memory_space<vmem>>, vector<1x8xf32>
    %430 = vector.broadcast %429 : vector<1x8xf32> to vector<64x8xf32>
    %431 = arith.addf %428, %430 : vector<64x8xf32>
    %432 = vector.shape_cast %431 : vector<64x8xf32> to vector<8x8x8xf32>
    %cst_459 = arith.constant dense<0xFF800000> : vector<8x8xf32>
    %433 = vector.multi_reduction <maximumf>, %432, %cst_459 [2] : vector<8x8x8xf32> to vector<8x8xf32>
    %434 = vector.shape_cast %433 : vector<8x8xf32> to vector<8x8x1xf32>
    %c0_460 = arith.constant 0 : index
    %c0_461 = arith.constant 0 : index
    %c0_462 = arith.constant 0 : index
    %c0_463 = arith.constant 0 : index
    %435 = vector.load %arg3[%c0_460, %c0_461, %c0_462, %c0_463] : memref<1x8x8x12xf32, #tpu.memory_space<vmem>>, vector<1x8x8x12xf32>
    %436 = vector.shape_cast %435 : vector<1x8x8x12xf32> to vector<8x8x12xf32>
    %437 = vector.shape_cast %436 : vector<8x8x12xf32> to vector<64x12xf32>
    %438 = arith.truncf %437 : vector<64x12xf32> to vector<64x12xbf16>
    %c0_464 = arith.constant 0 : index
    %c0_465 = arith.constant 0 : index
    %439 = vector.load %arg13[%c0_464, %c0_465] : memref<12x12xbf16, #tpu.memory_space<vmem>>, vector<12x12xbf16>
    %cst_466 = arith.constant dense<0.000000e+00> : vector<64x12xf32>
    %440 = tpu.matmul %438, %439, %cst_466 {dimension_numbers = #tpu.dot_dimension_numbers<[1], [0], [0], [1], [0, 0, 1, 1], [], []>} : vector<64x12xbf16>, vector<12x12xbf16>, vector<64x12xf32> -> vector<64x12xf32>
    %c0_467 = arith.constant 0 : index
    %c0_468 = arith.constant 0 : index
    %441 = vector.load %arg14[%c0_467, %c0_468] : memref<1x12xf32, #tpu.memory_space<vmem>>, vector<1x12xf32>
    %442 = vector.broadcast %441 : vector<1x12xf32> to vector<64x12xf32>
    %443 = arith.addf %440, %442 : vector<64x12xf32>
    %444 = vector.shape_cast %443 : vector<64x12xf32> to vector<8x8x12xf32>
    %cst_469 = arith.constant dense<0xFF800000> : vector<8x8xf32>
    %445 = vector.multi_reduction <maximumf>, %444, %cst_469 [2] : vector<8x8x12xf32> to vector<8x8xf32>
    %446 = vector.shape_cast %445 : vector<8x8xf32> to vector<8x8x1xf32>
    %c0_470 = arith.constant 0 : index
    %c0_471 = arith.constant 0 : index
    %c0_472 = arith.constant 0 : index
    %c0_473 = arith.constant 0 : index
    %447 = vector.load %arg4[%c0_470, %c0_471, %c0_472, %c0_473] : memref<1x8x8x16xf32, #tpu.memory_space<vmem>>, vector<1x8x8x16xf32>
    %448 = vector.shape_cast %447 : vector<1x8x8x16xf32> to vector<8x8x16xf32>
    %449 = vector.shape_cast %448 : vector<8x8x16xf32> to vector<64x16xf32>
    %450 = arith.truncf %449 : vector<64x16xf32> to vector<64x16xbf16>
    %c0_474 = arith.constant 0 : index
    %c0_475 = arith.constant 0 : index
    %451 = vector.load %arg15[%c0_474, %c0_475] : memref<16x16xbf16, #tpu.memory_space<vmem>>, vector<16x16xbf16>
    %cst_476 = arith.constant dense<0.000000e+00> : vector<64x16xf32>
    %452 = tpu.matmul %450, %451, %cst_476 {dimension_numbers = #tpu.dot_dimension_numbers<[1], [0], [0], [1], [0, 0, 1, 1], [], []>} : vector<64x16xbf16>, vector<16x16xbf16>, vector<64x16xf32> -> vector<64x16xf32>
    %c0_477 = arith.constant 0 : index
    %c0_478 = arith.constant 0 : index
    %453 = vector.load %arg16[%c0_477, %c0_478] : memref<1x16xf32, #tpu.memory_space<vmem>>, vector<1x16xf32>
    %454 = vector.broadcast %453 : vector<1x16xf32> to vector<64x16xf32>
    %455 = arith.addf %452, %454 : vector<64x16xf32>
    %456 = vector.shape_cast %455 : vector<64x16xf32> to vector<8x8x16xf32>
    %cst_479 = arith.constant dense<0xFF800000> : vector<8x8xf32>
    %457 = vector.multi_reduction <maximumf>, %456, %cst_479 [2] : vector<8x8x16xf32> to vector<8x8xf32>
    %458 = vector.shape_cast %457 : vector<8x8xf32> to vector<8x8x1xf32>
    %459 = tpu.concatenate %422, %434, %446, %458 in 2 : vector<8x8x1xf32>, vector<8x8x1xf32>, vector<8x8x1xf32>, vector<8x8x1xf32> -> vector<8x8x4xf32>
    %c3_480 = arith.constant 3 : index
    %c3_481 = arith.constant 3 : index
    %c0_482 = arith.constant 0 : index
    %460 = vector.load %arg19[%c3_480, %c3_481, %c0_482] : memref<14x14x4xf32, #tpu.memory_space<vmem>>, vector<8x8x4xf32>
    tpu.vector_store %arg19[%c3_480, %c3_481, %c0_482], %459 {strides = array<i32>} : memref<14x14x4xf32, #tpu.memory_space<vmem>>, vector<8x8x4xf32>,
    %cst_483 = arith.constant 0.000000e+00 : f32
    %461 = vector.broadcast %cst_483 : f32 to vector<8x8x4xf32>
    %c0_484 = arith.constant 0 : index
    %c0_485 = arith.constant 0 : index
    %c0_486 = arith.constant 0 : index
    %462 = vector.load %arg19[%c0_484, %c0_485, %c0_486] : memref<14x14x4xf32, #tpu.memory_space<vmem>>, vector<8x8x4xf32>
    %c0_487 = arith.constant 0 : index
    %c0_488 = arith.constant 0 : index
    %463 = vector.load %arg10[%c0_487, %c0_488] : memref<49x4xf32, #tpu.memory_space<vmem>>, vector<1x4xf32>
    %464 = vector.shape_cast %463 : vector<1x4xf32> to vector<4xf32>
    %465 = vector.shape_cast %464 : vector<4xf32> to vector<1x1x4xf32>
    %466 = vector.broadcast %465 : vector<1x1x4xf32> to vector<8x8x4xf32>
    %467 = arith.mulf %462, %466 : vector<8x8x4xf32>
    %468 = arith.addf %461, %467 : vector<8x8x4xf32>
    %c0_489 = arith.constant 0 : index
    %c1_490 = arith.constant 1 : index
    %c0_491 = arith.constant 0 : index
    %469 = vector.load %arg19[%c0_489, %c1_490, %c0_491] : memref<14x14x4xf32, #tpu.memory_space<vmem>>, vector<8x8x4xf32>
    %c1_492 = arith.constant 1 : index
    %c0_493 = arith.constant 0 : index
    %470 = vector.load %arg10[%c1_492, %c0_493] : memref<49x4xf32, #tpu.memory_space<vmem>>, vector<1x4xf32>
    %471 = vector.shape_cast %470 : vector<1x4xf32> to vector<4xf32>
    %472 = vector.shape_cast %471 : vector<4xf32> to vector<1x1x4xf32>
    %473 = vector.broadcast %472 : vector<1x1x4xf32> to vector<8x8x4xf32>
    %474 = arith.mulf %469, %473 : vector<8x8x4xf32>
    %475 = arith.addf %468, %474 : vector<8x8x4xf32>
    %c0_494 = arith.constant 0 : index
    %c2_495 = arith.constant 2 : index
    %c0_496 = arith.constant 0 : index
    %476 = vector.load %arg19[%c0_494, %c2_495, %c0_496] : memref<14x14x4xf32, #tpu.memory_space<vmem>>, vector<8x8x4xf32>
    %c2_497 = arith.constant 2 : index
    %c0_498 = arith.constant 0 : index
    %477 = vector.load %arg10[%c2_497, %c0_498] : memref<49x4xf32, #tpu.memory_space<vmem>>, vector<1x4xf32>
    %478 = vector.shape_cast %477 : vector<1x4xf32> to vector<4xf32>
    %479 = vector.shape_cast %478 : vector<4xf32> to vector<1x1x4xf32>
    %480 = vector.broadcast %479 : vector<1x1x4xf32> to vector<8x8x4xf32>
    %481 = arith.mulf %476, %480 : vector<8x8x4xf32>
    %482 = arith.addf %475, %481 : vector<8x8x4xf32>
    %c0_499 = arith.constant 0 : index
    %c3_500 = arith.constant 3 : index
    %c0_501 = arith.constant 0 : index
    %483 = vector.load %arg19[%c0_499, %c3_500, %c0_501] : memref<14x14x4xf32, #tpu.memory_space<vmem>>, vector<8x8x4xf32>
    %c3_502 = arith.constant 3 : index
    %c0_503 = arith.constant 0 : index
    %484 = vector.load %arg10[%c3_502, %c0_503] : memref<49x4xf32, #tpu.memory_space<vmem>>, vector<1x4xf32>
    %485 = vector.shape_cast %484 : vector<1x4xf32> to vector<4xf32>
    %486 = vector.shape_cast %485 : vector<4xf32> to vector<1x1x4xf32>
    %487 = vector.broadcast %486 : vector<1x1x4xf32> to vector<8x8x4xf32>
    %488 = arith.mulf %483, %487 : vector<8x8x4xf32>
    %489 = arith.addf %482, %488 : vector<8x8x4xf32>
    %c0_504 = arith.constant 0 : index
    %c4_505 = arith.constant 4 : index
    %c0_506 = arith.constant 0 : index
    %490 = vector.load %arg19[%c0_504, %c4_505, %c0_506] : memref<14x14x4xf32, #tpu.memory_space<vmem>>, vector<8x8x4xf32>
    %c4_507 = arith.constant 4 : index
    %c0_508 = arith.constant 0 : index
    %491 = vector.load %arg10[%c4_507, %c0_508] : memref<49x4xf32, #tpu.memory_space<vmem>>, vector<1x4xf32>
    %492 = vector.shape_cast %491 : vector<1x4xf32> to vector<4xf32>
    %493 = vector.shape_cast %492 : vector<4xf32> to vector<1x1x4xf32>
    %494 = vector.broadcast %493 : vector<1x1x4xf32> to vector<8x8x4xf32>
    %495 = arith.mulf %490, %494 : vector<8x8x4xf32>
    %496 = arith.addf %489, %495 : vector<8x8x4xf32>
    %c0_509 = arith.constant 0 : index
    %c5_510 = arith.constant 5 : index
    %c0_511 = arith.constant 0 : index
    %497 = vector.load %arg19[%c0_509, %c5_510, %c0_511] : memref<14x14x4xf32, #tpu.memory_space<vmem>>, vector<8x8x4xf32>
    %c5_512 = arith.constant 5 : index
    %c0_513 = arith.constant 0 : index
    %498 = vector.load %arg10[%c5_512, %c0_513] : memref<49x4xf32, #tpu.memory_space<vmem>>, vector<1x4xf32>
    %499 = vector.shape_cast %498 : vector<1x4xf32> to vector<4xf32>
    %500 = vector.shape_cast %499 : vector<4xf32> to vector<1x1x4xf32>
    %501 = vector.broadcast %500 : vector<1x1x4xf32> to vector<8x8x4xf32>
    %502 = arith.mulf %497, %501 : vector<8x8x4xf32>
    %503 = arith.addf %496, %502 : vector<8x8x4xf32>
    %c0_514 = arith.constant 0 : index
    %c6_515 = arith.constant 6 : index
    %c0_516 = arith.constant 0 : index
    %504 = vector.load %arg19[%c0_514, %c6_515, %c0_516] : memref<14x14x4xf32, #tpu.memory_space<vmem>>, vector<8x8x4xf32>
    %c6_517 = arith.constant 6 : index
    %c0_518 = arith.constant 0 : index
    %505 = vector.load %arg10[%c6_517, %c0_518] : memref<49x4xf32, #tpu.memory_space<vmem>>, vector<1x4xf32>
    %506 = vector.shape_cast %505 : vector<1x4xf32> to vector<4xf32>
    %507 = vector.shape_cast %506 : vector<4xf32> to vector<1x1x4xf32>
    %508 = vector.broadcast %507 : vector<1x1x4xf32> to vector<8x8x4xf32>
    %509 = arith.mulf %504, %508 : vector<8x8x4xf32>
    %510 = arith.addf %503, %509 : vector<8x8x4xf32>
    %c1_519 = arith.constant 1 : index
    %c0_520 = arith.constant 0 : index
    %c0_521 = arith.constant 0 : index
    %511 = vector.load %arg19[%c1_519, %c0_520, %c0_521] : memref<14x14x4xf32, #tpu.memory_space<vmem>>, vector<8x8x4xf32>
    %c7_522 = arith.constant 7 : index
    %c0_523 = arith.constant 0 : index
    %512 = vector.load %arg10[%c7_522, %c0_523] : memref<49x4xf32, #tpu.memory_space<vmem>>, vector<1x4xf32>
    %513 = vector.shape_cast %512 : vector<1x4xf32> to vector<4xf32>
    %514 = vector.shape_cast %513 : vector<4xf32> to vector<1x1x4xf32>
    %515 = vector.broadcast %514 : vector<1x1x4xf32> to vector<8x8x4xf32>
    %516 = arith.mulf %511, %515 : vector<8x8x4xf32>
    %517 = arith.addf %510, %516 : vector<8x8x4xf32>
    %c1_524 = arith.constant 1 : index
    %c1_525 = arith.constant 1 : index
    %c0_526 = arith.constant 0 : index
    %518 = vector.load %arg19[%c1_524, %c1_525, %c0_526] : memref<14x14x4xf32, #tpu.memory_space<vmem>>, vector<8x8x4xf32>
    %c8_527 = arith.constant 8 : index
    %c0_528 = arith.constant 0 : index
    %519 = vector.load %arg10[%c8_527, %c0_528] : memref<49x4xf32, #tpu.memory_space<vmem>>, vector<1x4xf32>
    %520 = vector.shape_cast %519 : vector<1x4xf32> to vector<4xf32>
    %521 = vector.shape_cast %520 : vector<4xf32> to vector<1x1x4xf32>
    %522 = vector.broadcast %521 : vector<1x1x4xf32> to vector<8x8x4xf32>
    %523 = arith.mulf %518, %522 : vector<8x8x4xf32>
    %524 = arith.addf %517, %523 : vector<8x8x4xf32>
    %c1_529 = arith.constant 1 : index
    %c2_530 = arith.constant 2 : index
    %c0_531 = arith.constant 0 : index
    %525 = vector.load %arg19[%c1_529, %c2_530, %c0_531] : memref<14x14x4xf32, #tpu.memory_space<vmem>>, vector<8x8x4xf32>
    %c9 = arith.constant 9 : index
    %c0_532 = arith.constant 0 : index
    %526 = vector.load %arg10[%c9, %c0_532] : memref<49x4xf32, #tpu.memory_space<vmem>>, vector<1x4xf32>
    %527 = vector.shape_cast %526 : vector<1x4xf32> to vector<4xf32>
    %528 = vector.shape_cast %527 : vector<4xf32> to vector<1x1x4xf32>
    %529 = vector.broadcast %528 : vector<1x1x4xf32> to vector<8x8x4xf32>
    %530 = arith.mulf %525, %529 : vector<8x8x4xf32>
    %531 = arith.addf %524, %530 : vector<8x8x4xf32>
    %c1_533 = arith.constant 1 : index
    %c3_534 = arith.constant 3 : index
    %c0_535 = arith.constant 0 : index
    %532 = vector.load %arg19[%c1_533, %c3_534, %c0_535] : memref<14x14x4xf32, #tpu.memory_space<vmem>>, vector<8x8x4xf32>
    %c10 = arith.constant 10 : index
    %c0_536 = arith.constant 0 : index
    %533 = vector.load %arg10[%c10, %c0_536] : memref<49x4xf32, #tpu.memory_space<vmem>>, vector<1x4xf32>
    %534 = vector.shape_cast %533 : vector<1x4xf32> to vector<4xf32>
    %535 = vector.shape_cast %534 : vector<4xf32> to vector<1x1x4xf32>
    %536 = vector.broadcast %535 : vector<1x1x4xf32> to vector<8x8x4xf32>
    %537 = arith.mulf %532, %536 : vector<8x8x4xf32>
    %538 = arith.addf %531, %537 : vector<8x8x4xf32>
    %c1_537 = arith.constant 1 : index
    %c4_538 = arith.constant 4 : index
    %c0_539 = arith.constant 0 : index
    %539 = vector.load %arg19[%c1_537, %c4_538, %c0_539] : memref<14x14x4xf32, #tpu.memory_space<vmem>>, vector<8x8x4xf32>
    %c11_540 = arith.constant 11 : index
    %c0_541 = arith.constant 0 : index
    %540 = vector.load %arg10[%c11_540, %c0_541] : memref<49x4xf32, #tpu.memory_space<vmem>>, vector<1x4xf32>
    %541 = vector.shape_cast %540 : vector<1x4xf32> to vector<4xf32>
    %542 = vector.shape_cast %541 : vector<4xf32> to vector<1x1x4xf32>
    %543 = vector.broadcast %542 : vector<1x1x4xf32> to vector<8x8x4xf32>
    %544 = arith.mulf %539, %543 : vector<8x8x4xf32>
    %545 = arith.addf %538, %544 : vector<8x8x4xf32>
    %c1_542 = arith.constant 1 : index
    %c5_543 = arith.constant 5 : index
    %c0_544 = arith.constant 0 : index
    %546 = vector.load %arg19[%c1_542, %c5_543, %c0_544] : memref<14x14x4xf32, #tpu.memory_space<vmem>>, vector<8x8x4xf32>
    %c12_545 = arith.constant 12 : index
    %c0_546 = arith.constant 0 : index
    %547 = vector.load %arg10[%c12_545, %c0_546] : memref<49x4xf32, #tpu.memory_space<vmem>>, vector<1x4xf32>
    %548 = vector.shape_cast %547 : vector<1x4xf32> to vector<4xf32>
    %549 = vector.shape_cast %548 : vector<4xf32> to vector<1x1x4xf32>
    %550 = vector.broadcast %549 : vector<1x1x4xf32> to vector<8x8x4xf32>
    %551 = arith.mulf %546, %550 : vector<8x8x4xf32>
    %552 = arith.addf %545, %551 : vector<8x8x4xf32>
    %c1_547 = arith.constant 1 : index
    %c6_548 = arith.constant 6 : index
    %c0_549 = arith.constant 0 : index
    %553 = vector.load %arg19[%c1_547, %c6_548, %c0_549] : memref<14x14x4xf32, #tpu.memory_space<vmem>>, vector<8x8x4xf32>
    %c13 = arith.constant 13 : index
    %c0_550 = arith.constant 0 : index
    %554 = vector.load %arg10[%c13, %c0_550] : memref<49x4xf32, #tpu.memory_space<vmem>>, vector<1x4xf32>
    %555 = vector.shape_cast %554 : vector<1x4xf32> to vector<4xf32>
    %556 = vector.shape_cast %555 : vector<4xf32> to vector<1x1x4xf32>
    %557 = vector.broadcast %556 : vector<1x1x4xf32> to vector<8x8x4xf32>
    %558 = arith.mulf %553, %557 : vector<8x8x4xf32>
    %559 = arith.addf %552, %558 : vector<8x8x4xf32>
    %c2_551 = arith.constant 2 : index
    %c0_552 = arith.constant 0 : index
    %c0_553 = arith.constant 0 : index
    %560 = vector.load %arg19[%c2_551, %c0_552, %c0_553] : memref<14x14x4xf32, #tpu.memory_space<vmem>>, vector<8x8x4xf32>
    %c14 = arith.constant 14 : index
    %c0_554 = arith.constant 0 : index
    %561 = vector.load %arg10[%c14, %c0_554] : memref<49x4xf32, #tpu.memory_space<vmem>>, vector<1x4xf32>
    %562 = vector.shape_cast %561 : vector<1x4xf32> to vector<4xf32>
    %563 = vector.shape_cast %562 : vector<4xf32> to vector<1x1x4xf32>
    %564 = vector.broadcast %563 : vector<1x1x4xf32> to vector<8x8x4xf32>
    %565 = arith.mulf %560, %564 : vector<8x8x4xf32>
    %566 = arith.addf %559, %565 : vector<8x8x4xf32>
    %c2_555 = arith.constant 2 : index
    %c1_556 = arith.constant 1 : index
    %c0_557 = arith.constant 0 : index
    %567 = vector.load %arg19[%c2_555, %c1_556, %c0_557] : memref<14x14x4xf32, #tpu.memory_space<vmem>>, vector<8x8x4xf32>
    %c15 = arith.constant 15 : index
    %c0_558 = arith.constant 0 : index
    %568 = vector.load %arg10[%c15, %c0_558] : memref<49x4xf32, #tpu.memory_space<vmem>>, vector<1x4xf32>
    %569 = vector.shape_cast %568 : vector<1x4xf32> to vector<4xf32>
    %570 = vector.shape_cast %569 : vector<4xf32> to vector<1x1x4xf32>
    %571 = vector.broadcast %570 : vector<1x1x4xf32> to vector<8x8x4xf32>
    %572 = arith.mulf %567, %571 : vector<8x8x4xf32>
    %573 = arith.addf %566, %572 : vector<8x8x4xf32>
    %c2_559 = arith.constant 2 : index
    %c2_560 = arith.constant 2 : index
    %c0_561 = arith.constant 0 : index
    %574 = vector.load %arg19[%c2_559, %c2_560, %c0_561] : memref<14x14x4xf32, #tpu.memory_space<vmem>>, vector<8x8x4xf32>
    %c16 = arith.constant 16 : index
    %c0_562 = arith.constant 0 : index
    %575 = vector.load %arg10[%c16, %c0_562] : memref<49x4xf32, #tpu.memory_space<vmem>>, vector<1x4xf32>
    %576 = vector.shape_cast %575 : vector<1x4xf32> to vector<4xf32>
    %577 = vector.shape_cast %576 : vector<4xf32> to vector<1x1x4xf32>
    %578 = vector.broadcast %577 : vector<1x1x4xf32> to vector<8x8x4xf32>
    %579 = arith.mulf %574, %578 : vector<8x8x4xf32>
    %580 = arith.addf %573, %579 : vector<8x8x4xf32>
    %c2_563 = arith.constant 2 : index
    %c3_564 = arith.constant 3 : index
    %c0_565 = arith.constant 0 : index
    %581 = vector.load %arg19[%c2_563, %c3_564, %c0_565] : memref<14x14x4xf32, #tpu.memory_space<vmem>>, vector<8x8x4xf32>
    %c17 = arith.constant 17 : index
    %c0_566 = arith.constant 0 : index
    %582 = vector.load %arg10[%c17, %c0_566] : memref<49x4xf32, #tpu.memory_space<vmem>>, vector<1x4xf32>
    %583 = vector.shape_cast %582 : vector<1x4xf32> to vector<4xf32>
    %584 = vector.shape_cast %583 : vector<4xf32> to vector<1x1x4xf32>
    %585 = vector.broadcast %584 : vector<1x1x4xf32> to vector<8x8x4xf32>
    %586 = arith.mulf %581, %585 : vector<8x8x4xf32>
    %587 = arith.addf %580, %586 : vector<8x8x4xf32>
    %c2_567 = arith.constant 2 : index
    %c4_568 = arith.constant 4 : index
    %c0_569 = arith.constant 0 : index
    %588 = vector.load %arg19[%c2_567, %c4_568, %c0_569] : memref<14x14x4xf32, #tpu.memory_space<vmem>>, vector<8x8x4xf32>
    %c18 = arith.constant 18 : index
    %c0_570 = arith.constant 0 : index
    %589 = vector.load %arg10[%c18, %c0_570] : memref<49x4xf32, #tpu.memory_space<vmem>>, vector<1x4xf32>
    %590 = vector.shape_cast %589 : vector<1x4xf32> to vector<4xf32>
    %591 = vector.shape_cast %590 : vector<4xf32> to vector<1x1x4xf32>
    %592 = vector.broadcast %591 : vector<1x1x4xf32> to vector<8x8x4xf32>
    %593 = arith.mulf %588, %592 : vector<8x8x4xf32>
    %594 = arith.addf %587, %593 : vector<8x8x4xf32>
    %c2_571 = arith.constant 2 : index
    %c5_572 = arith.constant 5 : index
    %c0_573 = arith.constant 0 : index
    %595 = vector.load %arg19[%c2_571, %c5_572, %c0_573] : memref<14x14x4xf32, #tpu.memory_space<vmem>>, vector<8x8x4xf32>
    %c19 = arith.constant 19 : index
    %c0_574 = arith.constant 0 : index
    %596 = vector.load %arg10[%c19, %c0_574] : memref<49x4xf32, #tpu.memory_space<vmem>>, vector<1x4xf32>
    %597 = vector.shape_cast %596 : vector<1x4xf32> to vector<4xf32>
    %598 = vector.shape_cast %597 : vector<4xf32> to vector<1x1x4xf32>
    %599 = vector.broadcast %598 : vector<1x1x4xf32> to vector<8x8x4xf32>
    %600 = arith.mulf %595, %599 : vector<8x8x4xf32>
    %601 = arith.addf %594, %600 : vector<8x8x4xf32>
    %c2_575 = arith.constant 2 : index
    %c6_576 = arith.constant 6 : index
    %c0_577 = arith.constant 0 : index
    %602 = vector.load %arg19[%c2_575, %c6_576, %c0_577] : memref<14x14x4xf32, #tpu.memory_space<vmem>>, vector<8x8x4xf32>
    %c20 = arith.constant 20 : index
    %c0_578 = arith.constant 0 : index
    %603 = vector.load %arg10[%c20, %c0_578] : memref<49x4xf32, #tpu.memory_space<vmem>>, vector<1x4xf32>
    %604 = vector.shape_cast %603 : vector<1x4xf32> to vector<4xf32>
    %605 = vector.shape_cast %604 : vector<4xf32> to vector<1x1x4xf32>
    %606 = vector.broadcast %605 : vector<1x1x4xf32> to vector<8x8x4xf32>
    %607 = arith.mulf %602, %606 : vector<8x8x4xf32>
    %608 = arith.addf %601, %607 : vector<8x8x4xf32>
    %c3_579 = arith.constant 3 : index
    %c0_580 = arith.constant 0 : index
    %c0_581 = arith.constant 0 : index
    %609 = vector.load %arg19[%c3_579, %c0_580, %c0_581] : memref<14x14x4xf32, #tpu.memory_space<vmem>>, vector<8x8x4xf32>
    %c21 = arith.constant 21 : index
    %c0_582 = arith.constant 0 : index
    %610 = vector.load %arg10[%c21, %c0_582] : memref<49x4xf32, #tpu.memory_space<vmem>>, vector<1x4xf32>
    %611 = vector.shape_cast %610 : vector<1x4xf32> to vector<4xf32>
    %612 = vector.shape_cast %611 : vector<4xf32> to vector<1x1x4xf32>
    %613 = vector.broadcast %612 : vector<1x1x4xf32> to vector<8x8x4xf32>
    %614 = arith.mulf %609, %613 : vector<8x8x4xf32>
    %615 = arith.addf %608, %614 : vector<8x8x4xf32>
    %c3_583 = arith.constant 3 : index
    %c1_584 = arith.constant 1 : index
    %c0_585 = arith.constant 0 : index
    %616 = vector.load %arg19[%c3_583, %c1_584, %c0_585] : memref<14x14x4xf32, #tpu.memory_space<vmem>>, vector<8x8x4xf32>
    %c22 = arith.constant 22 : index
    %c0_586 = arith.constant 0 : index
    %617 = vector.load %arg10[%c22, %c0_586] : memref<49x4xf32, #tpu.memory_space<vmem>>, vector<1x4xf32>
    %618 = vector.shape_cast %617 : vector<1x4xf32> to vector<4xf32>
    %619 = vector.shape_cast %618 : vector<4xf32> to vector<1x1x4xf32>
    %620 = vector.broadcast %619 : vector<1x1x4xf32> to vector<8x8x4xf32>
    %621 = arith.mulf %616, %620 : vector<8x8x4xf32>
    %622 = arith.addf %615, %621 : vector<8x8x4xf32>
    %c3_587 = arith.constant 3 : index
    %c2_588 = arith.constant 2 : index
    %c0_589 = arith.constant 0 : index
    %623 = vector.load %arg19[%c3_587, %c2_588, %c0_589] : memref<14x14x4xf32, #tpu.memory_space<vmem>>, vector<8x8x4xf32>
    %c23 = arith.constant 23 : index
    %c0_590 = arith.constant 0 : index
    %624 = vector.load %arg10[%c23, %c0_590] : memref<49x4xf32, #tpu.memory_space<vmem>>, vector<1x4xf32>
    %625 = vector.shape_cast %624 : vector<1x4xf32> to vector<4xf32>
    %626 = vector.shape_cast %625 : vector<4xf32> to vector<1x1x4xf32>
    %627 = vector.broadcast %626 : vector<1x1x4xf32> to vector<8x8x4xf32>
    %628 = arith.mulf %623, %627 : vector<8x8x4xf32>
    %629 = arith.addf %622, %628 : vector<8x8x4xf32>
    %c3_591 = arith.constant 3 : index
    %c3_592 = arith.constant 3 : index
    %c0_593 = arith.constant 0 : index
    %630 = vector.load %arg19[%c3_591, %c3_592, %c0_593] : memref<14x14x4xf32, #tpu.memory_space<vmem>>, vector<8x8x4xf32>
    %c24 = arith.constant 24 : index
    %c0_594 = arith.constant 0 : index
    %631 = vector.load %arg10[%c24, %c0_594] : memref<49x4xf32, #tpu.memory_space<vmem>>, vector<1x4xf32>
    %632 = vector.shape_cast %631 : vector<1x4xf32> to vector<4xf32>
    %633 = vector.shape_cast %632 : vector<4xf32> to vector<1x1x4xf32>
    %634 = vector.broadcast %633 : vector<1x1x4xf32> to vector<8x8x4xf32>
    %635 = arith.mulf %630, %634 : vector<8x8x4xf32>
    %636 = arith.addf %629, %635 : vector<8x8x4xf32>
    %c3_595 = arith.constant 3 : index
    %c4_596 = arith.constant 4 : index
    %c0_597 = arith.constant 0 : index
    %637 = vector.load %arg19[%c3_595, %c4_596, %c0_597] : memref<14x14x4xf32, #tpu.memory_space<vmem>>, vector<8x8x4xf32>
    %c25 = arith.constant 25 : index
    %c0_598 = arith.constant 0 : index
    %638 = vector.load %arg10[%c25, %c0_598] : memref<49x4xf32, #tpu.memory_space<vmem>>, vector<1x4xf32>
    %639 = vector.shape_cast %638 : vector<1x4xf32> to vector<4xf32>
    %640 = vector.shape_cast %639 : vector<4xf32> to vector<1x1x4xf32>
    %641 = vector.broadcast %640 : vector<1x1x4xf32> to vector<8x8x4xf32>
    %642 = arith.mulf %637, %641 : vector<8x8x4xf32>
    %643 = arith.addf %636, %642 : vector<8x8x4xf32>
    %c3_599 = arith.constant 3 : index
    %c5_600 = arith.constant 5 : index
    %c0_601 = arith.constant 0 : index
    %644 = vector.load %arg19[%c3_599, %c5_600, %c0_601] : memref<14x14x4xf32, #tpu.memory_space<vmem>>, vector<8x8x4xf32>
    %c26 = arith.constant 26 : index
    %c0_602 = arith.constant 0 : index
    %645 = vector.load %arg10[%c26, %c0_602] : memref<49x4xf32, #tpu.memory_space<vmem>>, vector<1x4xf32>
    %646 = vector.shape_cast %645 : vector<1x4xf32> to vector<4xf32>
    %647 = vector.shape_cast %646 : vector<4xf32> to vector<1x1x4xf32>
    %648 = vector.broadcast %647 : vector<1x1x4xf32> to vector<8x8x4xf32>
    %649 = arith.mulf %644, %648 : vector<8x8x4xf32>
    %650 = arith.addf %643, %649 : vector<8x8x4xf32>
    %c3_603 = arith.constant 3 : index
    %c6_604 = arith.constant 6 : index
    %c0_605 = arith.constant 0 : index
    %651 = vector.load %arg19[%c3_603, %c6_604, %c0_605] : memref<14x14x4xf32, #tpu.memory_space<vmem>>, vector<8x8x4xf32>
    %c27 = arith.constant 27 : index
    %c0_606 = arith.constant 0 : index
    %652 = vector.load %arg10[%c27, %c0_606] : memref<49x4xf32, #tpu.memory_space<vmem>>, vector<1x4xf32>
    %653 = vector.shape_cast %652 : vector<1x4xf32> to vector<4xf32>
    %654 = vector.shape_cast %653 : vector<4xf32> to vector<1x1x4xf32>
    %655 = vector.broadcast %654 : vector<1x1x4xf32> to vector<8x8x4xf32>
    %656 = arith.mulf %651, %655 : vector<8x8x4xf32>
    %657 = arith.addf %650, %656 : vector<8x8x4xf32>
    %c4_607 = arith.constant 4 : index
    %c0_608 = arith.constant 0 : index
    %c0_609 = arith.constant 0 : index
    %658 = vector.load %arg19[%c4_607, %c0_608, %c0_609] : memref<14x14x4xf32, #tpu.memory_space<vmem>>, vector<8x8x4xf32>
    %c28 = arith.constant 28 : index
    %c0_610 = arith.constant 0 : index
    %659 = vector.load %arg10[%c28, %c0_610] : memref<49x4xf32, #tpu.memory_space<vmem>>, vector<1x4xf32>
    %660 = vector.shape_cast %659 : vector<1x4xf32> to vector<4xf32>
    %661 = vector.shape_cast %660 : vector<4xf32> to vector<1x1x4xf32>
    %662 = vector.broadcast %661 : vector<1x1x4xf32> to vector<8x8x4xf32>
    %663 = arith.mulf %658, %662 : vector<8x8x4xf32>
    %664 = arith.addf %657, %663 : vector<8x8x4xf32>
    %c4_611 = arith.constant 4 : index
    %c1_612 = arith.constant 1 : index
    %c0_613 = arith.constant 0 : index
    %665 = vector.load %arg19[%c4_611, %c1_612, %c0_613] : memref<14x14x4xf32, #tpu.memory_space<vmem>>, vector<8x8x4xf32>
    %c29 = arith.constant 29 : index
    %c0_614 = arith.constant 0 : index
    %666 = vector.load %arg10[%c29, %c0_614] : memref<49x4xf32, #tpu.memory_space<vmem>>, vector<1x4xf32>
    %667 = vector.shape_cast %666 : vector<1x4xf32> to vector<4xf32>
    %668 = vector.shape_cast %667 : vector<4xf32> to vector<1x1x4xf32>
    %669 = vector.broadcast %668 : vector<1x1x4xf32> to vector<8x8x4xf32>
    %670 = arith.mulf %665, %669 : vector<8x8x4xf32>
    %671 = arith.addf %664, %670 : vector<8x8x4xf32>
    %c4_615 = arith.constant 4 : index
    %c2_616 = arith.constant 2 : index
    %c0_617 = arith.constant 0 : index
    %672 = vector.load %arg19[%c4_615, %c2_616, %c0_617] : memref<14x14x4xf32, #tpu.memory_space<vmem>>, vector<8x8x4xf32>
    %c30 = arith.constant 30 : index
    %c0_618 = arith.constant 0 : index
    %673 = vector.load %arg10[%c30, %c0_618] : memref<49x4xf32, #tpu.memory_space<vmem>>, vector<1x4xf32>
    %674 = vector.shape_cast %673 : vector<1x4xf32> to vector<4xf32>
    %675 = vector.shape_cast %674 : vector<4xf32> to vector<1x1x4xf32>
    %676 = vector.broadcast %675 : vector<1x1x4xf32> to vector<8x8x4xf32>
    %677 = arith.mulf %672, %676 : vector<8x8x4xf32>
    %678 = arith.addf %671, %677 : vector<8x8x4xf32>
    %c4_619 = arith.constant 4 : index
    %c3_620 = arith.constant 3 : index
    %c0_621 = arith.constant 0 : index
    %679 = vector.load %arg19[%c4_619, %c3_620, %c0_621] : memref<14x14x4xf32, #tpu.memory_space<vmem>>, vector<8x8x4xf32>
    %c31 = arith.constant 31 : index
    %c0_622 = arith.constant 0 : index
    %680 = vector.load %arg10[%c31, %c0_622] : memref<49x4xf32, #tpu.memory_space<vmem>>, vector<1x4xf32>
    %681 = vector.shape_cast %680 : vector<1x4xf32> to vector<4xf32>
    %682 = vector.shape_cast %681 : vector<4xf32> to vector<1x1x4xf32>
    %683 = vector.broadcast %682 : vector<1x1x4xf32> to vector<8x8x4xf32>
    %684 = arith.mulf %679, %683 : vector<8x8x4xf32>
    %685 = arith.addf %678, %684 : vector<8x8x4xf32>
    %c4_623 = arith.constant 4 : index
    %c4_624 = arith.constant 4 : index
    %c0_625 = arith.constant 0 : index
    %686 = vector.load %arg19[%c4_623, %c4_624, %c0_625] : memref<14x14x4xf32, #tpu.memory_space<vmem>>, vector<8x8x4xf32>
    %c32 = arith.constant 32 : index
    %c0_626 = arith.constant 0 : index
    %687 = vector.load %arg10[%c32, %c0_626] : memref<49x4xf32, #tpu.memory_space<vmem>>, vector<1x4xf32>
    %688 = vector.shape_cast %687 : vector<1x4xf32> to vector<4xf32>
    %689 = vector.shape_cast %688 : vector<4xf32> to vector<1x1x4xf32>
    %690 = vector.broadcast %689 : vector<1x1x4xf32> to vector<8x8x4xf32>
    %691 = arith.mulf %686, %690 : vector<8x8x4xf32>
    %692 = arith.addf %685, %691 : vector<8x8x4xf32>
    %c4_627 = arith.constant 4 : index
    %c5_628 = arith.constant 5 : index
    %c0_629 = arith.constant 0 : index
    %693 = vector.load %arg19[%c4_627, %c5_628, %c0_629] : memref<14x14x4xf32, #tpu.memory_space<vmem>>, vector<8x8x4xf32>
    %c33 = arith.constant 33 : index
    %c0_630 = arith.constant 0 : index
    %694 = vector.load %arg10[%c33, %c0_630] : memref<49x4xf32, #tpu.memory_space<vmem>>, vector<1x4xf32>
    %695 = vector.shape_cast %694 : vector<1x4xf32> to vector<4xf32>
    %696 = vector.shape_cast %695 : vector<4xf32> to vector<1x1x4xf32>
    %697 = vector.broadcast %696 : vector<1x1x4xf32> to vector<8x8x4xf32>
    %698 = arith.mulf %693, %697 : vector<8x8x4xf32>
    %699 = arith.addf %692, %698 : vector<8x8x4xf32>
    %c4_631 = arith.constant 4 : index
    %c6_632 = arith.constant 6 : index
    %c0_633 = arith.constant 0 : index
    %700 = vector.load %arg19[%c4_631, %c6_632, %c0_633] : memref<14x14x4xf32, #tpu.memory_space<vmem>>, vector<8x8x4xf32>
    %c34 = arith.constant 34 : index
    %c0_634 = arith.constant 0 : index
    %701 = vector.load %arg10[%c34, %c0_634] : memref<49x4xf32, #tpu.memory_space<vmem>>, vector<1x4xf32>
    %702 = vector.shape_cast %701 : vector<1x4xf32> to vector<4xf32>
    %703 = vector.shape_cast %702 : vector<4xf32> to vector<1x1x4xf32>
    %704 = vector.broadcast %703 : vector<1x1x4xf32> to vector<8x8x4xf32>
    %705 = arith.mulf %700, %704 : vector<8x8x4xf32>
    %706 = arith.addf %699, %705 : vector<8x8x4xf32>
    %c5_635 = arith.constant 5 : index
    %c0_636 = arith.constant 0 : index
    %c0_637 = arith.constant 0 : index
    %707 = vector.load %arg19[%c5_635, %c0_636, %c0_637] : memref<14x14x4xf32, #tpu.memory_space<vmem>>, vector<8x8x4xf32>
    %c35 = arith.constant 35 : index
    %c0_638 = arith.constant 0 : index
    %708 = vector.load %arg10[%c35, %c0_638] : memref<49x4xf32, #tpu.memory_space<vmem>>, vector<1x4xf32>
    %709 = vector.shape_cast %708 : vector<1x4xf32> to vector<4xf32>
    %710 = vector.shape_cast %709 : vector<4xf32> to vector<1x1x4xf32>
    %711 = vector.broadcast %710 : vector<1x1x4xf32> to vector<8x8x4xf32>
    %712 = arith.mulf %707, %711 : vector<8x8x4xf32>
    %713 = arith.addf %706, %712 : vector<8x8x4xf32>
    %c5_639 = arith.constant 5 : index
    %c1_640 = arith.constant 1 : index
    %c0_641 = arith.constant 0 : index
    %714 = vector.load %arg19[%c5_639, %c1_640, %c0_641] : memref<14x14x4xf32, #tpu.memory_space<vmem>>, vector<8x8x4xf32>
    %c36 = arith.constant 36 : index
    %c0_642 = arith.constant 0 : index
    %715 = vector.load %arg10[%c36, %c0_642] : memref<49x4xf32, #tpu.memory_space<vmem>>, vector<1x4xf32>
    %716 = vector.shape_cast %715 : vector<1x4xf32> to vector<4xf32>
    %717 = vector.shape_cast %716 : vector<4xf32> to vector<1x1x4xf32>
    %718 = vector.broadcast %717 : vector<1x1x4xf32> to vector<8x8x4xf32>
    %719 = arith.mulf %714, %718 : vector<8x8x4xf32>
    %720 = arith.addf %713, %719 : vector<8x8x4xf32>
    %c5_643 = arith.constant 5 : index
    %c2_644 = arith.constant 2 : index
    %c0_645 = arith.constant 0 : index
    %721 = vector.load %arg19[%c5_643, %c2_644, %c0_645] : memref<14x14x4xf32, #tpu.memory_space<vmem>>, vector<8x8x4xf32>
    %c37 = arith.constant 37 : index
    %c0_646 = arith.constant 0 : index
    %722 = vector.load %arg10[%c37, %c0_646] : memref<49x4xf32, #tpu.memory_space<vmem>>, vector<1x4xf32>
    %723 = vector.shape_cast %722 : vector<1x4xf32> to vector<4xf32>
    %724 = vector.shape_cast %723 : vector<4xf32> to vector<1x1x4xf32>
    %725 = vector.broadcast %724 : vector<1x1x4xf32> to vector<8x8x4xf32>
    %726 = arith.mulf %721, %725 : vector<8x8x4xf32>
    %727 = arith.addf %720, %726 : vector<8x8x4xf32>
    %c5_647 = arith.constant 5 : index
    %c3_648 = arith.constant 3 : index
    %c0_649 = arith.constant 0 : index
    %728 = vector.load %arg19[%c5_647, %c3_648, %c0_649] : memref<14x14x4xf32, #tpu.memory_space<vmem>>, vector<8x8x4xf32>
    %c38 = arith.constant 38 : index
    %c0_650 = arith.constant 0 : index
    %729 = vector.load %arg10[%c38, %c0_650] : memref<49x4xf32, #tpu.memory_space<vmem>>, vector<1x4xf32>
    %730 = vector.shape_cast %729 : vector<1x4xf32> to vector<4xf32>
    %731 = vector.shape_cast %730 : vector<4xf32> to vector<1x1x4xf32>
    %732 = vector.broadcast %731 : vector<1x1x4xf32> to vector<8x8x4xf32>
    %733 = arith.mulf %728, %732 : vector<8x8x4xf32>
    %734 = arith.addf %727, %733 : vector<8x8x4xf32>
    %c5_651 = arith.constant 5 : index
    %c4_652 = arith.constant 4 : index
    %c0_653 = arith.constant 0 : index
    %735 = vector.load %arg19[%c5_651, %c4_652, %c0_653] : memref<14x14x4xf32, #tpu.memory_space<vmem>>, vector<8x8x4xf32>
    %c39 = arith.constant 39 : index
    %c0_654 = arith.constant 0 : index
    %736 = vector.load %arg10[%c39, %c0_654] : memref<49x4xf32, #tpu.memory_space<vmem>>, vector<1x4xf32>
    %737 = vector.shape_cast %736 : vector<1x4xf32> to vector<4xf32>
    %738 = vector.shape_cast %737 : vector<4xf32> to vector<1x1x4xf32>
    %739 = vector.broadcast %738 : vector<1x1x4xf32> to vector<8x8x4xf32>
    %740 = arith.mulf %735, %739 : vector<8x8x4xf32>
    %741 = arith.addf %734, %740 : vector<8x8x4xf32>
    %c5_655 = arith.constant 5 : index
    %c5_656 = arith.constant 5 : index
    %c0_657 = arith.constant 0 : index
    %742 = vector.load %arg19[%c5_655, %c5_656, %c0_657] : memref<14x14x4xf32, #tpu.memory_space<vmem>>, vector<8x8x4xf32>
    %c40 = arith.constant 40 : index
    %c0_658 = arith.constant 0 : index
    %743 = vector.load %arg10[%c40, %c0_658] : memref<49x4xf32, #tpu.memory_space<vmem>>, vector<1x4xf32>
    %744 = vector.shape_cast %743 : vector<1x4xf32> to vector<4xf32>
    %745 = vector.shape_cast %744 : vector<4xf32> to vector<1x1x4xf32>
    %746 = vector.broadcast %745 : vector<1x1x4xf32> to vector<8x8x4xf32>
    %747 = arith.mulf %742, %746 : vector<8x8x4xf32>
    %748 = arith.addf %741, %747 : vector<8x8x4xf32>
    %c5_659 = arith.constant 5 : index
    %c6_660 = arith.constant 6 : index
    %c0_661 = arith.constant 0 : index
    %749 = vector.load %arg19[%c5_659, %c6_660, %c0_661] : memref<14x14x4xf32, #tpu.memory_space<vmem>>, vector<8x8x4xf32>
    %c41 = arith.constant 41 : index
    %c0_662 = arith.constant 0 : index
    %750 = vector.load %arg10[%c41, %c0_662] : memref<49x4xf32, #tpu.memory_space<vmem>>, vector<1x4xf32>
    %751 = vector.shape_cast %750 : vector<1x4xf32> to vector<4xf32>
    %752 = vector.shape_cast %751 : vector<4xf32> to vector<1x1x4xf32>
    %753 = vector.broadcast %752 : vector<1x1x4xf32> to vector<8x8x4xf32>
    %754 = arith.mulf %749, %753 : vector<8x8x4xf32>
    %755 = arith.addf %748, %754 : vector<8x8x4xf32>
    %c6_663 = arith.constant 6 : index
    %c0_664 = arith.constant 0 : index
    %c0_665 = arith.constant 0 : index
    %756 = vector.load %arg19[%c6_663, %c0_664, %c0_665] : memref<14x14x4xf32, #tpu.memory_space<vmem>>, vector<8x8x4xf32>
    %c42 = arith.constant 42 : index
    %c0_666 = arith.constant 0 : index
    %757 = vector.load %arg10[%c42, %c0_666] : memref<49x4xf32, #tpu.memory_space<vmem>>, vector<1x4xf32>
    %758 = vector.shape_cast %757 : vector<1x4xf32> to vector<4xf32>
    %759 = vector.shape_cast %758 : vector<4xf32> to vector<1x1x4xf32>
    %760 = vector.broadcast %759 : vector<1x1x4xf32> to vector<8x8x4xf32>
    %761 = arith.mulf %756, %760 : vector<8x8x4xf32>
    %762 = arith.addf %755, %761 : vector<8x8x4xf32>
    %c6_667 = arith.constant 6 : index
    %c1_668 = arith.constant 1 : index
    %c0_669 = arith.constant 0 : index
    %763 = vector.load %arg19[%c6_667, %c1_668, %c0_669] : memref<14x14x4xf32, #tpu.memory_space<vmem>>, vector<8x8x4xf32>
    %c43 = arith.constant 43 : index
    %c0_670 = arith.constant 0 : index
    %764 = vector.load %arg10[%c43, %c0_670] : memref<49x4xf32, #tpu.memory_space<vmem>>, vector<1x4xf32>
    %765 = vector.shape_cast %764 : vector<1x4xf32> to vector<4xf32>
    %766 = vector.shape_cast %765 : vector<4xf32> to vector<1x1x4xf32>
    %767 = vector.broadcast %766 : vector<1x1x4xf32> to vector<8x8x4xf32>
    %768 = arith.mulf %763, %767 : vector<8x8x4xf32>
    %769 = arith.addf %762, %768 : vector<8x8x4xf32>
    %c6_671 = arith.constant 6 : index
    %c2_672 = arith.constant 2 : index
    %c0_673 = arith.constant 0 : index
    %770 = vector.load %arg19[%c6_671, %c2_672, %c0_673] : memref<14x14x4xf32, #tpu.memory_space<vmem>>, vector<8x8x4xf32>
    %c44 = arith.constant 44 : index
    %c0_674 = arith.constant 0 : index
    %771 = vector.load %arg10[%c44, %c0_674] : memref<49x4xf32, #tpu.memory_space<vmem>>, vector<1x4xf32>
    %772 = vector.shape_cast %771 : vector<1x4xf32> to vector<4xf32>
    %773 = vector.shape_cast %772 : vector<4xf32> to vector<1x1x4xf32>
    %774 = vector.broadcast %773 : vector<1x1x4xf32> to vector<8x8x4xf32>
    %775 = arith.mulf %770, %774 : vector<8x8x4xf32>
    %776 = arith.addf %769, %775 : vector<8x8x4xf32>
    %c6_675 = arith.constant 6 : index
    %c3_676 = arith.constant 3 : index
    %c0_677 = arith.constant 0 : index
    %777 = vector.load %arg19[%c6_675, %c3_676, %c0_677] : memref<14x14x4xf32, #tpu.memory_space<vmem>>, vector<8x8x4xf32>
    %c45 = arith.constant 45 : index
    %c0_678 = arith.constant 0 : index
    %778 = vector.load %arg10[%c45, %c0_678] : memref<49x4xf32, #tpu.memory_space<vmem>>, vector<1x4xf32>
    %779 = vector.shape_cast %778 : vector<1x4xf32> to vector<4xf32>
    %780 = vector.shape_cast %779 : vector<4xf32> to vector<1x1x4xf32>
    %781 = vector.broadcast %780 : vector<1x1x4xf32> to vector<8x8x4xf32>
    %782 = arith.mulf %777, %781 : vector<8x8x4xf32>
    %783 = arith.addf %776, %782 : vector<8x8x4xf32>
    %c6_679 = arith.constant 6 : index
    %c4_680 = arith.constant 4 : index
    %c0_681 = arith.constant 0 : index
    %784 = vector.load %arg19[%c6_679, %c4_680, %c0_681] : memref<14x14x4xf32, #tpu.memory_space<vmem>>, vector<8x8x4xf32>
    %c46 = arith.constant 46 : index
    %c0_682 = arith.constant 0 : index
    %785 = vector.load %arg10[%c46, %c0_682] : memref<49x4xf32, #tpu.memory_space<vmem>>, vector<1x4xf32>
    %786 = vector.shape_cast %785 : vector<1x4xf32> to vector<4xf32>
    %787 = vector.shape_cast %786 : vector<4xf32> to vector<1x1x4xf32>
    %788 = vector.broadcast %787 : vector<1x1x4xf32> to vector<8x8x4xf32>
    %789 = arith.mulf %784, %788 : vector<8x8x4xf32>
    %790 = arith.addf %783, %789 : vector<8x8x4xf32>
    %c6_683 = arith.constant 6 : index
    %c5_684 = arith.constant 5 : index
    %c0_685 = arith.constant 0 : index
    %791 = vector.load %arg19[%c6_683, %c5_684, %c0_685] : memref<14x14x4xf32, #tpu.memory_space<vmem>>, vector<8x8x4xf32>
    %c47 = arith.constant 47 : index
    %c0_686 = arith.constant 0 : index
    %792 = vector.load %arg10[%c47, %c0_686] : memref<49x4xf32, #tpu.memory_space<vmem>>, vector<1x4xf32>
    %793 = vector.shape_cast %792 : vector<1x4xf32> to vector<4xf32>
    %794 = vector.shape_cast %793 : vector<4xf32> to vector<1x1x4xf32>
    %795 = vector.broadcast %794 : vector<1x1x4xf32> to vector<8x8x4xf32>
    %796 = arith.mulf %791, %795 : vector<8x8x4xf32>
    %797 = arith.addf %790, %796 : vector<8x8x4xf32>
    %c6_687 = arith.constant 6 : index
    %c6_688 = arith.constant 6 : index
    %c0_689 = arith.constant 0 : index
    %798 = vector.load %arg19[%c6_687, %c6_688, %c0_689] : memref<14x14x4xf32, #tpu.memory_space<vmem>>, vector<8x8x4xf32>
    %c48 = arith.constant 48 : index
    %c0_690 = arith.constant 0 : index
    %799 = vector.load %arg10[%c48, %c0_690] : memref<49x4xf32, #tpu.memory_space<vmem>>, vector<1x4xf32>
    %800 = vector.shape_cast %799 : vector<1x4xf32> to vector<4xf32>
    %801 = vector.shape_cast %800 : vector<4xf32> to vector<1x1x4xf32>
    %802 = vector.broadcast %801 : vector<1x1x4xf32> to vector<8x8x4xf32>
    %803 = arith.mulf %798, %802 : vector<8x8x4xf32>
    %804 = arith.addf %797, %803 : vector<8x8x4xf32>
    %805 = arith.negf %804 : vector<8x8x4xf32>
    %806 = math.exp %805 : vector<8x8x4xf32>
    %cst_691 = arith.constant 1.000000e+00 : f32
    %807 = vector.broadcast %cst_691 : f32 to vector<8x8x4xf32>
    %808 = arith.addf %807, %806 : vector<8x8x4xf32>
    %809 = arith.divf %807, %808 : vector<8x8x4xf32>
    %810 = vector.extract_strided_slice %809 {offsets = [0, 0, 0], sizes = [8, 8, 1], strides = [1, 1, 1]} : vector<8x8x4xf32> to vector<8x8x1xf32>
    %811 = vector.extract_strided_slice %809 {offsets = [0, 0, 1], sizes = [8, 8, 1], strides = [1, 1, 1]} : vector<8x8x4xf32> to vector<8x8x1xf32>
    %812 = vector.extract_strided_slice %809 {offsets = [0, 0, 2], sizes = [8, 8, 1], strides = [1, 1, 1]} : vector<8x8x4xf32> to vector<8x8x1xf32>
    %813 = vector.extract_strided_slice %809 {offsets = [0, 0, 3], sizes = [8, 8, 1], strides = [1, 1, 1]} : vector<8x8x4xf32> to vector<8x8x1xf32>
    %814 = vector.broadcast %811 : vector<8x8x1xf32> to vector<8x8x32xf32>
    %815 = arith.mulf %397, %814 : vector<8x8x32xf32>
    %816 = vector.broadcast %812 : vector<8x8x1xf32> to vector<8x8x32xf32>
    %817 = arith.mulf %397, %816 : vector<8x8x32xf32>
    %818 = vector.broadcast %813 : vector<8x8x1xf32> to vector<8x8x32xf32>
    %819 = arith.mulf %397, %818 : vector<8x8x32xf32>
    %820 = arith.addf %815, %817 : vector<8x8x32xf32>
    %821 = arith.addf %820, %819 : vector<8x8x32xf32>
    %cst_692 = arith.constant 1.000000e+00 : f32
    %822 = vector.broadcast %cst_692 : f32 to vector<8x8x1xf32>
    %823 = arith.subf %822, %810 : vector<8x8x1xf32>
    %824 = vector.broadcast %810 : vector<8x8x1xf32> to vector<8x8x32xf32>
    %825 = arith.mulf %397, %824 : vector<8x8x32xf32>
    %826 = vector.broadcast %823 : vector<8x8x1xf32> to vector<8x8x32xf32>
    %827 = arith.mulf %826, %821 : vector<8x8x32xf32>
    %828 = arith.addf %821, %827 : vector<8x8x32xf32>
    %829 = arith.addf %828, %825 : vector<8x8x32xf32>
    %830 = arith.addf %829, %17 : vector<8x8x32xf32>
    %c0_693 = arith.constant 0 : index
    %c0_694 = arith.constant 0 : index
    %c0_695 = arith.constant 0 : index
    %c0_696 = arith.constant 0 : index
    %831 = vector.load %arg17[%c0_693, %c0_694, %c0_695, %c0_696] : memref<1x8x8x32xf32, #tpu.memory_space<vmem>>, vector<1x8x8x32xf32>
    %832 = vector.shape_cast %831 : vector<1x8x8x32xf32> to vector<8x8x32xf32>
    %833 = vector.shape_cast %830 : vector<8x8x32xf32> to vector<1x8x8x32xf32>
    tpu.vector_store %arg17[%c0_693, %c0_694, %c0_695, %c0_696], %833 {strides = array<i32>} : memref<1x8x8x32xf32, #tpu.memory_space<vmem>>, vector<1x8x8x32xf32>,
    return
  }
  func.func @transform_0(%arg0: i32) -> (i32, i32, i32, i32) {
    %c0_i32 = arith.constant 0 : i32
    %c0_i32_0 = arith.constant 0 : i32
    %c0_i32_1 = arith.constant 0 : i32
    %c0_i32_2 = arith.constant 0 : i32
    return %arg0, %c0_i32, %c0_i32_0, %c0_i32_1 : i32, i32, i32, i32
  }
  func.func @transform_1(%arg0: i32) -> (i32, i32, i32, i32) {
    %c0_i32 = arith.constant 0 : i32
    %c0_i32_0 = arith.constant 0 : i32
    %c0_i32_1 = arith.constant 0 : i32
    %c0_i32_2 = arith.constant 0 : i32
    return %arg0, %c0_i32, %c0_i32_0, %c0_i32_1 : i32, i32, i32, i32
  }
  func.func @transform_2(%arg0: i32) -> (i32, i32, i32, i32) {
    %c0_i32 = arith.constant 0 : i32
    %c0_i32_0 = arith.constant 0 : i32
    %c0_i32_1 = arith.constant 0 : i32
    %c0_i32_2 = arith.constant 0 : i32
    return %arg0, %c0_i32, %c0_i32_0, %c0_i32_1 : i32, i32, i32, i32
  }
  func.func @transform_3(%arg0: i32) -> (i32, i32, i32, i32) {
    %c0_i32 = arith.constant 0 : i32
    %c0_i32_0 = arith.constant 0 : i32
    %c0_i32_1 = arith.constant 0 : i32
    %c0_i32_2 = arith.constant 0 : i32
    return %arg0, %c0_i32, %c0_i32_0, %c0_i32_1 : i32, i32, i32, i32
  }
  func.func @transform_4(%arg0: i32) -> (i32, i32, i32, i32) {
    %c0_i32 = arith.constant 0 : i32
    %c0_i32_0 = arith.constant 0 : i32
    %c0_i32_1 = arith.constant 0 : i32
    %c0_i32_2 = arith.constant 0 : i32
    %c0_i32_3 = arith.constant 0 : i32
    return %c0_i32, %c0_i32_0, %c0_i32_1, %c0_i32_2 : i32, i32, i32, i32
  }
  func.func @transform_5(%arg0: i32) -> (i32, i32, i32) {
    %c0_i32 = arith.constant 0 : i32
    %c0_i32_0 = arith.constant 0 : i32
    %c0_i32_1 = arith.constant 0 : i32
    %c0_i32_2 = arith.constant 0 : i32
    return %c0_i32, %c0_i32_0, %c0_i32_1 : i32, i32, i32
  }
  func.func @transform_6(%arg0: i32) -> (i32, i32, i32) {
    %c0_i32 = arith.constant 0 : i32
    %c0_i32_0 = arith.constant 0 : i32
    %c0_i32_1 = arith.constant 0 : i32
    %c0_i32_2 = arith.constant 0 : i32
    return %c0_i32, %c0_i32_0, %c0_i32_1 : i32, i32, i32
  }
  func.func @transform_7(%arg0: i32) -> (i32, i32) {
    %c0_i32 = arith.constant 0 : i32
    %c0_i32_0 = arith.constant 0 : i32
    %c0_i32_1 = arith.constant 0 : i32
    return %c0_i32, %c0_i32_0 : i32, i32
  }
  func.func @transform_8(%arg0: i32) -> (i32, i32) {
    %c0_i32 = arith.constant 0 : i32
    %c0_i32_0 = arith.constant 0 : i32
    %c0_i32_1 = arith.constant 0 : i32
    return %c0_i32, %c0_i32_0 : i32, i32
  }
  func.func @transform_9(%arg0: i32) -> (i32, i32) {
    %c0_i32 = arith.constant 0 : i32
    %c0_i32_0 = arith.constant 0 : i32
    %c0_i32_1 = arith.constant 0 : i32
    return %c0_i32, %c0_i32_0 : i32, i32
  }
  func.func @transform_10(%arg0: i32) -> (i32, i32) {
    %c0_i32 = arith.constant 0 : i32
    %c0_i32_0 = arith.constant 0 : i32
    %c0_i32_1 = arith.constant 0 : i32
    return %c0_i32, %c0_i32_0 : i32, i32
  }
  func.func @transform_11(%arg0: i32) -> (i32, i32) {
    %c0_i32 = arith.constant 0 : i32
    %c0_i32_0 = arith.constant 0 : i32
    %c0_i32_1 = arith.constant 0 : i32
    return %c0_i32, %c0_i32_0 : i32, i32
  }
  func.func @transform_12(%arg0: i32) -> (i32, i32) {
    %c0_i32 = arith.constant 0 : i32
    %c0_i32_0 = arith.constant 0 : i32
    %c0_i32_1 = arith.constant 0 : i32
    return %c0_i32, %c0_i32_0 : i32, i32
  }
  func.func @transform_13(%arg0: i32) -> (i32, i32) {
    %c0_i32 = arith.constant 0 : i32
    %c0_i32_0 = arith.constant 0 : i32
    %c0_i32_1 = arith.constant 0 : i32
    return %c0_i32, %c0_i32_0 : i32, i32
  }
  func.func @transform_14(%arg0: i32) -> (i32, i32) {
    %c0_i32 = arith.constant 0 : i32
    %c0_i32_0 = arith.constant 0 : i32
    %c0_i32_1 = arith.constant 0 : i32
    return %c0_i32, %c0_i32_0 : i32, i32
  }
  func.func @transform_15(%arg0: i32) -> (i32, i32) {
    %c0_i32 = arith.constant 0 : i32
    %c0_i32_0 = arith.constant 0 : i32
    %c0_i32_1 = arith.constant 0 : i32
    return %c0_i32, %c0_i32_0 : i32, i32
  }
  func.func @transform_16(%arg0: i32) -> (i32, i32, i32, i32) {
    %c0_i32 = arith.constant 0 : i32
    %c0_i32_0 = arith.constant 0 : i32
    %c0_i32_1 = arith.constant 0 : i32
    %c0_i32_2 = arith.constant 0 : i32
    return %arg0, %c0_i32, %c0_i32_0, %c0_i32_1 : i32, i32, i32, i32
  }
}

</mosaic_0001>

<bundles_post_ra>
// kernel: gate4_forward.1
= control target key start
LH: loop header
LB: loop body
LE: loop exit
PB: predicated region body
PF: predicated region fallthrough
CT: control target
= control target key end

     0   :  { %s13023_s0 = inlined_call_operand.vmem [shape: f32[2,8,8,32], index: 0, kind: input, shape index: {}]   ;;  %s13024_s1 = inlined_call_operand.vmem [shape: f32[2,8,8,8], index: 1, kind: input, shape index: {}]   ;;  %s13025_s2 = inlined_call_operand.vmem [shape: f32[2,8,8,12], index: 2, kind: input, shape index: {}]   ;;  %s13026_s3 = inlined_call_operand.vmem [shape: f32[2,8,8,16], index: 3, kind: input, shape index: {}]   ;;  %s13027_s4 = inlined_call_operand.vmem [shape: bf16[5,9,32,32], index: 4, kind: input, shape index: {}]   ;;  %s13028_s5 = inlined_call_operand.vmem [shape: f32[5,1,32], index: 5, kind: input, shape index: {}]   ;;  %s13029_s6 = inlined_call_operand.vmem [shape: f32[5,1,32], index: 6, kind: input, shape index: {}]   ;;  %s13030_s7 = inlined_call_operand.vmem [shape: f32[2,32], index: 7, kind: input, shape index: {}]   ;;  %s13031_s8 = inlined_call_operand.vmem [shape: f32[2,32], index: 8, kind: input, shape index: {}]   ;;  %s13032_s9 = inlined_call_operand.vmem [shape: f32[49,4], index: 9, kind: input, shape index: {}]   ;;  %s13033_s10 = inlined_call_operand.vmem [shape: bf16[8,8], index: 10, kind: input, shape index: {}]   ;;  %s13034_s11 = inlined_call_operand.vmem [shape: f32[1,8], index: 11, kind: input, shape index: {}]   ;;  %s13035_s12 = inlined_call_operand.vmem [shape: bf16[12,12], index: 12, kind: input, shape index: {}]   ;;  %s13036_s13 = inlined_call_operand.vmem [shape: f32[1,12], index: 13, kind: input, shape index: {}]   ;;  %s13037_s14 = inlined_call_operand.vmem [shape: bf16[16,16], index: 14, kind: input, shape index: {}]   ;;  %s13038_s15 = inlined_call_operand.vmem [shape: f32[1,16], index: 15, kind: input, shape index: {}]   ;;  %s13039_s16 = inlined_call_operand.hbm [shape: f32[2,8,8,32], index: 16, kind: output, shape index: {}]  }
   0x1   :  { %13136 = sst [smem:[#allocation58_spill]] %s13023_s0 }
   0x2   :  { %13137 = sst [smem:[#allocation59_spill]] %s13024_s1 }
   0x3   :  { %21 = vsyncpa [#allocation5], 0 }
   0x4   :  { %23 = vsyncpa [#allocation5 + $0x1], 0  ;;  %s10404_s21 = smov 0   ;;  %s10406_s22 = smov 0  }
   0x5   :  { %s10408_s23 = smov 0   ;;  %s10410_s24 = smov 0  }
   0x6 LB: > { %13138 = sst [smem:[#allocation7_spill]] %s10305_s23  ;;  %s10425_s25 = sadd.s32 4294967295, %s10309_s24   ;;  %s10309_s24 = sphi %s10410_s24, %s13289_s24   ;;  %s10305_s23 = sphi %s10408_s23, %s13291_s23   ;;  %s10301_s22 = sphi %s10406_s22, %s13293_s22   ;;  %s10297_s21 = sphi %s10404_s21, %s13292_s21  }
   0x7   : > { %s8308_s26 = sadd.s32 4294967294, %s10309_s24   ;;  %s10429_s27 = sadd.s32 1, %s10309_s24  }
   0x8   : > { %13139 = sst [smem:[#allocation8_spill]] %s10429_s27  ;;  %s392_s28 = sadd.s32 1, %s10305_s23 }
   0x9   : > { %s389_s29 = ssub.s32 %s10309_s24, %s10429_s27  ;;  %p402_p0 = scmp.ne.s32.totalorder %s10305_s23, %s10301_s22 }
   0xa   : > { %p390_p1 = scmp.eq.s32.totalorder %s389_s29, 0  ;;  %p403_p2 = scmp.eq.s32.totalorder %s10425_s25, 1 }
   0xb   : > { %p408_p3 = scmp.ne.s32.totalorder %s10301_s22, %s10297_s21  ;;  %p409_p4 = scmp.eq.s32.totalorder %s8308_s26, 1 }
   0xc   : > { %s10440_s30 = scalar_select %p390_p1, %s10305_s23, %s392_s28  }
   0xd   : > { %p10442_p5 = por %p403_p2, %p402_p0  ;;  %p10446_p6 = por %p409_p4, %p408_p3 }
   0xe   : > { %13140 = sst [smem:[#allocation9_spill]] %s10440_s30  ;;  %p8311_p7 = scmp.ge.s32.totalorder %s10309_s24, 1 }
   0xf   : > { %p495_p8 = scmp.lt.s32.totalorder %s10309_s24, 3 }
  0x11   : > { %p496_p9 = pnand %p8311_p7, %p495_p8 }
  0x13   : > { %499 = sbr.rel (%p496_p9) target bundleno = 2604 (0xa2c), region = 84 }
  0x1a   : > { %v10113_v0 = vld [vmem:[%s13027_s4 + $0x30] sm:$0xff]   ;;  %p560_p10 = scmp.lt.s32.totalorder %s10425_s25, 1  ;;  %v10114_v1 = vld [vmem:[%s13027_s4 + $0x38] sm:$0xff]   ;;  %vm581_vm0 = vcmask 261120   ;;  %vm600_vm1 = vcmask 257024   ;;  %v10465_v2 = vld [vmem:[%s13027_s4 + $0x40] sm:$0xff]  }
  0x1b   : > { %9191 = vmatprep.subr.bf16.mxu0 %v10113_v0  ;;  %v10311_v3 = vmov 0.0   ;;  %v10116_v4 = vld [vmem:[%s13027_s4 + $0x10] sm:$0xff]   ;;  %s13143_s29 = sld [smem:[#allocation58_spill]]  ;;  %v10118_v13 = vld [vmem:[%s13027_s4 + $0x18] sm:$0xff]   ;;  %v10120_v14 = vld [vmem:[%s13027_s4] sm:$0xff]   ;;  %vm6061_vm2 = vcmask 1043456  }
  0x1c   : > { %s10460_s28 = scalar_select %p560_p10, %s10425_s25, 1  ;;  %9192 = vmatpush3.bf16.msra.mxu0 %v10113_v0  ;;  %601 = vst.msk [vmem:[#allocation2 + $0x40] sm:$0xf] %vm600_vm1, %v10311_v3  ;;  %602 = vst.msk [vmem:[#allocation2 + $0x50] sm:$0xf] %vm600_vm1, %v10311_v3  ;;  %9155 = vmatprep.subr.bf16.mxu1 %v10116_v4  ;;  %v10117_v25 = vld [vmem:[%s13027_s4 + $0x48] sm:$0xff]  }
  0x1d   : > { %582 = vst.msk [vmem:[#allocation2] sm:$0xff] %vm581_vm0, %v10311_v3  ;;  %583 = vst.msk [vmem:[#allocation2 + $0x8] sm:$0xff] %vm581_vm0, %v10311_v3  ;;  %9193 = vmatprep.subr.bf16.mxu0 %v10114_v1  ;;  %9156 = vmatpush3.bf16.msra.mxu1 %v10116_v4  ;;  %v10122_v36 = vld [vmem:[%s13027_s4 + $0x8] sm:$0xff]   ;;  %v10119_v37 = vld [vmem:[%s13027_s4 + $0x50] sm:$0xff]   ;;  %s13152_s1 = sld [smem:[#allocation59_spill]]  ;;  %vm6048_vm3 = vcmask 64512  }
  0x1e   : > { %584 = vst.msk [vmem:[#allocation2 + $0x10] sm:$0xff] %vm581_vm0, %v10311_v3  ;;  %585 = vst.msk [vmem:[#allocation2 + $0x18] sm:$0xff] %vm581_vm0, %v10311_v3  ;;  %s10532_s30 = sshll.u32 %s10460_s28, 6  ;;  %9157 = vmatprep.subr.bf16.mxu1 %v10118_v13  ;;  %v10124_v43 = vld [vmem:[%s13027_s4 + $0x20] sm:$0xff]   ;;  %v10121_v47 = vld [vmem:[%s13027_s4 + $0x58] sm:$0xff]   ;;  %vm6193_vm4 = vcmask 1045504  }
  0x1f   : > { %586 = vst.msk [vmem:[#allocation2 + $0x20] sm:$0xff] %vm581_vm0, %v10311_v3  ;;  %587 = vst.msk [vmem:[#allocation2 + $0x28] sm:$0xff] %vm581_vm0, %v10311_v3  ;;  %v10126_v51 = vld [vmem:[%s13027_s4 + $0x28] sm:$0xff]   ;;  %v10123_v54 = vld [vmem:[%s13027_s4 + $0x60] sm:$0xff]   ;;  %s11197_s19 = scalar_lea.vmem %s13025_s2, %s10532_s30  ;;  %vm6180_vm5 = vcmask 97280   ;;  %vm6313_vm6 = vcmask 130048  }
  0x20   : > { %588 = vst.msk [vmem:[#allocation2 + $0x30] sm:$0xff] %vm581_vm0, %v10311_v3  ;;  %589 = vst.msk [vmem:[#allocation2 + $0x38] sm:$0xff] %vm581_vm0, %v10311_v3  ;;  %9194 = vmatpush3.bf16.msra.mxu0 %v10114_v1  ;;  %vm5976_vm7 = vcmask 254976   ;;  %vm617_vm8 = vcmask 31744   ;;  %vm619_vm9 = vcmask 29696   ;;  %vm633_vm10 = vcmask 26624  }
  0x21   : > { %591 = vst.msk [vmem:[#allocation2 + $0xc0] sm:$0xff] %vm581_vm0, %v10311_v3  ;;  %592 = vst.msk [vmem:[#allocation2 + $0xc8] sm:$0xff] %vm581_vm0, %v10311_v3  ;;  %s564_s23 = scalar_lea.vmem %s13143_s29, %s10532_s30  ;;  %9203 = vmatprep.subr.bf16.mxu0 %v10465_v2  ;;  %9158 = vmatpush3.bf16.msra.mxu1 %v10118_v13  ;;  %vm6415_vm11 = vcmask 7168   ;;  %vm6424_vm12 = vcmask 15360   ;;  %vm6433_vm13 = vcmask 23552   ;;  %s557_s20 = sand.u32 1, %s10301_s22  }
  0x22   : > { %593 = vst.msk [vmem:[#allocation2 + $0xd0] sm:$0xff] %vm581_vm0, %v10311_v3  ;;  %594 = vst.msk [vmem:[#allocation2 + $0xd8] sm:$0xff] %vm581_vm0, %v10311_v3  ;;  %v10541_v5 = vld [vmem:[%s564_s23] sm:$0xff]  ;;  %v10543_v6 = vld [vmem:[%s564_s23 + $0x8] sm:$0xff]  ;;  %9167 = vmatprep.subr.bf16.mxu1 %v10120_v14  ;;  %s8869_s28 = sshll.u32 %s10425_s25, 10  ;;  %s12982_s27 = scalar_lea.sflag [#allocation5], %s557_s20 }
  0x23   : > { %595 = vst.msk [vmem:[#allocation2 + $0xe0] sm:$0xff] %vm581_vm0, %v10311_v3  ;;  %596 = vst.msk [vmem:[#allocation2 + $0xe8] sm:$0xff] %vm581_vm0, %v10311_v3  ;;  %v10545_v7 = vld [vmem:[%s564_s23 + $0x10] sm:$0xff]  ;;  %v10551_v8 = vld [vmem:[%s564_s23 + $0x18] sm:$0xff]  ;;  %s11176_s26 = scalar_lea.vmem %s13152_s1, %s10532_s30 }
  0x24   : > { %597 = vst.msk [vmem:[#allocation2 + $0xf0] sm:$0xff] %vm581_vm0, %v10311_v3  ;;  %598 = vst.msk [vmem:[#allocation2 + $0xf8] sm:$0xff] %vm581_vm0, %v10311_v3  ;;  %v10555_v9 = vld [vmem:[%s564_s23 + $0x20] sm:$0xff]  ;;  %v10557_v10 = vld [vmem:[%s564_s23 + $0x28] sm:$0xff] }
  0x25   : > { %603 = vst.msk [vmem:[#allocation2 + $0x60] sm:$0xf] %vm600_vm1, %v10311_v3  ;;  %604 = vst.msk [vmem:[#allocation2 + $0x70] sm:$0xf] %vm600_vm1, %v10311_v3  ;;  %v10566_v11 = vld [vmem:[%s564_s23 + $0x30] sm:$0xff]  ;;  %v10568_v12 = vld [vmem:[%s564_s23 + $0x38] sm:$0xff]  ;;  %s11252_s23 = scalar_lea.vmem %s13026_s3, %s10532_s30 }
  0x26   : > { %605 = vst.msk [vmem:[#allocation2 + $0x80] sm:$0xf] %vm600_vm1, %v10311_v3  ;;  %606 = vst.msk [vmem:[#allocation2 + $0x90] sm:$0xf] %vm600_vm1, %v10311_v3 }
  0x27   : > { %607 = vst.msk [vmem:[#allocation2 + $0xa0] sm:$0xf] %vm600_vm1, %v10311_v3  ;;  %608 = vst.msk [vmem:[#allocation2 + $0xb0] sm:$0xf] %vm600_vm1, %v10311_v3  ;;  %v10580_v15 = vld [vmem:[#allocation2 + $0x34] sm:$0xff] }
  0x28   : > { %609 = vst.msk [vmem:[#allocation2 + $0x4c] sm:$0xf] %vm600_vm1, %v10311_v3  ;;  %610 = vst.msk [vmem:[#allocation2 + $0x5c] sm:$0xf] %vm600_vm1, %v10311_v3  ;;  %v667_v41 = vld [vmem:[#allocation2 + $0x33] sm:$0xff] }
  0x29   : > { %611 = vst.msk [vmem:[#allocation2 + $0x6c] sm:$0xf] %vm600_vm1, %v10311_v3  ;;  %612 = vst.msk [vmem:[#allocation2 + $0x7c] sm:$0xf] %vm600_vm1, %v10311_v3  ;;  %v878_v56 = vld [vmem:[#allocation2 + $0x35] sm:$0xff] }
  0x2a   : > { %613 = vst.msk [vmem:[#allocation2 + $0x8c] sm:$0xf] %vm600_vm1, %v10311_v3  ;;  %614 = vst.msk [vmem:[#allocation2 + $0x9c] sm:$0xf] %vm600_vm1, %v10311_v3 }
  0x2b   : > { %615 = vst.msk [vmem:[#allocation2 + $0xac] sm:$0xf] %vm600_vm1, %v10311_v3  ;;  %616 = vst.msk [vmem:[#allocation2 + $0xbc] sm:$0xf] %vm600_vm1, %v10311_v3 }
  0x2c   : > { %13144 = vst [vmem:[#allocation10_spill] sm:$0xff] %v10541_v5  ;;  %13145 = vst [vmem:[#allocation11_spill] sm:$0xff] %v10543_v6 }
  0x2d   : > { %13146 = vst [vmem:[#allocation12_spill] sm:$0xff] %v10545_v7  ;;  %658 = vst.msk [vmem:[#allocation2 + $0x44] sm:$0xff] %vm581_vm0, %v10541_v5  ;;  %v11856_v5 = vld [vmem:[%s13032_s9 + $0x15] ss:$0 sm:$0xff] }
  0x2e   : > { %659 = vst.msk [vmem:[#allocation2 + $0x54] sm:$0xff] %vm581_vm0, %v10543_v6  ;;  %13147 = vst [vmem:[#allocation13_spill] sm:$0xff] %v10551_v8 }
  0x2f   : > { %660 = vst.msk [vmem:[#allocation2 + $0x64] sm:$0xff] %vm581_vm0, %v10545_v7  ;;  %13148 = vst [vmem:[#allocation14_spill] sm:$0xff] %v10555_v9 }
  0x30   : > { %13149 = vst [vmem:[#allocation15_spill] sm:$0xff] %v10557_v10  ;;  %661 = vst.msk [vmem:[#allocation2 + $0x74] sm:$0xff] %vm581_vm0, %v10551_v8 }
  0x31   : > { %662 = vst.msk [vmem:[#allocation2 + $0x84] sm:$0xff] %vm581_vm0, %v10555_v9  ;;  %663 = vst.msk [vmem:[#allocation2 + $0x94] sm:$0xff] %vm581_vm0, %v10557_v10 }
  0x32   : > { %13150 = vst [vmem:[#allocation16_spill] sm:$0xff] %v10566_v11  ;;  %13151 = vst [vmem:[#allocation17_spill] sm:$0xff] %v10568_v12 }
  0x33   : > { %664 = vst.msk [vmem:[#allocation2 + $0xa4] sm:$0xff] %vm581_vm0, %v10566_v11  ;;  %665 = vst.msk [vmem:[#allocation2 + $0xb4] sm:$0xff] %vm581_vm0, %v10568_v12 }
  0x34   : > { %v992_v16 = vld [vmem:[#allocation2 + $0x43] sm:$0xff]  ;;  %618 = vst.msk [vmem:[#allocation3] sm:$0xff] %vm617_vm8, %v10311_v3  ;;  %621 = vst.msk [vmem:[#allocation3 + $0x10] sm:$0xff] %vm617_vm8, %v10311_v3 }
  0x35   : > { %v993_v17 = vld [vmem:[#allocation2 + $0x53] sm:$0xff]  ;;  %v684_v26 = vld [vmem:[#allocation2 + $0x44] sm:$0xff]  ;;  %v675_v45 = vpack.c.bf16 %v992_v16, %v667_v41  ;;  %623 = vst.msk [vmem:[#allocation3 + $0x20] sm:$0xff] %vm617_vm8, %v10311_v3  ;;  %626 = vst.msk [vmem:[#allocation3 + $0xb0] sm:$0xff] %vm617_vm8, %v10311_v3 }
  0x36   : > { %v994_v18 = vld [vmem:[#allocation2 + $0x63] sm:$0xff]  ;;  %v1000_v19 = vpack.c.bf16 %v993_v17, %v992_v16  ;;  %v691_v27 = vpack.c.bf16 %v684_v26, %v10580_v15  ;;  %v685_v28 = vld [vmem:[#allocation2 + $0x54] sm:$0xff]  ;;  %628 = vst.msk [vmem:[#allocation3 + $0xc0] sm:$0xff] %vm617_vm8, %v10311_v3  ;;  %630 = vst.msk [vmem:[#allocation3 + $0xd0] sm:$0xff] %vm617_vm8, %v10311_v3 }
  0x37   : > { %v995_v20 = vld [vmem:[#allocation2 + $0x73] sm:$0xff]  ;;  %v686_v29 = vld [vmem:[#allocation2 + $0x64] sm:$0xff]  ;;  %v1114_v42 = vpack.c.bf16 %v685_v28, %v684_v26  ;;  %v676_v50 = vpack.c.bf16 %v994_v18, %v993_v17  ;;  %620 = vst.msk [vmem:[#allocation3 + $0x8] sm:$0x3f] %vm619_vm9, %v10311_v3  ;;  %622 = vst.msk [vmem:[#allocation3 + $0x18] sm:$0x3f] %vm619_vm9, %v10311_v3 }
  0x38   : > { %v996_v21 = vld [vmem:[#allocation2 + $0x83] sm:$0xff]  ;;  %v10582_v22 = vld [vmem:[#allocation2 + $0x93] sm:$0xff]  ;;  %v1001_v23 = vpack.c.bf16 %v995_v20, %v994_v18  ;;  %9195 = vmatprep.mubr.msk.bf16.mxu0 %vm581_vm0, %v1000_v19  ;;  %v10591_v30 = vpack.c.bf16 %v686_v29, %v685_v28  ;;  %9159 = vmatprep.mubr.msk.bf16.mxu1 %vm581_vm0, %v691_v27  ;;  %624 = vst.msk [vmem:[#allocation3 + $0x28] sm:$0x3f] %vm619_vm9, %v10311_v3  ;;  %627 = vst.msk [vmem:[#allocation3 + $0xb8] sm:$0x3f] %vm619_vm9, %v10311_v3 }
  0x39   : > { %v1002_v24 = vpack.c.bf16 %v10582_v22, %v996_v21  ;;  %v1109_v31 = vld [vmem:[#allocation2 + $0x74] sm:$0xff]  ;;  %v688_v32 = vld [vmem:[#allocation2 + $0x84] sm:$0xff]  ;;  %v677_v55 = vpack.c.bf16 %v996_v21, %v995_v20  ;;  %629 = vst.msk [vmem:[#allocation3 + $0xc8] sm:$0x3f] %vm619_vm9, %v10311_v3  ;;  %631 = vst.msk [vmem:[#allocation3 + $0xd8] sm:$0x3f] %vm619_vm9, %v10311_v3 }
  0x3a   : > { %9196 = vmatmul.mubr.msk.bf16.vlgmr.msra.gmra.mrb[0].mxu0 %vm581_vm0, %v1001_v23  ;;  %v998_v33 = vld [vmem:[#allocation2 + $0xa3] sm:$0xff]  ;;  %v10595_v34 = vld [vmem:[#allocation2 + $0xb3] sm:$0xff]  ;;  %v10597_v35 = vpack.c.bf16 %v688_v32, %v1109_v31  ;;  %9160 = vmatmul.mubr.msk.bf16.vlgmr.msra.gmra.mrb[0].mxu1 %vm581_vm0, %v10591_v30  ;;  %v1115_v46 = vpack.c.bf16 %v1109_v31, %v686_v29  ;;  %634 = vst.msk [vmem:[#allocation3 + $0x30] sm:$0x7] %vm633_vm10, %v10311_v3  ;;  %635 = vst.msk [vmem:[#allocation3 + $0x40] sm:$0x7] %vm633_vm10, %v10311_v3 }
  0x3b   : > { %9204 = vmatpush3.bf16.msra.mxu0 %v10465_v2  ;;  %9199 = vmatprep.mubr.msk.bf16.mxu0 %vm581_vm0, %v1002_v24  ;;  %v1003_v38 = vpack.c.bf16 %v10595_v34, %v998_v33  ;;  %v689_v39 = vld [vmem:[#allocation2 + $0x94] sm:$0xff]  ;;  %v690_v40 = vld [vmem:[#allocation2 + $0xa4] sm:$0xff]  ;;  %v678_v61 = vpack.c.bf16 %v998_v33, %v10582_v22  ;;  %636 = vst.msk [vmem:[#allocation3 + $0x50] sm:$0x7] %vm633_vm10, %v10311_v3  ;;  %637 = vst.msk [vmem:[#allocation3 + $0x60] sm:$0x7] %vm633_vm10, %v10311_v3 }
  0x3c   : > { %9205 = vmatprep.subr.bf16.mxu0 %v10117_v25  ;;  %9163 = vmatprep.mubr.msk.bf16.mxu1 %vm581_vm0, %v10597_v35  ;;  %v10614_v44 = vpack.c.bf16 %v690_v40, %v689_v39  ;;  %v1116_v48 = vpack.c.bf16 %v689_v39, %v688_v32  ;;  %v10624_v49 = vld [vmem:[#allocation2 + $0xb4] sm:$0xff]  ;;  %v1220_v52 = vld [vmem:[#allocation2 + $0x45] sm:$0xff]  ;;  %638 = vst.msk [vmem:[#allocation3 + $0x70] sm:$0x7] %vm633_vm10, %v10311_v3  ;;  %642 = vst.msk [vmem:[#allocation3 + $0x3b] sm:$0x7] %vm633_vm10, %v10311_v3 }
  0x3d   : > { %9168 = vmatpush3.bf16.msra.mxu1 %v10120_v14  ;;  %v1221_v53 = vld [vmem:[#allocation2 + $0x55] sm:$0xff]  ;;  %v1117_v57 = vpack.c.bf16 %v10624_v49, %v690_v40  ;;  %v1222_v59 = vld [vmem:[#allocation2 + $0x65] sm:$0xff]  ;;  %v886_v0 = vpack.c.bf16 %v1220_v52, %v878_v56  ;;  %643 = vst.msk [vmem:[#allocation3 + $0x4b] sm:$0x7] %vm633_vm10, %v10311_v3  ;;  %644 = vst.msk [vmem:[#allocation3 + $0x5b] sm:$0x7] %vm633_vm10, %v10311_v3 }
  0x3e   : > { %9169 = vmatprep.subr.bf16.mxu1 %v10122_v36  ;;  %v1228_v58 = vpack.c.bf16 %v1221_v53, %v1220_v52  ;;  %v1223_v60 = vld [vmem:[#allocation2 + $0x75] sm:$0xff]  ;;  %v1224_v62 = vld [vmem:[#allocation2 + $0x85] sm:$0xff]  ;;  %v887_v16 = vpack.c.bf16 %v1222_v59, %v1221_v53  ;;  %645 = vst.msk [vmem:[#allocation3 + $0x6b] sm:$0x7] %vm633_vm10, %v10311_v3  ;;  %639 = vst.msk [vmem:[#allocation3 + $0x80] sm:$0x7] %vm633_vm10, %v10311_v3 }
  0x3f   : > { %9206 = vmatpush3.bf16.msra.mxu0 %v10117_v25  ;;  %v1225_v63 = vld [vmem:[#allocation2 + $0x95] sm:$0xff]  ;;  %v1229_v1 = vpack.c.bf16 %v1223_v60, %v1222_v59  ;;  %v10125_v2 = vld [vmem:[%s13027_s4 + $0x68] sm:$0xff]   ;;  %v888_v18 = vpack.c.bf16 %v1224_v62, %v1223_v60  ;;  %v10129_v23 = vld [vmem:[%s13027_s4 + $0x80] sm:$0xff]   ;;  %640 = vst.msk [vmem:[#allocation3 + $0x90] sm:$0x7] %vm633_vm10, %v10311_v3 }
  0x40   : > { %9215 = vmatprep.subr.bf16.mxu0 %v10119_v37  ;;  %v1230_v4 = vpack.c.bf16 %v1225_v63, %v1224_v62  ;;  %v1226_v13 = vld [vmem:[#allocation2 + $0xa5] sm:$0xff]  ;;  %v1227_v14 = vld [vmem:[#allocation2 + $0xb5] sm:$0xff]  ;;  %641 = vst.msk [vmem:[#allocation3 + $0xa0] sm:$0x7] %vm633_vm10, %v10311_v3  ;;  %646 = vst.msk [vmem:[#allocation3 + $0x7b] sm:$0x7] %vm633_vm10, %v10311_v3 }
  0x41   : > { %9170 = vmatpush3.bf16.msra.mxu1 %v10122_v36  ;;  %v10127_v17 = vld [vmem:[%s13027_s4 + $0x70] sm:$0xff]   ;;  %v1231_v19 = vpack.c.bf16 %v1227_v14, %v1226_v13  ;;  %v889_v20 = vpack.c.bf16 %v1226_v13, %v1225_v63  ;;  %v10128_v21 = vld [vmem:[%s13027_s4 + $0x78] sm:$0xff]   ;;  %v1342_v22 = vld [vmem:[#allocation2 + $0xc3] sm:$0xff]  ;;  %647 = vst.msk [vmem:[#allocation3 + $0x8b] sm:$0x7] %vm633_vm10, %v10311_v3 }
  0x42   : > { %9200 = vmatmul.mubr.msk.bf16.gmra.mrb[4].mxu0 %vm581_vm0, %v1003_v38  ;;  %9179 = vmatprep.subr.bf16.mxu1 %v10124_v43  ;;  %v1346_v24 = vpack.c.bf16 %v1342_v22, %v10595_v34  ;;  %v10130_v25 = vld [vmem:[%s13027_s4 + $0x88] sm:$0xff]   ;;  %v10696_v34 = vld [vmem:[%s13027_s4 + $0x90] sm:$0xff]   ;;  %648 = vst.msk [vmem:[#allocation3 + $0x9b] sm:$0x7] %vm633_vm10, %v10311_v3  ;;  %649 = vst.msk [vmem:[#allocation3 + $0xab] sm:$0x7] %vm633_vm10, %v10311_v3 }
  0x43   : > { %9207 = vmatprep.mubr.msk.bf16.mxu0 %vm581_vm0, %v1114_v42  ;;  %9164 = vmatmul.mubr.msk.bf16.gmra.mrb[4].mxu1 %vm581_vm0, %v10614_v44  ;;  %v10674_v26 = vld [vmem:[#allocation2 + $0xc4] sm:$0xff] }
  0x44   : > { %9171 = vmatprep.mubr.msk.bf16.mxu1 %vm581_vm0, %v675_v45  ;;  %v1460_v27 = vpack.c.bf16 %v10674_v26, %v10624_v49  ;;  %v1570_v28 = vld [vmem:[#allocation2 + $0xc5] sm:$0xff] }
  0x45   : > { %v1574_v29 = vpack.c.bf16 %v1570_v28, %v1227_v14  ;;  %v10132_v31 = vld [vmem:[%s13027_s4 + $0xa8] sm:$0xff]  }
  0x46   : > { %v10689_v32 = vld [vmem:[#allocation2 + $0x24] sm:$0xff] }
  0x47   : > { %v1749_v33 = vpack.c.bf16 %v10580_v15, %v10689_v32  ;;  %v8407_v15 = vld [vmem:[%s13028_s5] ss:$0 sm:$0xff] }
  0x4a   : > { %9208 = vmatmul.mubr.msk.bf16.vlgmr.msra.gmra.mrb[0].mxu0 %vm581_vm0, %v1115_v46  ;;  %v8408_v46 = vld [vmem:[%s13029_s6] ss:$0 sm:$0xff] }
  0x4b   : > { %9216 = vmatpush3.bf16.msra.mxu0 %v10119_v37  ;;  %9211 = vmatprep.mubr.msk.bf16.mxu0 %vm581_vm0, %v1116_v48 }
  0x4c   : > { %9217 = vmatprep.subr.bf16.mxu0 %v10121_v47  ;;  %9172 = vmatmul.mubr.msk.bf16.vlgmr.msra.gmra.mrb[0].mxu1 %vm581_vm0, %v676_v50 }
  0x4d   : > { %9175 = vmatprep.mubr.msk.bf16.mxu1 %vm581_vm0, %v677_v55  ;;  %9180 = vmatpush3.bf16.msra.mxu1 %v10124_v43 }
  0x4e   : > { %9181 = vmatprep.subr.bf16.mxu1 %v10126_v51 }
  0x4f   : > { %9218 = vmatpush3.bf16.msra.mxu0 %v10121_v47 }
  0x50   : > { %9227 = vmatprep.subr.bf16.mxu0 %v10123_v54 }
  0x51   : > { %9182 = vmatpush3.bf16.msra.mxu1 %v10126_v51 }
  0x52   : > { %9212 = vmatmul.mubr.msk.bf16.gmra.mrb[4].mxu0 %vm581_vm0, %v1117_v57 }
  0x53   : > { %9219 = vmatprep.mubr.msk.bf16.mxu0 %vm581_vm0, %v1228_v58 }
  0x54   : > { %9176 = vmatmul.mubr.msk.bf16.gmra.mrb[4].mxu1 %vm581_vm0, %v678_v61 }
  0x55   : > { %9183 = vmatprep.mubr.msk.bf16.mxu1 %vm581_vm0, %v886_v0 }
  0x5a   : > { %9220 = vmatmul.mubr.msk.bf16.vlgmr.msra.gmra.mrb[0].mxu0 %vm581_vm0, %v1229_v1 }
  0x5b   : > { %9228 = vmatpush3.bf16.msra.mxu0 %v10123_v54  ;;  %9223 = vmatprep.mubr.msk.bf16.mxu0 %vm581_vm0, %v1230_v4 }
  0x5c   : > { %9229 = vmatprep.subr.bf16.mxu0 %v10125_v2  ;;  %9184 = vmatmul.mubr.msk.bf16.vlgmr.msra.gmra.mrb[0].mxu1 %vm581_vm0, %v887_v16 }
  0x5d   : > { %9187 = vmatprep.mubr.msk.bf16.mxu1 %vm581_vm0, %v888_v18 }
  0x5f   : > { %9230 = vmatpush3.bf16.msra.mxu0 %v10125_v2 }
  0x60   : > { %9239 = vmatprep.subr.bf16.mxu0 %v10127_v17 }
  0x62   : > { %9224 = vmatmul.mubr.msk.bf16.gmra.mrb[4].mxu0 %vm581_vm0, %v1231_v19 }
  0x63   : > { %9231 = vmatprep.mubr.msk.bf16.mxu0 %vm581_vm0, %v676_v50 }
  0x64   : > { %9188 = vmatmul.mubr.msk.bf16.gmra.mrb[4].mxu1 %vm581_vm0, %v889_v20 }
  0x65   : > { %9267 = vmatprep.mubr.msk.bf16.mxu1 %vm581_vm0, %v1749_v33 }
  0x6a   : > { %9232 = vmatmul.mubr.msk.bf16.vlgmr.msra.gmra.mrb[0].mxu0 %vm581_vm0, %v677_v55 }
  0x6b   : > { %9240 = vmatpush3.bf16.msra.mxu0 %v10127_v17  ;;  %9235 = vmatprep.mubr.msk.bf16.mxu0 %vm581_vm0, %v678_v61 }
  0x6c   : > { %9241 = vmatprep.subr.bf16.mxu0 %v10128_v21 }
  0x6f   : > { %9242 = vmatpush3.bf16.msra.mxu0 %v10128_v21 }
  0x70   : > { %9251 = vmatprep.subr.bf16.mxu0 %v10129_v23 }
  0x72   : > { %9236 = vmatmul.mubr.msk.bf16.gmra.mrb[4].mxu0 %vm581_vm0, %v1346_v24 }
  0x73   : > { %9243 = vmatprep.mubr.msk.bf16.mxu0 %vm581_vm0, %v10591_v30  ;;  %v10131_v30 = vld [vmem:[%s13027_s4 + $0xa0] sm:$0xff]  }
  0x74   : > { %9263 = vmatprep.subr.bf16.mxu1 %v10131_v30 }
  0x75   : > { %9264 = vmatpush3.bf16.msra.mxu1 %v10131_v30 }
  0x76   : > { %9265 = vmatprep.subr.bf16.mxu1 %v10132_v31 }
  0x79   : > { %9266 = vmatpush3.bf16.msra.mxu1 %v10132_v31 }
  0x7a   : > { %9244 = vmatmul.mubr.msk.bf16.vlgmr.msra.gmra.mrb[0].mxu0 %vm581_vm0, %v10597_v35  ;;  %9275 = vmatprep.subr.bf16.mxu1 %v10696_v34 }
  0x7b   : > { %9252 = vmatpush3.bf16.msra.mxu0 %v10129_v23  ;;  %9247 = vmatprep.mubr.msk.bf16.mxu0 %vm581_vm0, %v10614_v44 }
  0x7c   : > { %9253 = vmatprep.subr.bf16.mxu0 %v10130_v25 }
  0x7f   : > { %9254 = vmatpush3.bf16.msra.mxu0 %v10130_v25 }
  0x82   : > { %9248 = vmatmul.mubr.msk.bf16.gmra.mrb[4].mxu0 %vm581_vm0, %v1460_v27 }
  0x83   : > { %9255 = vmatprep.mubr.msk.bf16.mxu0 %vm581_vm0, %v887_v16 }
  0x8a   : > { %9256 = vmatmul.mubr.msk.bf16.vlgmr.msra.gmra.mrb[0].mxu0 %vm581_vm0, %v888_v18 }
  0x8b   : > { %9259 = vmatprep.mubr.msk.bf16.mxu0 %vm581_vm0, %v889_v20 }
  0x92   : > { %9260 = vmatmul.mubr.msk.bf16.gmra.mrb[4].mxu0 %vm581_vm0, %v1574_v29 }
 0x12f   : > { %v9185_v35 = vpop.f32.mrb[0].mxu1 }
 0x130   : > { %v953_v36 = vpop.f32.mrb[1].mxu1 }
 0x131   : > { %v9186_v37 = vpop.f32.mrb[2].mxu1 }
 0x132   : > { %v956_v38 = vpop.f32.mrb[3].mxu1 }
 0x137   : > { %v9189_v39 = vpop.f32.mrb[4].mxu1 }
 0x138   : > { %v969_v40 = vpop.f32.mrb[5].mxu1 }
 0x139   : > { %v9190_v41 = vpop.f32.mrb[6].mxu1 }
 0x13a   : > { %v972_v42 = vpop.f32.mrb[7].mxu1 }
 0x15d   : > { %v9257_v43 = vpop.f32.mrb[0].mxu0 }
 0x15e   : > { %v9725_v44 = vadd.f32 %v9257_v43, %v9185_v35  ;;  %v1638_v45 = vpop.f32.mrb[1].mxu0 }
 0x15f   : > { %v9726_v47 = vadd.f32 %v1638_v45, %v953_v36  ;;  %v9258_v48 = vpop.f32.mrb[2].mxu0 }
 0x160   : > { %v1686_v49 = vmul.f32 %v9725_v44, %v8407_v15  ;;  %v9727_v50 = vadd.f32 %v9258_v48, %v9186_v37  ;;  %v1641_v51 = vpop.f32.mrb[3].mxu0 }
 0x161   : > { %v1684_v52 = vmul.f32 %v9726_v47, %v8407_v15  ;;  %v9728_v53 = vadd.f32 %v1641_v51, %v956_v38  ;;  %v10134_v38 = vld [vmem:[%s13027_s4 + $0x98] sm:$0xff]  }
 0x162   : > { %v1701_v54 = vadd.f32 %v8408_v46, %v1686_v49  ;;  %v1687_v55 = vmul.f32 %v9727_v50, %v8407_v15  ;;  %v10136_v50 = vld [vmem:[%s13027_s4 + $0xb8] sm:$0xff]  }
 0x163   : > { %v1699_v56 = vadd.f32 %v8408_v46, %v1684_v52  ;;  %v1685_v57 = vmul.f32 %v9728_v53, %v8407_v15  ;;  %v1936_v52 = vld [vmem:[#allocation2 + $0x26] sm:$0xff]  ;;  %v1937_v53 = vld [vmem:[#allocation2 + $0x36] sm:$0xff] }
 0x164   : > { %v1709_v58 = vmax.f32 %v1701_v54, 0.0  ;;  %v1702_v59 = vadd.f32 %v8408_v46, %v1687_v55  ;;  %v10137_v54 = vld [vmem:[%s13027_s4 + $0xc0] sm:$0xff]  }
 0x165   : > { %v1707_v60 = vmax.f32 %v1699_v56, 0.0  ;;  %v1700_v61 = vadd.f32 %v8408_v46, %v1685_v57  ;;  %v9261_v62 = vpop.f32.mrb[4].mxu0  ;;  %v1944_v57 = vpack.c.bf16 %v1937_v53, %v1936_v52 }
 0x166   : > { %1717 = vst.msk [vmem:[#allocation2 + $0x64] sm:$0xff] %vm581_vm0, %v1709_v58  ;;  %v1710_v63 = vmax.f32 %v1702_v59, 0.0  ;;  %v9729_v0 = vadd.f32 %v9261_v62, %v9189_v39  ;;  %v1654_v1 = vpop.f32.mrb[5].mxu0 }
 0x167   : > { %1715 = vst.msk [vmem:[#allocation2 + $0x44] sm:$0xff] %vm581_vm0, %v1707_v60  ;;  %v1708_v2 = vmax.f32 %v1700_v61, 0.0  ;;  %v9730_v4 = vadd.f32 %v1654_v1, %v969_v40  ;;  %v9262_v13 = vpop.f32.mrb[6].mxu0  ;;  %v1724_v40 = vld [vmem:[#allocation2 + $0x22] sm:$0xff] }
 0x168   : > { %1718 = vst.msk [vmem:[#allocation2 + $0x74] sm:$0xff] %vm581_vm0, %v1710_v63  ;;  %v1690_v14 = vmul.f32 %v9729_v0, %v8407_v15  ;;  %v9731_v16 = vadd.f32 %v9262_v13, %v9190_v41  ;;  %v1657_v17 = vpop.f32.mrb[7].mxu0  ;;  %v1725_v41 = vld [vmem:[#allocation2 + $0x32] sm:$0xff]  ;;  %v10138_v0 = vld [vmem:[%s13027_s4 + $0xc8] sm:$0xff]  }
 0x169   : > { %1716 = vst.msk [vmem:[#allocation2 + $0x54] sm:$0xff] %vm581_vm0, %v1708_v2  ;;  %v1688_v18 = vmul.f32 %v9730_v4, %v8407_v15  ;;  %v9732_v19 = vadd.f32 %v1657_v17, %v972_v42  ;;  %v10135_v42 = vld [vmem:[%s13027_s4 + $0xb0] sm:$0xff]   ;;  %v1732_v44 = vpack.c.bf16 %v1725_v41, %v1724_v40  ;;  %v10141_v17 = vld [vmem:[%s13027_s4 + $0xe0] sm:$0xff]   ;;  %v10148_v40 = vld [vmem:[%s13027_s4 + $0x118] sm:$0xff]  }
 0x16a   : > { %v1705_v20 = vadd.f32 %v8408_v46, %v1690_v14  ;;  %v1691_v21 = vmul.f32 %v9731_v16, %v8407_v15  ;;  %v10139_v2 = vld [vmem:[%s13027_s4 + $0xd0] sm:$0xff]   ;;  %v10140_v16 = vld [vmem:[%s13027_s4 + $0xd8] sm:$0xff]  }
 0x16b   : > { %v1703_v22 = vadd.f32 %v8408_v46, %v1688_v18  ;;  %v1689_v23 = vmul.f32 %v9732_v19, %v8407_v15  ;;  %v10822_v41 = vld [vmem:[#allocation2 + $0xd4] sm:$0xff] }
 0x16c   : > { %v1713_v24 = vmax.f32 %v1705_v20, 0.0  ;;  %v1706_v25 = vadd.f32 %v8408_v46, %v1691_v21  ;;  %v10142_v21 = vld [vmem:[%s13027_s4 + $0xe8] sm:$0xff]  }
 0x16d   : > { %v1711_v27 = vmax.f32 %v1703_v22, 0.0  ;;  %v1704_v28 = vadd.f32 %v8408_v46, %v1689_v23  ;;  %v1745_v37 = vld [vmem:[#allocation2 + $0x64] sm:$0xff]  ;;  %v10143_v22 = vld [vmem:[%s13027_s4 + $0xf0] sm:$0xff]  }
 0x16e   : > { %1721 = vst.msk [vmem:[#allocation2 + $0xa4] sm:$0xff] %vm581_vm0, %v1713_v24  ;;  %v1714_v29 = vmax.f32 %v1706_v25, 0.0  ;;  %v1743_v33 = vld [vmem:[#allocation2 + $0x44] sm:$0xff] }
 0x16f   : > { %1719 = vst.msk [vmem:[#allocation2 + $0x84] sm:$0xff] %vm581_vm0, %v1711_v27  ;;  %v1712_v30 = vmax.f32 %v1704_v28, 0.0  ;;  %v1746_v31 = vld [vmem:[#allocation2 + $0x74] sm:$0xff]  ;;  %v1726_v47 = vld [vmem:[#allocation2 + $0x42] sm:$0xff] }
 0x170   : > { %1722 = vst.msk [vmem:[#allocation2 + $0xb4] sm:$0xff] %vm581_vm0, %v1714_v29  ;;  %v1744_v35 = vld [vmem:[#allocation2 + $0x54] sm:$0xff]  ;;  %v10719_v39 = vpack.c.bf16 %v1746_v31, %v1745_v37  ;;  %v1728_v49 = vld [vmem:[#allocation2 + $0x62] sm:$0xff] }
 0x171   : > { %1720 = vst.msk [vmem:[#allocation2 + $0x94] sm:$0xff] %vm581_vm0, %v1712_v30  ;;  %v10714_v36 = vpack.c.bf16 %v1744_v35, %v1743_v33  ;;  %v1729_v46 = vld [vmem:[#allocation2 + $0x72] sm:$0xff]  ;;  %v1938_v61 = vld [vmem:[#allocation2 + $0x46] sm:$0xff] }
 0x172   : > { %v10737_v51 = vpack.c.bf16 %v1729_v46, %v1728_v49  ;;  %v1939_v59 = vld [vmem:[#allocation2 + $0x56] sm:$0xff]  ;;  %v1940_v63 = vld [vmem:[#allocation2 + $0x66] sm:$0xff]  ;;  %v8502_v49 = vld [vmem:[%s13029_s6 + $0x1] ss:$0 sm:$0xff] }
 0x173   : > { %9268 = vmatmul.mubr.msk.bf16.vlgmr.msra.gmra.mrb[8].mxu1 %vm581_vm0, %v10714_v36  ;;  %v1941_v60 = vld [vmem:[#allocation2 + $0x76] sm:$0xff]  ;;  %v1945_v62 = vpack.c.bf16 %v1939_v59, %v1938_v61  ;;  %v10145_v28 = vld [vmem:[%s13027_s4 + $0x100] sm:$0xff]   ;;  %v10146_v33 = vld [vmem:[%s13027_s4 + $0x108] sm:$0xff]  }
 0x174   : > { %9276 = vmatpush3.bf16.msra.mxu1 %v10696_v34  ;;  %9271 = vmatprep.mubr.msk.bf16.mxu1 %vm581_vm0, %v10719_v39  ;;  %v1727_v34 = vld [vmem:[#allocation2 + $0x52] sm:$0xff]  ;;  %v10753_v1 = vpack.c.bf16 %v1941_v60, %v1940_v63  ;;  %v2399_v35 = vld [vmem:[#allocation2 + $0xc2] sm:$0xff] }
 0x175   : > { %9277 = vmatprep.subr.bf16.mxu1 %v10134_v38  ;;  %v1733_v48 = vpack.c.bf16 %v1727_v34, %v1726_v47  ;;  %v2056_v19 = vld [vmem:[#allocation2 + $0xa2] sm:$0xff]  ;;  %v10144_v27 = vld [vmem:[%s13027_s4 + $0xf8] sm:$0xff]   ;;  %v10147_v37 = vld [vmem:[%s13027_s4 + $0x110] sm:$0xff]  }
 0x176   : > { %v1747_v43 = vld [vmem:[#allocation2 + $0x84] sm:$0xff]  ;;  %v8500_v47 = vld [vmem:[%s13028_s5 + $0x1] ss:$0 sm:$0xff] }
 0x177   : > { %v1730_v56 = vld [vmem:[#allocation2 + $0x82] sm:$0xff]  ;;  %v2057_v18 = vld [vmem:[#allocation2 + $0xb2] sm:$0xff] }
 0x178   : > { %v1748_v15 = vld [vmem:[#allocation2 + $0x94] sm:$0xff]  ;;  %9278 = vmatpush3.bf16.msra.mxu1 %v10134_v38  ;;  %v1942_v13 = vld [vmem:[#allocation2 + $0x86] sm:$0xff]  ;;  %v2061_v20 = vpack.c.bf16 %v2057_v18, %v2056_v19 }
 0x179   : > { %v10729_v45 = vpack.c.bf16 %v1748_v15, %v1747_v43  ;;  %9287 = vmatprep.subr.bf16.mxu1 %v10135_v42  ;;  %v1731_v55 = vld [vmem:[#allocation2 + $0x92] sm:$0xff]  ;;  %v2170_v24 = vld [vmem:[#allocation2 + $0xa4] sm:$0xff] }
 0x17a   : > { %v10745_v58 = vpack.c.bf16 %v1731_v55, %v1730_v56  ;;  %v1943_v4 = vld [vmem:[#allocation2 + $0x96] sm:$0xff]  ;;  %v2284_v30 = vld [vmem:[#allocation2 + $0xa6] sm:$0xff] }
 0x17b   : > { %9272 = vmatmul.mubr.msk.bf16.gmra.mrb[12].mxu1 %vm581_vm0, %v10729_v45  ;;  %v10761_v14 = vpack.c.bf16 %v1943_v4, %v1942_v13  ;;  %v2171_v23 = vld [vmem:[#allocation2 + $0xb4] sm:$0xff]  ;;  %v10151_v46 = vld [vmem:[%s13027_s4 + $0x120] sm:$0xff]  }
 0x17c   : > { %9279 = vmatprep.mubr.msk.bf16.mxu1 %vm581_vm0, %v1732_v44  ;;  %v2175_v25 = vpack.c.bf16 %v2171_v23, %v2170_v24  ;;  %v2285_v29 = vld [vmem:[#allocation2 + $0xb6] sm:$0xff] }
 0x17d   : > { %v2289_v31 = vpack.c.bf16 %v2285_v29, %v2284_v30  ;;  %v2628_v43 = vld [vmem:[#allocation2 + $0xd6] sm:$0xff]  ;;  %v10152_v30 = vld [vmem:[%s13027_s4 + $0x128] sm:$0xff]  }
 0x17e   : > { %v10150_v44 = vld [vmem:[%s13027_s4 + $0x138] sm:$0xff]  }
 0x183   : > { %9280 = vmatmul.mubr.msk.bf16.vlgmr.msra.gmra.mrb[8].mxu1 %vm581_vm0, %v1733_v48 }
 0x184   : > { %9288 = vmatpush3.bf16.msra.mxu1 %v10135_v42  ;;  %9283 = vmatprep.mubr.msk.bf16.mxu1 %vm581_vm0, %v10737_v51  ;;  %v2518_v42 = vpack.c.bf16 %v10822_v41, %v10674_v26  ;;  %v10149_v26 = vld [vmem:[%s13027_s4 + $0x130] sm:$0xff]  }
 0x185   : > { %9289 = vmatprep.subr.bf16.mxu1 %v10136_v50  ;;  %9371 = vmatprep.subr.bf16.mxu0 %v10149_v26 }
 0x186   : > { %9372 = vmatpush3.bf16.msra.mxu0 %v10149_v26  ;;  %v2786_v26 = vld [vmem:[#allocation2 + $0x31] sm:$0xff] }
 0x187   : > { %9373 = vmatprep.subr.bf16.mxu0 %v10150_v44 }
 0x188   : > { %9290 = vmatpush3.bf16.msra.mxu1 %v10136_v50 }
 0x189   : > { %9299 = vmatprep.subr.bf16.mxu1 %v10137_v54 }
 0x18a   : > { %9374 = vmatpush3.bf16.msra.mxu0 %v10150_v44 }
 0x18b   : > { %9284 = vmatmul.mubr.msk.bf16.gmra.mrb[12].mxu1 %vm581_vm0, %v10745_v58  ;;  %9383 = vmatprep.subr.bf16.mxu0 %v10151_v46 }
 0x18c   : > { %9291 = vmatprep.mubr.msk.bf16.mxu1 %vm581_vm0, %v1944_v57 }
 0x193   : > { %9292 = vmatmul.mubr.msk.bf16.vlgmr.msra.gmra.mrb[8].mxu1 %vm581_vm0, %v1945_v62 }
 0x194   : > { %9300 = vmatpush3.bf16.msra.mxu1 %v10137_v54  ;;  %9295 = vmatprep.mubr.msk.bf16.mxu1 %vm581_vm0, %v10753_v1 }
 0x195   : > { %9301 = vmatprep.subr.bf16.mxu1 %v10138_v0 }
 0x198   : > { %9302 = vmatpush3.bf16.msra.mxu1 %v10138_v0 }
 0x199   : > { %9311 = vmatprep.subr.bf16.mxu1 %v10139_v2 }
 0x19b   : > { %9296 = vmatmul.mubr.msk.bf16.gmra.mrb[12].mxu1 %vm581_vm0, %v10761_v14 }
 0x19c   : > { %9303 = vmatprep.mubr.msk.bf16.mxu1 %vm581_vm0, %v1733_v48 }
 0x1a3   : > { %9304 = vmatmul.mubr.msk.bf16.vlgmr.msra.gmra.mrb[8].mxu1 %vm581_vm0, %v10737_v51 }
 0x1a4   : > { %9312 = vmatpush3.bf16.msra.mxu1 %v10139_v2  ;;  %9307 = vmatprep.mubr.msk.bf16.mxu1 %vm581_vm0, %v10745_v58 }
 0x1a5   : > { %9313 = vmatprep.subr.bf16.mxu1 %v10140_v16 }
 0x1a8   : > { %9314 = vmatpush3.bf16.msra.mxu1 %v10140_v16 }
 0x1a9   : > { %9323 = vmatprep.subr.bf16.mxu1 %v10141_v17 }
 0x1ab   : > { %9308 = vmatmul.mubr.msk.bf16.gmra.mrb[12].mxu1 %vm581_vm0, %v2061_v20 }
 0x1ac   : > { %9315 = vmatprep.mubr.msk.bf16.mxu1 %vm581_vm0, %v10714_v36  ;;  %v2400_v36 = vld [vmem:[#allocation2 + $0xd2] sm:$0xff] }
 0x1ad   : > { %v2404_v38 = vpack.c.bf16 %v2400_v36, %v2399_v35  ;;  %v2784_v36 = vld [vmem:[#allocation2 + $0x11] sm:$0xff] }
 0x1b3   : > { %9316 = vmatmul.mubr.msk.bf16.vlgmr.msra.gmra.mrb[8].mxu1 %vm581_vm0, %v10719_v39 }
 0x1b4   : > { %9324 = vmatpush3.bf16.msra.mxu1 %v10141_v17  ;;  %9319 = vmatprep.mubr.msk.bf16.mxu1 %vm581_vm0, %v10729_v45 }
 0x1b5   : > { %9325 = vmatprep.subr.bf16.mxu1 %v10142_v21 }
 0x1b8   : > { %9326 = vmatpush3.bf16.msra.mxu1 %v10142_v21 }
 0x1b9   : > { %9335 = vmatprep.subr.bf16.mxu1 %v10143_v22 }
 0x1bb   : > { %9320 = vmatmul.mubr.msk.bf16.gmra.mrb[12].mxu1 %vm581_vm0, %v2175_v25 }
 0x1bc   : > { %9327 = vmatprep.mubr.msk.bf16.mxu1 %vm581_vm0, %v1945_v62 }
 0x1c3   : > { %9328 = vmatmul.mubr.msk.bf16.vlgmr.msra.gmra.mrb[8].mxu1 %vm581_vm0, %v10753_v1 }
 0x1c4   : > { %9336 = vmatpush3.bf16.msra.mxu1 %v10143_v22  ;;  %9331 = vmatprep.mubr.msk.bf16.mxu1 %vm581_vm0, %v10761_v14  ;;  %v10857_v22 = vld [vmem:[#allocation2 + $0x34] sm:$0xff] }
 0x1c5   : > { %9337 = vmatprep.subr.bf16.mxu1 %v10144_v27 }
 0x1c8   : > { %9338 = vmatpush3.bf16.msra.mxu1 %v10144_v27 }
 0x1c9   : > { %9347 = vmatprep.subr.bf16.mxu1 %v10145_v28 }
 0x1cb   : > { %9332 = vmatmul.mubr.msk.bf16.gmra.mrb[12].mxu1 %vm581_vm0, %v2289_v31 }
 0x1cc   : > { %9339 = vmatprep.mubr.msk.bf16.mxu1 %vm581_vm0, %v10737_v51 }
 0x1d3   : > { %9340 = vmatmul.mubr.msk.bf16.vlgmr.msra.gmra.mrb[8].mxu1 %vm581_vm0, %v10745_v58 }
 0x1d4   : > { %9348 = vmatpush3.bf16.msra.mxu1 %v10145_v28  ;;  %9343 = vmatprep.mubr.msk.bf16.mxu1 %vm581_vm0, %v2061_v20 }
 0x1d5   : > { %9349 = vmatprep.subr.bf16.mxu1 %v10146_v33 }
 0x1d8   : > { %9350 = vmatpush3.bf16.msra.mxu1 %v10146_v33 }
 0x1d9   : > { %9359 = vmatprep.subr.bf16.mxu1 %v10147_v37 }
 0x1db   : > { %9344 = vmatmul.mubr.msk.bf16.gmra.mrb[12].mxu1 %vm581_vm0, %v2404_v38  ;;  %v10153_v38 = vld [vmem:[%s13027_s4 + $0x140] sm:$0xff]  }
 0x1dc   : > { %9351 = vmatprep.mubr.msk.bf16.mxu1 %vm581_vm0, %v10719_v39  ;;  %v2627_v39 = vld [vmem:[#allocation2 + $0xc6] sm:$0xff] }
 0x1dd   : > { %v2632_v15 = vpack.c.bf16 %v2628_v43, %v2627_v39 }
 0x1e3   : > { %9352 = vmatmul.mubr.msk.bf16.vlgmr.msra.gmra.mrb[8].mxu1 %vm581_vm0, %v10729_v45  ;;  %v10839_v45 = vld [vmem:[#allocation2 + $0x14] sm:$0xff] }
 0x1e4   : > { %9360 = vmatpush3.bf16.msra.mxu1 %v10147_v37  ;;  %9355 = vmatprep.mubr.msk.bf16.mxu1 %vm581_vm0, %v2175_v25  ;;  %v2809_v34 = vpack.c.bf16 %v10689_v32, %v10839_v45  ;;  %v2785_v37 = vld [vmem:[#allocation2 + $0x21] sm:$0xff] }
 0x1e5   : > { %9361 = vmatprep.subr.bf16.mxu1 %v10148_v40  ;;  %v2792_v39 = vpack.c.bf16 %v2785_v37, %v2784_v36 }
 0x1e6   : > { %9375 = vmatprep.mubr.msk.bf16.mxu0 %vm581_vm0, %v2809_v34 }
 0x1e8   : > { %9362 = vmatpush3.bf16.msra.mxu1 %v10148_v40 }
 0x1eb   : > { %9356 = vmatmul.mubr.msk.bf16.gmra.mrb[12].mxu1 %vm581_vm0, %v2518_v42 }
 0x1ec   : > { %9363 = vmatprep.mubr.msk.bf16.mxu1 %vm581_vm0, %v10753_v1 }
 0x1f3   : > { %9364 = vmatmul.mubr.msk.bf16.vlgmr.msra.gmra.mrb[8].mxu1 %vm581_vm0, %v10761_v14 }
 0x1f4   : > { %9367 = vmatprep.mubr.msk.bf16.mxu1 %vm581_vm0, %v2289_v31 }
 0x1fb   : > { %9368 = vmatmul.mubr.msk.bf16.gmra.mrb[12].mxu1 %vm581_vm0, %v2632_v15  ;;  %v10167_v15 = vld [vmem:[%s13027_s4 + $0x1c0] sm:$0xff]  }
 0x1fc   : > { %9479 = vmatprep.subr.bf16.mxu1 %v10167_v15 }
 0x1fd   : > { %9480 = vmatpush3.bf16.msra.mxu1 %v10167_v15 }
 0x2c6   : > { %v9365_v48 = vpop.f32.mrb[8].mxu1 }
 0x2c7   : > { %v2745_v50 = vmul.f32 %v9365_v48, %v8500_v47  ;;  %v2696_v51 = vpop.f32.mrb[9].mxu1  ;;  %v10154_v48 = vld [vmem:[%s13027_s4 + $0x148] sm:$0xff]  }
 0x2c8   : > { %v2743_v52 = vmul.f32 %v8500_v47, %v2696_v51  ;;  %v9366_v32 = vpop.f32.mrb[10].mxu1  ;;  %v2997_v51 = vld [vmem:[#allocation2 + $0x27] sm:$0xff] }
 0x2c9   : > { %v2761_v53 = vadd.f32 %v8502_v49, %v2745_v50  ;;  %v2746_v54 = vmul.f32 %v9366_v32, %v8500_v47  ;;  %v2699_v55 = vpop.f32.mrb[11].mxu1  ;;  %v2996_v50 = vld [vmem:[#allocation2 + $0x17] sm:$0xff] }
 0x2ca   : > { %v2759_v56 = vadd.f32 %v8502_v49, %v2743_v52  ;;  %v2744_v57 = vmul.f32 %v8500_v47, %v2699_v55  ;;  %v10155_v52 = vld [vmem:[%s13027_s4 + $0x150] sm:$0xff]  }
 0x2cb   : > { %v2769_v58 = vmax.f32 %v2761_v53, 0.0  ;;  %v2762_v59 = vadd.f32 %v8502_v49, %v2746_v54  ;;  %v3004_v54 = vpack.c.bf16 %v2997_v51, %v2996_v50  ;;  %v10165_v50 = vld [vmem:[%s13027_s4 + $0x1a0] sm:$0xff]  }
 0x2cc   : > { %v2767_v60 = vmax.f32 %v2759_v56, 0.0  ;;  %v2760_v61 = vadd.f32 %v8502_v49, %v2744_v57  ;;  %v2998_v56 = vld [vmem:[#allocation2 + $0x37] sm:$0xff] }
 0x2cd   : > { %2777 = vst.msk [vmem:[#allocation2 + $0x64] sm:$0xff] %vm581_vm0, %v2769_v58  ;;  %v2770_v62 = vmax.f32 %v2762_v59, 0.0 }
 0x2ce   : > { %2775 = vst.msk [vmem:[#allocation2 + $0x44] sm:$0xff] %vm581_vm0, %v2767_v60  ;;  %v2768_v63 = vmax.f32 %v2760_v61, 0.0  ;;  %v9369_v0 = vpop.f32.mrb[12].mxu1  ;;  %v10156_v61 = vld [vmem:[%s13027_s4 + $0x158] sm:$0xff]  }
 0x2cf   : > { %2778 = vst.msk [vmem:[#allocation2 + $0x74] sm:$0xff] %vm581_vm0, %v2770_v62  ;;  %v2749_v1 = vmul.f32 %v9369_v0, %v8500_v47  ;;  %v2712_v2 = vpop.f32.mrb[13].mxu1 }
 0x2d0   : > { %2776 = vst.msk [vmem:[#allocation2 + $0x54] sm:$0xff] %vm581_vm0, %v2768_v63  ;;  %v2747_v4 = vmul.f32 %v8500_v47, %v2712_v2  ;;  %v9370_v13 = vpop.f32.mrb[14].mxu1  ;;  %v10157_v63 = vld [vmem:[%s13027_s4 + $0x160] sm:$0xff]  }
 0x2d1   : > { %v2765_v14 = vadd.f32 %v8502_v49, %v2749_v1  ;;  %v2750_v16 = vmul.f32 %v9370_v13, %v8500_v47  ;;  %v2715_v17 = vpop.f32.mrb[15].mxu1 }
 0x2d2   : > { %v2763_v18 = vadd.f32 %v8502_v49, %v2747_v4  ;;  %v2748_v19 = vmul.f32 %v8500_v47, %v2715_v17 }
 0x2d3   : > { %v2773_v20 = vmax.f32 %v2765_v14, 0.0  ;;  %v2766_v21 = vadd.f32 %v8502_v49, %v2750_v16  ;;  %v10158_v16 = vld [vmem:[%s13027_s4 + $0x168] sm:$0xff]  }
 0x2d4   : > { %v2771_v23 = vmax.f32 %v2763_v18, 0.0  ;;  %v2764_v24 = vadd.f32 %v8502_v49, %v2748_v19  ;;  %v10871_v33 = vld [vmem:[#allocation2 + $0x64] sm:$0xff]  ;;  %v10159_v18 = vld [vmem:[%s13027_s4 + $0x170] sm:$0xff]  }
 0x2d5   : > { %2781 = vst.msk [vmem:[#allocation2 + $0xa4] sm:$0xff] %vm581_vm0, %v2773_v20  ;;  %v2774_v25 = vmax.f32 %v2766_v21, 0.0  ;;  %v10860_v27 = vld [vmem:[#allocation2 + $0x44] sm:$0xff] }
 0x2d6   : > { %2779 = vst.msk [vmem:[#allocation2 + $0x84] sm:$0xff] %vm581_vm0, %v2771_v23  ;;  %v2772_v28 = vmax.f32 %v2764_v24, 0.0  ;;  %v2810_v29 = vpack.c.bf16 %v10860_v27, %v10857_v22  ;;  %v10881_v40 = vld [vmem:[#allocation2 + $0x74] sm:$0xff]  ;;  %v2787_v44 = vld [vmem:[#allocation2 + $0x41] sm:$0xff] }
 0x2d7   : > { %2782 = vst.msk [vmem:[#allocation2 + $0xb4] sm:$0xff] %vm581_vm0, %v2774_v25  ;;  %v10869_v31 = vld [vmem:[#allocation2 + $0x54] sm:$0xff]  ;;  %v2789_v47 = vld [vmem:[#allocation2 + $0x61] sm:$0xff]  ;;  %v3233_v25 = vpack.c.bf16 %v10881_v40, %v10871_v33 }
 0x2d8   : > { %2780 = vst.msk [vmem:[#allocation2 + $0x94] sm:$0xff] %vm581_vm0, %v2772_v28  ;;  %9376 = vmatmul.mubr.msk.bf16.vlgmr.msra.gmra.mrb[8].mxu0 %vm581_vm0, %v2810_v29  ;;  %v2811_v35 = vpack.c.bf16 %v10871_v33, %v10869_v31  ;;  %v2788_v34 = vld [vmem:[#allocation2 + $0x51] sm:$0xff]  ;;  %v2999_v57 = vld [vmem:[#allocation2 + $0x47] sm:$0xff]  ;;  %v3232_v23 = vpack.c.bf16 %v10869_v31, %v10860_v27 }
 0x2d9   : > { %9384 = vmatpush3.bf16.msra.mxu0 %v10151_v46  ;;  %v2793_v46 = vpack.c.bf16 %v2787_v44, %v2786_v26  ;;  %v2794_v49 = vpack.c.bf16 %v2789_v47, %v2788_v34  ;;  %v2790_v53 = vld [vmem:[#allocation2 + $0x71] sm:$0xff]  ;;  %v3005_v59 = vpack.c.bf16 %v2999_v57, %v2998_v56  ;;  %v3001_v60 = vld [vmem:[#allocation2 + $0x67] sm:$0xff]  ;;  %v3118_v4 = vpack.c.bf16 %v2788_v34, %v2787_v44 }
 0x2da   : > { %9379 = vmatprep.mubr.msk.bf16.mxu0 %vm581_vm0, %v2811_v35  ;;  %9385 = vmatprep.subr.bf16.mxu0 %v10152_v30  ;;  %v3000_v58 = vld [vmem:[#allocation2 + $0x57] sm:$0xff]  ;;  %v3119_v14 = vpack.c.bf16 %v2790_v53, %v2789_v47  ;;  %v10161_v27 = vld [vmem:[%s13027_s4 + $0x180] sm:$0xff]  }
 0x2db   : > { %v3006_v62 = vpack.c.bf16 %v3001_v60, %v3000_v58  ;;  %v3002_v1 = vld [vmem:[#allocation2 + $0x77] sm:$0xff]  ;;  %v3346_v35 = vpack.c.bf16 %v3000_v58, %v2999_v57  ;;  %v3458_v44 = vld [vmem:[#allocation2 + $0xc1] sm:$0xff] }
 0x2dc   : > { %v3116_v20 = vld [vmem:[#allocation2 + $0xa1] sm:$0xff]  ;;  %v10160_v28 = vld [vmem:[%s13027_s4 + $0x178] sm:$0xff]   ;;  %v3347_v37 = vpack.c.bf16 %v3002_v1, %v3001_v60 }
 0x2dd   : > { %v10883_v42 = vld [vmem:[#allocation2 + $0x84] sm:$0xff]  ;;  %9386 = vmatpush3.bf16.msra.mxu0 %v10152_v30 }
 0x2de   : > { %v10887_v43 = vpack.c.bf16 %v10883_v42, %v10881_v40  ;;  %9395 = vmatprep.subr.bf16.mxu0 %v10153_v38  ;;  %v2791_v32 = vld [vmem:[#allocation2 + $0x81] sm:$0xff]  ;;  %v3117_v19 = vld [vmem:[#allocation2 + $0xb1] sm:$0xff] }
 0x2df   : > { %v10903_v55 = vpack.c.bf16 %v2791_v32, %v2790_v53  ;;  %v3003_v0 = vld [vmem:[#allocation2 + $0x87] sm:$0xff]  ;;  %v3115_v13 = vld [vmem:[#allocation2 + $0x91] sm:$0xff]  ;;  %v3121_v21 = vpack.c.bf16 %v3117_v19, %v3116_v20  ;;  %v3463_v47 = vpack.c.bf16 %v3458_v44, %v3117_v19 }
 0x2e0   : > { %9380 = vmatmul.mubr.msk.bf16.gmra.mrb[12].mxu0 %vm581_vm0, %v10887_v43  ;;  %v10916_v2 = vpack.c.bf16 %v3003_v0, %v3002_v1  ;;  %v3120_v17 = vpack.c.bf16 %v3115_v13, %v2791_v32  ;;  %v3229_v24 = vld [vmem:[#allocation2 + $0x94] sm:$0xff]  ;;  %v3230_v31 = vld [vmem:[#allocation2 + $0xa4] sm:$0xff]  ;;  %v3462_v34 = vpack.c.bf16 %v3116_v20, %v3115_v13 }
 0x2e1   : > { %9387 = vmatprep.mubr.msk.bf16.mxu0 %vm581_vm0, %v2792_v39  ;;  %v3234_v29 = vpack.c.bf16 %v3229_v24, %v10883_v42  ;;  %v3231_v30 = vld [vmem:[#allocation2 + $0xb4] sm:$0xff]  ;;  %v3344_v15 = vld [vmem:[#allocation2 + $0xa7] sm:$0xff]  ;;  %v3576_v32 = vpack.c.bf16 %v3230_v31, %v3229_v24 }
 0x2e2   : > { %v3235_v33 = vpack.c.bf16 %v3231_v30, %v3230_v31  ;;  %v3343_v36 = vld [vmem:[#allocation2 + $0x97] sm:$0xff]  ;;  %v10166_v53 = vld [vmem:[%s13027_s4 + $0x1a8] sm:$0xff]  }
 0x2e3   : > { %v3348_v40 = vpack.c.bf16 %v3343_v36, %v3003_v0  ;;  %v10163_v42 = vld [vmem:[%s13027_s4 + $0x190] sm:$0xff]   ;;  %v3686_v56 = vld [vmem:[#allocation2 + $0xc7] sm:$0xff]  ;;  %v3690_v57 = vpack.c.bf16 %v3344_v15, %v3343_v36 }
 0x2e4   : > { %v3345_v39 = vld [vmem:[#allocation2 + $0xb7] sm:$0xff]  ;;  %v3688_v60 = vld [vmem:[#allocation2 + $0xe7] sm:$0xff] }
 0x2e5   : > { %v3349_v26 = vpack.c.bf16 %v3345_v39, %v3344_v15  ;;  %v3691_v58 = vpack.c.bf16 %v3686_v56, %v3345_v39  ;;  %v3862_v0 = vld [vmem:[#allocation2 + $0x24] sm:$0xff] }
 0x2e6   : > { %v3869_v1 = vpack.c.bf16 %v10857_v22, %v3862_v0  ;;  %v8594_v22 = vld [vmem:[%s13028_s5 + $0x2] ss:$0 sm:$0xff]  ;;  %v10172_v0 = vld [vmem:[%s13027_s4 + $0x1d8] sm:$0xff]  }
 0x2e8   : > { %9388 = vmatmul.mubr.msk.bf16.vlgmr.msra.gmra.mrb[8].mxu0 %vm581_vm0, %v2793_v46  ;;  %v10164_v46 = vld [vmem:[%s13027_s4 + $0x198] sm:$0xff]  }
 0x2e9   : > { %9396 = vmatpush3.bf16.msra.mxu0 %v10153_v38  ;;  %9391 = vmatprep.mubr.msk.bf16.mxu0 %vm581_vm0, %v2794_v49  ;;  %v10162_v38 = vld [vmem:[%s13027_s4 + $0x188] sm:$0xff]  }
 0x2ea   : > { %9397 = vmatprep.subr.bf16.mxu0 %v10154_v48  ;;  %v3460_v49 = vld [vmem:[#allocation2 + $0xe1] sm:$0xff] }
 0x2ed   : > { %9398 = vmatpush3.bf16.msra.mxu0 %v10154_v48  ;;  %v3459_v48 = vld [vmem:[#allocation2 + $0xd1] sm:$0xff] }
 0x2ee   : > { %9407 = vmatprep.subr.bf16.mxu0 %v10155_v52  ;;  %v3464_v51 = vpack.c.bf16 %v3460_v49, %v3459_v48 }
 0x2f0   : > { %9392 = vmatmul.mubr.msk.bf16.gmra.mrb[12].mxu0 %vm581_vm0, %v10903_v55 }
 0x2f1   : > { %9399 = vmatprep.mubr.msk.bf16.mxu0 %vm581_vm0, %v3004_v54 }
 0x2f8   : > { %9400 = vmatmul.mubr.msk.bf16.vlgmr.msra.gmra.mrb[8].mxu0 %vm581_vm0, %v3005_v59  ;;  %v3687_v59 = vld [vmem:[#allocation2 + $0xd7] sm:$0xff] }
 0x2f9   : > { %9408 = vmatpush3.bf16.msra.mxu0 %v10155_v52  ;;  %9403 = vmatprep.mubr.msk.bf16.mxu0 %vm581_vm0, %v3006_v62  ;;  %v10968_v52 = vld [vmem:[#allocation2 + $0xc4] sm:$0xff] }
 0x2fa   : > { %9409 = vmatprep.subr.bf16.mxu0 %v10156_v61  ;;  %v3577_v54 = vpack.c.bf16 %v10968_v52, %v3231_v30  ;;  %v3860_v62 = vld [vmem:[#allocation2 + $0x4] sm:$0xff] }
 0x2fd   : > { %9410 = vmatpush3.bf16.msra.mxu0 %v10156_v61  ;;  %v3692_v61 = vpack.c.bf16 %v3688_v60, %v3687_v59  ;;  %v3845_v60 = vld [vmem:[#allocation2 + $0x20] sm:$0xff] }
 0x2fe   : > { %9419 = vmatprep.subr.bf16.mxu0 %v10157_v63 }
 0x300   : > { %9404 = vmatmul.mubr.msk.bf16.gmra.mrb[12].mxu0 %vm581_vm0, %v10916_v2 }
 0x301   : > { %9411 = vmatprep.mubr.msk.bf16.mxu0 %vm581_vm0, %v3118_v4  ;;  %v10170_v4 = vld [vmem:[%s13027_s4 + $0x1b8] sm:$0xff]  }
 0x308   : > { %9412 = vmatmul.mubr.msk.bf16.vlgmr.msra.gmra.mrb[8].mxu0 %vm581_vm0, %v3119_v14  ;;  %v8596_v14 = vld [vmem:[%s13029_s6 + $0x2] ss:$0 sm:$0xff] }
 0x309   : > { %9420 = vmatpush3.bf16.msra.mxu0 %v10157_v63  ;;  %9415 = vmatprep.mubr.msk.bf16.mxu0 %vm581_vm0, %v3120_v17  ;;  %v3868_v63 = vpack.c.bf16 %v10839_v45, %v3860_v62  ;;  %v11002_v45 = vld [vmem:[%s13027_s4 + $0x1d0] sm:$0xff]  }
 0x30a   : > { %9421 = vmatprep.subr.bf16.mxu0 %v10158_v16 }
 0x30b   : > { %9483 = vmatprep.mubr.msk.bf16.mxu1 %vm581_vm0, %v3868_v63 }
 0x30d   : > { %9422 = vmatpush3.bf16.msra.mxu0 %v10158_v16 }
 0x30e   : > { %9431 = vmatprep.subr.bf16.mxu0 %v10159_v18 }
 0x310   : > { %9416 = vmatmul.mubr.msk.bf16.gmra.mrb[12].mxu0 %vm581_vm0, %v3121_v21 }
 0x311   : > { %9423 = vmatprep.mubr.msk.bf16.mxu0 %vm581_vm0, %v3232_v23 }
 0x318   : > { %9424 = vmatmul.mubr.msk.bf16.vlgmr.msra.gmra.mrb[8].mxu0 %vm581_vm0, %v3233_v25 }
 0x319   : > { %9432 = vmatpush3.bf16.msra.mxu0 %v10159_v18  ;;  %9427 = vmatprep.mubr.msk.bf16.mxu0 %vm581_vm0, %v3234_v29 }
 0x31a   : > { %9433 = vmatprep.subr.bf16.mxu0 %v10160_v28 }
 0x31d   : > { %9434 = vmatpush3.bf16.msra.mxu0 %v10160_v28 }
 0x31e   : > { %9443 = vmatprep.subr.bf16.mxu0 %v10161_v27 }
 0x320   : > { %9428 = vmatmul.mubr.msk.bf16.gmra.mrb[12].mxu0 %vm581_vm0, %v3235_v33 }
 0x321   : > { %9435 = vmatprep.mubr.msk.bf16.mxu0 %vm581_vm0, %v3346_v35 }
 0x328   : > { %9436 = vmatmul.mubr.msk.bf16.vlgmr.msra.gmra.mrb[8].mxu0 %vm581_vm0, %v3347_v37 }
 0x329   : > { %9444 = vmatpush3.bf16.msra.mxu0 %v10161_v27  ;;  %9439 = vmatprep.mubr.msk.bf16.mxu0 %vm581_vm0, %v3348_v40 }
 0x32a   : > { %9445 = vmatprep.subr.bf16.mxu0 %v10162_v38 }
 0x32d   : > { %9446 = vmatpush3.bf16.msra.mxu0 %v10162_v38 }
 0x32e   : > { %9455 = vmatprep.subr.bf16.mxu0 %v10163_v42 }
 0x330   : > { %9440 = vmatmul.mubr.msk.bf16.gmra.mrb[12].mxu0 %vm581_vm0, %v3349_v26 }
 0x331   : > { %9447 = vmatprep.mubr.msk.bf16.mxu0 %vm581_vm0, %v10903_v55  ;;  %v10976_v55 = vld [vmem:[#allocation2 + $0xe4] sm:$0xff] }
 0x338   : > { %9448 = vmatmul.mubr.msk.bf16.vlgmr.msra.gmra.mrb[8].mxu0 %vm581_vm0, %v3462_v34 }
 0x339   : > { %9456 = vmatpush3.bf16.msra.mxu0 %v10163_v42  ;;  %9451 = vmatprep.mubr.msk.bf16.mxu0 %vm581_vm0, %v3463_v47 }
 0x33a   : > { %9457 = vmatprep.subr.bf16.mxu0 %v10164_v46 }
 0x33d   : > { %9458 = vmatpush3.bf16.msra.mxu0 %v10164_v46 }
 0x33e   : > { %9467 = vmatprep.subr.bf16.mxu0 %v10165_v50 }
 0x340   : > { %9452 = vmatmul.mubr.msk.bf16.gmra.mrb[12].mxu0 %vm581_vm0, %v3464_v51  ;;  %v3844_v51 = vld [vmem:[#allocation2 + $0x10] sm:$0xff] }
 0x341   : > { %9459 = vmatprep.mubr.msk.bf16.mxu0 %vm581_vm0, %v10887_v43  ;;  %v3578_v43 = vpack.c.bf16 %v10976_v55, %v10822_v41  ;;  %v10168_v41 = vld [vmem:[%s13027_s4 + $0x1c8] sm:$0xff]  }
 0x342   : > { %9481 = vmatprep.subr.bf16.mxu1 %v10168_v41 }
 0x343   : > { %9482 = vmatpush3.bf16.msra.mxu1 %v10168_v41 }
 0x346   : > { %9484 = vmatmul.mubr.msk.bf16.vlgmr.msra.gmra.mrb[16].mxu1 %vm581_vm0, %v3869_v1 }
 0x348   : > { %9460 = vmatmul.mubr.msk.bf16.vlgmr.msra.gmra.mrb[8].mxu0 %vm581_vm0, %v3576_v32 }
 0x349   : > { %9468 = vmatpush3.bf16.msra.mxu0 %v10165_v50  ;;  %9463 = vmatprep.mubr.msk.bf16.mxu0 %vm581_vm0, %v3577_v54  ;;  %v3843_v50 = vld [vmem:[#allocation2] sm:$0xff] }
 0x34a   : > { %9469 = vmatprep.subr.bf16.mxu0 %v10166_v53 }
 0x34d   : > { %9470 = vmatpush3.bf16.msra.mxu0 %v10166_v53 }
 0x350   : > { %9464 = vmatmul.mubr.msk.bf16.gmra.mrb[12].mxu0 %vm581_vm0, %v3578_v43 }
 0x351   : > { %9471 = vmatprep.mubr.msk.bf16.mxu0 %vm581_vm0, %v10916_v2  ;;  %v10169_v2 = vld [vmem:[%s13027_s4 + $0x1b0] sm:$0xff]  }
 0x352   : > { %9491 = vmatprep.subr.bf16.mxu1 %v10169_v2 }
 0x353   : > { %9492 = vmatpush3.bf16.msra.mxu1 %v10169_v2  ;;  %v4055_v2 = vld [vmem:[#allocation2 + $0x8] sm:$0xff] }
 0x354   : > { %9493 = vmatprep.subr.bf16.mxu1 %v10170_v4 }
 0x357   : > { %9494 = vmatpush3.bf16.msra.mxu1 %v10170_v4  ;;  %v4056_v4 = vld [vmem:[#allocation2 + $0x18] sm:$0xff] }
 0x358   : > { %9472 = vmatmul.mubr.msk.bf16.vlgmr.msra.gmra.mrb[8].mxu0 %vm581_vm0, %v3690_v57  ;;  %9503 = vmatprep.subr.bf16.mxu1 %v11002_v45 }
 0x359   : > { %9475 = vmatprep.mubr.msk.bf16.mxu0 %vm581_vm0, %v3691_v58  ;;  %v3851_v58 = vpack.c.bf16 %v3844_v51, %v3843_v50  ;;  %v10180_v50 = vld [vmem:[%s13027_s4 + $0x218] sm:$0xff]  }
 0x360   : > { %9476 = vmatmul.mubr.msk.bf16.gmra.mrb[12].mxu0 %vm581_vm0, %v3692_v61  ;;  %v3846_v61 = vld [vmem:[#allocation2 + $0x30] sm:$0xff] }
 0x361   : > { %v3852_v41 = vpack.c.bf16 %v3846_v61, %v3845_v60  ;;  %v4518_v60 = vld [vmem:[#allocation2 + $0xe0] sm:$0xff]  ;;  %v4519_v61 = vld [vmem:[#allocation2 + $0xf0] sm:$0xff] }
 0x42b   : > { %v9473_v13 = vpop.f32.mrb[8].mxu0 }
 0x42c   : > { %v3805_v16 = vmul.f32 %v9473_v13, %v8594_v22  ;;  %v3756_v17 = vpop.f32.mrb[9].mxu0 }
 0x42d   : > { %v3803_v18 = vmul.f32 %v8594_v22, %v3756_v17  ;;  %v9474_v19 = vpop.f32.mrb[10].mxu0 }
 0x42e   : > { %v3821_v20 = vadd.f32 %v8596_v14, %v3805_v16  ;;  %v3806_v21 = vmul.f32 %v9474_v19, %v8594_v22  ;;  %v3759_v23 = vpop.f32.mrb[11].mxu0  ;;  %v4063_v16 = vpack.c.bf16 %v4056_v4, %v4055_v2  ;;  %v4633_v2 = vld [vmem:[#allocation2 + $0xf4] sm:$0xff] }
 0x42f   : > { %v3819_v24 = vadd.f32 %v8596_v14, %v3803_v18  ;;  %v3804_v25 = vmul.f32 %v8594_v22, %v3759_v23  ;;  %v4058_v18 = vld [vmem:[#allocation2 + $0x38] sm:$0xff]  ;;  %v10174_v23 = vld [vmem:[%s13027_s4 + $0x1e8] sm:$0xff]   ;;  %v4637_v4 = vpack.c.bf16 %v4633_v2, %v10976_v55  ;;  %v10185_v55 = vld [vmem:[%s13027_s4 + $0x250] sm:$0xff]  }
 0x430   : > { %v3829_v28 = vmax.f32 %v3821_v20, 0.0  ;;  %v3822_v29 = vadd.f32 %v8596_v14, %v3806_v21  ;;  %9587 = vmatprep.subr.bf16.mxu0 %v10185_v55 }
 0x431   : > { %v3827_v27 = vmax.f32 %v3819_v24, 0.0  ;;  %v3820_v30 = vadd.f32 %v8596_v14, %v3804_v25  ;;  %v10175_v25 = vld [vmem:[%s13027_s4 + $0x1f0] sm:$0xff]   ;;  %9588 = vmatpush3.bf16.msra.mxu0 %v10185_v55  ;;  %v10203_v55 = vld [vmem:[%s13035_s12] sm:$0x3f]  }
 0x432   : > { %3837 = vst.msk [vmem:[#allocation2 + $0x64] sm:$0xff] %vm581_vm0, %v3829_v28  ;;  %v3830_v31 = vmax.f32 %v3822_v29, 0.0 }
 0x433   : > { %3835 = vst.msk [vmem:[#allocation2 + $0x44] sm:$0xff] %vm581_vm0, %v3827_v27  ;;  %v3828_v33 = vmax.f32 %v3820_v30, 0.0  ;;  %v9477_v35 = vpop.f32.mrb[12].mxu0 }
 0x434   : > { %3838 = vst.msk [vmem:[#allocation2 + $0x74] sm:$0xff] %vm581_vm0, %v3830_v31  ;;  %v3809_v36 = vmul.f32 %v9477_v35, %v8594_v22  ;;  %v3772_v37 = vpop.f32.mrb[13].mxu0 }
 0x435   : > { %3836 = vst.msk [vmem:[#allocation2 + $0x54] sm:$0xff] %vm581_vm0, %v3828_v33  ;;  %v3807_v38 = vmul.f32 %v8594_v22, %v3772_v37  ;;  %v9478_v40 = vpop.f32.mrb[14].mxu0  ;;  %v10176_v33 = vld [vmem:[%s13027_s4 + $0x1f8] sm:$0xff]  }
 0x436   : > { %v3825_v42 = vadd.f32 %v8596_v14, %v3809_v36  ;;  %v3810_v39 = vmul.f32 %v9478_v40, %v8594_v22  ;;  %v3775_v15 = vpop.f32.mrb[15].mxu0  ;;  %v10177_v36 = vld [vmem:[%s13027_s4 + $0x200] sm:$0xff]  }
 0x437   : > { %v3823_v26 = vadd.f32 %v8596_v14, %v3807_v38  ;;  %v3808_v44 = vmul.f32 %v8594_v22, %v3775_v15  ;;  %v10173_v22 = vld [vmem:[%s13027_s4 + $0x1e0] sm:$0xff]   ;;  %v10178_v15 = vld [vmem:[%s13027_s4 + $0x208] sm:$0xff]  }
 0x438   : > { %v3833_v34 = vmax.f32 %v3825_v42, 0.0  ;;  %v3826_v46 = vadd.f32 %v8596_v14, %v3810_v39 }
 0x439   : > { %v3831_v47 = vmax.f32 %v3823_v26, 0.0  ;;  %v3824_v48 = vadd.f32 %v8596_v14, %v3808_v44  ;;  %v3866_v57 = vld [vmem:[#allocation2 + $0x64] sm:$0xff]  ;;  %v10179_v44 = vld [vmem:[%s13027_s4 + $0x210] sm:$0xff]  }
 0x43a   : > { %3841 = vst.msk [vmem:[#allocation2 + $0xa4] sm:$0xff] %vm581_vm0, %v3833_v34  ;;  %v3834_v49 = vmax.f32 %v3826_v46, 0.0  ;;  %v3864_v54 = vld [vmem:[#allocation2 + $0x44] sm:$0xff] }
 0x43b   : > { %3839 = vst.msk [vmem:[#allocation2 + $0x84] sm:$0xff] %vm581_vm0, %v3831_v47  ;;  %v3832_v32 = vmax.f32 %v3824_v48, 0.0  ;;  %v3867_v53 = vld [vmem:[#allocation2 + $0x74] sm:$0xff]  ;;  %v3847_v63 = vld [vmem:[#allocation2 + $0x40] sm:$0xff]  ;;  %v4059_v21 = vld [vmem:[#allocation2 + $0x48] sm:$0xff] }
 0x43c   : > { %3842 = vst.msk [vmem:[#allocation2 + $0xb4] sm:$0xff] %vm581_vm0, %v3834_v49  ;;  %v3865_v43 = vld [vmem:[#allocation2 + $0x54] sm:$0xff]  ;;  %v11021_v59 = vpack.c.bf16 %v3867_v53, %v3866_v57  ;;  %v3849_v14 = vld [vmem:[#allocation2 + $0x60] sm:$0xff]  ;;  %v4061_v29 = vld [vmem:[#allocation2 + $0x68] sm:$0xff] }
 0x43d   : > { %3840 = vst.msk [vmem:[#allocation2 + $0x94] sm:$0xff] %vm581_vm0, %v3832_v32  ;;  %v11019_v56 = vpack.c.bf16 %v3865_v43, %v3864_v54  ;;  %v3848_v62 = vld [vmem:[#allocation2 + $0x50] sm:$0xff]  ;;  %v4060_v20 = vld [vmem:[#allocation2 + $0x58] sm:$0xff]  ;;  %v10181_v32 = vld [vmem:[%s13027_s4 + $0x220] sm:$0xff]  }
 0x43e   : > { %v3853_v1 = vpack.c.bf16 %v3848_v62, %v3847_v63  ;;  %v3850_v13 = vld [vmem:[#allocation2 + $0x70] sm:$0xff]  ;;  %v4065_v24 = vpack.c.bf16 %v4060_v20, %v4059_v21  ;;  %v4062_v28 = vld [vmem:[#allocation2 + $0x78] sm:$0xff]  ;;  %v4523_v62 = vpack.c.bf16 %v4519_v61, %v4518_v60  ;;  %v8690_v21 = vld [vmem:[%s13029_s6 + $0x3] ss:$0 sm:$0xff] }
 0x43f   : > { %9487 = vmatprep.mubr.msk.bf16.mxu1 %vm581_vm0, %v11019_v56  ;;  %v3854_v17 = vpack.c.bf16 %v3850_v13, %v3849_v14  ;;  %v4066_v27 = vpack.c.bf16 %v4062_v28, %v4061_v29  ;;  %v4517_v57 = vld [vmem:[#allocation2 + $0xd0] sm:$0xff]  ;;  %v4746_v14 = vld [vmem:[#allocation2 + $0xe8] sm:$0xff] }
 0x440   : > { %9488 = vmatmul.mubr.msk.bf16.gmra.mrb[20].mxu1 %vm581_vm0, %v11021_v59  ;;  %v4631_v63 = vld [vmem:[#allocation2 + $0xd4] sm:$0xff] }
 0x441   : > { %9495 = vmatprep.mubr.msk.bf16.mxu1 %vm581_vm0, %v3851_v58  ;;  %v4175_v38 = vld [vmem:[#allocation2 + $0xa0] sm:$0xff]  ;;  %v4403_v54 = vld [vmem:[#allocation2 + $0xa8] sm:$0xff] }
 0x442   : > { %v4173_v31 = vld [vmem:[#allocation2 + $0x80] sm:$0xff]  ;;  %v4401_v49 = vld [vmem:[#allocation2 + $0x88] sm:$0xff] }
 0x443   : > { %v4176_v37 = vld [vmem:[#allocation2 + $0xb0] sm:$0xff]  ;;  %v4287_v39 = vld [vmem:[#allocation2 + $0x84] sm:$0xff]  ;;  %v4404_v53 = vld [vmem:[#allocation2 + $0xb8] sm:$0xff] }
 0x444   : > { %v4174_v30 = vld [vmem:[#allocation2 + $0x90] sm:$0xff]  ;;  %v4180_v40 = vpack.c.bf16 %v4176_v37, %v4175_v38  ;;  %v4289_v46 = vld [vmem:[#allocation2 + $0xa4] sm:$0xff]  ;;  %v4402_v48 = vld [vmem:[#allocation2 + $0x98] sm:$0xff]  ;;  %v4408_v43 = vpack.c.bf16 %v4404_v53, %v4403_v54 }
 0x445   : > { %v4179_v35 = vpack.c.bf16 %v4174_v30, %v4173_v31  ;;  %v4288_v42 = vld [vmem:[#allocation2 + $0x94] sm:$0xff]  ;;  %v4407_v51 = vpack.c.bf16 %v4402_v48, %v4401_v49 }
 0x446   : > { %v4293_v26 = vpack.c.bf16 %v4288_v42, %v4287_v39  ;;  %v4290_v34 = vld [vmem:[#allocation2 + $0xb4] sm:$0xff] }
 0x447   : > { %v4294_v47 = vpack.c.bf16 %v4290_v34, %v4289_v46  ;;  %v4919_v53 = vld [vmem:[#allocation2 + $0x34] sm:$0xff] }
 0x448   : > { %9496 = vmatmul.mubr.msk.bf16.vlgmr.msra.gmra.mrb[16].mxu1 %vm581_vm0, %v3852_v41  ;;  %v10183_v41 = vld [vmem:[%s13027_s4 + $0x230] sm:$0xff]  }
 0x449   : > { %9504 = vmatpush3.bf16.msra.mxu1 %v11002_v45  ;;  %9499 = vmatprep.mubr.msk.bf16.mxu1 %vm581_vm0, %v3853_v1  ;;  %v4057_v45 = vld [vmem:[#allocation2 + $0x28] sm:$0xff] }
 0x44a   : > { %9505 = vmatprep.subr.bf16.mxu1 %v10172_v0  ;;  %v4064_v19 = vpack.c.bf16 %v4058_v18, %v4057_v45  ;;  %v10186_v45 = vld [vmem:[%s13027_s4 + $0x258] sm:$0xff]   ;;  %v10187_v18 = vld [vmem:[%s13027_s4 + $0x240] sm:$0xff]  }
 0x44b   : > { %9589 = vmatprep.subr.bf16.mxu0 %v10186_v45 }
 0x44c   : > { %9590 = vmatpush3.bf16.msra.mxu0 %v10186_v45 }
 0x44d   : > { %9506 = vmatpush3.bf16.msra.mxu1 %v10172_v0  ;;  %v4636_v0 = vpack.c.bf16 %v4631_v63, %v10968_v52  ;;  %v4745_v52 = vld [vmem:[#allocation2 + $0xd8] sm:$0xff]  ;;  %9599 = vmatprep.subr.bf16.mxu0 %v10187_v18  ;;  %v10189_v63 = vld [vmem:[%s13027_s4 + $0x260] sm:$0xff]  }
 0x44e   : > { %9515 = vmatprep.subr.bf16.mxu1 %v10173_v22 }
 0x450   : > { %9500 = vmatmul.mubr.msk.bf16.gmra.mrb[20].mxu1 %vm581_vm0, %v3854_v17 }
 0x451   : > { %9507 = vmatprep.mubr.msk.bf16.mxu1 %vm581_vm0, %v4063_v16  ;;  %v4747_v16 = vld [vmem:[#allocation2 + $0xf8] sm:$0xff] }
 0x458   : > { %9508 = vmatmul.mubr.msk.bf16.vlgmr.msra.gmra.mrb[16].mxu1 %vm581_vm0, %v4064_v19  ;;  %v8688_v19 = vld [vmem:[%s13028_s5 + $0x3] ss:$0 sm:$0xff] }
 0x459   : > { %9516 = vmatpush3.bf16.msra.mxu1 %v10173_v22  ;;  %9511 = vmatprep.mubr.msk.bf16.mxu1 %vm581_vm0, %v4065_v24  ;;  %v4744_v22 = vld [vmem:[#allocation2 + $0xc8] sm:$0xff] }
 0x45a   : > { %9517 = vmatprep.subr.bf16.mxu1 %v10174_v23  ;;  %v4750_v13 = vpack.c.bf16 %v4745_v52, %v4744_v22 }
 0x45d   : > { %9518 = vmatpush3.bf16.msra.mxu1 %v10174_v23 }
 0x45e   : > { %9527 = vmatprep.subr.bf16.mxu1 %v10175_v25 }
 0x460   : > { %9512 = vmatmul.mubr.msk.bf16.gmra.mrb[20].mxu1 %vm581_vm0, %v4066_v27 }
 0x461   : > { %9519 = vmatprep.mubr.msk.bf16.mxu1 %vm581_vm0, %v3853_v1  ;;  %v10184_v1 = vld [vmem:[%s13027_s4 + $0x238] sm:$0xff]  }
 0x468   : > { %9520 = vmatmul.mubr.msk.bf16.vlgmr.msra.gmra.mrb[16].mxu1 %vm581_vm0, %v3854_v17  ;;  %v4751_v17 = vpack.c.bf16 %v4747_v16, %v4746_v14 }
 0x469   : > { %9528 = vmatpush3.bf16.msra.mxu1 %v10175_v25  ;;  %9523 = vmatprep.mubr.msk.bf16.mxu1 %vm581_vm0, %v4179_v35 }
 0x46a   : > { %9529 = vmatprep.subr.bf16.mxu1 %v10176_v33 }
 0x46d   : > { %9530 = vmatpush3.bf16.msra.mxu1 %v10176_v33 }
 0x46e   : > { %9539 = vmatprep.subr.bf16.mxu1 %v10177_v36 }
 0x470   : > { %9524 = vmatmul.mubr.msk.bf16.gmra.mrb[20].mxu1 %vm581_vm0, %v4180_v40 }
 0x471   : > { %9531 = vmatprep.mubr.msk.bf16.mxu1 %vm581_vm0, %v11019_v56  ;;  %v4516_v56 = vld [vmem:[#allocation2 + $0xc0] sm:$0xff] }
 0x472   : > { %v4522_v58 = vpack.c.bf16 %v4517_v57, %v4516_v56 }
 0x478   : > { %9532 = vmatmul.mubr.msk.bf16.vlgmr.msra.gmra.mrb[16].mxu1 %vm581_vm0, %v11021_v59  ;;  %v10182_v59 = vld [vmem:[%s13027_s4 + $0x228] sm:$0xff]  }
 0x479   : > { %9540 = vmatpush3.bf16.msra.mxu1 %v10177_v36  ;;  %9535 = vmatprep.mubr.msk.bf16.mxu1 %vm581_vm0, %v4293_v26 }
 0x47a   : > { %9541 = vmatprep.subr.bf16.mxu1 %v10178_v15 }
 0x47d   : > { %9542 = vmatpush3.bf16.msra.mxu1 %v10178_v15 }
 0x47e   : > { %9551 = vmatprep.subr.bf16.mxu1 %v10179_v44 }
 0x480   : > { %9536 = vmatmul.mubr.msk.bf16.gmra.mrb[20].mxu1 %vm581_vm0, %v4294_v47 }
 0x481   : > { %9543 = vmatprep.mubr.msk.bf16.mxu1 %vm581_vm0, %v4065_v24 }
 0x488   : > { %9544 = vmatmul.mubr.msk.bf16.vlgmr.msra.gmra.mrb[16].mxu1 %vm581_vm0, %v4066_v27 }
 0x489   : > { %9552 = vmatpush3.bf16.msra.mxu1 %v10179_v44  ;;  %9547 = vmatprep.mubr.msk.bf16.mxu1 %vm581_vm0, %v4407_v51 }
 0x48a   : > { %9553 = vmatprep.subr.bf16.mxu1 %v10180_v50 }
 0x48d   : > { %9554 = vmatpush3.bf16.msra.mxu1 %v10180_v50 }
 0x48e   : > { %9563 = vmatprep.subr.bf16.mxu1 %v10181_v32 }
 0x490   : > { %9548 = vmatmul.mubr.msk.bf16.gmra.mrb[20].mxu1 %vm581_vm0, %v4408_v43 }
 0x491   : > { %9555 = vmatprep.mubr.msk.bf16.mxu1 %vm581_vm0, %v4179_v35 }
 0x498   : > { %9556 = vmatmul.mubr.msk.bf16.vlgmr.msra.gmra.mrb[16].mxu1 %vm581_vm0, %v4180_v40 }
 0x499   : > { %9564 = vmatpush3.bf16.msra.mxu1 %v10181_v32  ;;  %9559 = vmatprep.mubr.msk.bf16.mxu1 %vm581_vm0, %v4522_v58 }
 0x49a   : > { %9565 = vmatprep.subr.bf16.mxu1 %v10182_v59 }
 0x49d   : > { %9566 = vmatpush3.bf16.msra.mxu1 %v10182_v59 }
 0x49e   : > { %9575 = vmatprep.subr.bf16.mxu1 %v10183_v41 }
 0x4a0   : > { %9560 = vmatmul.mubr.msk.bf16.gmra.mrb[20].mxu1 %vm581_vm0, %v4523_v62  ;;  %v10188_v62 = vld [vmem:[%s13027_s4 + $0x248] sm:$0xff]  }
 0x4a1   : > { %9567 = vmatprep.mubr.msk.bf16.mxu1 %vm581_vm0, %v4293_v26 }
 0x4a8   : > { %9568 = vmatmul.mubr.msk.bf16.vlgmr.msra.gmra.mrb[16].mxu1 %vm581_vm0, %v4294_v47 }
 0x4a9   : > { %9576 = vmatpush3.bf16.msra.mxu1 %v10183_v41  ;;  %9571 = vmatprep.mubr.msk.bf16.mxu1 %vm581_vm0, %v4636_v0 }
 0x4aa   : > { %9577 = vmatprep.subr.bf16.mxu1 %v10184_v1 }
 0x4ad   : > { %9578 = vmatpush3.bf16.msra.mxu1 %v10184_v1 }
 0x4b0   : > { %9572 = vmatmul.mubr.msk.bf16.gmra.mrb[20].mxu1 %vm581_vm0, %v4637_v4  ;;  %v4902_v4 = vld [vmem:[#allocation2 + $0x33] sm:$0xff] }
 0x4b1   : > { %9579 = vmatprep.mubr.msk.bf16.mxu1 %vm581_vm0, %v4407_v51 }
 0x4b8   : > { %9580 = vmatmul.mubr.msk.bf16.vlgmr.msra.gmra.mrb[16].mxu1 %vm581_vm0, %v4408_v43 }
 0x4b9   : > { %9583 = vmatprep.mubr.msk.bf16.mxu1 %vm581_vm0, %v4750_v13 }
 0x4c0   : > { %9584 = vmatmul.mubr.msk.bf16.gmra.mrb[20].mxu1 %vm581_vm0, %v4751_v17  ;;  %v6040_v17 = vld [vmem:[%s13033_s10] sm:$0xf] }
 0x4c1   : > { %10045 = vmatprep.subr.msk.bf16.mxu1 %vm6061_vm2, %v6040_v17  ;;  %v6063_v45 = vsel %vm6061_vm2, %v6040_v17, 0 }
 0x4c2   : > { %9696 = vmatpush3.bf16.msra.mxu1 %v6063_v45  ;;  %v6160_v45 = vld [vmem:[%s11197_s19 + $0x30] sm:$0xff] }
 0x4c3   : > { %10046 = vmatprep.subr.msk.bf16.mxu1 %vm6193_vm4, %v10203_v55 }
 0x58b   : > { %v9581_v20 = vpop.f32.mrb[16].mxu1 }
 0x58c   : > { %v4864_v23 = vmul.f32 %v9581_v20, %v8688_v19  ;;  %v4815_v24 = vpop.f32.mrb[17].mxu1  ;;  %v6030_v20 = vld [vmem:[%s11176_s26 + $0x10] sm:$0xff] }
 0x58d   : > { %v4862_v25 = vmul.f32 %v8688_v19, %v4815_v24  ;;  %v9582_v28 = vpop.f32.mrb[18].mxu1  ;;  %v6032_v24 = vld [vmem:[%s11176_s26 + $0x20] sm:$0xff] }
 0x58e   : > { %v4880_v29 = vadd.f32 %v8690_v21, %v4864_v23  ;;  %v4865_v27 = vmul.f32 %v9582_v28, %v8688_v19  ;;  %v4818_v30 = vpop.f32.mrb[19].mxu1  ;;  %v6031_v23 = vld [vmem:[%s11176_s26 + $0x18] sm:$0xff] }
 0x58f   : > { %v4878_v31 = vadd.f32 %v8690_v21, %v4862_v25  ;;  %v4863_v33 = vmul.f32 %v8688_v19, %v4818_v30  ;;  %v6033_v25 = vld [vmem:[%s11176_s26 + $0x28] sm:$0xff]  ;;  %v6195_v30 = vsel %vm6193_vm4, %v10203_v55, 0 }
 0x590   : > { %v4888_v35 = vmax.f32 %v4880_v29, 0.0  ;;  %v4881_v36 = vadd.f32 %v8690_v21, %v4865_v27  ;;  %v6037_v29 = vpack.c.bf16 %v6031_v23, %v6030_v20  ;;  %v6038_v27 = vpack.c.bf16 %v6033_v25, %v6032_v24  ;;  %v6286_v20 = vld [vmem:[%s11252_s23] sm:$0xff] }
 0x591   : > { %v4886_v37 = vmax.f32 %v4878_v31, 0.0  ;;  %v4879_v38 = vadd.f32 %v8690_v21, %v4863_v33  ;;  %v10193_v24 = vld [vmem:[%s13027_s4 + $0x280] sm:$0xff]  }
 0x592   : > { %4896 = vst.msk [vmem:[#allocation2 + $0x64] sm:$0xff] %vm581_vm0, %v4888_v35  ;;  %v4889_v40 = vmax.f32 %v4881_v36, 0.0  ;;  %v10190_v35 = vld [vmem:[%s13027_s4 + $0x268] sm:$0xff]   ;;  %v10204_v36 = vld [vmem:[%s13037_s14] sm:$0xff]  }
 0x593   : > { %4894 = vst.msk [vmem:[#allocation2 + $0x44] sm:$0xff] %vm581_vm0, %v4886_v37  ;;  %v4887_v42 = vmax.f32 %v4879_v38, 0.0  ;;  %v9585_v39 = vpop.f32.mrb[20].mxu1 }
 0x594   : > { %4897 = vst.msk [vmem:[#allocation2 + $0x74] sm:$0xff] %vm581_vm0, %v4889_v40  ;;  %v4868_v15 = vmul.f32 %v9585_v39, %v8688_v19  ;;  %v4831_v26 = vpop.f32.mrb[21].mxu1  ;;  %v6034_v40 = vld [vmem:[%s11176_s26 + $0x30] sm:$0xff] }
 0x595   : > { %4895 = vst.msk [vmem:[#allocation2 + $0x54] sm:$0xff] %vm581_vm0, %v4887_v42  ;;  %v4866_v44 = vmul.f32 %v8688_v19, %v4831_v26  ;;  %v9586_v34 = vpop.f32.mrb[22].mxu1  ;;  %v6035_v42 = vld [vmem:[%s11176_s26 + $0x38] sm:$0xff]  ;;  %v6155_v26 = vld [vmem:[%s11197_s19 + $0x8] sm:$0xff] }
 0x596   : > { %v4884_v46 = vadd.f32 %v8690_v21, %v4868_v15  ;;  %v4869_v47 = vmul.f32 %v9586_v34, %v8688_v19  ;;  %v4834_v48 = vpop.f32.mrb[23].mxu1  ;;  %v6154_v15 = vld [vmem:[%s11197_s19] sm:$0xff]  ;;  %v10191_v34 = vld [vmem:[%s13027_s4 + $0x270] sm:$0xff]  }
 0x597   : > { %v4882_v49 = vadd.f32 %v8690_v21, %v4866_v44  ;;  %v4867_v50 = vmul.f32 %v8688_v19, %v4834_v48  ;;  %v6029_v19 = vld [vmem:[%s11176_s26 + $0x8] sm:$0xff]  ;;  %v6039_v44 = vpack.c.bf16 %v6035_v42, %v6034_v40  ;;  %v5114_v48 = vld [vmem:[#allocation2 + $0x35] sm:$0xff] }
 0x598   : > { %v4892_v51 = vmax.f32 %v4884_v46, 0.0  ;;  %v4885_v32 = vadd.f32 %v8690_v21, %v4869_v47  ;;  %v6162_v46 = vpack.c.bf16 %v6155_v26, %v6154_v15  ;;  %v10194_v40 = vld [vmem:[%s13027_s4 + $0x288] sm:$0xff]  }
 0x599   : > { %v4890_v54 = vmax.f32 %v4882_v49, 0.0  ;;  %v4883_v43 = vadd.f32 %v8690_v21, %v4867_v50  ;;  %v11130_v61 = vld [vmem:[#allocation2 + $0x64] sm:$0xff] }
 0x59a   : > { %4900 = vst.msk [vmem:[#allocation2 + $0xa4] sm:$0xff] %vm581_vm0, %v4892_v51  ;;  %v4893_v56 = vmax.f32 %v4885_v32, 0.0  ;;  %v11123_v57 = vld [vmem:[#allocation2 + $0x44] sm:$0xff]  ;;  %v6156_v32 = vld [vmem:[%s11197_s19 + $0x10] sm:$0xff] }
 0x59b   : > { %4898 = vst.msk [vmem:[#allocation2 + $0x84] sm:$0xff] %vm581_vm0, %v4890_v54  ;;  %v4891_v58 = vmax.f32 %v4883_v43, 0.0  ;;  %v4927_v59 = vpack.c.bf16 %v11123_v57, %v4919_v53  ;;  %v11146_v0 = vld [vmem:[#allocation2 + $0x74] sm:$0xff]  ;;  %v11154_v22 = vld [vmem:[#allocation2 + $0x43] sm:$0xff] }
 0x59c   : > { %4901 = vst.msk [vmem:[#allocation2 + $0xb4] sm:$0xff] %vm581_vm0, %v4893_v56  ;;  %v11128_v60 = vld [vmem:[#allocation2 + $0x54] sm:$0xff]  ;;  %v4910_v16 = vpack.c.bf16 %v11154_v22, %v4902_v4  ;;  %v11199_v33 = vld [vmem:[#allocation2 + $0x63] sm:$0xff] }
 0x59d   : > { %4899 = vst.msk [vmem:[#allocation2 + $0x94] sm:$0xff] %vm581_vm0, %v4891_v58  ;;  %9591 = vmatprep.mubr.msk.bf16.mxu0 %vm581_vm0, %v4927_v59  ;;  %v11136_v41 = vpack.c.bf16 %v11130_v61, %v11128_v60  ;;  %v11188_v28 = vld [vmem:[#allocation2 + $0x53] sm:$0xff]  ;;  %v11230_v49 = vld [vmem:[#allocation2 + $0x45] sm:$0xff] }
 0x59e   : > { %v11210_v37 = vpack.c.bf16 %v11199_v33, %v11188_v28  ;;  %v11212_v38 = vld [vmem:[#allocation2 + $0x73] sm:$0xff]  ;;  %v5122_v54 = vpack.c.bf16 %v11230_v49, %v5114_v48  ;;  %v6158_v43 = vld [vmem:[%s11197_s19 + $0x20] sm:$0xff]  ;;  %v6159_v56 = vld [vmem:[%s11197_s19 + $0x28] sm:$0xff] }
 0x59f   : > { %9592 = vmatmul.mubr.msk.bf16.vlgmr.msra.gmra.mrb[16].mxu0 %vm581_vm0, %v11136_v41  ;;  %v6157_v53 = vld [vmem:[%s11197_s19 + $0x18] sm:$0xff]  ;;  %v6164_v59 = vpack.c.bf16 %v6159_v56, %v6158_v43  ;;  %v11254_v4 = vld [vmem:[#allocation2 + $0x65] sm:$0xff]  ;;  %v6292_v56 = vld [vmem:[%s11252_s23 + $0x30] sm:$0xff] }
 0x5a0   : > { %9600 = vmatpush3.bf16.msra.mxu0 %v10187_v18  ;;  %v6028_v18 = vld [vmem:[%s11176_s26] sm:$0xff]  ;;  %v6163_v58 = vpack.c.bf16 %v6157_v53, %v6156_v32  ;;  %v5118_v55 = vld [vmem:[#allocation2 + $0x75] sm:$0xff]  ;;  %v6291_v43 = vld [vmem:[%s11252_s23 + $0x28] sm:$0xff]  ;;  %s12973_s26 = scalar_lea.hbm %s13039_s16, %s8869_s28 }
 0x5a1   : > { %9601 = vmatprep.subr.bf16.mxu0 %v10188_v62  ;;  %v11158_v13 = vld [vmem:[#allocation2 + $0xa4] sm:$0xff]  ;;  %v6036_v21 = vpack.c.bf16 %v6029_v19, %v6028_v18  ;;  %v6161_v18 = vld [vmem:[%s11197_s19 + $0x38] sm:$0xff] }
 0x5a2   : > { %v11148_v1 = vld [vmem:[#allocation2 + $0x84] sm:$0xff]  ;;  %v6165_v23 = vpack.c.bf16 %v6161_v18, %v6160_v45  ;;  %v6289_v32 = vld [vmem:[%s11252_s23 + $0x18] sm:$0xff] }
 0x5a3   : > { %v11152_v2 = vpack.c.bf16 %v11148_v1, %v11146_v0  ;;  %v11190_v31 = vld [vmem:[#allocation2 + $0x83] sm:$0xff]  ;;  %9697 = vmatprep.mubr.msk.bf16.mxu1 %vm6048_vm3, %v6036_v21 }
 0x5a4   : > { %v11156_v52 = vld [vmem:[#allocation2 + $0x94] sm:$0xff]  ;;  %9602 = vmatpush3.bf16.msra.mxu0 %v10188_v62  ;;  %9698 = vmatmul.mubr.msk.bf16.vlgmr.msra.gmra.mrb[24].mxu1 %vm6048_vm3, %v6037_v29  ;;  %v11219_v39 = vpack.c.bf16 %v11190_v31, %v11212_v38  ;;  %v4909_v50 = vld [vmem:[#allocation2 + $0xa3] sm:$0xff] }
 0x5a5   : > { %9595 = vmatprep.mubr.msk.bf16.mxu0 %vm581_vm0, %v11152_v2  ;;  %v11164_v14 = vpack.c.bf16 %v11158_v13, %v11156_v52  ;;  %9611 = vmatprep.subr.bf16.mxu0 %v10189_v63  ;;  %v4908_v47 = vld [vmem:[#allocation2 + $0x93] sm:$0xff]  ;;  %v6287_v21 = vld [vmem:[%s11252_s23 + $0x8] sm:$0xff]  ;;  %v5352_v26 = vpack.c.bf16 %v11156_v52, %v11148_v1  ;;  %v5465_v1 = vpack.c.bf16 %v5118_v55, %v11254_v4  ;;  %v10201_v48 = vld [vmem:[%s13027_s4 + $0x2c0] sm:$0xff]  }
 0x5a6   : > { %9701 = vmatprep.mubr.msk.bf16.mxu1 %vm6048_vm3, %v6038_v27  ;;  %9706 = vmatpush3.bf16.msra.mxu1 %v6195_v30  ;;  %v11233_v51 = vpack.c.bf16 %v4909_v50, %v4908_v47  ;;  %v11244_v62 = vld [vmem:[#allocation2 + $0x55] sm:$0xff]  ;;  %v6294_v25 = vpack.c.bf16 %v6287_v21, %v6286_v20  ;;  %v5121_v27 = vld [vmem:[#allocation2 + $0xa5] sm:$0xff]  ;;  %v5238_v42 = vpack.c.bf16 %v4908_v47, %v11190_v31  ;;  %v8782_v45 = vld [vmem:[%s13028_s5 + $0x4] ss:$0 sm:$0xff] }
 0x5a7   : > { %9596 = vmatmul.mubr.msk.bf16.gmra.mrb[20].mxu0 %vm581_vm0, %v11164_v14  ;;  %9715 = vmatprep.subr.bf16.mxu1 %v10204_v36  ;;  %v11262_v17 = vpack.c.bf16 %v11254_v4, %v11244_v62  ;;  %v5120_v29 = vld [vmem:[#allocation2 + $0x95] sm:$0xff]  ;;  %v5351_v31 = vpack.c.bf16 %v11146_v0, %v11130_v61  ;;  %v5464_v0 = vpack.c.bf16 %v11244_v62, %v11230_v49  ;;  %v10198_v52 = vld [vmem:[%s13027_s4 + $0x2a8] sm:$0xff]  }
 0x5a8   : > { %9603 = vmatprep.mubr.msk.bf16.mxu0 %vm581_vm0, %v4910_v16  ;;  %v10192_v16 = vld [vmem:[%s13027_s4 + $0x278] sm:$0xff]   ;;  %v11280_v30 = vpack.c.bf16 %v5121_v27, %v5120_v29  ;;  %v5577_v49 = vld [vmem:[#allocation2 + $0xc3] sm:$0xff] }
 0x5a9   : > { %v10200_v47 = vld [vmem:[%s13027_s4 + $0x2b8] sm:$0xff]  }
 0x5ac   : > { %9702 = vmatmul.mubr.msk.bf16.gmra.mrb[28].mxu1 %vm6048_vm3, %v6039_v44 }
 0x5ad   : > { %9707 = vmatprep.mubr.msk.bf16.mxu1 %vm6180_vm5, %v6162_v46 }
 0x5af   : > { %9604 = vmatmul.mubr.msk.bf16.vlgmr.msra.gmra.mrb[16].mxu0 %vm581_vm0, %v11210_v37 }
 0x5b0   : > { %9612 = vmatpush3.bf16.msra.mxu0 %v10189_v63  ;;  %9607 = vmatprep.mubr.msk.bf16.mxu0 %vm581_vm0, %v11219_v39  ;;  %v11246_v63 = vld [vmem:[#allocation2 + $0x85] sm:$0xff] }
 0x5b1   : > { %9613 = vmatprep.subr.bf16.mxu0 %v10190_v35  ;;  %v11268_v19 = vpack.c.bf16 %v11246_v63, %v5118_v55  ;;  %v5466_v44 = vpack.c.bf16 %v5120_v29, %v11246_v63 }
 0x5b4   : > { %9614 = vmatpush3.bf16.msra.mxu0 %v10190_v35  ;;  %9708 = vmatmul.mubr.msk.bf16.vlgmr.msra.gmra.mrb[32].mxu1 %vm6180_vm5, %v6163_v58  ;;  %v5236_v35 = vpack.c.bf16 %v11188_v28, %v11154_v22  ;;  %v10195_v22 = vld [vmem:[%s13027_s4 + $0x290] sm:$0xff]  }
 0x5b5   : > { %9623 = vmatprep.subr.bf16.mxu0 %v10191_v34  ;;  %9716 = vmatpush3.bf16.msra.mxu1 %v10204_v36  ;;  %v5237_v36 = vpack.c.bf16 %v11212_v38, %v11199_v33  ;;  %v5235_v28 = vld [vmem:[#allocation2 + $0xb3] sm:$0xff]  ;;  %v5350_v33 = vpack.c.bf16 %v11128_v60, %v11123_v57  ;;  %v10197_v57 = vld [vmem:[%s13027_s4 + $0x2a0] sm:$0xff]  }
 0x5b6   : > { %9711 = vmatprep.mubr.msk.bf16.mxu1 %vm6180_vm5, %v6164_v59  ;;  %v5239_v15 = vpack.c.bf16 %v5235_v28, %v4909_v50  ;;  %v10196_v38 = vld [vmem:[%s13027_s4 + $0x298] sm:$0xff]   ;;  %v5581_v50 = vpack.c.bf16 %v5577_v49, %v5235_v28 }
 0x5b7   : > { %9608 = vmatmul.mubr.msk.bf16.gmra.mrb[20].mxu0 %vm581_vm0, %v11233_v51  ;;  %v5349_v60 = vld [vmem:[#allocation2 + $0xb4] sm:$0xff] }
 0x5b8   : > { %9615 = vmatprep.mubr.msk.bf16.mxu0 %vm581_vm0, %v5122_v54  ;;  %v5353_v61 = vpack.c.bf16 %v5349_v60, %v11158_v13  ;;  %v10199_v13 = vld [vmem:[%s13027_s4 + $0x2b0] sm:$0xff]   ;;  %v6290_v54 = vld [vmem:[%s11252_s23 + $0x20] sm:$0xff]  ;;  %v6293_v59 = vld [vmem:[%s11252_s23 + $0x38] sm:$0xff] }
 0x5b9   : > { %v6296_v58 = vpack.c.bf16 %v6291_v43, %v6290_v54  ;;  %v6297_v62 = vpack.c.bf16 %v6293_v59, %v6292_v56 }
 0x5bc   : > { %9712 = vmatmul.mubr.msk.bf16.gmra.mrb[36].mxu1 %vm6180_vm5, %v6165_v23  ;;  %v8784_v23 = vld [vmem:[%s13029_s6 + $0x4] ss:$0 sm:$0xff] }
 0x5bd   : > { %9717 = vmatprep.mubr.msk.bf16.mxu1 %vm6313_vm6, %v6294_v25 }
 0x5bf   : > { %9616 = vmatmul.mubr.msk.bf16.vlgmr.msra.gmra.mrb[16].mxu0 %vm581_vm0, %v11262_v17 }
 0x5c0   : > { %9624 = vmatpush3.bf16.msra.mxu0 %v10191_v34  ;;  %9619 = vmatprep.mubr.msk.bf16.mxu0 %vm581_vm0, %v11268_v19  ;;  %v5463_v34 = vld [vmem:[#allocation2 + $0xb5] sm:$0xff] }
 0x5c1   : > { %9625 = vmatprep.subr.bf16.mxu0 %v10192_v16  ;;  %v5467_v46 = vpack.c.bf16 %v5463_v34, %v5121_v27 }
 0x5c4   : > { %9626 = vmatpush3.bf16.msra.mxu0 %v10192_v16 }
 0x5c5   : > { %9635 = vmatprep.subr.bf16.mxu0 %v10193_v24 }
 0x5c7   : > { %9620 = vmatmul.mubr.msk.bf16.gmra.mrb[20].mxu0 %vm581_vm0, %v11280_v30 }
 0x5c8   : > { %9627 = vmatprep.mubr.msk.bf16.mxu0 %vm581_vm0, %v5236_v35 }
 0x5cf   : > { %9628 = vmatmul.mubr.msk.bf16.vlgmr.msra.gmra.mrb[16].mxu0 %vm581_vm0, %v5237_v36 }
 0x5d0   : > { %9636 = vmatpush3.bf16.msra.mxu0 %v10193_v24  ;;  %9631 = vmatprep.mubr.msk.bf16.mxu0 %vm581_vm0, %v5238_v42 }
 0x5d1   : > { %9637 = vmatprep.subr.bf16.mxu0 %v10194_v40 }
 0x5d4   : > { %9638 = vmatpush3.bf16.msra.mxu0 %v10194_v40 }
 0x5d5   : > { %9647 = vmatprep.subr.bf16.mxu0 %v10195_v22 }
 0x5d7   : > { %9632 = vmatmul.mubr.msk.bf16.gmra.mrb[20].mxu0 %vm581_vm0, %v5239_v15 }
 0x5d8   : > { %9639 = vmatprep.mubr.msk.bf16.mxu0 %vm581_vm0, %v5350_v33 }
 0x5df   : > { %9640 = vmatmul.mubr.msk.bf16.vlgmr.msra.gmra.mrb[16].mxu0 %vm581_vm0, %v5351_v31 }
 0x5e0   : > { %9648 = vmatpush3.bf16.msra.mxu0 %v10195_v22  ;;  %9643 = vmatprep.mubr.msk.bf16.mxu0 %vm581_vm0, %v5352_v26 }
 0x5e1   : > { %9649 = vmatprep.subr.bf16.mxu0 %v10196_v38 }
 0x5e4   : > { %9650 = vmatpush3.bf16.msra.mxu0 %v10196_v38 }
 0x5e5   : > { %9659 = vmatprep.subr.bf16.mxu0 %v10197_v57 }
 0x5e7   : > { %9644 = vmatmul.mubr.msk.bf16.gmra.mrb[20].mxu0 %vm581_vm0, %v5353_v61 }
 0x5e8   : > { %9651 = vmatprep.mubr.msk.bf16.mxu0 %vm581_vm0, %v5464_v0 }
 0x5ef   : > { %9652 = vmatmul.mubr.msk.bf16.vlgmr.msra.gmra.mrb[16].mxu0 %vm581_vm0, %v5465_v1 }
 0x5f0   : > { %9660 = vmatpush3.bf16.msra.mxu0 %v10197_v57  ;;  %9655 = vmatprep.mubr.msk.bf16.mxu0 %vm581_vm0, %v5466_v44 }
 0x5f1   : > { %9661 = vmatprep.subr.bf16.mxu0 %v10198_v52 }
 0x5f4   : > { %9662 = vmatpush3.bf16.msra.mxu0 %v10198_v52 }
 0x5f5   : > { %9671 = vmatprep.subr.bf16.mxu0 %v10199_v13 }
 0x5f7   : > { %9656 = vmatmul.mubr.msk.bf16.gmra.mrb[20].mxu0 %vm581_vm0, %v5467_v46 }
 0x5f8   : > { %9663 = vmatprep.mubr.msk.bf16.mxu0 %vm581_vm0, %v11210_v37  ;;  %v10202_v37 = vld [vmem:[%s13027_s4 + $0x2c8] sm:$0xff]  }
 0x5ff   : > { %9664 = vmatmul.mubr.msk.bf16.vlgmr.msra.gmra.mrb[16].mxu0 %vm581_vm0, %v11219_v39  ;;  %v5691_v39 = vld [vmem:[#allocation2 + $0xc4] sm:$0xff] }
 0x600   : > { %9672 = vmatpush3.bf16.msra.mxu0 %v10199_v13  ;;  %9667 = vmatprep.mubr.msk.bf16.mxu0 %vm581_vm0, %v11233_v51  ;;  %v6288_v51 = vld [vmem:[%s11252_s23 + $0x10] sm:$0xff]  ;;  %s8312_s23 = sshll.u32 %s557_s20, 6 }
 0x601   : > { %9673 = vmatprep.subr.bf16.mxu0 %v10200_v47  ;;  %v6295_v53 = vpack.c.bf16 %v6289_v32, %v6288_v51  ;;  %s12920_s29 = scalar_lea.vmem [#allocation4], %s8312_s23  ;;  %s10316_s23 = smov [#allocation4]  }
 0x602   : > { %s8210_s30 = sshll.u32 %s12920_s29, 4  ;;  %s10251_s28 = sshll.u32 %s10316_s23, 4  ;;  %s12975_s30 = int_to_ptr.vmem [resolvable:$true] %s8210_s30  ;;  %s10252_s28 = int_to_ptr.vmem [resolvable:$false] %s10251_s28 }
 0x603   : > { %9718 = vmatmul.mubr.msk.bf16.vlgmr.msra.gmra.mrb[40].mxu1 %vm6313_vm6, %v6295_v53  ;;  %s10247_s25 = scalar_lea.vmem %s12975_s30, 1024  ;;  %s10253_s18 = scalar_lea.vmem %s10252_s28, 2048 }
 0x604   : > { %9674 = vmatpush3.bf16.msra.mxu0 %v10200_v47  ;;  %9721 = vmatprep.mubr.msk.bf16.mxu1 %vm6313_vm6, %v6296_v58  ;;  %p10248_p11 = scmp.ne.s32.totalorder %s12975_s30, %s10247_s25  ;;  %p10254_p0 = scmp.lt.s32.totalorder %s12975_s30, %s10252_s28 }
 0x605   : > { %9683 = vmatprep.subr.bf16.mxu0 %v10201_v48  ;;  %p10255_p1 = scmp.lt.s32.totalorder %s10253_s18, %s10247_s25 }
 0x606   : > { %p10249_p12 = pnand %p10248_p11, %p10442_p5 }
 0x607   : > { %9668 = vmatmul.mubr.msk.bf16.gmra.mrb[20].mxu0 %vm581_vm0, %v5581_v50  ;;  %p10256_p2 = por %p10255_p1, %p10254_p0 }
 0x608   : > { %9675 = vmatprep.mubr.msk.bf16.mxu0 %vm581_vm0, %v11136_v41  ;;  %v5695_v41 = vpack.c.bf16 %v5691_v39, %v5349_v60  ;;  %p10250_p13 = pneg %p10249_p12 }
 0x60a   : > { %p10257_p3 = pnand %p10256_p2, %p10250_p13 }
 0x60b   : > { %9722 = vmatmul.mubr.msk.bf16.gmra.mrb[44].mxu1 %vm6313_vm6, %v6297_v62 }
 0x60f   : > { %9676 = vmatmul.mubr.msk.bf16.vlgmr.msra.gmra.mrb[16].mxu0 %vm581_vm0, %v11152_v2  ;;  %v5805_v2 = vld [vmem:[#allocation2 + $0xc5] sm:$0xff] }
 0x610   : > { %9684 = vmatpush3.bf16.msra.mxu0 %v10201_v48  ;;  %9679 = vmatprep.mubr.msk.bf16.mxu0 %vm581_vm0, %v11164_v14  ;;  %v5809_v14 = vpack.c.bf16 %v5805_v2, %v5463_v34 }
 0x611   : > { %9685 = vmatprep.subr.bf16.mxu0 %v10202_v37 }
 0x614   : > { %9686 = vmatpush3.bf16.msra.mxu0 %v10202_v37 }
 0x617   : > { %9680 = vmatmul.mubr.msk.bf16.gmra.mrb[20].mxu0 %vm581_vm0, %v5695_v41 }
 0x618   : > { %9687 = vmatprep.mubr.msk.bf16.mxu0 %vm581_vm0, %v11262_v17 }
 0x61f   : > { %9688 = vmatmul.mubr.msk.bf16.vlgmr.msra.gmra.mrb[16].mxu0 %vm581_vm0, %v11268_v19 }
 0x620   : > { %9691 = vmatprep.mubr.msk.bf16.mxu0 %vm581_vm0, %v11280_v30 }
 0x627   : > { %9692 = vmatmul.mubr.msk.bf16.gmra.mrb[20].mxu0 %vm581_vm0, %v5809_v14 }
 0x677   : > { %v11370_v63 = vpop.f32.mrb[24].mxu1 }
 0x678   : > { %v11372_v4 = vpop.f32.mrb[25].mxu1 }
 0x679   : > { %v11374_v16 = vpop.f32.mrb[26].mxu1 }
 0x67a   : > { %v11376_v17 = vpop.f32.mrb[27].mxu1 }
 0x6f2   : > { %v9689_v55 = vpop.f32.mrb[16].mxu0 }
 0x6f3   : > { %v5873_v18 = vpop.f32.mrb[17].mxu0  ;;  %v5922_v21 = vmul.f32 %v9689_v55, %v8782_v45 }
 0x6f4   : > { %v9690_v19 = vpop.f32.mrb[18].mxu0  ;;  %v5920_v24 = vmul.f32 %v8782_v45, %v5873_v18 }
 0x6f5   : > { %v5876_v20 = vpop.f32.mrb[19].mxu0  ;;  %v5923_v25 = vmul.f32 %v9690_v19, %v8782_v45  ;;  %v5938_v27 = vadd.f32 %v8784_v23, %v5922_v21 }
 0x6f6   : > { %v5921_v29 = vmul.f32 %v8782_v45, %v5876_v20  ;;  %v5936_v35 = vadd.f32 %v8784_v23, %v5920_v24  ;;  %v5974_v20 = vld [vmem:[%s13030_s7] sm:$0x3] }
 0x6f7   : > { %v5939_v36 = vadd.f32 %v8784_v23, %v5923_v25  ;;  %v11384_v26 = vmax.f32 %v5938_v27, 0.0  ;;  %v11424_v25 = vld [vmem:[%s13034_s11] ss:$0 sm:$0xff] }
 0x6f8   : > { %v5937_v22 = vadd.f32 %v8784_v23, %v5921_v29  ;;  %v11386_v61 = vmax.f32 %v5936_v35, 0.0  ;;  %v6100_v29 = vadd.f32 %v11424_v25, %v11372_v4  ;;  %v6103_v27 = vadd.f32 %v11424_v25, %v11376_v17  ;;  %v11438_v4 = vpop.f32.mrb[28].mxu1 }
 0x6f9   : > { %13153 = vst [vmem:[#allocation18_spill] sm:$0xff] %v11384_v26  ;;  %v11388_v0 = vmax.f32 %v5939_v36, 0.0  ;;  %v5954_v37 = vsel %vm581_vm0, %v11384_v26, -inf  ;;  %v6111_v35 = vadd.f32 %v11374_v16, %v11424_v25  ;;  %v6115_v17 = vpop.f32.mrb[29].mxu1 }
 0x6fa   : > { %v9693_v30 = vpop.f32.mrb[20].mxu0  ;;  %13154 = vst [vmem:[#allocation19_spill] sm:$0xff] %v11386_v61  ;;  %v11392_v44 = vmax.f32 %v5937_v22, 0.0  ;;  %v5952_v50 = vsel %vm581_vm0, %v11386_v61, -inf  ;;  %v6133_v36 = vsel %vm6048_vm3, %v6103_v27, -inf  ;;  %v6116_v16 = vadd.f32 %v11424_v25, %v6115_v17 }
 0x6fb   : > { %v5926_v40 = vmul.f32 %v9693_v30, %v8782_v45  ;;  %v5889_v42 = vpop.f32.mrb[21].mxu0  ;;  %13155 = vst [vmem:[#allocation20_spill] sm:$0xff] %v11388_v0  ;;  %v5955_v39 = vsel %vm581_vm0, %v11388_v0, -inf  ;;  %v6108_v30 = vadd.f32 %v11370_v63, %v11424_v25  ;;  %6134 = vmax.xlane.f32.xlu1 %v6133_v36 }
 0x6fc   : > { %v5924_v28 = vmul.f32 %v8782_v45, %v5889_v42  ;;  %v9694_v15 = vpop.f32.mrb[22].mxu0  ;;  %13157 = vst [vmem:[#allocation22_spill] sm:$0xff] %v11392_v44  ;;  %v5953_v2 = vsel %vm581_vm0, %v11392_v44, -inf  ;;  %v6139_v42 = vsel %vm6048_vm3, %v6111_v35, -inf }
 0x6fd   : > { %v5942_v33 = vadd.f32 %v8784_v23, %v5926_v40  ;;  %v5927_v31 = vmul.f32 %v9694_v15, %v8782_v45  ;;  %v5892_v38 = vpop.f32.mrb[23].mxu0  ;;  %v6130_v40 = vsel %vm6048_vm3, %v6100_v29, -inf  ;;  %v6136_v22 = vsel %vm6048_vm3, %v6108_v30, -inf }
 0x6fe   : > { %v5940_v57 = vadd.f32 %v8784_v23, %v5924_v28  ;;  %v5925_v60 = vmul.f32 %v8782_v45, %v5892_v38  ;;  %v11440_v28 = vpop.f32.mrb[30].mxu1  ;;  %v6142_v38 = vsel %vm6048_vm3, %v6116_v16, -inf }
 0x6ff   : > { %v11390_v1 = vmax.f32 %v5942_v33, 0.0  ;;  %v5943_v52 = vadd.f32 %v8784_v23, %v5927_v31  ;;  %6140 = vmax.xlane.f32.xlu1 %v6139_v42  ;;  %v11442_v63 = vpop.f32.mrb[31].mxu1 }
 0x700   : > { %v11394_v13 = vmax.f32 %v5940_v57, 0.0  ;;  %v5941_v34 = vadd.f32 %v8784_v23, %v5925_v60  ;;  %v9709_v15 = vpop.f32.mrb[32].mxu1  ;;  %v8791_v57 = vld [vmem:[%s13036_s13] ss:$0 sm:$0xff] }
 0x701   : > { %13156 = vst [vmem:[#allocation21_spill] sm:$0xff] %v11390_v1  ;;  %v11396_v46 = vmax.f32 %v5943_v52, 0.0  ;;  %v5960_v47 = vsel %vm581_vm0, %v11390_v1, -inf  ;;  %v6231_v33 = vpop.f32.mrb[33].mxu1 }
 0x702   : > { %13158 = vst [vmem:[#allocation23_spill] sm:$0xff] %v11394_v13  ;;  %v11400_v48 = vmax.f32 %v5941_v34, 0.0  ;;  %v5956_v49 = vsel %vm581_vm0, %v11394_v13, -inf  ;;  %v5961_v51 = vmax.f32 %v5954_v37, %v5960_v47  ;;  %v9710_v31 = vpop.f32.mrb[34].mxu1  ;;  %v6232_v52 = vadd.f32 %v8791_v57, %v6231_v33 }
 0x703   : > { %13159 = vst [vmem:[#allocation24_spill] sm:$0xff] %v11396_v46  ;;  %v5962_v41 = vsel %vm581_vm0, %v11396_v46, -inf  ;;  %v5957_v53 = vmax.f32 %v5952_v50, %v5956_v49  ;;  %v6234_v60 = vpop.f32.mrb[35].mxu1  ;;  %v6240_v50 = vadd.f32 %v9709_v15, %v8791_v57  ;;  %v6243_v37 = vadd.f32 %v9710_v31, %v8791_v57  ;;  %v5981_v15 = vld [vmem:[%s13031_s8] sm:$0x3] }
 0x704   : > { %13160 = vst [vmem:[#allocation25_spill] sm:$0xff] %v11400_v48  ;;  %v5958_v14 = vsel %vm581_vm0, %v11400_v48, -inf  ;;  %v5963_v32 = vmax.f32 %v5955_v39, %v5962_v41  ;;  %v6235_v34 = vadd.f32 %v8791_v57, %v6234_v60  ;;  %v6262_v47 = vsel %vm6180_vm5, %v6232_v52, -inf }
 0x705   : > { %v5959_v54 = vmax.f32 %v5953_v2, %v5958_v14  ;;  %6263 = vmax.xlane.f32.xlu1 %v6262_v47  ;;  %v6268_v39 = vsel %vm6180_vm5, %v6240_v50, -inf  ;;  %v6271_v41 = vsel %vm6180_vm5, %v6243_v37, -inf  ;;  %v9713_v2 = vpop.f32.mrb[36].mxu1 }
 0x706   : > { %v5965_v43 = vmax.f32 %v5961_v51, %v5963_v32  ;;  %v6265_v49 = vsel %vm6180_vm5, %v6235_v34, -inf  ;;  %v6247_v14 = vpop.f32.mrb[37].mxu1 }
 0x707   : > { %v5964_v56 = vmax.f32 %v5957_v53, %v5959_v54  ;;  %v9714_v51 = vpop.f32.mrb[38].mxu1  ;;  %v11453_v53 = vadd.f32 %v9713_v2, %v8791_v57  ;;  %v6248_v54 = vadd.f32 %v8791_v57, %v6247_v14 }
 0x708   : > { %v6250_v32 = vpop.f32.mrb[39].mxu1 }
 0x709   : > { %v5966_v58 = vmax.f32 %v5964_v56, %v5965_v43  ;;  %6269 = vmax.xlane.f32.xlu1 %v6268_v39  ;;  %v11455_v43 = vadd.f32 %v9714_v51, %v8791_v57  ;;  %v11457_v56 = vadd.f32 %v8791_v57, %v6250_v32  ;;  %v6280_v3 = vsel %vm6180_vm5, %v11453_v53, -inf  ;;  %v11568_v53 = vld [vmem:[%s13032_s9] ss:$0 sm:$0xff] }
 0x70a   : > { %13161 = vst [vmem:[#allocation26_spill] sm:$0xff] %v11568_v53 }
 0x70b   : > { %v5967_v59 = vsel %vm581_vm0, %v5966_v58, -inf  ;;  %v9719_v58 = vpop.f32.mrb[40].mxu1 }
 0x70c   : > { %v5968_v62 = vrot.slane %v5967_v59, 4 }
 0x70e   : > { %v5969_v55 = vmax.f32 %v5967_v59, %v5968_v62  ;;  %v6274_v59 = vsel %vm6180_vm5, %v6248_v54, -inf  ;;  %v8797_v62 = vld [vmem:[%s13038_s15] ss:$0 sm:$0xff] }
 0x70f   : > { %6275 = vmax.xlane.f32.xlu1 %v6274_v59 }
 0x710   : > { %v5970_v45 = vrot.slane %v5969_v55, 2 }
 0x712   : > { %v5971_v18 = vmax.f32 %v5969_v55, %v5970_v45  ;;  %v6360_v55 = vpop.f32.mrb[41].mxu1  ;;  %v6369_v45 = vadd.f32 %v9719_v58, %v8797_v62 }
 0x714   : > { %v5972_v19 = vrot.slane %v5971_v18, 1  ;;  %v6397_v27 = vsel %vm6313_vm6, %v6369_v45, -inf }
 0x716   : > { %v5973_v21 = vmax.f32 %v5971_v18, %v5972_v19  ;;  %v6361_v18 = vadd.f32 %v8797_v62, %v6360_v55  ;;  %v9720_v19 = vpop.f32.mrb[42].mxu1 }
 0x718   : > { %v5975_v23 = vmul.f32 %v5974_v20, %v5973_v21  ;;  %v11463_v20 = vadd.f32 %v9720_v19, %v8797_v62  ;;  %v6363_v21 = vpop.f32.mrb[43].mxu1  ;;  %v6119_v19 = vadd.f32 %v11424_v25, %v11442_v63 }
 0x719   : > { %v9723_v30 = vpop.f32.mrb[44].mxu1 }
 0x71a   : > { %v5977_v24 = vsel %vm5976_vm7, %v5975_v23, 0.0  ;;  %v6364_v23 = vadd.f32 %v8797_v62, %v6363_v21  ;;  %v11468_v35 = vadd.f32 %v9723_v30, %v8797_v62  ;;  %v6376_v36 = vpop.f32.mrb[45].mxu1  ;;  %v6124_v30 = vadd.f32 %v11438_v4, %v11424_v25 }
 0x71b   : > { %5978 = vadd.xlane.f32.xlu0 %v5977_v24  ;;  %v6391_v24 = vsel %vm6313_vm6, %v6361_v18, -inf  ;;  %v9724_v42 = vpop.f32.mrb[46].mxu1  ;;  %v6277_v4 = vsel %vm6180_vm5, %v11457_v56, -inf }
 0x71c   : > { %v6394_v29 = vsel %vm6313_vm6, %v6364_v23, -inf  ;;  %v6379_v17 = vpop.f32.mrb[47].mxu1  ;;  %v6400_v23 = vsel %vm6313_vm6, %v11463_v20, -inf  ;;  %v6148_v20 = vsel %vm6048_vm3, %v6124_v30, -inf }
 0x71d   : > { %6395 = vmax.xlane.f32.xlu1 %v6394_v29  ;;  %v6380_v16 = vadd.f32 %v8797_v62, %v6379_v17 }
 0x71f   : > { %6131 = vmax.xlane.f32.xlu0 %v6130_v40  ;;  %v6377_v40 = vadd.f32 %v8797_v62, %v6376_v36 }
 0x721   : > { %v6403_v18 = vsel %vm6313_vm6, %v6377_v40, -inf  ;;  %v6409_v40 = vsel %vm6313_vm6, %v11468_v35, -inf }
 0x723   : > { %6137 = vmax.xlane.f32.xlu0 %v6136_v22  ;;  %v11470_v22 = vadd.f32 %v9724_v42, %v8797_v62  ;;  %v6127_v42 = vadd.f32 %v11440_v28, %v11424_v25  ;;  %v6283_v25 = vsel %vm6180_vm5, %v11455_v43, -inf  ;;  %v6450_v28 = vld [vmem:[#allocation3] sm:$0xff] }
 0x724   : > { %v11580_v43 = vld [vmem:[%s13032_s9 + $0x2] ss:$0 sm:$0xff] }
 0x725   : > { %v6151_v56 = vsel %vm6048_vm3, %v6127_v42, -inf  ;;  %v6412_v35 = vsel %vm6313_vm6, %v11470_v22, -inf  ;;  %v6463_v22 = vmul.f32 %v11568_v53, %v6450_v28  ;;  %13163 = vst [vmem:[#allocation28_spill] sm:$0xff] %v11580_v43 }
 0x727   : > { %6143 = vmax.xlane.f32.xlu0 %v6142_v38 }
 0x72b   : > { %6266 = vmax.xlane.f32.xlu0 %v6265_v49 }
 0x72f   : > { %6272 = vmax.xlane.f32.xlu0 %v6271_v41 }
 0x733   : > { %6392 = vmax.xlane.f32.xlu0 %v6391_v24  ;;  %v6145_v24 = vsel %vm6048_vm3, %v6119_v19, -inf  ;;  %v6480_v19 = vld [vmem:[#allocation3 + $0x11] sm:$0xff] }
 0x737   : > { %6398 = vmax.xlane.f32.xlu0 %v6397_v27  ;;  %v6406_v27 = vsel %vm6313_vm6, %v6380_v16, -inf }
 0x7a8   : > { %v5979_v33 = vpop.xlane.xlu0 %5978 }
 0x7a9   : > { %v5980_v31 = vmax.f32 %v5979_v33, 0.0  ;;  %v6479_v33 = vld [vmem:[#allocation3 + $0x1] sm:$0xff] }
 0x7ab   : > { %v5982_v38 = vmul.f32 %v5981_v15, %v5980_v31  ;;  %v11573_v31 = vld [vmem:[%s13032_s9 + $0x1] ss:$0 sm:$0xff] }
 0x7ac   : > { %13162 = vst [vmem:[#allocation27_spill] sm:$0xff] %v11573_v31  ;;  %v6493_v30 = vmul.f32 %v11573_v31, %v6480_v19 }
 0x7ad   : > { %v5983_v57 = vsel %vm5976_vm7, %v5982_v38, 0.0  ;;  %v6492_v38 = vmul.f32 %v11573_v31, %v6479_v33  ;;  %v6567_v33 = vld [vmem:[#allocation3 + $0x14] sm:$0xff] }
 0x7ae   : > { %v5984_v60 = vrot.slane %v5983_v57, 4 }
 0x7b0   : > { %v5985_v52 = vadd.f32 %v5984_v60, %v5983_v57  ;;  %v6508_v57 = vld [vmem:[#allocation3 + $0x2] sm:$0xff]  ;;  %v6500_v60 = vadd.f32 %v6492_v38, %v6463_v22 }
 0x7b2   : > { %v5986_v34 = vrot.slane %v5985_v52, 2 }
 0x7b4   : > { %v5987_v47 = vadd.f32 %v5986_v34, %v5985_v52  ;;  %v6521_v52 = vmul.f32 %v11580_v43, %v6508_v57  ;;  %v6537_v34 = vld [vmem:[#allocation3 + $0x3] sm:$0xff] }
 0x7b6   : > { %v5988_v49 = vrot.slane %v5987_v47, 1 }
 0x7b8   : > { %v5989_v50 = vadd.f32 %v5988_v49, %v5987_v47  ;;  %v11586_v47 = vld [vmem:[%s13032_s9 + $0x3] ss:$0 sm:$0xff]  ;;  %v6529_v49 = vadd.f32 %v6521_v52, %v6500_v60  ;;  %v11646_v60 = vld [vmem:[%s13032_s9 + $0xb] ss:$0 sm:$0xff] }
 0x7b9   : > { %13164 = vst [vmem:[#allocation29_spill] sm:$0xff] %v11586_v47  ;;  %13172 = vst [vmem:[#allocation37_spill] sm:$0xff] %v11646_v60 }
 0x7ba   : > { %v8785_v37 = vmul.f32 -1.442695, %v5989_v50  ;;  %v6550_v50 = vmul.f32 %v11586_v47, %v6537_v34 }
 0x7bc   : > { %10205 = vpow2.f32 %v8785_v37  ;;  %v6566_v37 = vld [vmem:[#allocation3 + $0x4] sm:$0xff] }
 0x7c6   : > { %v10206_v39 = vpop.eup %10205 }
 0x7c7   : > { %v5993_v41 = vadd.f32 1.0, %v10206_v39  ;;  %v11592_v39 = vld [vmem:[%s13032_s9 + $0x4] ss:$0 sm:$0xff] }
 0x7c8   : > { %13165 = vst [vmem:[#allocation30_spill] sm:$0xff] %v11592_v39  ;;  %v6580_v34 = vmul.f32 %v11592_v39, %v6567_v33 }
 0x7c9   : > { %10207 = vrcp.f32 %v5993_v41  ;;  %v6558_v41 = vadd.f32 %v6550_v50, %v6529_v49  ;;  %v6596_v49 = vld [vmem:[#allocation3 + $0x15] sm:$0xff] }
 0x7d3   : > { %v10208_v2 = vpop.eup %10207 }
 0x7d4   : > { %v5997_v14 = vmul.f32 %v10208_v2, %v11392_v44  ;;  %v5996_v51 = vmul.f32 %v10208_v2, %v11386_v61  ;;  %v5998_v58 = vmul.f32 %v10208_v2, %v11384_v26  ;;  %v5999_v59 = vmul.f32 %v10208_v2, %v11388_v0 }
 0x7d5   : > { %v6000_v45 = vmul.f32 %v10208_v2, %v11394_v13  ;;  %v6001_v29 = vmul.f32 %v10208_v2, %v11400_v48  ;;  %v6002_v36 = vmul.f32 %v10208_v2, %v11390_v1  ;;  %v6003_v16 = vmul.f32 %v10208_v2, %v11396_v46 }
 0x7d6   : > { %v6007_v32 = vsel %vm581_vm0, %v5997_v14, -inf  ;;  %v6004_v54 = vsel %vm581_vm0, %v5996_v51, -inf  ;;  %v6010_v62 = vsel %vm581_vm0, %v5998_v58, -inf  ;;  %v6013_v55 = vsel %vm581_vm0, %v5999_v59, -inf  ;;  %v6595_v14 = vld [vmem:[#allocation3 + $0x5] sm:$0xff] }
 0x7d7   : > { %6008 = vmax.xlane.f32.xlu1 %v6007_v32  ;;  %6005 = vmax.xlane.f32.xlu0 %v6004_v54  ;;  %v6016_v21 = vsel %vm581_vm0, %v6000_v45, -inf  ;;  %v6019_v63 = vsel %vm581_vm0, %v6001_v29, -inf  ;;  %v6022_v17 = vsel %vm581_vm0, %v6002_v36, -inf  ;;  %v6025_v15 = vsel %vm581_vm0, %v6003_v16, -inf  ;;  %v11598_v51 = vld [vmem:[%s13032_s9 + $0x5] ss:$0 sm:$0xff]  ;;  %v11618_v29 = vpop.xlane.xlu0 %6131 }
 0x7d8   : > { %v6579_v2 = vmul.f32 %v11592_v39, %v6566_v37  ;;  %13166 = vst [vmem:[#allocation31_spill] sm:$0xff] %v11598_v51  ;;  %v6608_v54 = vmul.f32 %v11598_v51, %v6595_v14  ;;  %v6624_v58 = vld [vmem:[#allocation3 + $0x6] sm:$0xff]  ;;  %v6451_v45 = vld [vmem:[#allocation3 + $0x10] sm:$0xff]  ;;  %v6783_v37 = vmul.f32 %v11646_v60, %v6567_v33  ;;  %v11678_v33 = vld [vmem:[%s13032_s9 + $0xf] ss:$0 sm:$0xff] }
 0x7d9   : > { %v11604_v59 = vld [vmem:[%s13032_s9 + $0x6] ss:$0 sm:$0xff]  ;;  %v11626_v36 = vld [vmem:[%s13032_s9 + $0x9] ss:$0 sm:$0xff]  ;;  %13175 = vst [vmem:[#allocation40_spill] sm:$0xff] %v11678_v33 }
 0x7da   : > { %v6587_v32 = vadd.f32 %v6579_v2, %v6558_v41  ;;  %13167 = vst [vmem:[#allocation32_spill] sm:$0xff] %v11604_v59  ;;  %13170 = vst [vmem:[#allocation35_spill] sm:$0xff] %v11626_v36  ;;  %v11655_v2 = vld [vmem:[%s13032_s9 + $0xc] ss:$0 sm:$0xff] }
 0x7db   : > { %6011 = vmax.xlane.f32.xlu1 %v6010_v62  ;;  %6014 = vmax.xlane.f32.xlu0 %v6013_v55  ;;  %v6637_v55 = vmul.f32 %v11604_v59, %v6624_v58  ;;  %v11630_v16 = vpop.xlane.xlu0 %6137  ;;  %13173 = vst [vmem:[#allocation38_spill] sm:$0xff] %v11655_v2  ;;  %v6625_v58 = vld [vmem:[#allocation3 + $0x16] sm:$0xff] }
 0x7dc   : > { %v6616_v62 = vadd.f32 %v6608_v54, %v6587_v32  ;;  %v6609_v54 = vmul.f32 %v11598_v51, %v6596_v49 }
 0x7df   : > { %6017 = vmax.xlane.f32.xlu1 %v6016_v21  ;;  %6404 = vmax.xlane.f32.xlu0 %v6403_v18  ;;  %v11610_v18 = vld [vmem:[%s13032_s9 + $0x7] ss:$0 sm:$0xff]  ;;  %v6645_v21 = vadd.f32 %v6637_v55, %v6616_v62  ;;  %v11641_v57 = vpop.xlane.xlu0 %6143  ;;  %v6812_v55 = vmul.f32 %v11655_v2, %v6596_v49 }
 0x7e0   : > { %13168 = vst [vmem:[#allocation33_spill] sm:$0xff] %v11610_v18 }
 0x7e3   : > { %6401 = vmax.xlane.f32.xlu1 %v6400_v23  ;;  %6146 = vmax.xlane.f32.xlu0 %v6145_v24  ;;  %v6667_v23 = vmul.f32 %v11610_v18, %v6451_v45  ;;  %v11616_v24 = vld [vmem:[%s13032_s9 + $0x8] ss:$0 sm:$0xff]  ;;  %v6267_v14 = vpop.xlane.xlu0 %6266 }
 0x7e4   : > { %13169 = vst [vmem:[#allocation34_spill] sm:$0xff] %v11616_v24 }
 0x7e7   : > { %6020 = vmax.xlane.f32.xlu1 %v6019_v63  ;;  %6407 = vmax.xlane.f32.xlu0 %v6406_v27  ;;  %v6464_v27 = vmul.f32 %v11568_v53, %v6451_v45  ;;  %v6509_v63 = vld [vmem:[#allocation3 + $0x12] sm:$0xff] }
 0x7e8   : > { %v6522_v42 = vmul.f32 %v11580_v43, %v6509_v63 }
 0x7eb   : > { %6278 = vmax.xlane.f32.xlu1 %v6277_v4  ;;  %6149 = vmax.xlane.f32.xlu0 %v6148_v20  ;;  %v6675_v4 = vadd.f32 %v6667_v23, %v6645_v21  ;;  %v6696_v20 = vmul.f32 %v11616_v24, %v6480_v19  ;;  %v11662_v19 = vld [vmem:[%s13032_s9 + $0xd] ss:$0 sm:$0xff]  ;;  %v6638_v23 = vmul.f32 %v11604_v59, %v6625_v58 }
 0x7ec   : > { %13174 = vst [vmem:[#allocation39_spill] sm:$0xff] %v11662_v19 }
 0x7ef   : > { %6023 = vmax.xlane.f32.xlu1 %v6022_v17  ;;  %6410 = vmax.xlane.f32.xlu0 %v6409_v40  ;;  %v6501_v40 = vadd.f32 %v6493_v30, %v6464_v27  ;;  %v6538_v17 = vld [vmem:[#allocation3 + $0x13] sm:$0xff]  ;;  %v6452_v27 = vld [vmem:[#allocation3 + $0x20] sm:$0xff] }
 0x7f0   : > { %v6551_v28 = vmul.f32 %v11586_v47, %v6538_v17 }
 0x7f3   : > { %6281 = vmax.xlane.f32.xlu1 %v6280_v3  ;;  %6152 = vmax.xlane.f32.xlu0 %v6151_v56  ;;  %v6704_v3 = vadd.f32 %v6696_v20, %v6675_v4  ;;  %v6725_v56 = vmul.f32 %v11626_v36, %v6509_v63  ;;  %v6841_v63 = vmul.f32 %v11662_v19, %v6625_v58  ;;  %v11666_v4 = vpop.xlane.xlu0 %6272  ;;  %v11671_v20 = vld [vmem:[%s13032_s9 + $0xe] ss:$0 sm:$0xff] }
 0x7f5   : > { %v6733_v22 = vadd.f32 %v6725_v56, %v6704_v3  ;;  %v6481_v3 = vld [vmem:[#allocation3 + $0x21] sm:$0xff] }
 0x7f6   : > { %v6697_v49 = vmul.f32 %v11616_v24, %v6481_v3 }
 0x7f7   : > { %6026 = vmax.xlane.f32.xlu1 %v6025_v15  ;;  %6413 = vmax.xlane.f32.xlu0 %v6412_v35  ;;  %v11635_v15 = vld [vmem:[%s13032_s9 + $0xa] ss:$0 sm:$0xff]  ;;  %v11637_v35 = vpop.xlane.xlu1 %6134 }
 0x7f8   : > { %13171 = vst [vmem:[#allocation36_spill] sm:$0xff] %v11635_v15  ;;  %v6754_v38 = vmul.f32 %v11635_v15, %v6538_v17  ;;  %v6668_v17 = vmul.f32 %v11610_v18, %v6452_v27 }
 0x7fa   : > { %v6762_v50 = vadd.f32 %v6754_v38, %v6733_v22  ;;  %v6465_v38 = vmul.f32 %v11568_v53, %v6452_v27 }
 0x7fb   : > { %6284 = vmax.xlane.f32.xlu1 %v6283_v25  ;;  %v6530_v25 = vadd.f32 %v6522_v42, %v6501_v40  ;;  %v11650_v41 = vpop.xlane.xlu1 %6140 }
 0x7fc   : > { %v6791_v62 = vadd.f32 %v6783_v37, %v6762_v50  ;;  %v6510_v50 = vld [vmem:[#allocation3 + $0x22] sm:$0xff] }
 0x7fd   : > { %v6559_v52 = vadd.f32 %v6551_v28, %v6530_v25  ;;  %v6871_v25 = vmul.f32 %v11671_v20, %v6452_v27  ;;  %v6393_v28 = vpop.xlane.xlu0 %6392  ;;  %v6726_v27 = vmul.f32 %v11626_v36, %v6510_v50 }
 0x7fe   : > { %v6820_v30 = vadd.f32 %v6812_v55, %v6791_v62 }
 0x7ff   : > { %v6588_v32 = vadd.f32 %v6580_v34, %v6559_v52  ;;  %v6264_v45 = vpop.xlane.xlu1 %6263  ;;  %v6494_v52 = vmul.f32 %v11573_v31, %v6481_v3 }
 0x800   : > { %v6849_v56 = vadd.f32 %v6841_v63, %v6820_v30  ;;  %v6539_v30 = vld [vmem:[#allocation3 + $0x23] sm:$0xff] }
 0x801   : > { %v6617_v21 = vadd.f32 %v6609_v54, %v6588_v32  ;;  %v6900_v32 = vmul.f32 %v11678_v33, %v6481_v3  ;;  %v11689_v54 = vld [vmem:[%s13032_s9 + $0x10] ss:$0 sm:$0xff]  ;;  %v6399_v62 = vpop.xlane.xlu0 %6398  ;;  %v6502_v55 = vadd.f32 %v6494_v52, %v6465_v38  ;;  %v6755_v52 = vmul.f32 %v11635_v15, %v6539_v30 }
 0x802   : > { %v6879_v37 = vadd.f32 %v6871_v25, %v6849_v56  ;;  %v6552_v25 = vmul.f32 %v11586_v47, %v6539_v30 }
 0x803   : > { %v6270_v40 = vpop.xlane.xlu1 %6269  ;;  %v6646_v42 = vadd.f32 %v6638_v23, %v6617_v21  ;;  %v6523_v21 = vmul.f32 %v11580_v43, %v6510_v50 }
 0x804   : > { %v6908_v63 = vadd.f32 %v6900_v32, %v6879_v37 }
 0x805   : > { %v6676_v34 = vadd.f32 %v6668_v17, %v6646_v42  ;;  %v6929_v42 = vmul.f32 %v11689_v54, %v6510_v50  ;;  %v11697_v17 = vld [vmem:[%s13032_s9 + $0x11] ss:$0 sm:$0xff]  ;;  %v6531_v56 = vadd.f32 %v6523_v21, %v6502_v55  ;;  %v6568_v50 = vld [vmem:[#allocation3 + $0x24] sm:$0xff]  ;;  %v11710_v55 = vld [vmem:[%s13032_s9 + $0x12] ss:$0 sm:$0xff] }
 0x806   : > { %v6958_v32 = vmul.f32 %v11697_v17, %v6539_v30  ;;  %13176 = vst [vmem:[#allocation41_spill] sm:$0xff] %v11710_v55  ;;  %v6581_v30 = vmul.f32 %v11592_v39, %v6568_v50 }
 0x807   : > { %v11680_v22 = vpop.xlane.xlu1 %6275  ;;  %v6705_v23 = vadd.f32 %v6697_v49, %v6676_v34  ;;  %v6937_v37 = vadd.f32 %v6929_v42, %v6908_v63 }
 0x809   : > { %v6734_v38 = vadd.f32 %v6726_v27, %v6705_v23  ;;  %v6560_v27 = vadd.f32 %v6552_v25, %v6531_v56 }
 0x80b   : > { %v6396_v58 = vpop.xlane.xlu1 %6395  ;;  %v6763_v63 = vadd.f32 %v6755_v52, %v6734_v38  ;;  %v6589_v56 = vadd.f32 %v6581_v30, %v6560_v27 }
 0x864   : > { %v6009_v3 = vpop.xlane.xlu1 %6008  ;;  %v6006_v34 = vpop.xlane.xlu0 %6005 }
 0x865   : > { %v6417_v49 = vsel %vm6415_vm11, %v6009_v3, %v11637_v35  ;;  %v6416_v11 = vsel %vm6415_vm11, %v6006_v34, %v11618_v29  ;;  %v6784_v29 = vmul.f32 %v11646_v60, %v6568_v50  ;;  %v6597_v3 = vld [vmem:[#allocation3 + $0x25] sm:$0xff]  ;;  %v6966_v34 = vadd.f32 %v6958_v32, %v6937_v37 }
 0x866   : > { %v6426_v9 = vsel %vm6424_vm12, %v6417_v49, %v6267_v14  ;;  %v6425_v21 = vsel %vm6424_vm12, %v6416_v11, %v6264_v45  ;;  %v6987_v11 = vmul.f32 %v11710_v55, %v6568_v50  ;;  %v11725_v45 = vld [vmem:[%s13032_s9 + $0x13] ss:$0 sm:$0xff]  ;;  %v6610_v25 = vmul.f32 %v11598_v51, %v6597_v3 }
 0x867   : > { %v6435_v23 = vsel %vm6433_vm13, %v6426_v9, %v6396_v58  ;;  %v6434_v35 = vsel %vm6433_vm13, %v6425_v21, %v6393_v28  ;;  %13177 = vst [vmem:[#allocation42_spill] sm:$0xff] %v11725_v45  ;;  %v6792_v38 = vadd.f32 %v6784_v29, %v6763_v63  ;;  %v6813_v52 = vmul.f32 %v11655_v2, %v6597_v3 }
 0x868   : > { %6443 = vst.msk [vmem:[#allocation3 + $0x43] sm:$0xff] %vm617_vm8, %v6435_v23  ;;  %6442 = vst.msk [vmem:[#allocation3 + $0x33] sm:$0xff] %vm617_vm8, %v6434_v35  ;;  %v6012_v14 = vpop.xlane.xlu1 %6011  ;;  %v6015_v42 = vpop.xlane.xlu0 %6014  ;;  %v6995_v37 = vadd.f32 %v6987_v11, %v6966_v34  ;;  %v7016_v32 = vmul.f32 %v11725_v45, %v6597_v3  ;;  %v6618_v35 = vadd.f32 %v6610_v25, %v6589_v56  ;;  %v11759_v34 = vld [vmem:[%s13032_s9 + $0x1d] ss:$0 sm:$0xff]  ;;  %v11764_v11 = vld [vmem:[%s13032_s9 + $0x1e] ss:$0 sm:$0xff] }
 0x869   : > { %v6418_v9 = vsel %vm6415_vm11, %v6012_v14, %v11630_v16  ;;  %v6626_v16 = vld [vmem:[#allocation3 + $0x26] sm:$0xff]  ;;  %v6821_v30 = vadd.f32 %v6813_v52, %v6792_v38  ;;  %13179 = vst [vmem:[#allocation44_spill] sm:$0xff] %v11759_v34  ;;  %13180 = vst [vmem:[#allocation45_spill] sm:$0xff] %v11764_v11  ;;  %v6419_v52 = vsel %vm6415_vm11, %v6015_v42, %v11650_v41 }
 0x86a   : > { %v6427_v28 = vsel %vm6424_vm12, %v6418_v9, %v6270_v40  ;;  %v11738_v40 = vld [vmem:[%s13032_s9 + $0x14] ss:$0 sm:$0xff]  ;;  %v6639_v27 = vmul.f32 %v11604_v59, %v6626_v16  ;;  %v6842_v63 = vmul.f32 %v11662_v19, %v6626_v16 }
 0x86b   : > { %v6436_v58 = vsel %vm6433_vm13, %v6427_v28, %v6399_v62  ;;  %13178 = vst [vmem:[#allocation43_spill] sm:$0xff] %v11738_v40  ;;  %v7045_v14 = vmul.f32 %v11738_v40, %v6626_v16  ;;  %v7272_v9 = vld [vmem:[#allocation3 + $0xb0] sm:$0xff] }
 0x86c   : > { %6444 = vst.msk [vmem:[#allocation3 + $0x53] sm:$0xff] %vm617_vm8, %v6436_v58  ;;  %v6018_v49 = vpop.xlane.xlu1 %6017  ;;  %v6405_v50 = vpop.xlane.xlu0 %6404  ;;  %v7301_v28 = vld [vmem:[#allocation3 + $0xb1] sm:$0xff] }
 0x86d   : > { %v6420_v21 = vsel %vm6415_vm11, %v6018_v49, %v11641_v57  ;;  %v7024_v57 = vadd.f32 %v7016_v32, %v6995_v37  ;;  %v7330_v58 = vld [vmem:[#allocation3 + $0xb2] sm:$0xff]  ;;  %v6647_v49 = vadd.f32 %v6639_v27, %v6618_v35  ;;  %v6850_v32 = vadd.f32 %v6842_v63, %v6821_v30 }
 0x86e   : > { %v6429_v62 = vsel %vm6424_vm12, %v6420_v21, %v11680_v22  ;;  %v11754_v22 = vld [vmem:[%s13032_s9 + $0x1c] ss:$0 sm:$0xff]  ;;  %v11788_v41 = vmul.f32 %v11759_v34, %v7301_v28  ;;  %v11791_v42 = vmul.f32 %v11764_v11, %v7330_v58 }
 0x86f   : > { %v6438_v23 = vsel %vm6433_vm13, %v6429_v62, %v6405_v50  ;;  %v11766_v56 = vld [vmem:[#allocation3 + $0x40] sm:$0xff]  ;;  %v6453_v25 = vld [vmem:[#allocation3 + $0x30] sm:$0xff]  ;;  %v11785_v10 = vmul.f32 %v11754_v22, %v7272_v9  ;;  %v11808_v9 = vsel %vm6424_vm12, %v6419_v52, %v11666_v4 }
 0x870   : > { %6446 = vst.msk [vmem:[#allocation3 + $0x73] sm:$0xff] %vm617_vm8, %v6438_v23  ;;  %v11746_v29 = vpop.xlane.xlu1 %6401  ;;  %v11749_v3 = vpop.xlane.xlu0 %6146  ;;  %v11768_v38 = vld [vmem:[#allocation3 + $0x31] sm:$0xff]  ;;  %v11772_v50 = vld [vmem:[#allocation3 + $0x41] sm:$0xff]  ;;  %v7053_v23 = vadd.f32 %v7045_v14, %v7024_v57  ;;  %13183 = vst [vmem:[#allocation48_spill] sm:$0xff] %v11788_v41  ;;  %v11795_v35 = vmul.f32 %v11610_v18, %v11766_v56  ;;  %v6466_v63 = vmul.f32 %v11568_v53, %v6453_v25 }
 0x871   : > { %v11774_v16 = vld [vmem:[#allocation3 + $0x42] sm:$0xff]  ;;  %v11782_v12 = vld [vmem:[#allocation3 + $0x32] sm:$0xff]  ;;  %13182 = vst [vmem:[#allocation47_spill] sm:$0xff] %v11785_v10  ;;  %13184 = vst [vmem:[#allocation49_spill] sm:$0xff] %v11791_v42  ;;  %v6495_v57 = vmul.f32 %v11573_v31, %v11768_v38  ;;  %v11812_v28 = vmul.f32 %v11616_v24, %v11772_v50  ;;  %v11824_v8 = vmul.f32 %v11671_v20, %v11766_v56 }
 0x872   : > { %v11776_v37 = vld [vmem:[#allocation3 + $0x43] sm:$0xff]  ;;  %v11804_v14 = vld [vmem:[#allocation3 + $0x33] sm:$0xff]  ;;  %v11816_v58 = vmul.f32 %v11626_v36, %v11774_v16  ;;  %v6524_v46 = vmul.f32 %v11580_v43, %v11782_v12  ;;  %v6669_v0 = vmul.f32 %v11610_v18, %v6453_v25  ;;  %v6698_v41 = vmul.f32 %v11616_v24, %v11768_v38 }
 0x873   : > { %v11780_v62 = vld [vmem:[#allocation3 + $0x44] sm:$0xff]  ;;  %v11820_v1 = vmul.f32 %v11635_v15, %v11776_v37  ;;  %v6503_v52 = vadd.f32 %v6495_v57, %v6466_v63  ;;  %v11834_v48 = vld [vmem:[#allocation3 + $0x34] sm:$0xff]  ;;  %v11849_v63 = vmul.f32 %v11678_v33, %v11772_v50  ;;  %v6553_v57 = vmul.f32 %v11586_v47, %v11804_v14 }
 0x874   : > { %v11778_v21 = vpop.xlane.xlu1 %6020  ;;  %13181 = vst [vmem:[#allocation46_spill] sm:$0xff] %v11780_v62  ;;  %v11797_v27 = vld [vmem:[#allocation3 + $0x45] sm:$0xff]  ;;  %v11826_v13 = vpop.xlane.xlu0 %6407  ;;  %v11830_v4 = vmul.f32 %v11646_v60, %v11780_v62  ;;  %v11858_v61 = vld [vmem:[#allocation3 + $0x35] sm:$0xff]  ;;  %v6677_v42 = vadd.f32 %v6669_v0, %v6647_v49  ;;  %v6872_v10 = vmul.f32 %v11671_v20, %v6453_v25  ;;  %v11865_v18 = vmul.f32 %v11689_v54, %v11774_v16 }
 0x875   : > { %v11799_v30 = vld [vmem:[#allocation3 + $0x46] sm:$0xff]  ;;  %v11841_v26 = vmul.f32 %v11655_v2, %v11797_v27  ;;  %v6532_v44 = vadd.f32 %v6524_v46, %v6503_v52  ;;  %v11869_v47 = vmul.f32 %v11697_v17, %v11776_v37  ;;  %v6582_v43 = vmul.f32 %v11592_v39, %v11834_v48  ;;  %v11878_v0 = vld [vmem:[%s13032_s9 + $0x16] ss:$0 sm:$0xff] }
 0x876   : > { %13185 = vst [vmem:[#allocation50_spill] sm:$0xff] %v11799_v30  ;;  %v11845_v6 = vmul.f32 %v11662_v19, %v11799_v30  ;;  %v6727_v46 = vmul.f32 %v11626_v36, %v11782_v12  ;;  %v11880_v52 = vld [vmem:[#allocation3 + $0x36] sm:$0xff]  ;;  %v6706_v24 = vadd.f32 %v6698_v41, %v6677_v42  ;;  %v6880_v31 = vadd.f32 %v6872_v10, %v6850_v32 }
 0x877   : > { %13186 = vst [vmem:[#allocation51_spill] sm:$0xff] %v11841_v26  ;;  %13188 = vst [vmem:[#allocation53_spill] sm:$0xff] %v11869_v47  ;;  %v6561_v49 = vadd.f32 %v6553_v57, %v6532_v44  ;;  %v6901_v53 = vmul.f32 %v11678_v33, %v11768_v38  ;;  %v11888_v39 = vmul.f32 %v11710_v55, %v11780_v62  ;;  %v11900_v10 = vld [vmem:[%s13032_s9 + $0x17] ss:$0 sm:$0xff]  ;;  %v11913_v26 = vld [vmem:[%s13032_s9 + $0x18] ss:$0 sm:$0xff] }
 0x878   : > { %v11837_v7 = vpop.xlane.xlu1 %6278  ;;  %13187 = vst [vmem:[#allocation52_spill] sm:$0xff] %v11845_v6  ;;  %v6611_v36 = vmul.f32 %v11598_v51, %v11858_v61  ;;  %v6756_v47 = vmul.f32 %v11635_v15, %v11804_v14  ;;  %v7074_v44 = vmul.f32 %v11856_v5, %v6453_v25  ;;  %v11895_v57 = vpop.xlane.xlu0 %6149  ;;  %v6735_v41 = vadd.f32 %v6727_v46, %v6706_v24 }
 0x879   : > { %13189 = vst [vmem:[#allocation54_spill] sm:$0xff] %v11888_v39  ;;  %v6590_v32 = vadd.f32 %v6582_v43, %v6561_v49  ;;  %v6909_v42 = vadd.f32 %v6901_v53, %v6880_v31  ;;  %v6930_v39 = vmul.f32 %v11689_v54, %v11782_v12  ;;  %v6640_v51 = vmul.f32 %v11604_v59, %v11880_v52 }
 0x87a   : > { %v6785_v15 = vmul.f32 %v11646_v60, %v11834_v48  ;;  %v7082_v25 = vadd.f32 %v7074_v44, %v7053_v23  ;;  %v7103_v33 = vmul.f32 %v11878_v0, %v11768_v38  ;;  %v6764_v53 = vadd.f32 %v6756_v47, %v6735_v41 }
 0x87b   : > { %v6619_v43 = vadd.f32 %v6611_v36, %v6590_v32  ;;  %v6938_v31 = vadd.f32 %v6930_v39, %v6909_v42  ;;  %v6959_v24 = vmul.f32 %v11697_v17, %v11804_v14  ;;  %v11921_v49 = vmul.f32 %v11725_v45, %v11797_v27 }
 0x87c   : > { %v11884_v6 = vpop.xlane.xlu1 %6023  ;;  %v6814_v38 = vmul.f32 %v11655_v2, %v11858_v61  ;;  %v7111_v23 = vadd.f32 %v7103_v33, %v7082_v25  ;;  %v7132_v44 = vmul.f32 %v11900_v10, %v11782_v12  ;;  %v6793_v36 = vadd.f32 %v6785_v15, %v6764_v53  ;;  %v6411_v25 = vpop.xlane.xlu0 %6410  ;;  %v11940_v12 = vld [vmem:[%s13032_s9 + $0x19] ss:$0 sm:$0xff] }
 0x87d   : > { %v6648_v60 = vadd.f32 %v6640_v51, %v6619_v43  ;;  %v6967_v47 = vadd.f32 %v6959_v24, %v6938_v31  ;;  %v6988_v39 = vmul.f32 %v11710_v55, %v11834_v48  ;;  %v11931_v32 = vmul.f32 %v11738_v40, %v11799_v30  ;;  %v11945_v51 = vld [vmem:[%s13032_s9 + $0x1a] ss:$0 sm:$0xff] }
 0x87e   : > { %v6843_v41 = vmul.f32 %v11662_v19, %v11880_v52  ;;  %v7140_v42 = vadd.f32 %v7132_v44, %v7111_v23  ;;  %v7161_v33 = vmul.f32 %v11913_v26, %v11804_v14  ;;  %v6822_v43 = vadd.f32 %v6814_v38, %v6793_v36  ;;  %v11961_v44 = vld [vmem:[%s13032_s9 + $0x1b] ss:$0 sm:$0xff] }
 0x87f   : > { %v6678_v15 = vadd.f32 %v11795_v35, %v6648_v60  ;;  %v6996_v53 = vadd.f32 %v6988_v39, %v6967_v47  ;;  %v7017_v31 = vmul.f32 %v11725_v45, %v11858_v61  ;;  %v7075_v14 = vmul.f32 %v11856_v5, %v11766_v56  ;;  %13190 = vst [vmem:[#allocation55_spill] sm:$0xff] %v11961_v44 }
 0x880   : > { %v11917_v46 = vpop.xlane.xlu1 %6281  ;;  %v7104_v24 = vmul.f32 %v11878_v0, %v11772_v50  ;;  %v11956_v23 = vmul.f32 %v11900_v10, %v11774_v16  ;;  %v7169_v60 = vadd.f32 %v7161_v33, %v7140_v42  ;;  %v6851_v38 = vadd.f32 %v6843_v41, %v6822_v43  ;;  %v11986_v43 = vld [vmem:[#allocation3 + $0x50] sm:$0xff] }
 0x881   : > { %v6707_v35 = vadd.f32 %v11812_v28, %v6678_v15  ;;  %v7025_v36 = vadd.f32 %v7017_v31, %v6996_v53  ;;  %v7046_v47 = vmul.f32 %v11738_v40, %v11880_v52  ;;  %v11968_v19 = vmul.f32 %v11913_v26, %v11776_v37 }
 0x882   : > { %v11972_v2 = vmul.f32 %v11940_v12, %v11780_v62  ;;  %v11976_v59 = vmul.f32 %v11945_v51, %v11797_v27  ;;  %v7190_v28 = vmul.f32 %v11940_v12, %v11834_v48  ;;  %v11982_v41 = vmul.f32 %v11961_v44, %v11799_v30  ;;  %v6153_v30 = vpop.xlane.xlu0 %6152 }
 0x883   : > { %v6736_v42 = vadd.f32 %v11816_v58, %v6707_v35  ;;  %v6881_v33 = vadd.f32 %v11824_v8, %v6851_v38  ;;  %v7054_v15 = vadd.f32 %v7046_v47, %v7025_v36  ;;  %v11990_v53 = vmul.f32 %v11754_v22, %v11766_v56  ;;  %v12019_v47 = vld [vmem:[#allocation3 + $0x52] sm:$0xff] }
 0x884   : > { %v6027_v39 = vpop.xlane.xlu1 %6026  ;;  %13191 = vst [vmem:[#allocation56_spill] sm:$0xff] %v11982_v41  ;;  %v11994_v31 = vmul.f32 %v11759_v34, %v11772_v50  ;;  %v7198_v48 = vadd.f32 %v7190_v28, %v7169_v60  ;;  %v6437_v41 = vsel %vm6433_vm13, %v11808_v9, %v11746_v29  ;;  %v12001_v8 = vmul.f32 %v11764_v11, %v11774_v16  ;;  %v12021_v28 = vld [vmem:[#allocation3 + $0x53] sm:$0xff] }
 0x885   : > { %v6765_v58 = vadd.f32 %v11820_v1, %v6736_v42  ;;  %v6910_v35 = vadd.f32 %v11849_v63, %v6881_v33  ;;  %v7083_v38 = vadd.f32 %v7075_v14, %v7054_v15  ;;  %6445 = vst.msk [vmem:[#allocation3 + $0x63] sm:$0xff] %vm617_vm8, %v6437_v41  ;;  %v7219_v36 = vmul.f32 %v11945_v51, %v11858_v61  ;;  %v12017_v14 = vld [vmem:[#allocation3 + $0x51] sm:$0xff]  ;;  %v13193_v33 = vld [vmem:[#allocation51_spill] sm:$0xff] }
 0x886   : > { %13192 = vst [vmem:[#allocation57_spill] sm:$0xff] %v12001_v8  ;;  %v7248_v60 = vmul.f32 %v11961_v44, %v11880_v52  ;;  %v6874_v29 = vmul.f32 %v11671_v20, %v11986_v43  ;;  %v6421_v9 = vsel %vm6415_vm11, %v11778_v21, %v11749_v3  ;;  %v6422_v52 = vsel %vm6415_vm11, %v11884_v6, %v11895_v57  ;;  %v12028_v21 = vld [vmem:[#allocation3 + $0x54] sm:$0xff] }
 0x887   : > { %v6794_v1 = vadd.f32 %v11830_v4, %v6765_v58  ;;  %v6939_v63 = vadd.f32 %v11865_v18, %v6910_v35  ;;  %v6430_v61 = vsel %vm6424_vm12, %v6421_v9, %v11837_v7  ;;  %v7112_v42 = vadd.f32 %v7104_v24, %v7083_v38  ;;  %v13194_v58 = vld [vmem:[#allocation53_spill] sm:$0xff]  ;;  %v13195_v24 = vld [vmem:[#allocation40_spill] sm:$0xff]  ;;  %v6414_v38 = vpop.xlane.xlu0 %6413 }
 0x888   : > { %v6285_v41 = vpop.xlane.xlu1 %6284  ;;  %v7227_v3 = vadd.f32 %v7219_v36, %v7198_v48  ;;  %v6439_v18 = vsel %vm6433_vm13, %v6430_v61, %v11826_v13  ;;  %v6431_v4 = vsel %vm6424_vm12, %v6422_v52, %v11917_v46  ;;  %v12036_v7 = vld [vmem:[#allocation3 + $0x55] sm:$0xff]  ;;  %v6423_v57 = vsel %vm6415_vm11, %v6027_v39, %v6153_v30  ;;  %v13197_v61 = vld [vmem:[#allocation54_spill] sm:$0xff] }
 0x889   : > { %v6823_v15 = vadd.f32 %v13193_v33, %v6794_v1  ;;  %v6968_v35 = vadd.f32 %v13194_v58, %v6939_v63  ;;  %v12038_v9 = vld [vmem:[#allocation3 + $0x56] sm:$0xff]  ;;  %6447 = vst.msk [vmem:[#allocation3 + $0x83] sm:$0xff] %vm617_vm8, %v6439_v18  ;;  %v6440_v6 = vsel %vm6433_vm13, %v6431_v4, %v6411_v25  ;;  %v6903_v13 = vmul.f32 %v13195_v24, %v12017_v14 }
 0x88a   : > { %v6932_v46 = vmul.f32 %v11689_v54, %v12019_v47  ;;  %v6961_v48 = vmul.f32 %v11697_v17, %v12021_v28  ;;  %6448 = vst.msk [vmem:[#allocation3 + $0x93] sm:$0xff] %vm617_vm8, %v6440_v6  ;;  %v6432_v36 = vsel %vm6424_vm12, %v6423_v57, %v6285_v41  ;;  %v13196_v1 = vld [vmem:[#allocation52_spill] sm:$0xff]  ;;  %v6990_v30 = vmul.f32 %v11710_v55, %v12028_v21 }
 0x88b   : > { %v6852_v63 = vadd.f32 %v13196_v1, %v6823_v15  ;;  %v6997_v25 = vadd.f32 %v13197_v61, %v6968_v35  ;;  %v6441_v39 = vsel %vm6433_vm13, %v6432_v36, %v6414_v38  ;;  %v7019_v52 = vmul.f32 %v11725_v45, %v12036_v7  ;;  %v12074_v6 = vld [vmem:[#allocation3 + $0x70] sm:$0xff] }
 0x88c   : > { %v12060_v18 = vmul.f32 %v11738_v40, %v12038_v9  ;;  %v7076_v4 = vmul.f32 %v11856_v5, %v11986_v43  ;;  %v12066_v41 = vmul.f32 %v11878_v0, %v12017_v14  ;;  %6449 = vst.msk [vmem:[#allocation3 + $0xa3] sm:$0xff] %vm617_vm8, %v6441_v39  ;;  %v7141_v33 = vadd.f32 %v11956_v23, %v7112_v42  ;;  %v12093_v42 = vld [vmem:[#allocation3 + $0x71] sm:$0xff]  ;;  %v12097_v1 = vld [vmem:[#allocation3 + $0x61] sm:$0xff] }
 0x88d   : > { %v7256_v15 = vadd.f32 %v7248_v60, %v7227_v3  ;;  %v12072_v58 = vmul.f32 %v11900_v10, %v12019_v47  ;;  %v6882_v35 = vadd.f32 %v6874_v29, %v6852_v63  ;;  %v12078_v57 = vmul.f32 %v11913_v26, %v12021_v28  ;;  %v12095_v3 = vld [vmem:[#allocation3 + $0x60] sm:$0xff]  ;;  %v13201_v39 = vld [vmem:[#allocation27_spill] sm:$0xff] }
 0x88e   : > { %v12082_v38 = vmul.f32 %v11940_v12, %v12028_v21  ;;  %v12086_v36 = vmul.f32 %v11945_v51, %v12036_v7  ;;  %v12090_v23 = vmul.f32 %v11961_v44, %v12038_v9  ;;  %v7026_v60 = vadd.f32 %v11921_v49, %v6997_v25  ;;  %v13200_v63 = vld [vmem:[#allocation26_spill] sm:$0xff] }
 0x88f   : > { %v6911_v29 = vadd.f32 %v6903_v13, %v6882_v35  ;;  %v6467_v61 = vmul.f32 %v13200_v63, %v11766_v56  ;;  %v6496_v8 = vmul.f32 %v13201_v39, %v11772_v50  ;;  %v6468_v49 = vmul.f32 %v13200_v63, %v11986_v43 }
 0x890   : > { %13198 = vst [vmem:[#allocation51_spill] sm:$0xff] %v12086_v36  ;;  %13199 = vst [vmem:[#allocation53_spill] sm:$0xff] %v12090_v23  ;;  %v12105_v36 = vmul.f32 %v11754_v22, %v11986_v43  ;;  %v6470_v13 = vmul.f32 %v13200_v63, %v12074_v6  ;;  %v6497_v25 = vmul.f32 %v13201_v39, %v12017_v14 }
 0x891   : > { %v7170_v35 = vadd.f32 %v11968_v19, %v7141_v33  ;;  %v7286_v56 = vadd.f32 %v11990_v53, %v7256_v15  ;;  %v12117_v50 = vmul.f32 %v11759_v34, %v12017_v14  ;;  %v6940_v23 = vadd.f32 %v6932_v46, %v6911_v29  ;;  %v12130_v33 = vld [vmem:[#allocation3 + $0x62] sm:$0xff] }
 0x892   : > { %13202 = vst [vmem:[#allocation40_spill] sm:$0xff] %v12105_v36  ;;  %v12121_v36 = vmul.f32 %v11764_v11, %v12019_v47  ;;  %v6469_v44 = vmul.f32 %v13200_v63, %v12095_v3  ;;  %v6498_v40 = vmul.f32 %v13201_v39, %v12097_v1  ;;  %v6499_v19 = vmul.f32 %v13201_v39, %v12093_v42  ;;  %v12136_v11 = vld [vmem:[#allocation3 + $0x72] sm:$0xff] }
 0x893   : > { %13203 = vst [vmem:[#allocation52_spill] sm:$0xff] %v12117_v50  ;;  %v7055_v53 = vadd.f32 %v11931_v32, %v7026_v60  ;;  %v12134_v46 = vmul.f32 %v11754_v22, %v12074_v6  ;;  %v6969_v15 = vadd.f32 %v6961_v48, %v6940_v23  ;;  %v6504_v29 = vadd.f32 %v6496_v8, %v6467_v61  ;;  %v13205_v50 = vld [vmem:[#allocation28_spill] sm:$0xff]  ;;  %v12144_v60 = vld [vmem:[#allocation3 + $0x63] sm:$0xff] }
 0x894   : > { %13204 = vst [vmem:[#allocation54_spill] sm:$0xff] %v12121_v36  ;;  %v6505_v36 = vadd.f32 %v6497_v25, %v6468_v49  ;;  %v6506_v63 = vadd.f32 %v6498_v40, %v6469_v44  ;;  %v6507_v34 = vadd.f32 %v6499_v19, %v6470_v13  ;;  %v6525_v45 = vmul.f32 %v13205_v50, %v11774_v16  ;;  %v12162_v19 = vld [vmem:[#allocation3 + $0x64] sm:$0xff] }
 0x895   : > { %v7199_v39 = vadd.f32 %v11972_v2, %v7170_v35  ;;  %v12142_v32 = vadd.f32 %v11994_v31, %v7286_v56  ;;  %v6998_v55 = vadd.f32 %v6990_v30, %v6969_v15  ;;  %v6526_v48 = vmul.f32 %v13205_v50, %v12019_v47  ;;  %v12154_v2 = vld [vmem:[#allocation3 + $0x73] sm:$0xff]  ;;  %v13207_v15 = vld [vmem:[#allocation30_spill] sm:$0xff] }
 0x896   : > { %v7077_v8 = vmul.f32 %v11856_v5, %v12095_v3  ;;  %v6527_v40 = vmul.f32 %v13205_v50, %v12130_v33  ;;  %v6528_v16 = vmul.f32 %v13205_v50, %v12136_v11  ;;  %v6533_v44 = vadd.f32 %v6525_v45, %v6504_v29  ;;  %v13206_v30 = vld [vmem:[#allocation29_spill] sm:$0xff] }
 0x897   : > { %v7084_v31 = vadd.f32 %v7076_v4, %v7055_v53  ;;  %v7027_v23 = vadd.f32 %v7019_v52, %v6998_v55  ;;  %v6534_v61 = vadd.f32 %v6526_v48, %v6505_v36  ;;  %v6554_v49 = vmul.f32 %v13206_v30, %v11776_v37  ;;  %v12176_v48 = vld [vmem:[#allocation3 + $0x65] sm:$0xff] }
 0x898   : > { %v6535_v13 = vadd.f32 %v6527_v40, %v6506_v63  ;;  %v6536_v25 = vadd.f32 %v6528_v16, %v6507_v34  ;;  %v6555_v35 = vmul.f32 %v13206_v30, %v12021_v28  ;;  %v6556_v56 = vmul.f32 %v13206_v30, %v12144_v60  ;;  %v12171_v34 = vld [vmem:[#allocation3 + $0x74] sm:$0xff] }
 0x899   : > { %v7106_v45 = vmul.f32 %v11878_v0, %v12097_v1  ;;  %v7135_v55 = vmul.f32 %v11900_v10, %v12130_v33  ;;  %v7056_v52 = vadd.f32 %v12060_v18, %v7027_v23  ;;  %v6557_v4 = vmul.f32 %v13206_v30, %v12154_v2 }
 0x89a   : > { %v6562_v36 = vadd.f32 %v6554_v49, %v6533_v44  ;;  %v6563_v50 = vadd.f32 %v6555_v35, %v6534_v61  ;;  %v6564_v53 = vadd.f32 %v6556_v56, %v6535_v13  ;;  %v6583_v29 = vmul.f32 %v13207_v15, %v11780_v62  ;;  %v12186_v49 = vld [vmem:[#allocation3 + $0x75] sm:$0xff]  ;;  %v13208_v13 = vld [vmem:[#allocation31_spill] sm:$0xff]  ;;  %v13210_v62 = vld [vmem:[#allocation50_spill] sm:$0xff] }
 0x89b   : > { %v7113_v63 = vadd.f32 %v12066_v41, %v7084_v31  ;;  %v7164_v40 = vmul.f32 %v11913_v26, %v12144_v60  ;;  %v7085_v16 = vadd.f32 %v7077_v8, %v7056_v52  ;;  %v6565_v18 = vadd.f32 %v6557_v4, %v6536_v25  ;;  %v12193_v25 = vld [vmem:[#allocation3 + $0x66] sm:$0xff] }
 0x89c   : > { %v6584_v23 = vmul.f32 %v13207_v15, %v12028_v21  ;;  %v6585_v44 = vmul.f32 %v13207_v15, %v12162_v19  ;;  %v6586_v61 = vmul.f32 %v13207_v15, %v12171_v34  ;;  %v6591_v30 = vadd.f32 %v6583_v29, %v6562_v36 }
 0x89d   : > { %v7228_v41 = vadd.f32 %v11976_v59, %v7199_v39  ;;  %v7114_v31 = vadd.f32 %v7106_v45, %v7085_v16  ;;  %v6612_v35 = vmul.f32 %v13208_v13, %v11797_v27  ;;  %v6613_v8 = vmul.f32 %v13208_v13, %v12036_v7  ;;  %v12202_v45 = vld [vmem:[#allocation3 + $0x76] sm:$0xff] }
 0x89e   : > { %v6592_v56 = vadd.f32 %v6584_v23, %v6563_v50  ;;  %v6593_v52 = vadd.f32 %v6585_v44, %v6564_v53  ;;  %v6594_v4 = vadd.f32 %v6586_v61, %v6565_v18  ;;  %v6614_v15 = vmul.f32 %v13208_v13, %v12176_v48  ;;  %13209 = vst [vmem:[#allocation26_spill] sm:$0xff] %v12202_v45  ;;  %v13211_v50 = vld [vmem:[#allocation32_spill] sm:$0xff]  ;;  %v12214_v61 = vld [vmem:[#allocation3 + $0x80] sm:$0xff] }
 0x89f   : > { %v7142_v36 = vadd.f32 %v12072_v58, %v7113_v63  ;;  %v7193_v59 = vmul.f32 %v11940_v12, %v12162_v19  ;;  %v6615_v39 = vmul.f32 %v13208_v13, %v12186_v49  ;;  %v6620_v27 = vadd.f32 %v6612_v35, %v6591_v30  ;;  %13212 = vst [vmem:[#allocation27_spill] sm:$0xff] %v12214_v61 }
 0x8a0   : > { %v6621_v29 = vadd.f32 %v6613_v8, %v6592_v56  ;;  %v6622_v16 = vadd.f32 %v6614_v15, %v6593_v52  ;;  %v6641_v53 = vmul.f32 %v13211_v50, %v13210_v62  ;;  %v6642_v18 = vmul.f32 %v13211_v50, %v12038_v9  ;;  %v13213_v62 = vld [vmem:[#allocation33_spill] sm:$0xff]  ;;  %v13214_v56 = vld [vmem:[#allocation56_spill] sm:$0xff] }
 0x8a1   : > { %v12210_v58 = vmul.f32 %v11945_v51, %v12176_v48  ;;  %v7143_v63 = vadd.f32 %v7135_v55, %v7114_v31  ;;  %v6623_v23 = vadd.f32 %v6615_v39, %v6594_v4  ;;  %v6643_v44 = vmul.f32 %v13211_v50, %v12193_v25  ;;  %v12226_v4 = vld [vmem:[#allocation3 + $0x81] sm:$0xff] }
 0x8a2   : > { %v6644_v30 = vmul.f32 %v13211_v50, %v12202_v45  ;;  %v6649_v13 = vadd.f32 %v6641_v53, %v6620_v27  ;;  %v6650_v35 = vadd.f32 %v6642_v18, %v6621_v29  ;;  %v6671_v8 = vmul.f32 %v13213_v62, %v11986_v43  ;;  %13215 = vst [vmem:[#allocation28_spill] sm:$0xff] %v12226_v4 }
 0x8a3   : > { %v12221_v52 = vadd.f32 %v13214_v56, %v7228_v41  ;;  %v7171_v15 = vadd.f32 %v12078_v57, %v7142_v36  ;;  %v6651_v55 = vadd.f32 %v6643_v44, %v6622_v16  ;;  %v6672_v31 = vmul.f32 %v13213_v62, %v12095_v3  ;;  %v13216_v41 = vld [vmem:[#allocation34_spill] sm:$0xff] }
 0x8a4   : > { %v6652_v39 = vadd.f32 %v6644_v30, %v6623_v23  ;;  %v6673_v50 = vmul.f32 %v13213_v62, %v12074_v6  ;;  %v6674_v27 = vmul.f32 %v13213_v62, %v12214_v61  ;;  %v6679_v29 = vadd.f32 %v6671_v8, %v6649_v13  ;;  %v12240_v30 = vld [vmem:[#allocation3 + $0x82] sm:$0xff] }
 0x8a5   : > { %v7172_v43 = vadd.f32 %v7164_v40, %v7143_v63  ;;  %v6680_v53 = vadd.f32 %v6672_v31, %v6650_v35  ;;  %v6700_v18 = vmul.f32 %v13216_v41, %v12017_v14  ;;  %v6701_v57 = vmul.f32 %v13216_v41, %v12097_v1  ;;  %v13217_v14 = vld [vmem:[#allocation35_spill] sm:$0xff] }
 0x8a6   : > { %v6681_v36 = vadd.f32 %v6673_v50, %v6651_v55  ;;  %v6682_v16 = vadd.f32 %v6674_v27, %v6652_v39  ;;  %v6702_v23 = vmul.f32 %v13216_v41, %v12093_v42  ;;  %v6703_v44 = vmul.f32 %v13216_v41, %v12226_v4  ;;  %v12251_v31 = vld [vmem:[#allocation3 + $0x83] sm:$0xff]  ;;  %v13219_v50 = vld [vmem:[#allocation36_spill] sm:$0xff] }
 0x8a7   : > { %v12243_v13 = vadd.f32 %v12082_v38, %v7171_v15  ;;  %v6708_v40 = vadd.f32 %v6700_v18, %v6679_v29  ;;  %v6709_v63 = vadd.f32 %v6701_v57, %v6680_v53  ;;  %v6729_v35 = vmul.f32 %v13217_v14, %v12019_v47  ;;  %13218 = vst [vmem:[#allocation29_spill] sm:$0xff] %v12251_v31  ;;  %v12263_v18 = vld [vmem:[#allocation3 + $0x84] sm:$0xff] }
 0x8a8   : > { %v6710_v62 = vadd.f32 %v6702_v23, %v6681_v36  ;;  %v6711_v8 = vadd.f32 %v6703_v44, %v6682_v16  ;;  %v6730_v56 = vmul.f32 %v13217_v14, %v12130_v33  ;;  %v6731_v55 = vmul.f32 %v13217_v14, %v12136_v11  ;;  %v13220_v36 = vld [vmem:[#allocation37_spill] sm:$0xff] }
 0x8a9   : > { %v12253_v39 = vadd.f32 %v7193_v59, %v7172_v43  ;;  %v6732_v38 = vmul.f32 %v13217_v14, %v12240_v30  ;;  %v6737_v15 = vadd.f32 %v6729_v35, %v6708_v40  ;;  %v6758_v27 = vmul.f32 %v13219_v50, %v12021_v28  ;;  %v12273_v14 = vld [vmem:[#allocation3 + $0x85] sm:$0xff] }
 0x8aa   : > { %v6738_v47 = vadd.f32 %v6730_v56, %v6709_v63  ;;  %v6739_v29 = vadd.f32 %v6731_v55, %v6710_v62  ;;  %v6759_v53 = vmul.f32 %v13219_v50, %v12144_v60  ;;  %v6760_v41 = vmul.f32 %v13219_v50, %v12154_v2  ;;  %v13221_v56 = vld [vmem:[#allocation38_spill] sm:$0xff] }
 0x8ab   : > { %v6740_v57 = vadd.f32 %v6732_v38, %v6711_v8  ;;  %v6761_v59 = vmul.f32 %v13219_v50, %v12251_v31  ;;  %v6766_v43 = vadd.f32 %v6758_v27, %v6737_v15  ;;  %v6787_v16 = vmul.f32 %v13220_v36, %v12028_v21 }
 0x8ac   : > { %v6767_v23 = vadd.f32 %v6759_v53, %v6738_v47  ;;  %v6768_v44 = vadd.f32 %v6760_v41, %v6739_v29  ;;  %v6788_v40 = vmul.f32 %v13220_v36, %v12162_v19  ;;  %v6789_v63 = vmul.f32 %v13220_v36, %v12171_v34  ;;  %v12283_v47 = vld [vmem:[#allocation3 + $0x86] sm:$0xff] }
 0x8ad   : > { %v6769_v35 = vadd.f32 %v6761_v59, %v6740_v57  ;;  %v6790_v62 = vmul.f32 %v13220_v36, %v12263_v18  ;;  %v6795_v8 = vadd.f32 %v6787_v16, %v6766_v43  ;;  %v6816_v55 = vmul.f32 %v13221_v56, %v12036_v7  ;;  %v13222_v57 = vld [vmem:[#allocation39_spill] sm:$0xff] }
 0x8ae   : > { %v6796_v38 = vadd.f32 %v6788_v40, %v6767_v23  ;;  %v6797_v15 = vadd.f32 %v6789_v63, %v6768_v44  ;;  %v6817_v50 = vmul.f32 %v13221_v56, %v12176_v48  ;;  %v6818_v27 = vmul.f32 %v13221_v56, %v12186_v49  ;;  %v12293_v23 = vld [vmem:[#allocation3 + $0x90] sm:$0xff] }
 0x8af   : > { %v6798_v29 = vadd.f32 %v6790_v62, %v6769_v35  ;;  %v6819_v53 = vmul.f32 %v13221_v56, %v12273_v14  ;;  %v6824_v41 = vadd.f32 %v6816_v55, %v6795_v8  ;;  %v6845_v59 = vmul.f32 %v13222_v57, %v12038_v9  ;;  %v12303_v55 = vld [vmem:[#allocation3 + $0x91] sm:$0xff] }
 0x8b0   : > { %v6825_v43 = vadd.f32 %v6817_v50, %v6796_v38  ;;  %v6826_v7 = vadd.f32 %v6818_v27, %v6797_v15  ;;  %v6846_v36 = vmul.f32 %v13222_v57, %v12193_v25  ;;  %v6847_v16 = vmul.f32 %v13222_v57, %v12202_v45 }
 0x8b1   : > { %v6827_v44 = vadd.f32 %v6819_v53, %v6798_v29  ;;  %v6848_v40 = vmul.f32 %v13222_v57, %v12283_v47  ;;  %v6853_v63 = vadd.f32 %v6845_v59, %v6824_v41  ;;  %v6875_v35 = vmul.f32 %v11671_v20, %v12095_v3  ;;  %v12313_v59 = vld [vmem:[#allocation3 + $0x92] sm:$0xff] }
 0x8b2   : > { %v6854_v62 = vadd.f32 %v6846_v36, %v6825_v43  ;;  %v6855_v9 = vadd.f32 %v6847_v16, %v6826_v7  ;;  %v6876_v8 = vmul.f32 %v11671_v20, %v12074_v6  ;;  %v6877_v56 = vmul.f32 %v11671_v20, %v12214_v61  ;;  %13223 = vst [vmem:[#allocation30_spill] sm:$0xff] %v12313_v59 }
 0x8b3   : > { %v6856_v38 = vadd.f32 %v6848_v40, %v6827_v44  ;;  %v6878_v15 = vmul.f32 %v11671_v20, %v12293_v23  ;;  %v6883_v50 = vadd.f32 %v6875_v35, %v6853_v63  ;;  %v6904_v27 = vmul.f32 %v13195_v24, %v12097_v1  ;;  %v12323_v35 = vld [vmem:[#allocation3 + $0x93] sm:$0xff] }
 0x8b4   : > { %v6884_v29 = vadd.f32 %v6876_v8, %v6854_v62  ;;  %v6885_v53 = vadd.f32 %v6877_v56, %v6855_v9  ;;  %v6905_v41 = vmul.f32 %v13195_v24, %v12093_v42  ;;  %v6906_v57 = vmul.f32 %v13195_v24, %v12226_v4  ;;  %13224 = vst [vmem:[#allocation31_spill] sm:$0xff] %v12323_v35 }
 0x8b5   : > { %v6886_v43 = vadd.f32 %v6878_v15, %v6856_v38  ;;  %v6907_v7 = vmul.f32 %v13195_v24, %v12303_v55  ;;  %v6912_v36 = vadd.f32 %v6904_v27, %v6883_v50  ;;  %v6933_v20 = vmul.f32 %v11689_v54, %v12130_v33  ;;  %v12333_v27 = vld [vmem:[#allocation3 + $0x94] sm:$0xff] }
 0x8b6   : > { %v6913_v16 = vadd.f32 %v6905_v41, %v6884_v29  ;;  %v6914_v44 = vadd.f32 %v6906_v57, %v6885_v53  ;;  %v6934_v40 = vmul.f32 %v11689_v54, %v12136_v11  ;;  %v6935_v63 = vmul.f32 %v11689_v54, %v12240_v30  ;;  %13225 = vst [vmem:[#allocation50_spill] sm:$0xff] %v12333_v27 }
 0x8b7   : > { %v6915_v62 = vadd.f32 %v6907_v7, %v6886_v43  ;;  %v6936_v9 = vmul.f32 %v11689_v54, %v12313_v59  ;;  %v6941_v8 = vadd.f32 %v6933_v20, %v6912_v36  ;;  %v6962_v24 = vmul.f32 %v11697_v17, %v12144_v60  ;;  %v13226_v54 = vld [vmem:[#allocation41_spill] sm:$0xff] }
 0x8b8   : > { %v6942_v56 = vadd.f32 %v6934_v40, %v6913_v16  ;;  %v6943_v38 = vadd.f32 %v6935_v63, %v6914_v44  ;;  %v6963_v15 = vmul.f32 %v11697_v17, %v12154_v2  ;;  %v6964_v50 = vmul.f32 %v11697_v17, %v12251_v31  ;;  %v12343_v20 = vld [vmem:[#allocation3 + $0x95] sm:$0xff] }
 0x8b9   : > { %v6944_v29 = vadd.f32 %v6936_v9, %v6915_v62  ;;  %v6965_v53 = vmul.f32 %v11697_v17, %v12323_v35  ;;  %v6970_v41 = vadd.f32 %v6962_v24, %v6941_v8  ;;  %v6991_v57 = vmul.f32 %v13226_v54, %v12162_v19  ;;  %13227 = vst [vmem:[#allocation32_spill] sm:$0xff] %v12343_v20  ;;  %v13228_v17 = vld [vmem:[#allocation42_spill] sm:$0xff]  ;;  %v12353_v24 = vld [vmem:[#allocation3 + $0x96] sm:$0xff] }
 0x8ba   : > { %v6971_v43 = vadd.f32 %v6963_v15, %v6942_v56  ;;  %v6972_v60 = vadd.f32 %v6964_v50, %v6943_v38  ;;  %v6992_v7 = vmul.f32 %v13226_v54, %v12171_v34  ;;  %v6993_v36 = vmul.f32 %v13226_v54, %v12263_v18  ;;  %v13229_v50 = vld [vmem:[#allocation43_spill] sm:$0xff] }
 0x8bb   : > { %v6973_v16 = vadd.f32 %v6965_v53, %v6944_v29  ;;  %v6994_v44 = vmul.f32 %v13226_v54, %v12333_v27  ;;  %v6999_v40 = vadd.f32 %v6991_v57, %v6970_v41  ;;  %v7020_v63 = vmul.f32 %v13228_v17, %v12176_v48  ;;  %v12363_v57 = vld [vmem:[#allocation3 + $0xa0] sm:$0xff] }
 0x8bc   : > { %v7000_v62 = vadd.f32 %v6992_v7, %v6971_v43  ;;  %v7001_v19 = vadd.f32 %v6993_v36, %v6972_v60  ;;  %v7021_v9 = vmul.f32 %v13228_v17, %v12186_v49  ;;  %v7022_v8 = vmul.f32 %v13228_v17, %v12273_v14 }
 0x8bd   : > { %v7002_v56 = vadd.f32 %v6994_v44, %v6973_v16  ;;  %v7023_v38 = vmul.f32 %v13228_v17, %v12343_v20  ;;  %v7028_v15 = vadd.f32 %v7020_v63, %v6999_v40  ;;  %v7049_v29 = vmul.f32 %v13229_v50, %v12193_v25  ;;  %v12373_v63 = vld [vmem:[#allocation3 + $0xa1] sm:$0xff] }
 0x8be   : > { %v7029_v53 = vadd.f32 %v7021_v9, %v7000_v62  ;;  %v7030_v48 = vadd.f32 %v7022_v8, %v7001_v19  ;;  %v7050_v41 = vmul.f32 %v13229_v50, %v12202_v45  ;;  %v7051_v54 = vmul.f32 %v13229_v50, %v12283_v47 }
 0x8bf   : > { %v7031_v43 = vadd.f32 %v7023_v38, %v7002_v56  ;;  %v7052_v60 = vmul.f32 %v13229_v50, %v12353_v24  ;;  %v7057_v7 = vadd.f32 %v7049_v29, %v7028_v15  ;;  %v7078_v36 = vmul.f32 %v11856_v5, %v12074_v6  ;;  %v12383_v50 = vld [vmem:[#allocation3 + $0xa2] sm:$0xff] }
 0x8c0   : > { %v7058_v16 = vadd.f32 %v7050_v41, %v7029_v53  ;;  %v7059_v44 = vadd.f32 %v7051_v54, %v7030_v48  ;;  %v7079_v40 = vmul.f32 %v11856_v5, %v12214_v61  ;;  %v7080_v17 = vmul.f32 %v11856_v5, %v12293_v23  ;;  %v13230_v41 = vld [vmem:[#allocation55_spill] sm:$0xff] }
 0x8c1   : > { %v7060_v62 = vadd.f32 %v7052_v60, %v7031_v43  ;;  %v7081_v19 = vmul.f32 %v11856_v5, %v12363_v57  ;;  %v7086_v9 = vadd.f32 %v7078_v36, %v7057_v7  ;;  %v7107_v8 = vmul.f32 %v11878_v0, %v12093_v42  ;;  %v13231_v43 = vld [vmem:[#allocation51_spill] sm:$0xff] }
 0x8c2   : > { %v7087_v56 = vadd.f32 %v7079_v40, %v7058_v16  ;;  %v7088_v6 = vadd.f32 %v7080_v17, %v7059_v44  ;;  %v7108_v38 = vmul.f32 %v11878_v0, %v12226_v4  ;;  %v7109_v15 = vmul.f32 %v11878_v0, %v12303_v55  ;;  %v12395_v16 = vld [vmem:[#allocation3 + $0xa3] sm:$0xff] }
 0x8c3   : > { %v7089_v29 = vadd.f32 %v7081_v19, %v7060_v62  ;;  %v7110_v53 = vmul.f32 %v11878_v0, %v12373_v63  ;;  %v7115_v48 = vadd.f32 %v7107_v8, %v7086_v9  ;;  %v7136_v5 = vmul.f32 %v11900_v10, %v12136_v11  ;;  %v13232_v62 = vld [vmem:[#allocation40_spill] sm:$0xff]  ;;  %v12405_v8 = vld [vmem:[#allocation3 + $0xa4] sm:$0xff] }
 0x8c4   : > { %v7251_v54 = vmul.f32 %v13230_v41, %v12193_v25  ;;  %v7229_v60 = vadd.f32 %v13231_v43, %v12243_v13  ;;  %v7116_v7 = vadd.f32 %v7108_v38, %v7087_v56  ;;  %v7137_v36 = vmul.f32 %v11900_v10, %v12240_v30 }
 0x8c5   : > { %v7117_v44 = vadd.f32 %v7109_v15, %v7088_v6  ;;  %v7118_v40 = vadd.f32 %v7110_v53, %v7089_v29  ;;  %v7139_v0 = vmul.f32 %v11900_v10, %v12383_v50  ;;  %v7144_v17 = vadd.f32 %v7136_v5, %v7115_v48  ;;  %v12418_v48 = vld [vmem:[#allocation3 + $0xa5] sm:$0xff] }
 0x8c6   : > { %v7287_v19 = vadd.f32 %v13232_v62, %v12221_v52  ;;  %v7230_v25 = vadd.f32 %v12210_v58, %v12253_v39  ;;  %v7145_v9 = vadd.f32 %v7137_v36, %v7116_v7  ;;  %v7166_v13 = vmul.f32 %v11913_v26, %v12251_v31  ;;  %v13233_v58 = vld [vmem:[#allocation53_spill] sm:$0xff]  ;;  %13234 = vst [vmem:[#allocation33_spill] sm:$0xff] %v12418_v48  ;;  %v13235_v36 = vld [vmem:[#allocation52_spill] sm:$0xff] }
 0x8c7   : > { %v7138_v56 = vmul.f32 %v11900_v10, %v12313_v59  ;;  %v7147_v6 = vadd.f32 %v7139_v0, %v7118_v40  ;;  %v7165_v38 = vmul.f32 %v11913_v26, %v12154_v2  ;;  %v7168_v15 = vmul.f32 %v11913_v26, %v12395_v16 }
 0x8c8   : > { %v7280_v52 = vmul.f32 %v11754_v22, %v12095_v3  ;;  %v7258_v39 = vadd.f32 %v13233_v58, %v7229_v60  ;;  %v7174_v29 = vadd.f32 %v7166_v13, %v7145_v9  ;;  %v7195_v53 = vmul.f32 %v11940_v12, %v12263_v18 }
 0x8c9   : > { %v7146_v5 = vadd.f32 %v7138_v56, %v7117_v44  ;;  %v7173_v10 = vadd.f32 %v7165_v38, %v7144_v17  ;;  %v7176_v43 = vadd.f32 %v7168_v15, %v7147_v6  ;;  %v7197_v7 = vmul.f32 %v11940_v12, %v12405_v8  ;;  %v12431_v17 = vld [vmem:[#allocation3 + $0xa6] sm:$0xff]  ;;  %v13238_v56 = vld [vmem:[#allocation44_spill] sm:$0xff] }
 0x8ca   : > { %v7316_v40 = vadd.f32 %v13235_v36, %v7287_v19  ;;  %v7259_v0 = vadd.f32 %v7251_v54, %v7230_v25  ;;  %v7203_v62 = vadd.f32 %v7195_v53, %v7174_v29  ;;  %v7224_v3 = vmul.f32 %v11945_v51, %v12273_v14  ;;  %13236 = vst [vmem:[#allocation56_spill] sm:$0xff] %v12431_v17  ;;  %v12436_v54 = vld [vmem:[%s13032_s9 + $0x1f] ss:$0 sm:$0xff] }
 0x8cb   : > { %v7167_v60 = vmul.f32 %v11913_v26, %v12323_v35  ;;  %v7194_v9 = vmul.f32 %v11940_v12, %v12171_v34  ;;  %v7205_v13 = vadd.f32 %v7197_v7, %v7176_v43  ;;  %v7226_v44 = vmul.f32 %v11945_v51, %v12418_v48  ;;  %v13237_v19 = vld [vmem:[#allocation57_spill] sm:$0xff] }
 0x8cc   : > { %v7344_v25 = vadd.f32 %v13237_v19, %v12142_v32  ;;  %v7310_v26 = vmul.f32 %v13238_v56, %v12093_v42  ;;  %v7232_v6 = vadd.f32 %v7224_v3, %v7203_v62  ;;  %v7253_v38 = vmul.f32 %v13230_v41, %v12283_v47  ;;  %v13239_v62 = vld [vmem:[#allocation54_spill] sm:$0xff] }
 0x8cd   : > { %v7288_v15 = vadd.f32 %v7280_v52, %v7258_v39  ;;  %v7175_v58 = vadd.f32 %v7167_v60, %v7146_v5  ;;  %v7202_v29 = vadd.f32 %v7194_v9, %v7173_v10  ;;  %v7234_v53 = vadd.f32 %v7226_v44, %v7205_v13  ;;  %v12454_v39 = vld [vmem:[#allocation3 + $0xb3] sm:$0xff] }
 0x8ce   : > { %v7255_v43 = vmul.f32 %v13230_v41, %v12431_v17  ;;  %v7261_v7 = vadd.f32 %v7253_v38, %v7232_v6  ;;  %v7283_v36 = vmul.f32 %v11754_v22, %v12293_v23  ;;  %v7289_v32 = vadd.f32 %v12134_v46, %v7259_v0  ;;  %13240 = vst [vmem:[#allocation34_spill] sm:$0xff] %v12454_v39 }
 0x8cf   : > { %v7365_v42 = vmul.f32 %v12436_v54, %v11776_v37  ;;  %v7345_v3 = vadd.f32 %v13239_v62, %v7316_v40  ;;  %v7309_v52 = vmul.f32 %v13238_v56, %v12097_v1  ;;  %v7196_v5 = vmul.f32 %v11940_v12, %v12333_v27  ;;  %v13241_v40 = vld [vmem:[#allocation45_spill] sm:$0xff]  ;;  %v12467_v1 = vld [vmem:[%s13032_s9 + $0x20] ss:$0 sm:$0xff] }
 0x8d0   : > { %v7223_v10 = vmul.f32 %v11945_v51, %v12186_v49  ;;  %v7263_v60 = vadd.f32 %v7255_v43, %v7234_v53  ;;  %v7291_v9 = vadd.f32 %v7283_v36, %v7261_v7  ;;  %v7318_v13 = vadd.f32 %v7310_v26, %v7289_v32  ;;  %v12482_v36 = vld [vmem:[#allocation3 + $0x63] sm:$0xff]  ;;  %v12490_v62 = vld [vmem:[#allocation3 + $0xb4] sm:$0xff] }
 0x8d1   : > { %v7366_v46 = vmul.f32 %v12436_v54, %v12021_v28  ;;  %v7317_v37 = vadd.f32 %v7309_v52, %v7288_v15  ;;  %v7204_v0 = vadd.f32 %v7196_v5, %v7175_v58  ;;  %v7339_v44 = vmul.f32 %v13241_v40, %v12136_v11  ;;  %13244 = vst [vmem:[#allocation35_spill] sm:$0xff] %v12490_v62 }
 0x8d2   : > { %v7373_v12 = vadd.f32 %v7365_v42, %v7344_v25  ;;  %v12471_v19 = vmul.f32 %v12436_v54, %v12454_v39  ;;  %v7231_v6 = vadd.f32 %v7223_v10, %v7202_v29  ;;  %v7312_v26 = vmul.f32 %v13238_v56, %v12303_v55  ;;  %v13242_v25 = vld [vmem:[#allocation47_spill] sm:$0xff]  ;;  %v13243_v56 = vld [vmem:[#allocation46_spill] sm:$0xff] }
 0x8d3   : > { %v7338_v28 = vmul.f32 %v13241_v40, %v12130_v33  ;;  %v7374_v38 = vadd.f32 %v7366_v46, %v7345_v3  ;;  %v7225_v15 = vmul.f32 %v11945_v51, %v12343_v20  ;;  %v7347_v58 = vadd.f32 %v7339_v44, %v7318_v13  ;;  %v12495_v3 = vld [vmem:[%s13032_s9 + $0x21] ss:$0 sm:$0xff] }
 0x8d4   : > { %v7252_v53 = vmul.f32 %v13230_v41, %v12202_v45  ;;  %v7293_v43 = vadd.f32 %v13242_v25, %v7263_v60  ;;  %v7320_v7 = vadd.f32 %v7312_v26, %v7291_v9  ;;  %v7368_v29 = vmul.f32 %v12436_v54, %v12154_v2  ;;  %v7410_v9 = vld [vmem:[#allocation3 + $0x45] sm:$0xff]  ;;  %v12520_v25 = vld [vmem:[%s13032_s9 + $0x22] ss:$0 sm:$0xff] }
 0x8d5   : > { %v7394_v32 = vmul.f32 %v12467_v1, %v13243_v56  ;;  %v7395_v33 = vmul.f32 %v12467_v1, %v12028_v21  ;;  %v7346_v42 = vadd.f32 %v7338_v28, %v7317_v37  ;;  %v7233_v51 = vadd.f32 %v7225_v15, %v7204_v0  ;;  %v12505_v0 = vld [vmem:[#allocation3 + $0x55] sm:$0xff]  ;;  %v12510_v28 = vld [vmem:[#allocation3 + $0x64] sm:$0xff] }
 0x8d6   : > { %v7260_v52 = vadd.f32 %v7252_v53, %v7231_v6  ;;  %v7341_v5 = vmul.f32 %v13241_v40, %v12313_v59  ;;  %v7376_v10 = vadd.f32 %v7368_v29, %v7347_v58  ;;  %v7397_v60 = vmul.f32 %v12467_v1, %v12171_v34  ;;  %v13245_v6 = vld [vmem:[#allocation48_spill] sm:$0xff]  ;;  %v7439_v56 = vld [vmem:[#allocation3 + $0x46] sm:$0xff] }
 0x8d7   : > { %v7402_v13 = vadd.f32 %v7394_v32, %v7373_v12  ;;  %v7403_v21 = vadd.f32 %v7395_v33, %v7374_v38  ;;  %v7254_v46 = vmul.f32 %v13230_v41, %v12353_v24  ;;  %v7367_v37 = vmul.f32 %v12436_v54, %v12482_v36  ;;  %v12515_v53 = vld [vmem:[#allocation3 + $0xb5] sm:$0xff] }
 0x8d8   : > { %v7282_v44 = vmul.f32 %v11754_v22, %v12214_v61  ;;  %v7322_v40 = vadd.f32 %v13245_v6, %v7293_v43  ;;  %v7349_v26 = vadd.f32 %v7341_v5, %v7320_v7  ;;  %v7405_v15 = vadd.f32 %v7397_v60, %v7376_v10  ;;  %13246 = vst [vmem:[#allocation36_spill] sm:$0xff] %v12515_v53  ;;  %v10241_v32 = vld [vmem:[%s13032_s9 + $0x1c] ss:$0 sm:$0xff] }
 0x8d9   : > { %v7401_v12 = vmul.f32 %v12467_v1, %v12490_v62  ;;  %v7262_v38 = vadd.f32 %v7254_v46, %v7233_v51  ;;  %v7375_v58 = vadd.f32 %v7367_v37, %v7346_v42  ;;  %v7423_v41 = vmul.f32 %v12495_v3, %v7410_v9  ;;  %v10242_v42 = vld [vmem:[%s13032_s9 + $0x1d] ss:$0 sm:$0xff]  ;;  %v12541_v37 = vld [vmem:[#allocation3 + $0x65] sm:$0xff]  ;;  %v12548_v62 = vld [vmem:[%s13032_s9 + $0x23] ss:$0 sm:$0xff] }
 0x8da   : > { %v7290_v22 = vadd.f32 %v7282_v44, %v7260_v52  ;;  %v7370_v43 = vmul.f32 %v12436_v54, %v12323_v35  ;;  %v7424_v7 = vmul.f32 %v12495_v3, %v12505_v0  ;;  %v7426_v29 = vmul.f32 %v12495_v3, %v12186_v49  ;;  %v12538_v10 = vld [vmem:[#allocation3 + $0x56] sm:$0xff] }
 0x8db   : > { %v7284_v33 = vmul.f32 %v10241_v32, %v12363_v57  ;;  %v7311_v51 = vmul.f32 %v10242_v42, %v12226_v4  ;;  %v7396_v52 = vmul.f32 %v12467_v1, %v12510_v28  ;;  %v7431_v5 = vadd.f32 %v7423_v41, %v7402_v13  ;;  %v13247_v60 = vld [vmem:[#allocation49_spill] sm:$0xff] }
 0x8dc   : > { %v7351_v9 = vadd.f32 %v13247_v60, %v7322_v40  ;;  %v7378_v46 = vadd.f32 %v7370_v43, %v7349_v26  ;;  %v7432_v44 = vadd.f32 %v7424_v7, %v7403_v21  ;;  %v7434_v6 = vadd.f32 %v7426_v29, %v7405_v15  ;;  %v12551_v41 = vld [vmem:[#allocation3 + $0xb6] sm:$0xff]  ;;  %v12559_v7 = vld [vmem:[#allocation3 + $0x60] sm:$0xff] }
 0x8dd   : > { %v7430_v32 = vmul.f32 %v12495_v3, %v12515_v53  ;;  %v7292_v35 = vadd.f32 %v7284_v33, %v7262_v38  ;;  %v7404_v39 = vadd.f32 %v7396_v52, %v7375_v58  ;;  %v7452_v13 = vmul.f32 %v12520_v25, %v7439_v56  ;;  %13248 = vst [vmem:[#allocation37_spill] sm:$0xff] %v12551_v41  ;;  %v7469_v43 = vld [vmem:[#allocation3 + $0x50] sm:$0xff]  ;;  %v10243_v58 = vld [vmem:[%s13032_s9 + $0x1e] ss:$0 sm:$0xff]  ;;  %v12569_v52 = vld [vmem:[#allocation3 + $0x66] sm:$0xff] }
 0x8de   : > { %v7319_v40 = vadd.f32 %v7311_v51, %v7290_v22  ;;  %v7399_v26 = vmul.f32 %v12467_v1, %v12333_v27  ;;  %v7453_v21 = vmul.f32 %v12520_v25, %v12538_v10  ;;  %v7455_v15 = vmul.f32 %v12520_v25, %v12202_v45 }
 0x8df   : > { %v7313_v38 = vmul.f32 %v10242_v42, %v12373_v63  ;;  %v7340_v22 = vmul.f32 %v10243_v58, %v12240_v30  ;;  %v7425_v29 = vmul.f32 %v12495_v3, %v12541_v37  ;;  %v7460_v56 = vadd.f32 %v7452_v13, %v7431_v5  ;;  %v12579_v5 = vld [vmem:[%s13032_s9 + $0x24] ss:$0 sm:$0xff] }
 0x8e0   : > { %v7380_v33 = vadd.f32 %v12471_v19, %v7351_v9  ;;  %v7407_v51 = vadd.f32 %v7399_v26, %v7378_v46  ;;  %v7461_v60 = vadd.f32 %v7453_v21, %v7432_v44  ;;  %v7463_v53 = vadd.f32 %v7455_v15, %v7434_v6  ;;  %v7498_v6 = vld [vmem:[#allocation3 + $0x51] sm:$0xff] }
 0x8e1   : > { %v7459_v42 = vmul.f32 %v12520_v25, %v12551_v41  ;;  %v7433_v27 = vadd.f32 %v7425_v29, %v7404_v39  ;;  %v7482_v45 = vmul.f32 %v12548_v62, %v7469_v43  ;;  %v7483_v59 = vmul.f32 %v12548_v62, %v12559_v7  ;;  %v12585_v39 = vld [vmem:[#allocation3 + $0x61] sm:$0xff] }
 0x8e2   : > { %v7321_v19 = vadd.f32 %v7313_v38, %v7292_v35  ;;  %v7348_v9 = vadd.f32 %v7340_v22, %v7319_v40  ;;  %v7428_v46 = vmul.f32 %v12495_v3, %v12343_v20  ;;  %v7485_v44 = vmul.f32 %v12548_v62, %v12214_v61  ;;  %v12592_v38 = vld [vmem:[#allocation3 + $0x70] sm:$0xff]  ;;  %v12597_v29 = vld [vmem:[%s13032_s9 + $0x25] ss:$0 sm:$0xff] }
 0x8e3   : > { %v7342_v13 = vmul.f32 %v10243_v58, %v12383_v50  ;;  %v7454_v26 = vmul.f32 %v12520_v25, %v12569_v52  ;;  %v7490_v21 = vadd.f32 %v7482_v45, %v7460_v56  ;;  %v7491_v15 = vadd.f32 %v7483_v59, %v7461_v60  ;;  %v7527_v56 = vld [vmem:[#allocation3 + $0x52] sm:$0xff] }
 0x8e4   : > { %v7369_v35 = vmul.f32 %v12436_v54, %v12251_v31  ;;  %v7409_v40 = vadd.f32 %v7401_v12, %v7380_v33  ;;  %v7436_v43 = vadd.f32 %v7428_v46, %v7407_v51  ;;  %v7493_v22 = vadd.f32 %v7485_v44, %v7463_v53  ;;  %v12604_v12 = vld [vmem:[#allocation3 + $0x62] sm:$0xff] }
 0x8e5   : > { %v7462_v41 = vadd.f32 %v7454_v26, %v7433_v27  ;;  %v7511_v58 = vmul.f32 %v12579_v5, %v7498_v6  ;;  %v7512_v45 = vmul.f32 %v12579_v5, %v12585_v39  ;;  %v7514_v59 = vmul.f32 %v12579_v5, %v12226_v4  ;;  %v12606_v33 = vld [vmem:[#allocation3 + $0xc0] sm:$0xff]  ;;  %v12614_v4 = vld [vmem:[#allocation3 + $0x71] sm:$0xff] }
 0x8e6   : > { %v7350_v53 = vadd.f32 %v7342_v13, %v7321_v19  ;;  %v7371_v51 = vmul.f32 %v12436_v54, %v12395_v16  ;;  %v7377_v60 = vadd.f32 %v7369_v35, %v7348_v9  ;;  %v7457_v27 = vmul.f32 %v12520_v25, %v12353_v24  ;;  %v12624_v9 = vld [vmem:[%s13032_s9 + $0x26] ss:$0 sm:$0xff] }
 0x8e7   : > { %v7484_v46 = vmul.f32 %v12548_v62, %v12592_v38  ;;  %v7519_v44 = vadd.f32 %v7511_v58, %v7490_v21  ;;  %v7520_v6 = vadd.f32 %v7512_v45, %v7491_v15  ;;  %v7522_v26 = vadd.f32 %v7514_v59, %v7493_v22  ;;  %v7556_v15 = vld [vmem:[#allocation3 + $0x53] sm:$0xff] }
 0x8e8   : > { %v7438_v20 = vadd.f32 %v7430_v32, %v7409_v40  ;;  %v7465_v31 = vadd.f32 %v7457_v27, %v7436_v43  ;;  %v7540_v61 = vmul.f32 %v12597_v29, %v7527_v56  ;;  %v7541_v19 = vmul.f32 %v12597_v29, %v12604_v12  ;;  %v7585_v27 = vld [vmem:[#allocation3 + $0x54] sm:$0xff] }
 0x8e9   : > { %v7489_v54 = vmul.f32 %v12548_v62, %v12606_v33  ;;  %v7398_v13 = vmul.f32 %v12467_v1, %v12263_v18  ;;  %v7492_v32 = vadd.f32 %v7484_v46, %v7462_v41  ;;  %v7543_v21 = vmul.f32 %v12597_v29, %v12240_v30  ;;  %v12641_v30 = vld [vmem:[%s13032_s9 + $0x27] ss:$0 sm:$0xff] }
 0x8ea   : > { %v7379_v35 = vadd.f32 %v7371_v51, %v7350_v53  ;;  %v7487_v40 = vmul.f32 %v12548_v62, %v12363_v57  ;;  %v7548_v43 = vadd.f32 %v7540_v61, %v7519_v44  ;;  %v7549_v22 = vadd.f32 %v7541_v19, %v7520_v6 }
 0x8eb   : > { %v7400_v58 = vmul.f32 %v12467_v1, %v12405_v8  ;;  %v7406_v45 = vadd.f32 %v7398_v13, %v7377_v60  ;;  %v7513_v59 = vmul.f32 %v12579_v5, %v12614_v4  ;;  %v12636_v56 = vadd.f32 %v7543_v21, %v7522_v26  ;;  %v12646_v1 = vld [vmem:[#allocation3 + $0xc1] sm:$0xff] }
 0x8ec   : > { %v7467_v41 = vadd.f32 %v7459_v42, %v7438_v20  ;;  %v7495_v53 = vadd.f32 %v7487_v40, %v7465_v31  ;;  %v7569_v51 = vmul.f32 %v12624_v9, %v7556_v15  ;;  %v7570_v61 = vmul.f32 %v12624_v9, %v12482_v36 }
 0x8ed   : > { %v7427_v60 = vmul.f32 %v12495_v3, %v12273_v14  ;;  %v7521_v46 = vadd.f32 %v7513_v59, %v7492_v32  ;;  %v7408_v44 = vadd.f32 %v7400_v58, %v7379_v35  ;;  %v7516_v6 = vmul.f32 %v12579_v5, %v12373_v63  ;;  %v12662_v32 = vld [vmem:[%s13032_s9 + $0x28] ss:$0 sm:$0xff]  ;;  %v12670_v59 = vld [vmem:[#allocation3 + $0xb0] sm:$0xff] }
 0x8ee   : > { %v7577_v26 = vadd.f32 %v7569_v51, %v7548_v43  ;;  %v7578_v19 = vadd.f32 %v7570_v61, %v7549_v22  ;;  %v7542_v31 = vmul.f32 %v12597_v29, %v12136_v11  ;;  %v7598_v42 = vmul.f32 %v12641_v30, %v7585_v27  ;;  %v12666_v43 = vld [vmem:[#allocation3 + $0xc2] sm:$0xff] }
 0x8ef   : > { %v7435_v20 = vadd.f32 %v7427_v60, %v7406_v45  ;;  %v7599_v13 = vmul.f32 %v12641_v30, %v12510_v28  ;;  %v7518_v21 = vmul.f32 %v12579_v5, %v12646_v1  ;;  %v7429_v15 = vmul.f32 %v12495_v3, %v12418_v48  ;;  %v12679_v3 = vld [vmem:[%s13032_s9 + $0x29] ss:$0 sm:$0xff] }
 0x8f0   : > { %v7497_v35 = vadd.f32 %v7489_v54, %v7467_v41  ;;  %v7524_v40 = vadd.f32 %v7516_v6, %v7495_v53  ;;  %v7456_v11 = vmul.f32 %v12520_v25, %v12283_v47  ;;  %v7550_v22 = vadd.f32 %v7542_v31, %v7521_v46 }
 0x8f1   : > { %v7606_v58 = vadd.f32 %v7598_v42, %v7577_v26  ;;  %v7607_v45 = vadd.f32 %v7599_v13, %v7578_v19  ;;  %v7488_v51 = vmul.f32 %v12670_v59, %v12548_v62  ;;  %v7437_v61 = vadd.f32 %v7429_v15, %v7408_v44  ;;  %v12689_v44 = vld [vmem:[#allocation3 + $0xc3] sm:$0xff] }
 0x8f2   : > { %v7545_v27 = vmul.f32 %v12597_v29, %v12383_v50  ;;  %v7464_v54 = vadd.f32 %v7456_v11, %v7435_v20  ;;  %v7571_v41 = vmul.f32 %v12624_v9, %v12154_v2  ;;  %v7627_v53 = vmul.f32 %v12662_v32, %v12505_v0 }
 0x8f3   : > { %v7628_v60 = vmul.f32 %v12662_v32, %v12541_v37  ;;  %v7547_v46 = vmul.f32 %v12597_v29, %v12666_v43  ;;  %v7458_v6 = vmul.f32 %v12520_v25, %v12431_v17  ;;  %v7526_v26 = vadd.f32 %v7518_v21, %v7497_v35 }
 0x8f4   : > { %v7553_v19 = vadd.f32 %v7545_v27, %v7524_v40  ;;  %v7486_v20 = vmul.f32 %v12548_v62, %v12293_v23  ;;  %v7579_v2 = vadd.f32 %v7571_v41, %v7550_v22  ;;  %v7635_v31 = vadd.f32 %v7627_v53, %v7606_v58  ;;  %v12706_v62 = vld [vmem:[%s13032_s9 + $0x2a] ss:$0 sm:$0xff] }
 0x8f5   : > { %v7636_v42 = vadd.f32 %v7628_v60, %v7607_v45  ;;  %v7466_v0 = vadd.f32 %v7458_v6, %v7437_v61  ;;  %v7574_v13 = vmul.f32 %v12624_v9, %v12395_v16  ;;  %v7656_v15 = vmul.f32 %v12679_v3, %v12538_v10  ;;  %v12710_v40 = vld [vmem:[#allocation3 + $0xc4] sm:$0xff]  ;;  %v12712_v61 = vld [vmem:[#allocation3 + $0xb1] sm:$0xff] }
 0x8f6   : > { %v7657_v11 = vmul.f32 %v12679_v3, %v12569_v52  ;;  %v7576_v25 = vmul.f32 %v12624_v9, %v12689_v44  ;;  %v7494_v21 = vadd.f32 %v7486_v20, %v7464_v54  ;;  %v7600_v35 = vmul.f32 %v12641_v30, %v12171_v34  ;;  %13249 = vst [vmem:[#allocation38_spill] sm:$0xff] %v12710_v40  ;;  %v12721_v54 = vld [vmem:[%s13032_s9 + $0x2b] ss:$0 sm:$0xff] }
 0x8f7   : > { %v7555_v22 = vadd.f32 %v7547_v46, %v7526_v26  ;;  %v7582_v58 = vadd.f32 %v7574_v13, %v7553_v19  ;;  %v7664_v10 = vadd.f32 %v7656_v15, %v7635_v31  ;;  %v7517_v27 = vmul.f32 %v12712_v61, %v12579_v5 }
 0x8f8   : > { %v7665_v45 = vadd.f32 %v7657_v11, %v7636_v42  ;;  %v7515_v41 = vmul.f32 %v12579_v5, %v12303_v55  ;;  %v7608_v53 = vadd.f32 %v7600_v35, %v7579_v2  ;;  %v7496_v34 = vadd.f32 %v7488_v51, %v7466_v0  ;;  %v12731_v5 = vld [vmem:[#allocation3 + $0xc5] sm:$0xff] }
 0x8f9   : > { %v7603_v60 = vmul.f32 %v12641_v30, %v12405_v8  ;;  %v7686_v46 = vmul.f32 %v12706_v62, %v12559_v7  ;;  %v7687_v6 = vmul.f32 %v12706_v62, %v12592_v38  ;;  %v7605_v26 = vmul.f32 %v12641_v30, %v12710_v40  ;;  %13250 = vst [vmem:[#allocation39_spill] sm:$0xff] %v12731_v5  ;;  %v12738_v7 = vld [vmem:[%s13032_s9 + $0x2c] ss:$0 sm:$0xff]  ;;  %v13251_v0 = vld [vmem:[#allocation30_spill] sm:$0xff] }
 0x8fa   : > { %v7523_v19 = vadd.f32 %v7515_v41, %v7494_v21  ;;  %v7629_v20 = vmul.f32 %v12662_v32, %v12186_v49  ;;  %v7584_v2 = vadd.f32 %v7576_v25, %v7555_v22  ;;  %v7544_v38 = vmul.f32 %v12597_v29, %v13251_v0  ;;  %v7732_v49 = vld [vmem:[#allocation3 + $0x72] sm:$0xff] }
 0x8fb   : > { %v7611_v51 = vadd.f32 %v7603_v60, %v7582_v58  ;;  %v7694_v31 = vadd.f32 %v7686_v46, %v7664_v10  ;;  %v7695_v42 = vadd.f32 %v7687_v6, %v7665_v45  ;;  %v7715_v15 = vmul.f32 %v12721_v54, %v12585_v39  ;;  %v10246_v25 = vld [vmem:[#allocation3 + $0xb2] sm:$0xff]  ;;  %v13252_v45 = vld [vmem:[#allocation26_spill] sm:$0xff] }
 0x8fc   : > { %v7637_v13 = vadd.f32 %v7629_v20, %v7608_v53  ;;  %v7716_v11 = vmul.f32 %v12721_v54, %v12614_v4  ;;  %v7546_v21 = vmul.f32 %v10246_v25, %v12597_v29  ;;  %v7634_v35 = vmul.f32 %v12662_v32, %v12731_v5  ;;  %v12753_v60 = vld [vmem:[#allocation3 + $0xc6] sm:$0xff]  ;;  %v13263_v0 = vld [vmem:[#allocation37_spill] sm:$0xff] }
 0x8fd   : > { %v7525_v22 = vadd.f32 %v7517_v27, %v7496_v34  ;;  %v7632_v58 = vmul.f32 %v12662_v32, %v12418_v48  ;;  %v7552_v10 = vadd.f32 %v7544_v38, %v7523_v19  ;;  %v7658_v41 = vmul.f32 %v12679_v3, %v13252_v45  ;;  %13253 = vst [vmem:[#allocation41_spill] sm:$0xff] %v12753_v60  ;;  %v13254_v20 = vld [vmem:[#allocation34_spill] sm:$0xff]  ;;  %v12763_v34 = vld [vmem:[%s13032_s9 + $0x2d] ss:$0 sm:$0xff]  ;;  %v7761_v38 = vld [vmem:[#allocation3 + $0x73] sm:$0xff] }
 0x8fe   : > { %v7723_v53 = vadd.f32 %v7715_v15, %v7694_v31  ;;  %v7724_v39 = vadd.f32 %v7716_v11, %v7695_v42  ;;  %v7613_v4 = vadd.f32 %v7605_v26, %v7584_v2  ;;  %v7744_v29 = vmul.f32 %v12738_v7, %v12604_v12  ;;  %v13255_v19 = vld [vmem:[#allocation31_spill] sm:$0xff]  ;;  %v7680_v11 = vld [vmem:[#allocation3 + $0xd0] sm:$0xff] }
 0x8ff   : > { %v7640_v46 = vadd.f32 %v7632_v58, %v7611_v51  ;;  %v7745_v6 = vmul.f32 %v12738_v7, %v7732_v49  ;;  %v7575_v27 = vmul.f32 %v12624_v9, %v13254_v20  ;;  %v7573_v31 = vmul.f32 %v12624_v9, %v13255_v19  ;;  %v13256_v58 = vld [vmem:[#allocation27_spill] sm:$0xff] }
 0x900   : > { %v7666_v42 = vadd.f32 %v7658_v41, %v7637_v13  ;;  %v7554_v26 = vadd.f32 %v7546_v21, %v7525_v22  ;;  %v7661_v2 = vmul.f32 %v12679_v3, %v12431_v17  ;;  %v7752_v12 = vadd.f32 %v7744_v29, %v7723_v53  ;;  %v12780_v21 = vld [vmem:[%s13032_s9 + $0x2e] ss:$0 sm:$0xff] }
 0x901   : > { %v7753_v51 = vadd.f32 %v7745_v6, %v7724_v39  ;;  %v7663_v15 = vmul.f32 %v12679_v3, %v12753_v60  ;;  %v7581_v49 = vadd.f32 %v7573_v31, %v7552_v10  ;;  %v7688_v45 = vmul.f32 %v12706_v62, %v13256_v58  ;;  %v7790_v39 = vld [vmem:[#allocation3 + $0x74] sm:$0xff]  ;;  %v13257_v10 = vld [vmem:[#allocation35_spill] sm:$0xff]  ;;  %v13258_v6 = vld [vmem:[#allocation50_spill] sm:$0xff] }
 0x902   : > { %v7773_v5 = vmul.f32 %v12763_v34, %v12482_v36  ;;  %v7691_v13 = vmul.f32 %v12670_v59, %v12706_v62  ;;  %v7642_v22 = vadd.f32 %v7634_v35, %v7613_v4  ;;  %v7669_v41 = vadd.f32 %v7661_v2, %v7640_v46  ;;  %v13259_v60 = vld [vmem:[#allocation36_spill] sm:$0xff]  ;;  %v12793_v4 = vld [vmem:[%s13032_s9 + $0x2f] ss:$0 sm:$0xff] }
 0x903   : > { %v7774_v53 = vmul.f32 %v12763_v34, %v7761_v38  ;;  %v7604_v29 = vmul.f32 %v12641_v30, %v13257_v10  ;;  %v7602_v31 = vmul.f32 %v12641_v30, %v13258_v6  ;;  %v7696_v36 = vadd.f32 %v7688_v45, %v7666_v42  ;;  %v7709_v35 = vld [vmem:[#allocation3 + $0xd1] sm:$0xff] }
 0x904   : > { %v7781_v58 = vadd.f32 %v7773_v5, %v7752_v12  ;;  %v7633_v59 = vmul.f32 %v12662_v32, %v13259_v60  ;;  %v7693_v17 = vmul.f32 %v12706_v62, %v7680_v11  ;;  %v7583_v19 = vadd.f32 %v7575_v27, %v7554_v26  ;;  %v13260_v38 = vld [vmem:[#allocation28_spill] sm:$0xff]  ;;  %v13261_v26 = vld [vmem:[#allocation29_spill] sm:$0xff] }
 0x905   : > { %v7782_v48 = vadd.f32 %v7774_v53, %v7753_v51  ;;  %v7610_v46 = vadd.f32 %v7602_v31, %v7581_v49  ;;  %v7717_v2 = vmul.f32 %v12721_v54, %v13260_v38  ;;  %v7802_v5 = vmul.f32 %v12780_v21, %v12510_v28  ;;  %v7819_v12 = vld [vmem:[#allocation3 + $0x75] sm:$0xff]  ;;  %v7733_v53 = vld [vmem:[#allocation3 + $0x82] sm:$0xff] }
 0x906   : > { %v7803_v42 = vmul.f32 %v12780_v21, %v7790_v39  ;;  %v7720_v27 = vmul.f32 %v12712_v61, %v12721_v54  ;;  %v7572_v51 = vmul.f32 %v12624_v9, %v13261_v26  ;;  %v7671_v11 = vadd.f32 %v7663_v15, %v7642_v22  ;;  %v13262_v6 = vld [vmem:[#allocation32_spill] sm:$0xff] }
 0x907   : > { %v7699_v45 = vadd.f32 %v7691_v13, %v7669_v41  ;;  %v7631_v49 = vmul.f32 %v12662_v32, %v13262_v6  ;;  %v7725_v31 = vadd.f32 %v7717_v2, %v7696_v36  ;;  %v7810_v38 = vadd.f32 %v7802_v5, %v7781_v58  ;;  %v12811_v61 = vld [vmem:[%s13032_s9 + $0x30] ss:$0 sm:$0xff]  ;;  %v7848_v13 = vld [vmem:[#allocation3 + $0x76] sm:$0xff]  ;;  %v7762_v2 = vld [vmem:[#allocation3 + $0x83] sm:$0xff] }
 0x908   : > { %v7811_v40 = vadd.f32 %v7803_v42, %v7782_v48  ;;  %v7722_v28 = vmul.f32 %v12721_v54, %v7709_v35  ;;  %v7749_v39 = vmul.f32 %v10246_v25, %v12738_v7  ;;  %v7831_v9 = vmul.f32 %v12793_v4, %v12541_v37  ;;  %v7738_v22 = vld [vmem:[#allocation3 + $0xd2] sm:$0xff] }
 0x909   : > { %v7832_v15 = vmul.f32 %v12793_v4, %v7819_v12  ;;  %v7580_v41 = vadd.f32 %v7572_v51, %v12636_v56  ;;  %v7612_v36 = vadd.f32 %v7604_v29, %v7583_v19  ;;  %v7639_v48 = vadd.f32 %v7631_v49, %v7610_v46 }
 0x90a   : > { %v7746_v58 = vmul.f32 %v12738_v7, %v7733_v53  ;;  %v7701_v35 = vadd.f32 %v7693_v17, %v7671_v11  ;;  %v7728_v25 = vadd.f32 %v7720_v27, %v7699_v45  ;;  %v7839_v5 = vadd.f32 %v7831_v9, %v7810_v38  ;;  %v7767_v27 = vld [vmem:[#allocation3 + $0xd3] sm:$0xff]  ;;  %v7791_v53 = vld [vmem:[#allocation3 + $0x84] sm:$0xff] }
 0x90b   : > { %v7840_v42 = vadd.f32 %v7832_v15, %v7811_v40  ;;  %v7601_v26 = vmul.f32 %v12641_v30, %v12263_v18  ;;  %v7860_v37 = vmul.f32 %v12811_v61, %v12569_v52  ;;  %v7861_v12 = vmul.f32 %v12811_v61, %v7848_v13 }
 0x90c   : > { %v7754_v6 = vadd.f32 %v7746_v58, %v7725_v31  ;;  %v7662_v56 = vmul.f32 %v12679_v3, %v13263_v0  ;;  %v7751_v19 = vmul.f32 %v12738_v7, %v7738_v22  ;;  %v7778_v17 = vmul.f32 %v12763_v34, %v13254_v20  ;;  %v7820_v22 = vld [vmem:[#allocation3 + $0x85] sm:$0xff] }
 0x90d   : > { %v7660_v40 = vmul.f32 %v12679_v3, %v12353_v24  ;;  %v7609_v29 = vadd.f32 %v7601_v26, %v7580_v41  ;;  %v7775_v18 = vmul.f32 %v12763_v34, %v7762_v2  ;;  %v7868_v30 = vadd.f32 %v7860_v37, %v7839_v5  ;;  %v7796_v41 = vld [vmem:[#allocation3 + $0xd4] sm:$0xff]  ;;  %v7849_v37 = vld [vmem:[#allocation3 + $0x86] sm:$0xff] }
 0x90e   : > { %v7869_v46 = vadd.f32 %v7861_v12, %v7840_v42  ;;  %v7641_v52 = vadd.f32 %v7633_v59, %v7612_v36  ;;  %v7730_v11 = vadd.f32 %v7722_v28, %v7701_v35  ;;  %v7757_v45 = vadd.f32 %v7749_v39, %v7728_v25  ;;  %v7825_v12 = vld [vmem:[#allocation3 + $0xd5] sm:$0xff] }
 0x90f   : > { %v7668_v51 = vadd.f32 %v7660_v40, %v7639_v48  ;;  %v7783_v49 = vadd.f32 %v7775_v18, %v7754_v6  ;;  %v8852_v31 = vmul.f32 -1.442695, %v7868_v30  ;;  %v7630_v38 = vmul.f32 %v12662_v32, %v12273_v14 }
 0x910   : > { %v7690_v20 = vmul.f32 %v12706_v62, %v12363_v57  ;;  %v10312_v9 = vmov 1   ;;  %v10313_v15 = vmov 0   ;;  %v7692_v59 = vmul.f32 %v12706_v62, %v12606_v33 }
 0x911   : > { %10093 = vset.pattern.permute.xlu1 %v10312_v9  ;;  %10097 = vset.pattern.permute.xlu0 %v10313_v15  ;;  %v7780_v28 = vmul.f32 %v12763_v34, %v7767_v27  ;;  %v7804_v6 = vmul.f32 %v12780_v21, %v7791_v53  ;;  %v8853_v39 = vmul.f32 -1.442695, %v7869_v46  ;;  %v7807_v14 = vmul.f32 %v12780_v21, %v13257_v10  ;;  %v7854_v46 = vld [vmem:[#allocation3 + $0xd6] sm:$0xff] }
 0x912   : > { %v7638_v32 = vadd.f32 %v7630_v38, %v7609_v29  ;;  %v7670_v13 = vadd.f32 %v7662_v56, %v7641_v52  ;;  %v7698_v57 = vadd.f32 %v7690_v20, %v7668_v51  ;;  %v7759_v36 = vadd.f32 %v7751_v19, %v7730_v11 }
 0x913   : > { %v7786_v48 = vadd.f32 %v7778_v17, %v7757_v45  ;;  %v7812_v58 = vadd.f32 %v7804_v6, %v7783_v49  ;;  %10209 = vpow2.f32 %v8852_v31  ;;  %v7719_v33 = vmul.f32 %v12721_v54, %v12373_v63  ;;  %v13264_v6 = vld [vmem:[#allocation30_spill] sm:$0xff] }
 0x914   : > { %10211 = vpow2.f32 %v8853_v39  ;;  %v7721_v35 = vmul.f32 %v12721_v54, %v12646_v1  ;;  %v7659_v25 = vmul.f32 %v12679_v3, %v12283_v47  ;;  %v7833_v10 = vmul.f32 %v12793_v4, %v7820_v22 }
 0x915   : > { %v7809_v2 = vmul.f32 %v12780_v21, %v7796_v41  ;;  %v7836_v5 = vmul.f32 %v12793_v4, %v13259_v60  ;;  %v7700_v42 = vadd.f32 %v7692_v59, %v7670_v13  ;;  %v7727_v26 = vadd.f32 %v7719_v33, %v7698_v57  ;;  %v13266_v41 = vld [vmem:[#allocation33_spill] sm:$0xff] }
 0x916   : > { %v7667_v56 = vadd.f32 %v7659_v25, %v7638_v32  ;;  %v7788_v63 = vadd.f32 %v7780_v28, %v7759_v36  ;;  %v7815_v19 = vadd.f32 %v7807_v14, %v7786_v48  ;;  %v7841_v17 = vadd.f32 %v7833_v10, %v7812_v58  ;;  %v13265_v14 = vld [vmem:[#allocation38_spill] sm:$0xff]  ;;  %v13267_v48 = vld [vmem:[#allocation31_spill] sm:$0xff] }
 0x917   : > { %v7748_v1 = vmul.f32 %v12738_v7, %v12383_v50  ;;  %v7750_v47 = vmul.f32 %v12738_v7, %v12666_v43  ;;  %v7689_v3 = vmul.f32 %v12706_v62, %v12293_v23  ;;  %v7862_v40 = vmul.f32 %v12811_v61, %v7849_v37  ;;  %v13268_v58 = vld [vmem:[#allocation39_spill] sm:$0xff] }
 0x918   : > { %v7838_v60 = vmul.f32 %v12793_v4, %v7825_v12  ;;  %v7865_v29 = vmul.f32 %v12811_v61, %v13263_v0  ;;  %v7729_v18 = vadd.f32 %v7721_v35, %v7700_v42  ;;  %v7817_v52 = vadd.f32 %v7809_v2, %v7788_v63  ;;  %v13269_v2 = vld [vmem:[#allocation56_spill] sm:$0xff]  ;;  %v13270_v42 = vld [vmem:[#allocation50_spill] sm:$0xff]  ;;  %v13271_v12 = vld [vmem:[#allocation41_spill] sm:$0xff] }
 0x919   : > { %v7756_v30 = vadd.f32 %v7748_v1, %v7727_v26  ;;  %v7697_v27 = vadd.f32 %v7689_v3, %v7667_v56  ;;  %v7844_v51 = vadd.f32 %v7836_v5, %v7815_v19  ;;  %v7870_v50 = vadd.f32 %v7862_v40, %v7841_v17 }
 0x91a   : > { %v7777_v43 = vmul.f32 %v12763_v34, %v12395_v16  ;;  %v7779_v23 = vmul.f32 %v12763_v34, %v12689_v44  ;;  %v7718_v62 = vmul.f32 %v12721_v54, %v12303_v55  ;;  %v7867_v0 = vmul.f32 %v12811_v61, %v7854_v46 }
 0x91b   : > { %v7758_v53 = vadd.f32 %v7750_v47, %v7729_v18  ;;  %v7846_v20 = vadd.f32 %v7838_v60, %v7817_v52  ;;  %v7873_v59 = vadd.f32 %v7865_v29, %v7844_v51  ;;  %v8854_v28 = vmul.f32 -1.442695, %v7870_v50  ;;  %v13272_v47 = vld [vmem:[#allocation32_spill] sm:$0xff] }
 0x91c   : > { %v7785_v49 = vadd.f32 %v7777_v43, %v7756_v30  ;;  %v7726_v38 = vadd.f32 %v7718_v62, %v7697_v27  ;;  %v7806_v16 = vmul.f32 %v12780_v21, %v12405_v8  ;;  %v7747_v44 = vmul.f32 %v12738_v7, %v13264_v6 }
 0x91d   : > { %v10210_v11 = vpop.eup %10209  ;;  %v7808_v55 = vmul.f32 %v12780_v21, %v13265_v14  ;;  %v7787_v54 = vadd.f32 %v7779_v23, %v7758_v53  ;;  %v7875_v57 = vadd.f32 %v7867_v0, %v7846_v20  ;;  %v8857_v22 = vmul.f32 -1.442695, %v7873_v59 }
 0x91e   : > { %v10212_v45 = vpop.eup %10211  ;;  %v7900_v31 = vadd.f32 1.0, %v10210_v11  ;;  %v7814_v32 = vadd.f32 %v7806_v16, %v7785_v49  ;;  %v7755_v13 = vadd.f32 %v7747_v44, %v7726_v38  ;;  %v7835_v36 = vmul.f32 %v12793_v4, %v13266_v41 }
 0x91f   : > { %v7901_v39 = vadd.f32 1.0, %v10212_v45  ;;  %v7776_v8 = vmul.f32 %v12763_v34, %v13267_v48  ;;  %v7837_v7 = vmul.f32 %v12793_v4, %v13268_v58  ;;  %v7816_v33 = vadd.f32 %v7808_v55, %v7787_v54 }
 0x920   : > { %10213 = vrcp.f32 %v7900_v31  ;;  %v7843_v35 = vadd.f32 %v7835_v36, %v7814_v32  ;;  %v8859_v10 = vmul.f32 -1.442695, %v7875_v57  ;;  %v7864_v5 = vmul.f32 %v12811_v61, %v13269_v2 }
 0x921   : > { %10215 = vpow2.f32 %v8854_v28  ;;  %v7784_v25 = vadd.f32 %v7776_v8, %v7755_v13  ;;  %v7805_v26 = vmul.f32 %v12780_v21, %v13270_v42  ;;  %v7866_v56 = vmul.f32 %v12811_v61, %v13271_v12  ;;  %v13273_v13 = vld [vmem:[#allocation19_spill] sm:$0xff]  ;;  %v13274_v42 = vld [vmem:[#allocation22_spill] sm:$0xff] }
 0x922   : > { %10217 = vrcp.f32 %v7901_v39  ;;  %v7845_v34 = vadd.f32 %v7837_v7, %v7816_v33  ;;  %v7872_v63 = vadd.f32 %v7864_v5, %v7843_v35  ;;  %v7834_v3 = vmul.f32 %v12793_v4, %v13272_v47 }
 0x923   : > { %10219 = vpow2.f32 %v8857_v22  ;;  %v7813_v19 = vadd.f32 %v7805_v26, %v7784_v25  ;;  %v10314_v21 = vmov 2   ;;  %v7863_v27 = vmul.f32 %v12811_v61, %v12353_v24 }
 0x924   : > { %10221 = vpow2.f32 %v8859_v10  ;;  %v7874_v40 = vadd.f32 %v7866_v56, %v7845_v34  ;;  %v8856_v60 = vmul.f32 -1.442695, %v7872_v63  ;;  %v10315_v50 = vmov 3  }
 0x925   : > { %v7842_v18 = vadd.f32 %v7834_v3, %v7813_v19 }
 0x926   : > { %10223 = vpow2.f32 %v8856_v60  ;;  %v8858_v52 = vmul.f32 -1.442695, %v7874_v40 }
 0x927   : > { %v7871_v4 = vadd.f32 %v7863_v27, %v7842_v18  ;;  %v13276_v18 = vld [vmem:[#allocation11_spill] sm:$0xff]  ;;  %v13277_v27 = vld [vmem:[#allocation18_spill] sm:$0xff] }
 0x929   : > { %v8855_v11 = vmul.f32 -1.442695, %v7871_v4 }
 0x92a   : > { %v10214_v37 = vpop.eup %10213 }
 0x92b   : > { %7926 = vperm.xlu1 %10093, %v10214_v37   ;;  %v8068_v17 = vsub.f32 1.0, %v10214_v37  ;;  %v10216_v1 = vpop.eup %10215 }
 0x92c   : > { %v10218_v29 = vpop.eup %10217  ;;  %v7902_v30 = vadd.f32 1.0, %v10216_v1 }
 0x92d   : > { %8118 = vperm.xlu0 %10097, %v8068_v17   ;;  %v10220_v46 = vpop.eup %10219  ;;  %v8069_v53 = vsub.f32 1.0, %v10218_v29 }
 0x92e   : > { %v7905_v51 = vadd.f32 1.0, %v10220_v46  ;;  %10225 = vrcp.f32 %v7902_v30  ;;  %v10222_v43 = vpop.eup %10221 }
 0x92f   : > { %10094 = vset.pattern.permute.xlu1 %v10314_v21  ;;  %10227 = vpow2.f32 %v8858_v52  ;;  %v7907_v24 = vadd.f32 1.0, %v10222_v43 }
 0x930   : > { %7973 = vperm.xlu1 %10094, %v10214_v37   ;;  %10229 = vrcp.f32 %v7905_v51  ;;  %v10224_v61 = vpop.eup %10223 }
 0x931   : > { %10098 = vset.pattern.permute.xlu0 %v10312_v9  ;;  %10231 = vpow2.f32 %v8855_v11  ;;  %v7904_v62 = vadd.f32 1.0, %v10224_v61 }
 0x932   : > { %7931 = vperm.xlu0 %10098, %v10218_v29   ;;  %10233 = vrcp.f32 %v7907_v24 }
 0x933   : > { %10235 = vrcp.f32 %v7904_v62 }
 0x934   : > { %10095 = vset.pattern.permute.xlu1 %v10315_v50 }
 0x935   : > { %8013 = vperm.xlu1 %10095, %v10214_v37  }
 0x936   : > { %10100 = vset.pattern.permute.xlu0 %v10315_v50 }
 0x937   : > { %8017 = vperm.xlu0 %10100, %v10218_v29  }
 0x938   : > { %v10226_v23 = vpop.eup %10225 }
 0x939   : > { %10096 = vset.pattern.permute.xlu1 %v10313_v15  ;;  %v10228_v45 = vpop.eup %10227  ;;  %v8070_v16 = vsub.f32 1.0, %v10226_v23 }
 0x93a   : > { %8077 = vperm.xlu1 %10096, %v10214_v37   ;;  %v10230_v0 = vpop.eup %10229  ;;  %v7906_v49 = vadd.f32 1.0, %v10228_v45  ;;  %v13275_v37 = vld [vmem:[#allocation10_spill] sm:$0xff] }
 0x93b   : > { %10101 = vset.pattern.permute.xlu0 %v10313_v15  ;;  %v10232_v31 = vpop.eup %10231  ;;  %v8073_v39 = vsub.f32 1.0, %v10230_v0 }
 0x93c   : > { %8081 = vperm.xlu0 %10101, %v10218_v29   ;;  %v10234_v38 = vpop.eup %10233  ;;  %10237 = vrcp.f32 %v7906_v49  ;;  %v7903_v20 = vadd.f32 1.0, %v10232_v31  ;;  %v13278_v31 = vld [vmem:[#allocation12_spill] sm:$0xff] }
 0x93d   : > { %v10236_v59 = vpop.eup %10235  ;;  %v8075_v14 = vsub.f32 1.0, %v10234_v38 }
 0x93e   : > { %10099 = vset.pattern.permute.xlu1 %v10314_v21  ;;  %10239 = vrcp.f32 %v7903_v20 }
 0x93f   : > { %7977 = vperm.xlu1 %10099, %v10218_v29  }
 0x940   : > { %10104 = vset.pattern.permute.xlu0 %v10314_v21 }
 0x941   : > { %7981 = vperm.xlu0 %10104, %v10226_v23  }
 0x943   : > { %10102 = vset.pattern.permute.xlu1 %v10313_v15 }
 0x944   : > { %8123 = vperm.xlu1 %10102, %v8069_v53  }
 0x945   : > { %7993 = vperm.xlu0 %10104, %v10230_v0  }
 0x946   : > { %v10238_v28 = vpop.eup %10237 }
 0x947   : > { %v8074_v55 = vsub.f32 1.0, %v10238_v28 }
 0x948   : > { %10103 = vset.pattern.permute.xlu1 %v10312_v9  ;;  %v10240_v6 = vpop.eup %10239 }
 0x949   : > { %7936 = vperm.xlu1 %10103, %v10226_v23   ;;  %8001 = vperm.xlu0 %10104, %v10234_v38   ;;  %v8071_v44 = vsub.f32 1.0, %v10240_v6 }
 0x94d   : > { %10105 = vset.pattern.permute.xlu1 %v10315_v50  ;;  %10110 = vset.pattern.permute.xlu0 %v10315_v50 }
 0x94e   : > { %8021 = vperm.xlu1 %10105, %v10226_v23   ;;  %8029 = vperm.xlu0 %10110, %v10236_v59  }
 0x952   : > { %10106 = vset.pattern.permute.xlu1 %v10313_v15  ;;  %8037 = vperm.xlu0 %10110, %v10238_v28  }
 0x953   : > { %8085 = vperm.xlu1 %10106, %v10226_v23  }
 0x956   : > { %10111 = vset.pattern.permute.xlu0 %v10313_v15 }
 0x957   : > { %8128 = vperm.xlu1 %10106, %v8070_v16   ;;  %8089 = vperm.xlu0 %10111, %v10240_v6  }
 0x95b   : > { %10107 = vset.pattern.permute.xlu1 %v10312_v9  ;;  %8097 = vperm.xlu0 %10111, %v10230_v0   ;;  %v8072_v9 = vsub.f32 1.0, %v10236_v59 }
 0x95c   : > { %7941 = vperm.xlu1 %10107, %v10240_v6  }
 0x95f   : > { %8133 = vperm.xlu0 %10111, %v8071_v44  }
 0x960   : > { %7946 = vperm.xlu1 %10107, %v10236_v59  }
 0x963   : > { %8143 = vperm.xlu0 %10111, %v8073_v39  }
 0x964   : > { %7951 = vperm.xlu1 %10107, %v10230_v0  }
 0x967   : > { %8153 = vperm.xlu0 %10111, %v8075_v14  }
 0x968   : > { %7956 = vperm.xlu1 %10107, %v10238_v28  }
 0x96b   : > { %8105 = vperm.xlu0 %10111, %v10234_v38  }
 0x96c   : > { %7961 = vperm.xlu1 %10107, %v10234_v38  }
 0x970   : > { %10108 = vset.pattern.permute.xlu1 %v10314_v21 }
 0x971   : > { %7985 = vperm.xlu1 %10108, %v10240_v6  }
 0x975   : > { %7989 = vperm.xlu1 %10108, %v10236_v59  }
 0x979   : > { %7997 = vperm.xlu1 %10108, %v10238_v28  }
 0x97d   : > { %10109 = vset.pattern.permute.xlu1 %v10315_v50 }
 0x97e   : > { %8025 = vperm.xlu1 %10109, %v10240_v6  }
 0x982   : > { %8033 = vperm.xlu1 %10109, %v10230_v0  }
 0x986   : > { %8041 = vperm.xlu1 %10109, %v10234_v38  }
 0x98a   : > { %10112 = vset.pattern.permute.xlu1 %v10313_v15 }
 0x98b   : > { %8093 = vperm.xlu1 %10112, %v10236_v59  }
 0x98f   : > { %8138 = vperm.xlu1 %10112, %v8072_v9  }
 0x993   : > { %8148 = vperm.xlu1 %10112, %v8074_v55  }
 0x997   : > { %8101 = vperm.xlu1 %10112, %v10238_v28  }
 0x9aa   : > { %v7927_v54 = vpop.permute.xlu1 %7926 }
 0x9ab   : > { %v7964_v22 = vmul.f32 %v7927_v54, %v13273_v13 }
 0x9ac   : > { %v8119_v41 = vpop.permute.xlu0 %8118 }
 0x9af   : > { %v7974_v32 = vpop.permute.xlu1 %7973 }
 0x9b0   : > { %v8004_v57 = vmul.f32 %v7974_v32, %v13273_v13 }
 0x9b1   : > { %v7932_v58 = vpop.permute.xlu0 %7931 }
 0x9b2   : > { %v8052_v48 = vadd.f32 %v8004_v57, %v7964_v22  ;;  %v7965_v26 = vmul.f32 %v7932_v58, %v13274_v42 }
 0x9b4   : > { %v8014_v36 = vpop.permute.xlu1 %8013 }
 0x9b5   : > { %v8044_v8 = vmul.f32 %v8014_v36, %v13273_v13 }
 0x9b6   : > { %v8018_v2 = vpop.permute.xlu0 %8017 }
 0x9b7   : > { %v8060_v15 = vadd.f32 %v8052_v48, %v8044_v8  ;;  %v8045_v34 = vmul.f32 %v8018_v2, %v13274_v42  ;;  %v13280_v48 = vld [vmem:[#allocation25_spill] sm:$0xff] }
 0x9b9   : > { %v8156_v7 = vmul.f32 %v8119_v41, %v8060_v15  ;;  %v8078_v33 = vpop.permute.xlu1 %8077 }
 0x9ba   : > { %v8108_v35 = vmul.f32 %v8078_v33, %v13273_v13  ;;  %v13279_v13 = vld [vmem:[#allocation20_spill] sm:$0xff] }
 0x9bb   : > { %v8164_v25 = vadd.f32 %v8156_v7, %v8060_v15  ;;  %v8082_v1 = vpop.permute.xlu0 %8081 }
 0x9bc   : > { %v8109_v3 = vmul.f32 %v8082_v1, %v13274_v42 }
 0x9bd   : > { %v8172_v10 = vadd.f32 %v8164_v25, %v8108_v35 }
 0x9be   : > { %v7978_v5 = vpop.permute.xlu1 %7977 }
 0x9bf   : > { %v8180_v12 = vadd.f32 %v8172_v10, %v13275_v37  ;;  %v8005_v56 = vmul.f32 %v7978_v5, %v13274_v42  ;;  %v13281_v10 = vld [vmem:[#allocation24_spill] sm:$0xff] }
 0x9c0   : > { %v7982_v30 = vpop.permute.xlu0 %7981 }
 0x9c1   : > { %8188 = vst.msk [vmem:[%s12920_s29] sm:$0xff] %vm581_vm0, %v8180_v12  ;;  %v8053_v63 = vadd.f32 %v8005_v56, %v7965_v26  ;;  %v8006_v52 = vmul.f32 %v7982_v30, %v13277_v27 }
 0x9c3   : > { %v8124_v19 = vpop.permute.xlu1 %8123  ;;  %v8061_v17 = vadd.f32 %v8053_v63, %v8045_v34  ;;  %v13282_v63 = vld [vmem:[#allocation23_spill] sm:$0xff] }
 0x9c4   : > { %v7994_v11 = vpop.permute.xlu0 %7993 }
 0x9c5   : > { %v8157_v47 = vmul.f32 %v8124_v19, %v8061_v17  ;;  %v8009_v7 = vmul.f32 %v7994_v11, %v13280_v48 }
 0x9c7   : > { %v8165_v40 = vadd.f32 %v8157_v47, %v8061_v17 }
 0x9c8   : > { %v7937_v60 = vpop.permute.xlu1 %7936  ;;  %v8002_v0 = vpop.permute.xlu0 %8001 }
 0x9c9   : > { %v8173_v29 = vadd.f32 %v8165_v40, %v8109_v3  ;;  %v7966_v4 = vmul.f32 %v7937_v60, %v13277_v27  ;;  %v8011_v37 = vmul.f32 %v8002_v0, %v13281_v10 }
 0x9cb   : > { %v8181_v21 = vadd.f32 %v8173_v29, %v13276_v18  ;;  %v8054_v43 = vadd.f32 %v8006_v52, %v7966_v4  ;;  %v13283_v18 = vld [vmem:[#allocation13_spill] sm:$0xff] }
 0x9cc   : > { %v13284_v52 = vld [vmem:[#allocation21_spill] sm:$0xff] }
 0x9cd   : > { %8189 = vst.msk [vmem:[%s12920_s29 + $0x8] sm:$0xff] %vm581_vm0, %v8181_v21  ;;  %v8022_v46 = vpop.permute.xlu1 %8021  ;;  %v8030_v59 = vpop.permute.xlu0 %8029 }
 0x9ce   : > { %v8046_v51 = vmul.f32 %v8022_v46, %v13277_v27 }
 0x9d0   : > { %v8062_v24 = vadd.f32 %v8054_v43, %v8046_v51 }
 0x9d1   : > { %v8038_v16 = vpop.permute.xlu0 %8037 }
 0x9d2   : > { %v8086_v50 = vpop.permute.xlu1 %8085 }
 0x9d3   : > { %v8110_v62 = vmul.f32 %v8086_v50, %v13277_v27 }
 0x9d6   : > { %v8129_v61 = vpop.permute.xlu1 %8128  ;;  %v8090_v44 = vpop.permute.xlu0 %8089 }
 0x9d7   : > { %v8158_v23 = vmul.f32 %v8129_v61, %v8062_v24  ;;  %v8111_v12 = vmul.f32 %v8090_v44, %v13279_v13 }
 0x9d9   : > { %v8166_v45 = vadd.f32 %v8158_v23, %v8062_v24  ;;  %v8048_v24 = vmul.f32 %v8030_v59, %v13282_v63 }
 0x9da   : > { %v8098_v9 = vpop.permute.xlu0 %8097 }
 0x9db   : > { %v8174_v53 = vadd.f32 %v8166_v45, %v8110_v62  ;;  %v7942_v49 = vpop.permute.xlu1 %7941  ;;  %v8113_v29 = vmul.f32 %v8098_v9, %v13280_v48  ;;  %v13285_v62 = vld [vmem:[#allocation15_spill] sm:$0xff] }
 0x9dc   : > { %v7967_v22 = vmul.f32 %v7942_v49, %v13279_v13 }
 0x9dd   : > { %v8182_v38 = vadd.f32 %v8174_v53, %v13278_v31 }
 0x9de   : > { %v8134_v54 = vpop.permute.xlu0 %8133 }
 0x9df   : > { %8190 = vst.msk [vmem:[%s12920_s29 + $0x10] sm:$0xff] %vm581_vm0, %v8182_v38  ;;  %v7947_v20 = vpop.permute.xlu1 %7946 }
 0x9e0   : > { %v7968_v60 = vmul.f32 %v7947_v20, %v13282_v63  ;;  %v8050_v20 = vmul.f32 %v8038_v16, %v13284_v52 }
 0x9e2   : > { %v8144_v41 = vpop.permute.xlu0 %8143 }
 0x9e3   : > { %v7952_v28 = vpop.permute.xlu1 %7951 }
 0x9e4   : > { %v7969_v8 = vmul.f32 %v7952_v28, %v13280_v48  ;;  %v13286_v28 = vld [vmem:[#allocation17_spill] sm:$0xff] }
 0x9e6   : > { %v8057_v25 = vadd.f32 %v8009_v7, %v7969_v8  ;;  %v8154_v26 = vpop.permute.xlu0 %8153 }
 0x9e7   : > { %v7957_v6 = vpop.permute.xlu1 %7956 }
 0x9e8   : > { %v7970_v61 = vmul.f32 %v7957_v6, %v13284_v52 }
 0x9ea   : > { %v8106_v51 = vpop.permute.xlu0 %8105 }
 0x9eb   : > { %v7962_v39 = vpop.permute.xlu1 %7961  ;;  %v8115_v23 = vmul.f32 %v8106_v51, %v13281_v10 }
 0x9ec   : > { %v7971_v2 = vmul.f32 %v7962_v39, %v13281_v10 }
 0x9ee   : > { %v8059_v1 = vadd.f32 %v8011_v37, %v7971_v2 }
 0x9f0   : > { %v7986_v14 = vpop.permute.xlu1 %7985 }
 0x9f1   : > { %v8007_v57 = vmul.f32 %v7986_v14, %v13279_v13 }
 0x9f3   : > { %v8055_v15 = vadd.f32 %v8007_v57, %v7967_v22 }
 0x9f4   : > { %v7990_v55 = vpop.permute.xlu1 %7989 }
 0x9f5   : > { %v8008_v19 = vmul.f32 %v7990_v55, %v13282_v63 }
 0x9f7   : > { %v8056_v27 = vadd.f32 %v8008_v19, %v7968_v60 }
 0x9f8   : > { %v7998_v32 = vpop.permute.xlu1 %7997 }
 0x9f9   : > { %v8010_v4 = vmul.f32 %v7998_v32, %v13284_v52  ;;  %v8064_v49 = vadd.f32 %v8056_v27, %v8048_v24  ;;  %v13287_v32 = vld [vmem:[#allocation14_spill] sm:$0xff] }
 0x9fb   : > { %v8058_v53 = vadd.f32 %v8010_v4, %v7970_v61 }
 0x9fd   : > { %v8026_v36 = vpop.permute.xlu1 %8025  ;;  %v8066_v14 = vadd.f32 %v8058_v53, %v8050_v20 }
 0x9fe   : > { %v8047_v58 = vmul.f32 %v8026_v36, %v13279_v13  ;;  %v13288_v36 = vld [vmem:[#allocation16_spill] sm:$0xff] }
 0xa00   : > { %v8063_v33 = vadd.f32 %v8055_v15, %v8047_v58 }
 0xa01   : > { %v8034_v35 = vpop.permute.xlu1 %8033 }
 0xa02   : > { %v8159_v5 = vmul.f32 %v8134_v54, %v8063_v33  ;;  %v8049_v42 = vmul.f32 %v8034_v35, %v13280_v48 }
 0xa04   : > { %v8167_v56 = vadd.f32 %v8159_v5, %v8063_v33  ;;  %v8065_v34 = vadd.f32 %v8057_v25, %v8049_v42 }
 0xa05   : > { %v8042_v17 = vpop.permute.xlu1 %8041 }
 0xa06   : > { %v8175_v47 = vadd.f32 %v8167_v56, %v8111_v12  ;;  %v8161_v3 = vmul.f32 %v8144_v41, %v8065_v34  ;;  %v8051_v40 = vmul.f32 %v8042_v17, %v13281_v10 }
 0xa08   : > { %v8183_v21 = vadd.f32 %v8175_v47, %v13283_v18  ;;  %v8169_v30 = vadd.f32 %v8161_v3, %v8065_v34  ;;  %v8067_v46 = vadd.f32 %v8059_v1, %v8051_v40 }
 0xa0a   : > { %8191 = vst.msk [vmem:[%s12920_s29 + $0x18] sm:$0xff] %vm581_vm0, %v8183_v21  ;;  %v8177_v50 = vadd.f32 %v8169_v30, %v8113_v29  ;;  %v8163_v43 = vmul.f32 %v8154_v26, %v8067_v46  ;;  %v8094_v11 = vpop.permute.xlu1 %8093 }
 0xa0b   : > { %v8112_v6 = vmul.f32 %v8094_v11, %v13282_v63 }
 0xa0c   : > { %v8185_v45 = vadd.f32 %v8177_v50, %v13285_v62  ;;  %v8171_v0 = vadd.f32 %v8163_v43, %v8067_v46 }
 0xa0e   : > { %8193 = vst.msk [vmem:[%s12920_s29 + $0x28] sm:$0xff] %vm581_vm0, %v8185_v45  ;;  %v8179_v31 = vadd.f32 %v8171_v0, %v8115_v23  ;;  %v8139_v38 = vpop.permute.xlu1 %8138 }
 0xa0f   : > { %v8160_v59 = vmul.f32 %v8139_v38, %v8064_v49 }
 0xa10   : > { %v8187_v44 = vadd.f32 %v8179_v31, %v13286_v28 }
 0xa11   : > { %v8168_v39 = vadd.f32 %v8160_v59, %v8064_v49 }
 0xa12   : > { %8195 = vst.msk [vmem:[%s12920_s29 + $0x38] sm:$0xff] %vm581_vm0, %v8187_v44  ;;  %v8149_v9 = vpop.permute.xlu1 %8148 }
 0xa13   : > { %v8176_v55 = vadd.f32 %v8168_v39, %v8112_v6  ;;  %v8162_v54 = vmul.f32 %v8149_v9, %v8066_v14 }
 0xa15   : > { %v8184_v13 = vadd.f32 %v8176_v55, %v13287_v32  ;;  %v8170_v16 = vadd.f32 %v8162_v54, %v8066_v14 }
 0xa16   : > { %v8102_v57 = vpop.permute.xlu1 %8101 }
 0xa17   : > { %8192 = vst.msk [vmem:[%s12920_s29 + $0x20] sm:$0xff] %vm581_vm0, %v8184_v13  ;;  %v8114_v22 = vmul.f32 %v8102_v57, %v13284_v52 }
 0xa19   : > { %v8178_v41 = vadd.f32 %v8170_v16, %v8114_v22 }
 0xa1b   : > { %v8186_v48 = vadd.f32 %v8178_v41, %v13288_v36 }
 0xa1d   : > { %8194 = vst.msk [vmem:[%s12920_s29 + $0x30] sm:$0xff] %vm581_vm0, %v8186_v48 }
 0xa1e   : > { %10260 = shalt.err (!%p10257_p3)
}
 0xa1f   : > { %s10261_s20 = scalar_lea.hbm %s12973_s26, 1024  ;;  %s10265_s23 = scalar_lea.hbm %s13039_s16, 2048 }
 0xa20   : > { %p10262_p4 = scmp.ne.s32.totalorder %s12973_s26, %s10261_s20  ;;  %p10266_p9 = scmp.lt.u32.totalorder %s12973_s26, %s13039_s16 }
 0xa21   : > { %p10267_p10 = scmp.lt.u32.totalorder %s10265_s23, %s10261_s20  ;;  %p10269_p12 = scmp.lt.u32.totalorder %s10261_s20, %s12973_s26 }
 0xa22   : > { %p10263_p7 = pnand %p10262_p4, %p10442_p5 }
 0xa23   : > { %p10268_p11 = por %p10267_p10, %p10266_p9 }
 0xa24   : > { %p10264_p8 = pneg %p10263_p7 }
 0xa25   : > { %p10270_p13 = por %p10269_p12, %p10268_p11 }
 0xa27   : > { %p10271_p0 = pnand %p10270_p13, %p10264_p8 }
 0xa29   : > { %10274 = shalt.err (!%p10271_p0)
}
 0xa2a   : > { %s10317_s25 = smov 128   ;;  %s10318_s18 = smov 8  }
 0xa2b   : > { %10047 = dma.vmem_to_hbm [thread:$0]  (%p10442_p5), %s12975_s30, 1024, %s12973_s26, %s12982_s27, %s10317_s25, %s10317_s25, %s10318_s18  }
 0xa2c PF: > { %p10053_p1 = scmp.ge.s32.totalorder %s10309_s24, 2  ;;  %s8225_s1 = sand.u32 1, %s10297_s21  }
 0xa2d   : > { %s8226_s20 = scalar_lea.sflag [#allocation5], %s8225_s1 }
 0xa2e   : > { %p10050_p2 = pnand %p10053_p1, %p10446_p6 }
 0xa30   : > { %10292 = dma.done.wait (!%p10050_p2), %s8226_s20, 1024  }
 0xa31   : > { %10294 = vsyncadd (!%p10050_p2), %s8226_s20, 4294966272  ;;  %s13289_s24 = sld [smem:[#allocation8_spill]]  ;;  %s13290_s29 = sld [smem:[#allocation7_spill]] }
 0xa32   : > { %s13291_s23 = sld [smem:[#allocation9_spill]]  ;;  %s13292_s21 = smov %s10301_s22 }
 0xa37   : > { %p26_p3 = scmp.ge.s32.totalorder %s13289_s24, 4   ;;  %s13293_s22 = smov %s13290_s29 }
 0xa39   :  { %28 = sbr.rel (!%p26_p3) target bundleno = 6 (0x6), region = 196 }
 0xa40   :  { %8231 = vsyncpa [#allocation5], 1 }
 0xa41   :  { %8233 = vsyncpa [#allocation5 + $0x1], 1 }

</bundles_post_ra>
